<compile_context>
chip_gen: v7x
topology: tpu7x:2x2x1
jax: 0.10.0
libtpu: 0.0.40
codegen_flags: <defaults>
</compile_context>

<pallas_src>
import functools

import jax
import jax.numpy as jnp
import numpy as np
from jax import lax
from jax.experimental import pallas as pl
from jax.experimental.pallas import tpu as pltpu

EPS = 1e-5                                  # PyTorch BatchNorm2d default eps
VMEM_LIMIT = 48 * 1024 * 1024               # <= v7x's 64 MiB physical VMEM, with headroom
PER_STEP_VMEM_BUDGET = 20 * 1024 * 1024     # budget used when picking the batch tile Bt


# ---------------------------------------------------------------------------
# In-kernel building blocks
# ---------------------------------------------------------------------------
def _zero_halo(pad_ref, Bt, H, W, C):
    """Zero only the 1-pixel halo strips of the (Bt, H+2, W+2, C) padded scratch."""
    dt = pad_ref.dtype
    pad_ref[:, 0:1, :, :] = jnp.zeros((Bt, 1, W + 2, C), dt)           # top row
    pad_ref[:, H + 1:H + 2, :, :] = jnp.zeros((Bt, 1, W + 2, C), dt)   # bottom row
    pad_ref[:, :, 0:1, :] = jnp.zeros((Bt, H + 2, 1, C), dt)           # left col
    pad_ref[:, :, W + 1:W + 2, :] = jnp.zeros((Bt, H + 2, 1, C), dt)   # right col


def _conv3x3_from_padded(pad_ref, w_ref, Bt, H, W, Cin, Cout):
    """3x3 / stride-1 conv as 9 accumulating matmuls over shifted views of the padded scratch.

    pad_ref: (Bt, H+2, W+2, Cin) f32 VMEM scratch (halo already zero, interior filled).
    w_ref:   (9, Cin, Cout) bf16 VMEM ref, tap index t = kh*3 + kw.
    Returns the f32 accumulator of shape (Bt*H*W, Cout).
    """
    acc = jnp.zeros((Bt * H * W, Cout), jnp.float32)
    for kh in range(3):
        for kw in range(3):
            lhs = pad_ref[:, kh:kh + H, kw:kw + W, :].reshape(Bt * H * W, Cin)
            acc = acc + jnp.dot(lhs.astype(jnp.bfloat16), w_ref[kh * 3 + kw],
                                preferred_element_type=jnp.float32)
    return acc


# ---------------------------------------------------------------------------
# Pallas kernels
# ---------------------------------------------------------------------------
def conv_stats_kernel(x_ref, w_ref, y_ref, psum_ref, psq_ref, pad_ref,
                      *, Bt, H, W, Cin, Cout):
    """y = conv3x3(x) (bf16 out); per-step partial per-channel sum / sumsq from the f32 acc."""
    _zero_halo(pad_ref, Bt, H, W, Cin)
    pad_ref[:, 1:H + 1, 1:W + 1, :] = x_ref[...].astype(pad_ref.dtype)
    acc = _conv3x3_from_padded(pad_ref, w_ref, Bt, H, W, Cin, Cout)
    y_ref[...] = acc.reshape(Bt, H, W, Cout).astype(y_ref.dtype)
    psum_ref[...] = jnp.sum(acc, axis=0).reshape(1, 1, Cout)
    psq_ref[...] = jnp.sum(acc * acc, axis=0).reshape(1, 1, Cout)


def bn_relu_conv_stats_kernel(y1_ref, scale_ref, shift_ref, w_ref,
                              y2_ref, psum_ref, psq_ref, pad_ref,
                              *, Bt, H, W, C1, C2):
    """z = relu(bn1(y1)) written straight into the padded scratch; y2 = conv3x3(z) + stats."""
    _zero_halo(pad_ref, Bt, H, W, C1)
    z = jnp.maximum(
        y1_ref[...].astype(jnp.float32) * scale_ref[...].reshape(1, 1, 1, C1)
        + shift_ref[...].reshape(1, 1, 1, C1), 0.0)
    pad_ref[:, 1:H + 1, 1:W + 1, :] = z.astype(pad_ref.dtype)
    acc = _conv3x3_from_padded(pad_ref, w_ref, Bt, H, W, C1, C2)
    y2_ref[...] = acc.reshape(Bt, H, W, C2).astype(y2_ref.dtype)
    psum_ref[...] = jnp.sum(acc, axis=0).reshape(1, 1, C2)
    psq_ref[...] = jnp.sum(acc * acc, axis=0).reshape(1, 1, C2)


def bn_add_relu_kernel(y2_ref, scale_ref, shift_ref, x_ref, o_ref, *, C2):
    """out = relu(bn2(y2) + residual)."""
    y = (y2_ref[...].astype(jnp.float32) * scale_ref[...].reshape(1, 1, 1, C2)
         + shift_ref[...].reshape(1, 1, 1, C2) + x_ref[...].astype(jnp.float32))
    o_ref[...] = jnp.maximum(y, 0.0).astype(o_ref.dtype)


# ---------------------------------------------------------------------------
# Tiling / wrapper helpers
# ---------------------------------------------------------------------------
def _pick_batch_tile(N, H, W, Cin, Cout, budget=PER_STEP_VMEM_BUDGET):
    """Largest divisor Bt of N whose per-step working set fits the VMEM budget."""
    best = 1
    for bt in range(1, N + 1):
        if N % bt:
            continue
        x_blk = 2 * bt * H * W * Cin * 4               # double-buffered f32 input block
        y_blk = 2 * bt * H * W * Cout * 2              # double-buffered bf16 output block
        pad_scr = bt * (H + 2) * (W + 2) * Cin * 4     # f32 padded scratch (single copy)
        acc = bt * H * W * Cout * 4                    # f32 matmul accumulator
        if x_blk + y_blk + pad_scr + acc <= budget:
            best = bt
    return best


def _bn_scale_shift(psum, psq, gamma, beta, count):
    """Combine per-step partial stats and fold into BN scale/shift (tiny XLA ops, f32)."""
    mean = jnp.sum(psum, axis=0) / count               # (1, C)
    ex2 = jnp.sum(psq, axis=0) / count                 # (1, C)
    var = ex2 - mean * mean                            # biased variance (training-mode BN)
    scale = gamma * lax.rsqrt(var + EPS)
    shift = beta - mean * scale
    return scale, shift


# ---------------------------------------------------------------------------
# pallas_call wrappers
# ---------------------------------------------------------------------------
def conv3x3_stats(x, w_taps, *, bt):
    """Pass 1: conv1 over a batch grid + per-step partial per-channel sum/sumsq."""
    N, H, W, Cin = x.shape
    Cout = w_taps.shape[-1]
    G = N // bt
    kernel = functools.partial(conv_stats_kernel, Bt=bt, H=H, W=W, Cin=Cin, Cout=Cout)
    cost = pl.CostEstimate(
        flops=2 * N * H * W * 9 * Cin * Cout + 4 * N * H * W * Cout,
        transcendentals=0,
        bytes_accessed=4 * x.size + 2 * w_taps.size + 2 * N * H * W * Cout + 8 * G * Cout,
    )
    return pl.pallas_call(
        kernel,
        grid=(G,),
        in_specs=[
            pl.BlockSpec((bt, H, W, Cin), lambda n: (n, 0, 0, 0)),    # Bt images per step
            pl.BlockSpec((9, Cin, Cout), lambda n: (0, 0, 0)),        # resident bf16 weights
        ],
        out_specs=[
            pl.BlockSpec((bt, H, W, Cout), lambda n: (n, 0, 0, 0)),   # bf16 conv output
            pl.BlockSpec((1, 1, Cout), lambda n: (n, 0, 0)),          # partial sum (this step)
            pl.BlockSpec((1, 1, Cout), lambda n: (n, 0, 0)),          # partial sumsq
        ],
        out_shape=[
            jax.ShapeDtypeStruct((N, H, W, Cout), jnp.bfloat16),
            jax.ShapeDtypeStruct((G, 1, Cout), jnp.float32),
            jax.ShapeDtypeStruct((G, 1, Cout), jnp.float32),
        ],
        scratch_shapes=[pltpu.VMEM((bt, H + 2, W + 2, Cin), jnp.float32)],
        compiler_params=pltpu.CompilerParams(
            dimension_semantics=("parallel",),      # no carried state -> megacore-friendly
            vmem_limit_bytes=VMEM_LIMIT,
        ),
        cost_estimate=cost,
    )(x, w_taps)


def bn_relu_conv3x3_stats(y1, scale1, shift1, w_taps, *, bt):
    """Pass 2: bn1+relu applied on the fly (fused), conv2, plus conv2's partial stats."""
    N, H, W, C1 = y1.shape
    C2 = w_taps.shape[-1]
    G = N // bt
    kernel = functools.partial(bn_relu_conv_stats_kernel, Bt=bt, H=H, W=W, C1=C1, C2=C2)
    cost = pl.CostEstimate(
        flops=2 * N * H * W * 9 * C1 * C2 + 8 * N * H * W * C1,
        transcendentals=0,
        bytes_accessed=2 * y1.size + 2 * w_taps.size + 2 * N * H * W * C2 + 8 * G * C2,
    )
    return pl.pallas_call(
        kernel,
        grid=(G,),
        in_specs=[
            pl.BlockSpec((bt, H, W, C1), lambda n: (n, 0, 0, 0)),     # bf16 conv1 output tile
            pl.BlockSpec((1, C1), lambda n: (0, 0)),                  # bn1 scale (f32)
            pl.BlockSpec((1, C1), lambda n: (0, 0)),                  # bn1 shift (f32)
            pl.BlockSpec((9, C1, C2), lambda n: (0, 0, 0)),           # resident bf16 weights
        ],
        out_specs=[
            pl.BlockSpec((bt, H, W, C2), lambda n: (n, 0, 0, 0)),
            pl.BlockSpec((1, 1, C2), lambda n: (n, 0, 0)),
            pl.BlockSpec((1, 1, C2), lambda n: (n, 0, 0)),
        ],
        out_shape=[
            jax.ShapeDtypeStruct((N, H, W, C2), jnp.bfloat16),
            jax.ShapeDtypeStruct((G, 1, C2), jnp.float32),
            jax.ShapeDtypeStruct((G, 1, C2), jnp.float32),
        ],
        scratch_shapes=[pltpu.VMEM((bt, H + 2, W + 2, C1), jnp.float32)],
        compiler_params=pltpu.CompilerParams(
            dimension_semantics=("parallel",),
            vmem_limit_bytes=VMEM_LIMIT,
        ),
        cost_estimate=cost,
    )(y1, scale1, shift1, w_taps)


def bn_add_relu(y2, scale2, shift2, residual, *, bt):
    """Pass 3: bn2 + residual add + relu (pure elementwise, fully parallel batch axis)."""
    N, H, W, C2 = y2.shape
    G = N // bt
    kernel = functools.partial(bn_add_relu_kernel, C2=C2)
    cost = pl.CostEstimate(
        flops=4 * N * H * W * C2,
        transcendentals=0,
        bytes_accessed=2 * y2.size + 4 * residual.size + 4 * N * H * W * C2,
    )
    return pl.pallas_call(
        kernel,
        grid=(G,),
        in_specs=[
            pl.BlockSpec((bt, H, W, C2), lambda n: (n, 0, 0, 0)),
            pl.BlockSpec((1, C2), lambda n: (0, 0)),
            pl.BlockSpec((1, C2), lambda n: (0, 0)),
            pl.BlockSpec((bt, H, W, C2), lambda n: (n, 0, 0, 0)),     # residual = raw input
        ],
        out_specs=pl.BlockSpec((bt, H, W, C2), lambda n: (n, 0, 0, 0)),
        out_shape=jax.ShapeDtypeStruct((N, H, W, C2), residual.dtype),
        compiler_params=pltpu.CompilerParams(
            dimension_semantics=("parallel",),
            vmem_limit_bytes=VMEM_LIMIT,
        ),
        cost_estimate=cost,
    )(y2, scale2, shift2, residual)


# ---------------------------------------------------------------------------
# BasicBlock forward
# ---------------------------------------------------------------------------
def basic_block_forward_nhwc(x_nhwc, params):
    """BasicBlock.forward on NHWC activations (preferred entry point — no transposes)."""
    N, H, W, Cin = x_nhwc.shape
    C1 = params["w1"].shape[-1]
    C2 = params["w2"].shape[-1]
    count = N * H * W
    bt = _pick_batch_tile(N, H, W, max(Cin, C1), max(C1, C2))

    y1, s1, q1 = conv3x3_stats(x_nhwc, params["w1"], bt=bt)
    scale1, shift1 = _bn_scale_shift(s1, q1, params["g1"], params["b1"], count)

    y2, s2, q2 = bn_relu_conv3x3_stats(y1, scale1, shift1, params["w2"], bt=bt)
    scale2, shift2 = _bn_scale_shift(s2, q2, params["g2"], params["b2"], count)

    return bn_add_relu(y2, scale2, shift2, x_nhwc, bt=bt)


@jax.jit
def basic_block_forward(x_nchw, params):
    """NCHW wrapper kept only for PyTorch layout parity (transposes are XLA glue)."""
    x = jnp.transpose(x_nchw, (0, 2, 3, 1))                           # NCHW -> NHWC
    out = basic_block_forward_nhwc(x, params)
    return jnp.transpose(out, (0, 3, 1, 2))                           # NHWC -> NCHW


# ---------------------------------------------------------------------------
# Pure-JAX references (for correctness checks)
# ---------------------------------------------------------------------------
def reference_block(x_nchw, ref_w, params, quantize):
    """quantize=False: exact module (f32) semantics.
    quantize=True : bf16 rounding applied at the same points as the kernel (x, w, y1, z, y2),
                    with f32 accumulation + f32 BN stats — validates kernel structure tightly.
    """
    x = jnp.transpose(x_nchw, (0, 2, 3, 1))
    q = (lambda a: a.astype(jnp.bfloat16).astype(jnp.float32)) if quantize else (lambda a: a)

    def conv(xx, w):
        return lax.conv_general_dilated(
            q(xx), q(w), window_strides=(1, 1), padding="SAME",
            dimension_numbers=("NHWC", "HWIO", "NHWC"))

    def bn(y_apply, y_stats, g, b):
        m = jnp.mean(y_stats, axis=(0, 1, 2), keepdims=True)
        v = jnp.mean((y_stats - m) ** 2, axis=(0, 1, 2), keepdims=True)   # biased var
        scale = g.reshape(1, 1, 1, -1) * lax.rsqrt(v + EPS)
        shift = b.reshape(1, 1, 1, -1) - m * scale
        return y_apply * scale + shift

    y1 = conv(x, ref_w["w1_hwio"])
    z = jnp.maximum(bn(q(y1), y1, params["g1"], params["b1"]), 0.0)
    y2 = conv(z, ref_w["w2_hwio"])
    out = jnp.maximum(bn(q(y2), y2, params["g2"], params["b2"]) + x, 0.0)
    return jnp.transpose(out, (0, 3, 1, 2))


# ---------------------------------------------------------------------------
# Deterministic parameter construction + test
# ---------------------------------------------------------------------------
def make_params(key, inplanes, cfg):
    k1, k2, k3, k4, k5, k6 = jax.random.split(key, 6)
    # PyTorch conv weight layout (Cout, Cin, kh, kw) -> (kh, kw, Cin, Cout) -> (9, Cin, Cout)
    # tap ordering t = kh*3 + kw matches the in-kernel shifted-view loop.
    w1_oihw = jax.random.normal(k1, (cfg[0], inplanes, 3, 3), jnp.float32) * 0.1
    w2_oihw = jax.random.normal(k2, (cfg[1], cfg[0], 3, 3), jnp.float32) * 0.1

    def to_taps(w_oihw):
        w_hwio = jnp.transpose(w_oihw, (2, 3, 1, 0))
        return w_hwio, w_hwio.reshape(9, w_hwio.shape[2], w_hwio.shape[3])

    w1_hwio, w1_taps = to_taps(w1_oihw)
    w2_hwio, w2_taps = to_taps(w2_oihw)

    params = {
        "w1": w1_taps.astype(jnp.bfloat16),
        "w2": w2_taps.astype(jnp.bfloat16),
        "g1": 1.0 + 0.1 * jax.random.normal(k3, (1, cfg[0]), jnp.float32),
        "b1": 0.05 * jax.random.normal(k4, (1, cfg[0]), jnp.float32),
        "g2": 1.0 + 0.1 * jax.random.normal(k5, (1, cfg[1]), jnp.float32),
        "b2": 0.05 * jax.random.normal(k6, (1, cfg[1]), jnp.float32),
    }
    ref_weights = {"w1_hwio": w1_hwio, "w2_hwio": w2_hwio}
    return params, ref_weights


if __name__ == "__main__":
    key = jax.random.PRNGKey(0)
    kx, kp = jax.random.split(key)

    N, C, H, W = 2, 4, 16, 16          # inplanes=4, cfg=[4, 4], stride=1, downsample=None
    cfg = [4, 4]

    x = jax.random.normal(kx, (N, C, H, W), jnp.float32)
    params, ref_w = make_params(kp, C, cfg)

    out = jax.block_until_ready(basic_block_forward(x, params))

    # Structural check: reference quantized at exactly the kernel's bf16 points (tight).
    ref_q = jax.block_until_ready(reference_block(x, ref_w, params, quantize=True))
    np.testing.assert_allclose(np.asarray(out), np.asarray(ref_q), atol=2e-3, rtol=2e-3)

    # Module-semantics check vs pure f32; the gap is bf16 input/weight quantization by design.
    ref_f32 = jax.block_until_ready(reference_block(x, ref_w, params, quantize=False))
    np.testing.assert_allclose(np.asarray(out), np.asarray(ref_f32), atol=5e-2, rtol=5e-2)

    print("KERNEL_OK")
</pallas_src>

<mosaic_0001>
module attributes {stable_mosaic.version = 11 : i64} {
  func.func @conv_stats_kernel(%arg0: i32, %arg1: memref<2x16x16x4xf32, #tpu.memory_space<vmem>>, %arg2: memref<9x4x4xbf16, #tpu.memory_space<vmem>>, %arg3: memref<2x16x16x4xbf16, #tpu.memory_space<vmem>>, %arg4: memref<1x1x4xf32, #tpu.memory_space<vmem>>, %arg5: memref<1x1x4xf32, #tpu.memory_space<vmem>>, %arg6: memref<2x18x18x4xf32, #tpu.memory_space<vmem>>) attributes {dimension_semantics = [#tpu.dimension_semantics<parallel>], iteration_bounds = array<i64: 1>, scalar_prefetch = 0 : i64, scratch_operands = 1 : i64, tpu.core_type = #tpu.core_type<tc>, window_params = [{transform_indices = @transform_0, window_bounds = array<i64: 2, 16, 16, 4>}, {pipeline_mode = #tpu.pipeline_mode<synchronous>, transform_indices = @transform_1, window_bounds = array<i64: 9, 4, 4>}, {transform_indices = @transform_2, window_bounds = array<i64: 2, 16, 16, 4>}, {transform_indices = @transform_3, window_bounds = array<i64: 1, 1, 4>}, {transform_indices = @transform_4, window_bounds = array<i64: 1, 1, 4>}]} {
    %cst = arith.constant 0.000000e+00 : f32
    %0 = vector.broadcast %cst : f32 to vector<2x1x18x4xf32>
    %c0 = arith.constant 0 : index
    %c0_0 = arith.constant 0 : index
    %c0_1 = arith.constant 0 : index
    %c0_2 = arith.constant 0 : index
    %1 = vector.load %arg6[%c0, %c0_0, %c0_1, %c0_2] : memref<2x18x18x4xf32, #tpu.memory_space<vmem>>, vector<2x1x18x4xf32>
    tpu.vector_store %arg6[%c0, %c0_0, %c0_1, %c0_2], %0 {strides = array<i32>} : memref<2x18x18x4xf32, #tpu.memory_space<vmem>>, vector<2x1x18x4xf32>,
    %cst_3 = arith.constant 0.000000e+00 : f32
    %2 = vector.broadcast %cst_3 : f32 to vector<2x1x18x4xf32>
    %c0_4 = arith.constant 0 : index
    %c17 = arith.constant 17 : index
    %c0_5 = arith.constant 0 : index
    %c0_6 = arith.constant 0 : index
    %3 = vector.load %arg6[%c0_4, %c17, %c0_5, %c0_6] : memref<2x18x18x4xf32, #tpu.memory_space<vmem>>, vector<2x1x18x4xf32>
    tpu.vector_store %arg6[%c0_4, %c17, %c0_5, %c0_6], %2 {strides = array<i32>} : memref<2x18x18x4xf32, #tpu.memory_space<vmem>>, vector<2x1x18x4xf32>,
    %cst_7 = arith.constant 0.000000e+00 : f32
    %4 = vector.broadcast %cst_7 : f32 to vector<2x18x1x4xf32>
    %c0_8 = arith.constant 0 : index
    %c0_9 = arith.constant 0 : index
    %c0_10 = arith.constant 0 : index
    %c0_11 = arith.constant 0 : index
    %5 = vector.load %arg6[%c0_8, %c0_9, %c0_10, %c0_11] : memref<2x18x18x4xf32, #tpu.memory_space<vmem>>, vector<2x18x1x4xf32>
    tpu.vector_store %arg6[%c0_8, %c0_9, %c0_10, %c0_11], %4 {strides = array<i32>} : memref<2x18x18x4xf32, #tpu.memory_space<vmem>>, vector<2x18x1x4xf32>,
    %cst_12 = arith.constant 0.000000e+00 : f32
    %6 = vector.broadcast %cst_12 : f32 to vector<2x18x1x4xf32>
    %c0_13 = arith.constant 0 : index
    %c0_14 = arith.constant 0 : index
    %c17_15 = arith.constant 17 : index
    %c0_16 = arith.constant 0 : index
    %7 = vector.load %arg6[%c0_13, %c0_14, %c17_15, %c0_16] : memref<2x18x18x4xf32, #tpu.memory_space<vmem>>, vector<2x18x1x4xf32>
    tpu.vector_store %arg6[%c0_13, %c0_14, %c17_15, %c0_16], %6 {strides = array<i32>} : memref<2x18x18x4xf32, #tpu.memory_space<vmem>>, vector<2x18x1x4xf32>,
    %c0_17 = arith.constant 0 : index
    %c0_18 = arith.constant 0 : index
    %c0_19 = arith.constant 0 : index
    %c0_20 = arith.constant 0 : index
    %8 = vector.load %arg1[%c0_17, %c0_18, %c0_19, %c0_20] : memref<2x16x16x4xf32, #tpu.memory_space<vmem>>, vector<2x16x16x4xf32>
    %c0_21 = arith.constant 0 : index
    %c1 = arith.constant 1 : index
    %c1_22 = arith.constant 1 : index
    %c0_23 = arith.constant 0 : index
    %9 = vector.load %arg6[%c0_21, %c1, %c1_22, %c0_23] : memref<2x18x18x4xf32, #tpu.memory_space<vmem>>, vector<2x16x16x4xf32>
    tpu.vector_store %arg6[%c0_21, %c1, %c1_22, %c0_23], %8 {strides = array<i32>} : memref<2x18x18x4xf32, #tpu.memory_space<vmem>>, vector<2x16x16x4xf32>,
    %cst_24 = arith.constant 0.000000e+00 : f32
    %10 = vector.broadcast %cst_24 : f32 to vector<512x4xf32>
    %c0_25 = arith.constant 0 : index
    %c0_26 = arith.constant 0 : index
    %c0_27 = arith.constant 0 : index
    %c0_28 = arith.constant 0 : index
    %11 = vector.load %arg6[%c0_25, %c0_26, %c0_27, %c0_28] : memref<2x18x18x4xf32, #tpu.memory_space<vmem>>, vector<2x16x16x4xf32>
    %12 = vector.shape_cast %11 : vector<2x16x16x4xf32> to vector<512x4xf32>
    %13 = arith.truncf %12 : vector<512x4xf32> to vector<512x4xbf16>
    %c0_29 = arith.constant 0 : index
    %c0_30 = arith.constant 0 : index
    %c0_31 = arith.constant 0 : index
    %14 = vector.load %arg2[%c0_29, %c0_30, %c0_31] : memref<9x4x4xbf16, #tpu.memory_space<vmem>>, vector<1x4x4xbf16>
    %15 = vector.shape_cast %14 : vector<1x4x4xbf16> to vector<4x4xbf16>
    %cst_32 = arith.constant dense<0.000000e+00> : vector<512x4xf32>
    %16 = tpu.matmul %13, %15, %cst_32 {dimension_numbers = #tpu.dot_dimension_numbers<[1], [0], [0], [1], [0, 0, 1, 1], [], []>} : vector<512x4xbf16>, vector<4x4xbf16>, vector<512x4xf32> -> vector<512x4xf32>
    %17 = arith.addf %10, %16 : vector<512x4xf32>
    %c0_33 = arith.constant 0 : index
    %c0_34 = arith.constant 0 : index
    %c1_35 = arith.constant 1 : index
    %c0_36 = arith.constant 0 : index
    %18 = vector.load %arg6[%c0_33, %c0_34, %c1_35, %c0_36] : memref<2x18x18x4xf32, #tpu.memory_space<vmem>>, vector<2x16x16x4xf32>
    %19 = vector.shape_cast %18 : vector<2x16x16x4xf32> to vector<512x4xf32>
    %20 = arith.truncf %19 : vector<512x4xf32> to vector<512x4xbf16>
    %c1_37 = arith.constant 1 : index
    %c0_38 = arith.constant 0 : index
    %c0_39 = arith.constant 0 : index
    %21 = vector.load %arg2[%c1_37, %c0_38, %c0_39] : memref<9x4x4xbf16, #tpu.memory_space<vmem>>, vector<1x4x4xbf16>
    %22 = vector.shape_cast %21 : vector<1x4x4xbf16> to vector<4x4xbf16>
    %cst_40 = arith.constant dense<0.000000e+00> : vector<512x4xf32>
    %23 = tpu.matmul %20, %22, %cst_40 {dimension_numbers = #tpu.dot_dimension_numbers<[1], [0], [0], [1], [0, 0, 1, 1], [], []>} : vector<512x4xbf16>, vector<4x4xbf16>, vector<512x4xf32> -> vector<512x4xf32>
    %24 = arith.addf %17, %23 : vector<512x4xf32>
    %c0_41 = arith.constant 0 : index
    %c0_42 = arith.constant 0 : index
    %c2 = arith.constant 2 : index
    %c0_43 = arith.constant 0 : index
    %25 = vector.load %arg6[%c0_41, %c0_42, %c2, %c0_43] : memref<2x18x18x4xf32, #tpu.memory_space<vmem>>, vector<2x16x16x4xf32>
    %26 = vector.shape_cast %25 : vector<2x16x16x4xf32> to vector<512x4xf32>
    %27 = arith.truncf %26 : vector<512x4xf32> to vector<512x4xbf16>
    %c2_44 = arith.constant 2 : index
    %c0_45 = arith.constant 0 : index
    %c0_46 = arith.constant 0 : index
    %28 = vector.load %arg2[%c2_44, %c0_45, %c0_46] : memref<9x4x4xbf16, #tpu.memory_space<vmem>>, vector<1x4x4xbf16>
    %29 = vector.shape_cast %28 : vector<1x4x4xbf16> to vector<4x4xbf16>
    %cst_47 = arith.constant dense<0.000000e+00> : vector<512x4xf32>
    %30 = tpu.matmul %27, %29, %cst_47 {dimension_numbers = #tpu.dot_dimension_numbers<[1], [0], [0], [1], [0, 0, 1, 1], [], []>} : vector<512x4xbf16>, vector<4x4xbf16>, vector<512x4xf32> -> vector<512x4xf32>
    %31 = arith.addf %24, %30 : vector<512x4xf32>
    %c0_48 = arith.constant 0 : index
    %c1_49 = arith.constant 1 : index
    %c0_50 = arith.constant 0 : index
    %c0_51 = arith.constant 0 : index
    %32 = vector.load %arg6[%c0_48, %c1_49, %c0_50, %c0_51] : memref<2x18x18x4xf32, #tpu.memory_space<vmem>>, vector<2x16x16x4xf32>
    %33 = vector.shape_cast %32 : vector<2x16x16x4xf32> to vector<512x4xf32>
    %34 = arith.truncf %33 : vector<512x4xf32> to vector<512x4xbf16>
    %c3 = arith.constant 3 : index
    %c0_52 = arith.constant 0 : index
    %c0_53 = arith.constant 0 : index
    %35 = vector.load %arg2[%c3, %c0_52, %c0_53] : memref<9x4x4xbf16, #tpu.memory_space<vmem>>, vector<1x4x4xbf16>
    %36 = vector.shape_cast %35 : vector<1x4x4xbf16> to vector<4x4xbf16>
    %cst_54 = arith.constant dense<0.000000e+00> : vector<512x4xf32>
    %37 = tpu.matmul %34, %36, %cst_54 {dimension_numbers = #tpu.dot_dimension_numbers<[1], [0], [0], [1], [0, 0, 1, 1], [], []>} : vector<512x4xbf16>, vector<4x4xbf16>, vector<512x4xf32> -> vector<512x4xf32>
    %38 = arith.addf %31, %37 : vector<512x4xf32>
    %c0_55 = arith.constant 0 : index
    %c1_56 = arith.constant 1 : index
    %c1_57 = arith.constant 1 : index
    %c0_58 = arith.constant 0 : index
    %39 = vector.load %arg6[%c0_55, %c1_56, %c1_57, %c0_58] : memref<2x18x18x4xf32, #tpu.memory_space<vmem>>, vector<2x16x16x4xf32>
    %40 = vector.shape_cast %39 : vector<2x16x16x4xf32> to vector<512x4xf32>
    %41 = arith.truncf %40 : vector<512x4xf32> to vector<512x4xbf16>
    %c4 = arith.constant 4 : index
    %c0_59 = arith.constant 0 : index
    %c0_60 = arith.constant 0 : index
    %42 = vector.load %arg2[%c4, %c0_59, %c0_60] : memref<9x4x4xbf16, #tpu.memory_space<vmem>>, vector<1x4x4xbf16>
    %43 = vector.shape_cast %42 : vector<1x4x4xbf16> to vector<4x4xbf16>
    %cst_61 = arith.constant dense<0.000000e+00> : vector<512x4xf32>
    %44 = tpu.matmul %41, %43, %cst_61 {dimension_numbers = #tpu.dot_dimension_numbers<[1], [0], [0], [1], [0, 0, 1, 1], [], []>} : vector<512x4xbf16>, vector<4x4xbf16>, vector<512x4xf32> -> vector<512x4xf32>
    %45 = arith.addf %38, %44 : vector<512x4xf32>
    %c0_62 = arith.constant 0 : index
    %c1_63 = arith.constant 1 : index
    %c2_64 = arith.constant 2 : index
    %c0_65 = arith.constant 0 : index
    %46 = vector.load %arg6[%c0_62, %c1_63, %c2_64, %c0_65] : memref<2x18x18x4xf32, #tpu.memory_space<vmem>>, vector<2x16x16x4xf32>
    %47 = vector.shape_cast %46 : vector<2x16x16x4xf32> to vector<512x4xf32>
    %48 = arith.truncf %47 : vector<512x4xf32> to vector<512x4xbf16>
    %c5 = arith.constant 5 : index
    %c0_66 = arith.constant 0 : index
    %c0_67 = arith.constant 0 : index
    %49 = vector.load %arg2[%c5, %c0_66, %c0_67] : memref<9x4x4xbf16, #tpu.memory_space<vmem>>, vector<1x4x4xbf16>
    %50 = vector.shape_cast %49 : vector<1x4x4xbf16> to vector<4x4xbf16>
    %cst_68 = arith.constant dense<0.000000e+00> : vector<512x4xf32>
    %51 = tpu.matmul %48, %50, %cst_68 {dimension_numbers = #tpu.dot_dimension_numbers<[1], [0], [0], [1], [0, 0, 1, 1], [], []>} : vector<512x4xbf16>, vector<4x4xbf16>, vector<512x4xf32> -> vector<512x4xf32>
    %52 = arith.addf %45, %51 : vector<512x4xf32>
    %c0_69 = arith.constant 0 : index
    %c2_70 = arith.constant 2 : index
    %c0_71 = arith.constant 0 : index
    %c0_72 = arith.constant 0 : index
    %53 = vector.load %arg6[%c0_69, %c2_70, %c0_71, %c0_72] : memref<2x18x18x4xf32, #tpu.memory_space<vmem>>, vector<2x16x16x4xf32>
    %54 = vector.shape_cast %53 : vector<2x16x16x4xf32> to vector<512x4xf32>
    %55 = arith.truncf %54 : vector<512x4xf32> to vector<512x4xbf16>
    %c6 = arith.constant 6 : index
    %c0_73 = arith.constant 0 : index
    %c0_74 = arith.constant 0 : index
    %56 = vector.load %arg2[%c6, %c0_73, %c0_74] : memref<9x4x4xbf16, #tpu.memory_space<vmem>>, vector<1x4x4xbf16>
    %57 = vector.shape_cast %56 : vector<1x4x4xbf16> to vector<4x4xbf16>
    %cst_75 = arith.constant dense<0.000000e+00> : vector<512x4xf32>
    %58 = tpu.matmul %55, %57, %cst_75 {dimension_numbers = #tpu.dot_dimension_numbers<[1], [0], [0], [1], [0, 0, 1, 1], [], []>} : vector<512x4xbf16>, vector<4x4xbf16>, vector<512x4xf32> -> vector<512x4xf32>
    %59 = arith.addf %52, %58 : vector<512x4xf32>
    %c0_76 = arith.constant 0 : index
    %c2_77 = arith.constant 2 : index
    %c1_78 = arith.constant 1 : index
    %c0_79 = arith.constant 0 : index
    %60 = vector.load %arg6[%c0_76, %c2_77, %c1_78, %c0_79] : memref<2x18x18x4xf32, #tpu.memory_space<vmem>>, vector<2x16x16x4xf32>
    %61 = vector.shape_cast %60 : vector<2x16x16x4xf32> to vector<512x4xf32>
    %62 = arith.truncf %61 : vector<512x4xf32> to vector<512x4xbf16>
    %c7 = arith.constant 7 : index
    %c0_80 = arith.constant 0 : index
    %c0_81 = arith.constant 0 : index
    %63 = vector.load %arg2[%c7, %c0_80, %c0_81] : memref<9x4x4xbf16, #tpu.memory_space<vmem>>, vector<1x4x4xbf16>
    %64 = vector.shape_cast %63 : vector<1x4x4xbf16> to vector<4x4xbf16>
    %cst_82 = arith.constant dense<0.000000e+00> : vector<512x4xf32>
    %65 = tpu.matmul %62, %64, %cst_82 {dimension_numbers = #tpu.dot_dimension_numbers<[1], [0], [0], [1], [0, 0, 1, 1], [], []>} : vector<512x4xbf16>, vector<4x4xbf16>, vector<512x4xf32> -> vector<512x4xf32>
    %66 = arith.addf %59, %65 : vector<512x4xf32>
    %c0_83 = arith.constant 0 : index
    %c2_84 = arith.constant 2 : index
    %c2_85 = arith.constant 2 : index
    %c0_86 = arith.constant 0 : index
    %67 = vector.load %arg6[%c0_83, %c2_84, %c2_85, %c0_86] : memref<2x18x18x4xf32, #tpu.memory_space<vmem>>, vector<2x16x16x4xf32>
    %68 = vector.shape_cast %67 : vector<2x16x16x4xf32> to vector<512x4xf32>
    %69 = arith.truncf %68 : vector<512x4xf32> to vector<512x4xbf16>
    %c8 = arith.constant 8 : index
    %c0_87 = arith.constant 0 : index
    %c0_88 = arith.constant 0 : index
    %70 = vector.load %arg2[%c8, %c0_87, %c0_88] : memref<9x4x4xbf16, #tpu.memory_space<vmem>>, vector<1x4x4xbf16>
    %71 = vector.shape_cast %70 : vector<1x4x4xbf16> to vector<4x4xbf16>
    %cst_89 = arith.constant dense<0.000000e+00> : vector<512x4xf32>
    %72 = tpu.matmul %69, %71, %cst_89 {dimension_numbers = #tpu.dot_dimension_numbers<[1], [0], [0], [1], [0, 0, 1, 1], [], []>} : vector<512x4xbf16>, vector<4x4xbf16>, vector<512x4xf32> -> vector<512x4xf32>
    %73 = arith.addf %66, %72 : vector<512x4xf32>
    %74 = vector.shape_cast %73 : vector<512x4xf32> to vector<2x16x16x4xf32>
    %75 = arith.truncf %74 : vector<2x16x16x4xf32> to vector<2x16x16x4xbf16>
    %c0_90 = arith.constant 0 : index
    %c0_91 = arith.constant 0 : index
    %c0_92 = arith.constant 0 : index
    %c0_93 = arith.constant 0 : index
    %76 = vector.load %arg3[%c0_90, %c0_91, %c0_92, %c0_93] : memref<2x16x16x4xbf16, #tpu.memory_space<vmem>>, vector<2x16x16x4xbf16>
    tpu.vector_store %arg3[%c0_90, %c0_91, %c0_92, %c0_93], %75 {strides = array<i32>} : memref<2x16x16x4xbf16, #tpu.memory_space<vmem>>, vector<2x16x16x4xbf16>,
    %cst_94 = arith.constant dense<0.000000e+00> : vector<4xf32>
    %77 = vector.multi_reduction <add>, %73, %cst_94 [0] : vector<512x4xf32> to vector<4xf32>
    %78 = vector.shape_cast %77 : vector<4xf32> to vector<1x1x4xf32>
    %c0_95 = arith.constant 0 : index
    %c0_96 = arith.constant 0 : index
    %c0_97 = arith.constant 0 : index
    %79 = vector.load %arg4[%c0_95, %c0_96, %c0_97] : memref<1x1x4xf32, #tpu.memory_space<vmem>>, vector<1x1x4xf32>
    tpu.vector_store %arg4[%c0_95, %c0_96, %c0_97], %78 {strides = array<i32>} : memref<1x1x4xf32, #tpu.memory_space<vmem>>, vector<1x1x4xf32>,
    %80 = arith.mulf %73, %73 : vector<512x4xf32>
    %cst_98 = arith.constant dense<0.000000e+00> : vector<4xf32>
    %81 = vector.multi_reduction <add>, %80, %cst_98 [0] : vector<512x4xf32> to vector<4xf32>
    %82 = vector.shape_cast %81 : vector<4xf32> to vector<1x1x4xf32>
    %c0_99 = arith.constant 0 : index
    %c0_100 = arith.constant 0 : index
    %c0_101 = arith.constant 0 : index
    %83 = vector.load %arg5[%c0_99, %c0_100, %c0_101] : memref<1x1x4xf32, #tpu.memory_space<vmem>>, vector<1x1x4xf32>
    tpu.vector_store %arg5[%c0_99, %c0_100, %c0_101], %82 {strides = array<i32>} : memref<1x1x4xf32, #tpu.memory_space<vmem>>, vector<1x1x4xf32>,
    return
  }
  func.func @transform_0(%arg0: i32) -> (i32, i32, i32, i32) {
    %c0_i32 = arith.constant 0 : i32
    %c0_i32_0 = arith.constant 0 : i32
    %c0_i32_1 = arith.constant 0 : i32
    %c0_i32_2 = arith.constant 0 : i32
    return %arg0, %c0_i32, %c0_i32_0, %c0_i32_1 : i32, i32, i32, i32
  }
  func.func @transform_1(%arg0: i32) -> (i32, i32, i32) {
    %c0_i32 = arith.constant 0 : i32
    %c0_i32_0 = arith.constant 0 : i32
    %c0_i32_1 = arith.constant 0 : i32
    %c0_i32_2 = arith.constant 0 : i32
    return %c0_i32, %c0_i32_0, %c0_i32_1 : i32, i32, i32
  }
  func.func @transform_2(%arg0: i32) -> (i32, i32, i32, i32) {
    %c0_i32 = arith.constant 0 : i32
    %c0_i32_0 = arith.constant 0 : i32
    %c0_i32_1 = arith.constant 0 : i32
    %c0_i32_2 = arith.constant 0 : i32
    return %arg0, %c0_i32, %c0_i32_0, %c0_i32_1 : i32, i32, i32, i32
  }
  func.func @transform_3(%arg0: i32) -> (i32, i32, i32) {
    %c0_i32 = arith.constant 0 : i32
    %c0_i32_0 = arith.constant 0 : i32
    %c0_i32_1 = arith.constant 0 : i32
    return %arg0, %c0_i32, %c0_i32_0 : i32, i32, i32
  }
  func.func @transform_4(%arg0: i32) -> (i32, i32, i32) {
    %c0_i32 = arith.constant 0 : i32
    %c0_i32_0 = arith.constant 0 : i32
    %c0_i32_1 = arith.constant 0 : i32
    return %arg0, %c0_i32, %c0_i32_0 : i32, i32, i32
  }
}

module attributes {stable_mosaic.version = 11 : i64} {
  func.func @bn_add_relu_kernel(%arg0: i32, %arg1: memref<2x16x16x4xbf16, #tpu.memory_space<vmem>>, %arg2: memref<1x4xf32, #tpu.memory_space<vmem>>, %arg3: memref<1x4xf32, #tpu.memory_space<vmem>>, %arg4: memref<2x16x16x4xf32, #tpu.memory_space<vmem>>, %arg5: memref<2x16x16x4xf32, #tpu.memory_space<vmem>>) attributes {dimension_semantics = [#tpu.dimension_semantics<parallel>], iteration_bounds = array<i64: 1>, scalar_prefetch = 0 : i64, scratch_operands = 0 : i64, tpu.core_type = #tpu.core_type<tc>, window_params = [{transform_indices = @transform_0, window_bounds = array<i64: 2, 16, 16, 4>}, {pipeline_mode = #tpu.pipeline_mode<synchronous>, transform_indices = @transform_1, window_bounds = array<i64: 1, 4>}, {pipeline_mode = #tpu.pipeline_mode<synchronous>, transform_indices = @transform_2, window_bounds = array<i64: 1, 4>}, {transform_indices = @transform_3, window_bounds = array<i64: 2, 16, 16, 4>}, {transform_indices = @transform_4, window_bounds = array<i64: 2, 16, 16, 4>}]} {
    %c0 = arith.constant 0 : index
    %c0_0 = arith.constant 0 : index
    %c0_1 = arith.constant 0 : index
    %c0_2 = arith.constant 0 : index
    %0 = vector.load %arg1[%c0, %c0_0, %c0_1, %c0_2] : memref<2x16x16x4xbf16, #tpu.memory_space<vmem>>, vector<2x16x16x4xbf16>
    %1 = arith.extf %0 : vector<2x16x16x4xbf16> to vector<2x16x16x4xf32>
    %c0_3 = arith.constant 0 : index
    %c0_4 = arith.constant 0 : index
    %2 = vector.load %arg2[%c0_3, %c0_4] : memref<1x4xf32, #tpu.memory_space<vmem>>, vector<1x4xf32>
    %3 = vector.shape_cast %2 : vector<1x4xf32> to vector<1x1x1x4xf32>
    %4 = vector.broadcast %3 : vector<1x1x1x4xf32> to vector<2x16x16x4xf32>
    %5 = arith.mulf %1, %4 : vector<2x16x16x4xf32>
    %c0_5 = arith.constant 0 : index
    %c0_6 = arith.constant 0 : index
    %6 = vector.load %arg3[%c0_5, %c0_6] : memref<1x4xf32, #tpu.memory_space<vmem>>, vector<1x4xf32>
    %7 = vector.shape_cast %6 : vector<1x4xf32> to vector<1x1x1x4xf32>
    %8 = vector.broadcast %7 : vector<1x1x1x4xf32> to vector<2x16x16x4xf32>
    %9 = arith.addf %5, %8 : vector<2x16x16x4xf32>
    %c0_7 = arith.constant 0 : index
    %c0_8 = arith.constant 0 : index
    %c0_9 = arith.constant 0 : index
    %c0_10 = arith.constant 0 : index
    %10 = vector.load %arg4[%c0_7, %c0_8, %c0_9, %c0_10] : memref<2x16x16x4xf32, #tpu.memory_space<vmem>>, vector<2x16x16x4xf32>
    %11 = arith.addf %9, %10 : vector<2x16x16x4xf32>
    %cst = arith.constant 0.000000e+00 : f32
    %12 = vector.broadcast %cst : f32 to vector<2x16x16x4xf32>
    %13 = arith.maximumf %11, %12 : vector<2x16x16x4xf32>
    %c0_11 = arith.constant 0 : index
    %c0_12 = arith.constant 0 : index
    %c0_13 = arith.constant 0 : index
    %c0_14 = arith.constant 0 : index
    %14 = vector.load %arg5[%c0_11, %c0_12, %c0_13, %c0_14] : memref<2x16x16x4xf32, #tpu.memory_space<vmem>>, vector<2x16x16x4xf32>
    tpu.vector_store %arg5[%c0_11, %c0_12, %c0_13, %c0_14], %13 {strides = array<i32>} : memref<2x16x16x4xf32, #tpu.memory_space<vmem>>, vector<2x16x16x4xf32>,
    return
  }
  func.func @transform_0(%arg0: i32) -> (i32, i32, i32, i32) {
    %c0_i32 = arith.constant 0 : i32
    %c0_i32_0 = arith.constant 0 : i32
    %c0_i32_1 = arith.constant 0 : i32
    %c0_i32_2 = arith.constant 0 : i32
    return %arg0, %c0_i32, %c0_i32_0, %c0_i32_1 : i32, i32, i32, i32
  }
  func.func @transform_1(%arg0: i32) -> (i32, i32) {
    %c0_i32 = arith.constant 0 : i32
    %c0_i32_0 = arith.constant 0 : i32
    %c0_i32_1 = arith.constant 0 : i32
    return %c0_i32, %c0_i32_0 : i32, i32
  }
  func.func @transform_2(%arg0: i32) -> (i32, i32) {
    %c0_i32 = arith.constant 0 : i32
    %c0_i32_0 = arith.constant 0 : i32
    %c0_i32_1 = arith.constant 0 : i32
    return %c0_i32, %c0_i32_0 : i32, i32
  }
  func.func @transform_3(%arg0: i32) -> (i32, i32, i32, i32) {
    %c0_i32 = arith.constant 0 : i32
    %c0_i32_0 = arith.constant 0 : i32
    %c0_i32_1 = arith.constant 0 : i32
    %c0_i32_2 = arith.constant 0 : i32
    return %arg0, %c0_i32, %c0_i32_0, %c0_i32_1 : i32, i32, i32, i32
  }
  func.func @transform_4(%arg0: i32) -> (i32, i32, i32, i32) {
    %c0_i32 = arith.constant 0 : i32
    %c0_i32_0 = arith.constant 0 : i32
    %c0_i32_1 = arith.constant 0 : i32
    %c0_i32_2 = arith.constant 0 : i32
    return %arg0, %c0_i32, %c0_i32_0, %c0_i32_1 : i32, i32, i32, i32
  }
}

module attributes {stable_mosaic.version = 11 : i64} {
  func.func @bn_relu_conv_stats_kernel(%arg0: i32, %arg1: memref<2x16x16x4xbf16, #tpu.memory_space<vmem>>, %arg2: memref<1x4xf32, #tpu.memory_space<vmem>>, %arg3: memref<1x4xf32, #tpu.memory_space<vmem>>, %arg4: memref<9x4x4xbf16, #tpu.memory_space<vmem>>, %arg5: memref<2x16x16x4xbf16, #tpu.memory_space<vmem>>, %arg6: memref<1x1x4xf32, #tpu.memory_space<vmem>>, %arg7: memref<1x1x4xf32, #tpu.memory_space<vmem>>, %arg8: memref<2x18x18x4xf32, #tpu.memory_space<vmem>>) attributes {dimension_semantics = [#tpu.dimension_semantics<parallel>], iteration_bounds = array<i64: 1>, scalar_prefetch = 0 : i64, scratch_operands = 1 : i64, tpu.core_type = #tpu.core_type<tc>, window_params = [{transform_indices = @transform_0, window_bounds = array<i64: 2, 16, 16, 4>}, {pipeline_mode = #tpu.pipeline_mode<synchronous>, transform_indices = @transform_1, window_bounds = array<i64: 1, 4>}, {pipeline_mode = #tpu.pipeline_mode<synchronous>, transform_indices = @transform_2, window_bounds = array<i64: 1, 4>}, {pipeline_mode = #tpu.pipeline_mode<synchronous>, transform_indices = @transform_3, window_bounds = array<i64: 9, 4, 4>}, {transform_indices = @transform_4, window_bounds = array<i64: 2, 16, 16, 4>}, {transform_indices = @transform_5, window_bounds = array<i64: 1, 1, 4>}, {transform_indices = @transform_6, window_bounds = array<i64: 1, 1, 4>}]} {
    %cst = arith.constant 0.000000e+00 : f32
    %0 = vector.broadcast %cst : f32 to vector<2x1x18x4xf32>
    %c0 = arith.constant 0 : index
    %c0_0 = arith.constant 0 : index
    %c0_1 = arith.constant 0 : index
    %c0_2 = arith.constant 0 : index
    %1 = vector.load %arg8[%c0, %c0_0, %c0_1, %c0_2] : memref<2x18x18x4xf32, #tpu.memory_space<vmem>>, vector<2x1x18x4xf32>
    tpu.vector_store %arg8[%c0, %c0_0, %c0_1, %c0_2], %0 {strides = array<i32>} : memref<2x18x18x4xf32, #tpu.memory_space<vmem>>, vector<2x1x18x4xf32>,
    %cst_3 = arith.constant 0.000000e+00 : f32
    %2 = vector.broadcast %cst_3 : f32 to vector<2x1x18x4xf32>
    %c0_4 = arith.constant 0 : index
    %c17 = arith.constant 17 : index
    %c0_5 = arith.constant 0 : index
    %c0_6 = arith.constant 0 : index
    %3 = vector.load %arg8[%c0_4, %c17, %c0_5, %c0_6] : memref<2x18x18x4xf32, #tpu.memory_space<vmem>>, vector<2x1x18x4xf32>
    tpu.vector_store %arg8[%c0_4, %c17, %c0_5, %c0_6], %2 {strides = array<i32>} : memref<2x18x18x4xf32, #tpu.memory_space<vmem>>, vector<2x1x18x4xf32>,
    %cst_7 = arith.constant 0.000000e+00 : f32
    %4 = vector.broadcast %cst_7 : f32 to vector<2x18x1x4xf32>
    %c0_8 = arith.constant 0 : index
    %c0_9 = arith.constant 0 : index
    %c0_10 = arith.constant 0 : index
    %c0_11 = arith.constant 0 : index
    %5 = vector.load %arg8[%c0_8, %c0_9, %c0_10, %c0_11] : memref<2x18x18x4xf32, #tpu.memory_space<vmem>>, vector<2x18x1x4xf32>
    tpu.vector_store %arg8[%c0_8, %c0_9, %c0_10, %c0_11], %4 {strides = array<i32>} : memref<2x18x18x4xf32, #tpu.memory_space<vmem>>, vector<2x18x1x4xf32>,
    %cst_12 = arith.constant 0.000000e+00 : f32
    %6 = vector.broadcast %cst_12 : f32 to vector<2x18x1x4xf32>
    %c0_13 = arith.constant 0 : index
    %c0_14 = arith.constant 0 : index
    %c17_15 = arith.constant 17 : index
    %c0_16 = arith.constant 0 : index
    %7 = vector.load %arg8[%c0_13, %c0_14, %c17_15, %c0_16] : memref<2x18x18x4xf32, #tpu.memory_space<vmem>>, vector<2x18x1x4xf32>
    tpu.vector_store %arg8[%c0_13, %c0_14, %c17_15, %c0_16], %6 {strides = array<i32>} : memref<2x18x18x4xf32, #tpu.memory_space<vmem>>, vector<2x18x1x4xf32>,
    %c0_17 = arith.constant 0 : index
    %c0_18 = arith.constant 0 : index
    %c0_19 = arith.constant 0 : index
    %c0_20 = arith.constant 0 : index
    %8 = vector.load %arg1[%c0_17, %c0_18, %c0_19, %c0_20] : memref<2x16x16x4xbf16, #tpu.memory_space<vmem>>, vector<2x16x16x4xbf16>
    %9 = arith.extf %8 : vector<2x16x16x4xbf16> to vector<2x16x16x4xf32>
    %c0_21 = arith.constant 0 : index
    %c0_22 = arith.constant 0 : index
    %10 = vector.load %arg2[%c0_21, %c0_22] : memref<1x4xf32, #tpu.memory_space<vmem>>, vector<1x4xf32>
    %11 = vector.shape_cast %10 : vector<1x4xf32> to vector<1x1x1x4xf32>
    %12 = vector.broadcast %11 : vector<1x1x1x4xf32> to vector<2x16x16x4xf32>
    %13 = arith.mulf %9, %12 : vector<2x16x16x4xf32>
    %c0_23 = arith.constant 0 : index
    %c0_24 = arith.constant 0 : index
    %14 = vector.load %arg3[%c0_23, %c0_24] : memref<1x4xf32, #tpu.memory_space<vmem>>, vector<1x4xf32>
    %15 = vector.shape_cast %14 : vector<1x4xf32> to vector<1x1x1x4xf32>
    %16 = vector.broadcast %15 : vector<1x1x1x4xf32> to vector<2x16x16x4xf32>
    %17 = arith.addf %13, %16 : vector<2x16x16x4xf32>
    %cst_25 = arith.constant 0.000000e+00 : f32
    %18 = vector.broadcast %cst_25 : f32 to vector<2x16x16x4xf32>
    %19 = arith.maximumf %17, %18 : vector<2x16x16x4xf32>
    %c0_26 = arith.constant 0 : index
    %c1 = arith.constant 1 : index
    %c1_27 = arith.constant 1 : index
    %c0_28 = arith.constant 0 : index
    %20 = vector.load %arg8[%c0_26, %c1, %c1_27, %c0_28] : memref<2x18x18x4xf32, #tpu.memory_space<vmem>>, vector<2x16x16x4xf32>
    tpu.vector_store %arg8[%c0_26, %c1, %c1_27, %c0_28], %19 {strides = array<i32>} : memref<2x18x18x4xf32, #tpu.memory_space<vmem>>, vector<2x16x16x4xf32>,
    %cst_29 = arith.constant 0.000000e+00 : f32
    %21 = vector.broadcast %cst_29 : f32 to vector<512x4xf32>
    %c0_30 = arith.constant 0 : index
    %c0_31 = arith.constant 0 : index
    %c0_32 = arith.constant 0 : index
    %c0_33 = arith.constant 0 : index
    %22 = vector.load %arg8[%c0_30, %c0_31, %c0_32, %c0_33] : memref<2x18x18x4xf32, #tpu.memory_space<vmem>>, vector<2x16x16x4xf32>
    %23 = vector.shape_cast %22 : vector<2x16x16x4xf32> to vector<512x4xf32>
    %24 = arith.truncf %23 : vector<512x4xf32> to vector<512x4xbf16>
    %c0_34 = arith.constant 0 : index
    %c0_35 = arith.constant 0 : index
    %c0_36 = arith.constant 0 : index
    %25 = vector.load %arg4[%c0_34, %c0_35, %c0_36] : memref<9x4x4xbf16, #tpu.memory_space<vmem>>, vector<1x4x4xbf16>
    %26 = vector.shape_cast %25 : vector<1x4x4xbf16> to vector<4x4xbf16>
    %cst_37 = arith.constant dense<0.000000e+00> : vector<512x4xf32>
    %27 = tpu.matmul %24, %26, %cst_37 {dimension_numbers = #tpu.dot_dimension_numbers<[1], [0], [0], [1], [0, 0, 1, 1], [], []>} : vector<512x4xbf16>, vector<4x4xbf16>, vector<512x4xf32> -> vector<512x4xf32>
    %28 = arith.addf %21, %27 : vector<512x4xf32>
    %c0_38 = arith.constant 0 : index
    %c0_39 = arith.constant 0 : index
    %c1_40 = arith.constant 1 : index
    %c0_41 = arith.constant 0 : index
    %29 = vector.load %arg8[%c0_38, %c0_39, %c1_40, %c0_41] : memref<2x18x18x4xf32, #tpu.memory_space<vmem>>, vector<2x16x16x4xf32>
    %30 = vector.shape_cast %29 : vector<2x16x16x4xf32> to vector<512x4xf32>
    %31 = arith.truncf %30 : vector<512x4xf32> to vector<512x4xbf16>
    %c1_42 = arith.constant 1 : index
    %c0_43 = arith.constant 0 : index
    %c0_44 = arith.constant 0 : index
    %32 = vector.load %arg4[%c1_42, %c0_43, %c0_44] : memref<9x4x4xbf16, #tpu.memory_space<vmem>>, vector<1x4x4xbf16>
    %33 = vector.shape_cast %32 : vector<1x4x4xbf16> to vector<4x4xbf16>
    %cst_45 = arith.constant dense<0.000000e+00> : vector<512x4xf32>
    %34 = tpu.matmul %31, %33, %cst_45 {dimension_numbers = #tpu.dot_dimension_numbers<[1], [0], [0], [1], [0, 0, 1, 1], [], []>} : vector<512x4xbf16>, vector<4x4xbf16>, vector<512x4xf32> -> vector<512x4xf32>
    %35 = arith.addf %28, %34 : vector<512x4xf32>
    %c0_46 = arith.constant 0 : index
    %c0_47 = arith.constant 0 : index
    %c2 = arith.constant 2 : index
    %c0_48 = arith.constant 0 : index
    %36 = vector.load %arg8[%c0_46, %c0_47, %c2, %c0_48] : memref<2x18x18x4xf32, #tpu.memory_space<vmem>>, vector<2x16x16x4xf32>
    %37 = vector.shape_cast %36 : vector<2x16x16x4xf32> to vector<512x4xf32>
    %38 = arith.truncf %37 : vector<512x4xf32> to vector<512x4xbf16>
    %c2_49 = arith.constant 2 : index
    %c0_50 = arith.constant 0 : index
    %c0_51 = arith.constant 0 : index
    %39 = vector.load %arg4[%c2_49, %c0_50, %c0_51] : memref<9x4x4xbf16, #tpu.memory_space<vmem>>, vector<1x4x4xbf16>
    %40 = vector.shape_cast %39 : vector<1x4x4xbf16> to vector<4x4xbf16>
    %cst_52 = arith.constant dense<0.000000e+00> : vector<512x4xf32>
    %41 = tpu.matmul %38, %40, %cst_52 {dimension_numbers = #tpu.dot_dimension_numbers<[1], [0], [0], [1], [0, 0, 1, 1], [], []>} : vector<512x4xbf16>, vector<4x4xbf16>, vector<512x4xf32> -> vector<512x4xf32>
    %42 = arith.addf %35, %41 : vector<512x4xf32>
    %c0_53 = arith.constant 0 : index
    %c1_54 = arith.constant 1 : index
    %c0_55 = arith.constant 0 : index
    %c0_56 = arith.constant 0 : index
    %43 = vector.load %arg8[%c0_53, %c1_54, %c0_55, %c0_56] : memref<2x18x18x4xf32, #tpu.memory_space<vmem>>, vector<2x16x16x4xf32>
    %44 = vector.shape_cast %43 : vector<2x16x16x4xf32> to vector<512x4xf32>
    %45 = arith.truncf %44 : vector<512x4xf32> to vector<512x4xbf16>
    %c3 = arith.constant 3 : index
    %c0_57 = arith.constant 0 : index
    %c0_58 = arith.constant 0 : index
    %46 = vector.load %arg4[%c3, %c0_57, %c0_58] : memref<9x4x4xbf16, #tpu.memory_space<vmem>>, vector<1x4x4xbf16>
    %47 = vector.shape_cast %46 : vector<1x4x4xbf16> to vector<4x4xbf16>
    %cst_59 = arith.constant dense<0.000000e+00> : vector<512x4xf32>
    %48 = tpu.matmul %45, %47, %cst_59 {dimension_numbers = #tpu.dot_dimension_numbers<[1], [0], [0], [1], [0, 0, 1, 1], [], []>} : vector<512x4xbf16>, vector<4x4xbf16>, vector<512x4xf32> -> vector<512x4xf32>
    %49 = arith.addf %42, %48 : vector<512x4xf32>
    %c0_60 = arith.constant 0 : index
    %c1_61 = arith.constant 1 : index
    %c1_62 = arith.constant 1 : index
    %c0_63 = arith.constant 0 : index
    %50 = vector.load %arg8[%c0_60, %c1_61, %c1_62, %c0_63] : memref<2x18x18x4xf32, #tpu.memory_space<vmem>>, vector<2x16x16x4xf32>
    %51 = vector.shape_cast %50 : vector<2x16x16x4xf32> to vector<512x4xf32>
    %52 = arith.truncf %51 : vector<512x4xf32> to vector<512x4xbf16>
    %c4 = arith.constant 4 : index
    %c0_64 = arith.constant 0 : index
    %c0_65 = arith.constant 0 : index
    %53 = vector.load %arg4[%c4, %c0_64, %c0_65] : memref<9x4x4xbf16, #tpu.memory_space<vmem>>, vector<1x4x4xbf16>
    %54 = vector.shape_cast %53 : vector<1x4x4xbf16> to vector<4x4xbf16>
    %cst_66 = arith.constant dense<0.000000e+00> : vector<512x4xf32>
    %55 = tpu.matmul %52, %54, %cst_66 {dimension_numbers = #tpu.dot_dimension_numbers<[1], [0], [0], [1], [0, 0, 1, 1], [], []>} : vector<512x4xbf16>, vector<4x4xbf16>, vector<512x4xf32> -> vector<512x4xf32>
    %56 = arith.addf %49, %55 : vector<512x4xf32>
    %c0_67 = arith.constant 0 : index
    %c1_68 = arith.constant 1 : index
    %c2_69 = arith.constant 2 : index
    %c0_70 = arith.constant 0 : index
    %57 = vector.load %arg8[%c0_67, %c1_68, %c2_69, %c0_70] : memref<2x18x18x4xf32, #tpu.memory_space<vmem>>, vector<2x16x16x4xf32>
    %58 = vector.shape_cast %57 : vector<2x16x16x4xf32> to vector<512x4xf32>
    %59 = arith.truncf %58 : vector<512x4xf32> to vector<512x4xbf16>
    %c5 = arith.constant 5 : index
    %c0_71 = arith.constant 0 : index
    %c0_72 = arith.constant 0 : index
    %60 = vector.load %arg4[%c5, %c0_71, %c0_72] : memref<9x4x4xbf16, #tpu.memory_space<vmem>>, vector<1x4x4xbf16>
    %61 = vector.shape_cast %60 : vector<1x4x4xbf16> to vector<4x4xbf16>
    %cst_73 = arith.constant dense<0.000000e+00> : vector<512x4xf32>
    %62 = tpu.matmul %59, %61, %cst_73 {dimension_numbers = #tpu.dot_dimension_numbers<[1], [0], [0], [1], [0, 0, 1, 1], [], []>} : vector<512x4xbf16>, vector<4x4xbf16>, vector<512x4xf32> -> vector<512x4xf32>
    %63 = arith.addf %56, %62 : vector<512x4xf32>
    %c0_74 = arith.constant 0 : index
    %c2_75 = arith.constant 2 : index
    %c0_76 = arith.constant 0 : index
    %c0_77 = arith.constant 0 : index
    %64 = vector.load %arg8[%c0_74, %c2_75, %c0_76, %c0_77] : memref<2x18x18x4xf32, #tpu.memory_space<vmem>>, vector<2x16x16x4xf32>
    %65 = vector.shape_cast %64 : vector<2x16x16x4xf32> to vector<512x4xf32>
    %66 = arith.truncf %65 : vector<512x4xf32> to vector<512x4xbf16>
    %c6 = arith.constant 6 : index
    %c0_78 = arith.constant 0 : index
    %c0_79 = arith.constant 0 : index
    %67 = vector.load %arg4[%c6, %c0_78, %c0_79] : memref<9x4x4xbf16, #tpu.memory_space<vmem>>, vector<1x4x4xbf16>
    %68 = vector.shape_cast %67 : vector<1x4x4xbf16> to vector<4x4xbf16>
    %cst_80 = arith.constant dense<0.000000e+00> : vector<512x4xf32>
    %69 = tpu.matmul %66, %68, %cst_80 {dimension_numbers = #tpu.dot_dimension_numbers<[1], [0], [0], [1], [0, 0, 1, 1], [], []>} : vector<512x4xbf16>, vector<4x4xbf16>, vector<512x4xf32> -> vector<512x4xf32>
    %70 = arith.addf %63, %69 : vector<512x4xf32>
    %c0_81 = arith.constant 0 : index
    %c2_82 = arith.constant 2 : index
    %c1_83 = arith.constant 1 : index
    %c0_84 = arith.constant 0 : index
    %71 = vector.load %arg8[%c0_81, %c2_82, %c1_83, %c0_84] : memref<2x18x18x4xf32, #tpu.memory_space<vmem>>, vector<2x16x16x4xf32>
    %72 = vector.shape_cast %71 : vector<2x16x16x4xf32> to vector<512x4xf32>
    %73 = arith.truncf %72 : vector<512x4xf32> to vector<512x4xbf16>
    %c7 = arith.constant 7 : index
    %c0_85 = arith.constant 0 : index
    %c0_86 = arith.constant 0 : index
    %74 = vector.load %arg4[%c7, %c0_85, %c0_86] : memref<9x4x4xbf16, #tpu.memory_space<vmem>>, vector<1x4x4xbf16>
    %75 = vector.shape_cast %74 : vector<1x4x4xbf16> to vector<4x4xbf16>
    %cst_87 = arith.constant dense<0.000000e+00> : vector<512x4xf32>
    %76 = tpu.matmul %73, %75, %cst_87 {dimension_numbers = #tpu.dot_dimension_numbers<[1], [0], [0], [1], [0, 0, 1, 1], [], []>} : vector<512x4xbf16>, vector<4x4xbf16>, vector<512x4xf32> -> vector<512x4xf32>
    %77 = arith.addf %70, %76 : vector<512x4xf32>
    %c0_88 = arith.constant 0 : index
    %c2_89 = arith.constant 2 : index
    %c2_90 = arith.constant 2 : index
    %c0_91 = arith.constant 0 : index
    %78 = vector.load %arg8[%c0_88, %c2_89, %c2_90, %c0_91] : memref<2x18x18x4xf32, #tpu.memory_space<vmem>>, vector<2x16x16x4xf32>
    %79 = vector.shape_cast %78 : vector<2x16x16x4xf32> to vector<512x4xf32>
    %80 = arith.truncf %79 : vector<512x4xf32> to vector<512x4xbf16>
    %c8 = arith.constant 8 : index
    %c0_92 = arith.constant 0 : index
    %c0_93 = arith.constant 0 : index
    %81 = vector.load %arg4[%c8, %c0_92, %c0_93] : memref<9x4x4xbf16, #tpu.memory_space<vmem>>, vector<1x4x4xbf16>
    %82 = vector.shape_cast %81 : vector<1x4x4xbf16> to vector<4x4xbf16>
    %cst_94 = arith.constant dense<0.000000e+00> : vector<512x4xf32>
    %83 = tpu.matmul %80, %82, %cst_94 {dimension_numbers = #tpu.dot_dimension_numbers<[1], [0], [0], [1], [0, 0, 1, 1], [], []>} : vector<512x4xbf16>, vector<4x4xbf16>, vector<512x4xf32> -> vector<512x4xf32>
    %84 = arith.addf %77, %83 : vector<512x4xf32>
    %85 = vector.shape_cast %84 : vector<512x4xf32> to vector<2x16x16x4xf32>
    %86 = arith.truncf %85 : vector<2x16x16x4xf32> to vector<2x16x16x4xbf16>
    %c0_95 = arith.constant 0 : index
    %c0_96 = arith.constant 0 : index
    %c0_97 = arith.constant 0 : index
    %c0_98 = arith.constant 0 : index
    %87 = vector.load %arg5[%c0_95, %c0_96, %c0_97, %c0_98] : memref<2x16x16x4xbf16, #tpu.memory_space<vmem>>, vector<2x16x16x4xbf16>
    tpu.vector_store %arg5[%c0_95, %c0_96, %c0_97, %c0_98], %86 {strides = array<i32>} : memref<2x16x16x4xbf16, #tpu.memory_space<vmem>>, vector<2x16x16x4xbf16>,
    %cst_99 = arith.constant dense<0.000000e+00> : vector<4xf32>
    %88 = vector.multi_reduction <add>, %84, %cst_99 [0] : vector<512x4xf32> to vector<4xf32>
    %89 = vector.shape_cast %88 : vector<4xf32> to vector<1x1x4xf32>
    %c0_100 = arith.constant 0 : index
    %c0_101 = arith.constant 0 : index
    %c0_102 = arith.constant 0 : index
    %90 = vector.load %arg6[%c0_100, %c0_101, %c0_102] : memref<1x1x4xf32, #tpu.memory_space<vmem>>, vector<1x1x4xf32>
    tpu.vector_store %arg6[%c0_100, %c0_101, %c0_102], %89 {strides = array<i32>} : memref<1x1x4xf32, #tpu.memory_space<vmem>>, vector<1x1x4xf32>,
    %91 = arith.mulf %84, %84 : vector<512x4xf32>
    %cst_103 = arith.constant dense<0.000000e+00> : vector<4xf32>
    %92 = vector.multi_reduction <add>, %91, %cst_103 [0] : vector<512x4xf32> to vector<4xf32>
    %93 = vector.shape_cast %92 : vector<4xf32> to vector<1x1x4xf32>
    %c0_104 = arith.constant 0 : index
    %c0_105 = arith.constant 0 : index
    %c0_106 = arith.constant 0 : index
    %94 = vector.load %arg7[%c0_104, %c0_105, %c0_106] : memref<1x1x4xf32, #tpu.memory_space<vmem>>, vector<1x1x4xf32>
    tpu.vector_store %arg7[%c0_104, %c0_105, %c0_106], %93 {strides = array<i32>} : memref<1x1x4xf32, #tpu.memory_space<vmem>>, vector<1x1x4xf32>,
    return
  }
  func.func @transform_0(%arg0: i32) -> (i32, i32, i32, i32) {
    %c0_i32 = arith.constant 0 : i32
    %c0_i32_0 = arith.constant 0 : i32
    %c0_i32_1 = arith.constant 0 : i32
    %c0_i32_2 = arith.constant 0 : i32
    return %arg0, %c0_i32, %c0_i32_0, %c0_i32_1 : i32, i32, i32, i32
  }
  func.func @transform_1(%arg0: i32) -> (i32, i32) {
    %c0_i32 = arith.constant 0 : i32
    %c0_i32_0 = arith.constant 0 : i32
    %c0_i32_1 = arith.constant 0 : i32
    return %c0_i32, %c0_i32_0 : i32, i32
  }
  func.func @transform_2(%arg0: i32) -> (i32, i32) {
    %c0_i32 = arith.constant 0 : i32
    %c0_i32_0 = arith.constant 0 : i32
    %c0_i32_1 = arith.constant 0 : i32
    return %c0_i32, %c0_i32_0 : i32, i32
  }
  func.func @transform_3(%arg0: i32) -> (i32, i32, i32) {
    %c0_i32 = arith.constant 0 : i32
    %c0_i32_0 = arith.constant 0 : i32
    %c0_i32_1 = arith.constant 0 : i32
    %c0_i32_2 = arith.constant 0 : i32
    return %c0_i32, %c0_i32_0, %c0_i32_1 : i32, i32, i32
  }
  func.func @transform_4(%arg0: i32) -> (i32, i32, i32, i32) {
    %c0_i32 = arith.constant 0 : i32
    %c0_i32_0 = arith.constant 0 : i32
    %c0_i32_1 = arith.constant 0 : i32
    %c0_i32_2 = arith.constant 0 : i32
    return %arg0, %c0_i32, %c0_i32_0, %c0_i32_1 : i32, i32, i32, i32
  }
  func.func @transform_5(%arg0: i32) -> (i32, i32, i32) {
    %c0_i32 = arith.constant 0 : i32
    %c0_i32_0 = arith.constant 0 : i32
    %c0_i32_1 = arith.constant 0 : i32
    return %arg0, %c0_i32, %c0_i32_0 : i32, i32, i32
  }
  func.func @transform_6(%arg0: i32) -> (i32, i32, i32) {
    %c0_i32 = arith.constant 0 : i32
    %c0_i32_0 = arith.constant 0 : i32
    %c0_i32_1 = arith.constant 0 : i32
    return %arg0, %c0_i32, %c0_i32_0 : i32, i32, i32
  }
}

</mosaic_0001>

<bundles_post_ra>
// kernel: basic_block_forward.5
= control target key start
LH: loop header
LB: loop body
LE: loop exit
PB: predicated region body
PF: predicated region fallthrough
CT: control target
= control target key end

     0   :  { %vm479_vm0 = vcmask 31744   ;;  %s1416_s0 = inlined_call_operand.vmem [shape: bf16[2,16,16,4], index: 0, kind: input, shape index: {}]   ;;  %s1417_s1 = inlined_call_operand.vmem [shape: f32[1,4], index: 1, kind: input, shape index: {}]   ;;  %s1418_s2 = inlined_call_operand.vmem [shape: f32[1,4], index: 2, kind: input, shape index: {}]   ;;  %s1419_s3 = inlined_call_operand.vmem [shape: f32[2,16,16,4], index: 3, kind: input, shape index: {}]   ;;  %s1420_s4 = inlined_call_operand.vmem [shape: f32[2,16,16,4], index: 4, kind: output, shape index: {}]  }
   0x1   :  { %v551_v0 = vld [vmem:[%s1416_s0] sm:$0xff]   ;;  %v678_v4 = vld [vmem:[%s1416_s0 + $0x8] sm:$0xff]   ;;  %v679_v8 = vld [vmem:[%s1416_s0 + $0x10] sm:$0xff]  }
   0x2   :  { %v740_v1 = vld [vmem:[%s1417_s1] ss:$0 sm:$0xff]  ;;  %v552_v2 = vunpack.c.l.bf16 %v551_v0  ;;  %v553_v3 = vunpack.c.h.bf16 %v551_v0  ;;  %v556_v6 = vunpack.c.l.bf16 %v678_v4  ;;  %v557_v7 = vunpack.c.h.bf16 %v678_v4  ;;  %v680_v13 = vld [vmem:[%s1416_s0 + $0x18] sm:$0xff]   ;;  %v288_v15 = vld [vmem:[%s1419_s3 + $0x8] sm:$0xff] }
   0x3   :  { %v748_v5 = vld [vmem:[%s1418_s2] ss:$0 sm:$0xff]  ;;  %v560_v11 = vunpack.c.l.bf16 %v679_v8  ;;  %v561_v12 = vunpack.c.h.bf16 %v679_v8  ;;  %v564_v18 = vunpack.c.l.bf16 %v680_v13  ;;  %v565_v19 = vunpack.c.h.bf16 %v680_v13  ;;  %v289_v22 = vld [vmem:[%s1419_s3 + $0x10] sm:$0xff]  ;;  %v290_v23 = vld [vmem:[%s1419_s3 + $0x18] sm:$0xff] }
   0x4   :  { %v152_v9 = vmul.f32 %v552_v2, %v740_v1  ;;  %v153_v10 = vmul.f32 %v553_v3, %v740_v1  ;;  %v287_v14 = vld [vmem:[%s1419_s3] sm:$0xff]  ;;  %v154_v16 = vmul.f32 %v556_v6, %v740_v1  ;;  %v155_v17 = vmul.f32 %v557_v7, %v740_v1  ;;  %v292_v29 = vld [vmem:[%s1419_s3 + $0x28] sm:$0xff]  ;;  %v293_v36 = vld [vmem:[%s1419_s3 + $0x30] sm:$0xff] }
   0x5   :  { %v156_v24 = vmul.f32 %v560_v11, %v740_v1  ;;  %v157_v25 = vmul.f32 %v561_v12, %v740_v1  ;;  %v291_v28 = vld [vmem:[%s1419_s3 + $0x20] sm:$0xff]  ;;  %v158_v30 = vmul.f32 %v564_v18, %v740_v1  ;;  %v159_v31 = vmul.f32 %v565_v19, %v740_v1  ;;  %v294_v37 = vld [vmem:[%s1419_s3 + $0x38] sm:$0xff]  ;;  %v682_v47 = vld [vmem:[%s1416_s0 + $0x28] sm:$0xff]  }
   0x6   :  { %v223_v20 = vadd.f32 %v748_v5, %v152_v9  ;;  %v224_v21 = vadd.f32 %v748_v5, %v153_v10  ;;  %v225_v26 = vadd.f32 %v748_v5, %v154_v16  ;;  %v226_v27 = vadd.f32 %v748_v5, %v155_v17  ;;  %v681_v42 = vld [vmem:[%s1416_s0 + $0x20] sm:$0xff]   ;;  %v683_v52 = vld [vmem:[%s1416_s0 + $0x30] sm:$0xff]   ;;  %v684_v57 = vld [vmem:[%s1416_s0 + $0x38] sm:$0xff]  }
   0x7   :  { %v227_v34 = vadd.f32 %v748_v5, %v156_v24  ;;  %v228_v35 = vadd.f32 %v748_v5, %v157_v25  ;;  %v229_v40 = vadd.f32 %v748_v5, %v158_v30  ;;  %v230_v41 = vadd.f32 %v748_v5, %v159_v31  ;;  %v295_v3 = vld [vmem:[%s1419_s3 + $0x40] sm:$0xff]  ;;  %v296_v4 = vld [vmem:[%s1419_s3 + $0x48] sm:$0xff]  ;;  %v297_v12 = vld [vmem:[%s1419_s3 + $0x50] sm:$0xff] }
   0x8   :  { %v351_v32 = vadd.f32 %v287_v14, %v223_v20  ;;  %v352_v33 = vadd.f32 %v288_v15, %v224_v21  ;;  %v353_v38 = vadd.f32 %v289_v22, %v225_v26  ;;  %v354_v39 = vadd.f32 %v290_v23, %v226_v27  ;;  %v298_v13 = vld [vmem:[%s1419_s3 + $0x58] sm:$0xff]  ;;  %v299_v18 = vld [vmem:[%s1419_s3 + $0x60] sm:$0xff]  ;;  %v300_v19 = vld [vmem:[%s1419_s3 + $0x68] sm:$0xff] }
   0x9   :  { %v355_v45 = vadd.f32 %v291_v28, %v227_v34  ;;  %v356_v46 = vadd.f32 %v292_v29, %v228_v35  ;;  %v357_v50 = vadd.f32 %v293_v36, %v229_v40  ;;  %v358_v51 = vadd.f32 %v294_v37, %v230_v41  ;;  %v301_v26 = vld [vmem:[%s1419_s3 + $0x70] sm:$0xff]  ;;  %v302_v27 = vld [vmem:[%s1419_s3 + $0x78] sm:$0xff]  ;;  %v686_v37 = vld [vmem:[%s1416_s0 + $0x48] sm:$0xff]  }
   0xa   :  { %v415_v43 = vmax.f32 %v351_v32, 0.0  ;;  %v416_v44 = vmax.f32 %v352_v33, 0.0  ;;  %v417_v48 = vmax.f32 %v353_v38, 0.0  ;;  %v418_v49 = vmax.f32 %v354_v39, 0.0  ;;  %v685_v32 = vld [vmem:[%s1416_s0 + $0x40] sm:$0xff]  }
   0xb   :  { %v419_v53 = vmax.f32 %v355_v45, 0.0  ;;  %v420_v54 = vmax.f32 %v356_v46, 0.0  ;;  %v568_v55 = vunpack.c.l.bf16 %v681_v42  ;;  %v569_v56 = vunpack.c.h.bf16 %v681_v42  ;;  %v687_v42 = vld [vmem:[%s1416_s0 + $0x50] sm:$0xff]  }
   0xc   :  { %480 = vst.msk [vmem:[%s1420_s4] sm:$0xff] %vm479_vm0, %v415_v43  ;;  %481 = vst.msk [vmem:[%s1420_s4 + $0x8] sm:$0xff] %vm479_vm0, %v416_v44  ;;  %v421_v58 = vmax.f32 %v357_v50, 0.0  ;;  %v422_v59 = vmax.f32 %v358_v51, 0.0  ;;  %v572_v60 = vunpack.c.l.bf16 %v682_v47  ;;  %v573_v61 = vunpack.c.h.bf16 %v682_v47  ;;  %v688_v47 = vld [vmem:[%s1416_s0 + $0x58] sm:$0xff]  }
   0xd   :  { %482 = vst.msk [vmem:[%s1420_s4 + $0x10] sm:$0xff] %vm479_vm0, %v417_v48  ;;  %483 = vst.msk [vmem:[%s1420_s4 + $0x18] sm:$0xff] %vm479_vm0, %v418_v49  ;;  %v160_v62 = vmul.f32 %v568_v55, %v740_v1  ;;  %v161_v63 = vmul.f32 %v569_v56, %v740_v1  ;;  %v576_v0 = vunpack.c.l.bf16 %v683_v52  ;;  %v577_v2 = vunpack.c.h.bf16 %v683_v52  ;;  %v303_v56 = vld [vmem:[%s1419_s3 + $0x80] sm:$0xff] }
   0xe   :  { %484 = vst.msk [vmem:[%s1420_s4 + $0x20] sm:$0xff] %vm479_vm0, %v419_v53  ;;  %485 = vst.msk [vmem:[%s1420_s4 + $0x28] sm:$0xff] %vm479_vm0, %v420_v54  ;;  %v162_v6 = vmul.f32 %v572_v60, %v740_v1  ;;  %v163_v7 = vmul.f32 %v573_v61, %v740_v1  ;;  %v580_v8 = vunpack.c.l.bf16 %v684_v57  ;;  %v581_v9 = vunpack.c.h.bf16 %v684_v57  ;;  %v304_v57 = vld [vmem:[%s1419_s3 + $0x88] sm:$0xff] }
   0xf   :  { %486 = vst.msk [vmem:[%s1420_s4 + $0x30] sm:$0xff] %vm479_vm0, %v421_v58  ;;  %487 = vst.msk [vmem:[%s1420_s4 + $0x38] sm:$0xff] %vm479_vm0, %v422_v59  ;;  %v231_v10 = vadd.f32 %v748_v5, %v160_v62  ;;  %v232_v11 = vadd.f32 %v748_v5, %v161_v63  ;;  %v164_v14 = vmul.f32 %v576_v0, %v740_v1  ;;  %v584_v45 = vunpack.c.l.bf16 %v685_v32  ;;  %v305_v0 = vld [vmem:[%s1419_s3 + $0x90] sm:$0xff] }
  0x10   :  { %v165_v15 = vmul.f32 %v577_v2, %v740_v1  ;;  %v233_v16 = vadd.f32 %v748_v5, %v162_v6  ;;  %v234_v17 = vadd.f32 %v748_v5, %v163_v7  ;;  %v166_v20 = vmul.f32 %v580_v8, %v740_v1  ;;  %v306_v2 = vld [vmem:[%s1419_s3 + $0x98] sm:$0xff]  ;;  %v307_v8 = vld [vmem:[%s1419_s3 + $0xa0] sm:$0xff] }
  0x11   :  { %v167_v21 = vmul.f32 %v581_v9, %v740_v1  ;;  %v359_v22 = vadd.f32 %v295_v3, %v231_v10  ;;  %v360_v23 = vadd.f32 %v296_v4, %v232_v11  ;;  %v235_v24 = vadd.f32 %v748_v5, %v164_v14  ;;  %v308_v9 = vld [vmem:[%s1419_s3 + $0xa8] sm:$0xff] }
  0x12   :  { %v236_v25 = vadd.f32 %v748_v5, %v165_v15  ;;  %v361_v28 = vadd.f32 %v297_v12, %v233_v16  ;;  %v362_v29 = vadd.f32 %v298_v13, %v234_v17  ;;  %v237_v30 = vadd.f32 %v748_v5, %v166_v20  ;;  %v309_v16 = vld [vmem:[%s1419_s3 + $0xb0] sm:$0xff]  ;;  %v310_v17 = vld [vmem:[%s1419_s3 + $0xb8] sm:$0xff] }
  0x13   :  { %v238_v31 = vadd.f32 %v748_v5, %v167_v21  ;;  %v423_v33 = vmax.f32 %v359_v22, 0.0  ;;  %v424_v34 = vmax.f32 %v360_v23, 0.0  ;;  %v363_v35 = vadd.f32 %v299_v18, %v235_v24  ;;  %v689_v22 = vld [vmem:[%s1416_s0 + $0x60] sm:$0xff]  }
  0x14   :  { %v364_v36 = vadd.f32 %v300_v19, %v236_v25  ;;  %v425_v38 = vmax.f32 %v361_v28, 0.0  ;;  %v426_v39 = vmax.f32 %v362_v29, 0.0  ;;  %v365_v40 = vadd.f32 %v301_v26, %v237_v30 }
  0x15   :  { %v366_v41 = vadd.f32 %v302_v27, %v238_v31  ;;  %488 = vst.msk [vmem:[%s1420_s4 + $0x40] sm:$0xff] %vm479_vm0, %v423_v33  ;;  %489 = vst.msk [vmem:[%s1420_s4 + $0x48] sm:$0xff] %vm479_vm0, %v424_v34  ;;  %v427_v43 = vmax.f32 %v363_v35, 0.0  ;;  %v585_v46 = vunpack.c.h.bf16 %v685_v32  ;;  %v588_v50 = vunpack.c.l.bf16 %v686_v37  ;;  %v690_v27 = vld [vmem:[%s1416_s0 + $0x68] sm:$0xff]   ;;  %v691_v32 = vld [vmem:[%s1416_s0 + $0x70] sm:$0xff]  }
  0x16   :  { %v428_v44 = vmax.f32 %v364_v36, 0.0  ;;  %490 = vst.msk [vmem:[%s1420_s4 + $0x50] sm:$0xff] %vm479_vm0, %v425_v38  ;;  %491 = vst.msk [vmem:[%s1420_s4 + $0x58] sm:$0xff] %vm479_vm0, %v426_v39  ;;  %v429_v48 = vmax.f32 %v365_v40, 0.0  ;;  %v589_v51 = vunpack.c.h.bf16 %v686_v37  ;;  %v168_v52 = vmul.f32 %v584_v45, %v740_v1  ;;  %v692_v37 = vld [vmem:[%s1416_s0 + $0x78] sm:$0xff]  }
  0x17   :  { %v430_v49 = vmax.f32 %v366_v41, 0.0  ;;  %492 = vst.msk [vmem:[%s1420_s4 + $0x60] sm:$0xff] %vm479_vm0, %v427_v43  ;;  %v169_v53 = vmul.f32 %v585_v46, %v740_v1  ;;  %v592_v54 = vunpack.c.l.bf16 %v687_v42  ;;  %v593_v55 = vunpack.c.h.bf16 %v687_v42  ;;  %v311_v46 = vld [vmem:[%s1419_s3 + $0xc0] sm:$0xff] }
  0x18   :  { %493 = vst.msk [vmem:[%s1420_s4 + $0x68] sm:$0xff] %vm479_vm0, %v428_v44  ;;  %494 = vst.msk [vmem:[%s1420_s4 + $0x70] sm:$0xff] %vm479_vm0, %v429_v48  ;;  %v170_v58 = vmul.f32 %v588_v50, %v740_v1  ;;  %v171_v59 = vmul.f32 %v589_v51, %v740_v1  ;;  %v596_v60 = vunpack.c.l.bf16 %v688_v47  ;;  %v597_v61 = vunpack.c.h.bf16 %v688_v47  ;;  %v312_v47 = vld [vmem:[%s1419_s3 + $0xc8] sm:$0xff] }
  0x19   :  { %495 = vst.msk [vmem:[%s1420_s4 + $0x78] sm:$0xff] %vm479_vm0, %v430_v49  ;;  %v239_v62 = vadd.f32 %v748_v5, %v168_v52  ;;  %v240_v63 = vadd.f32 %v748_v5, %v169_v53  ;;  %v172_v3 = vmul.f32 %v592_v54, %v740_v1  ;;  %v173_v4 = vmul.f32 %v593_v55, %v740_v1  ;;  %v313_v54 = vld [vmem:[%s1419_s3 + $0xd0] sm:$0xff]  ;;  %v314_v55 = vld [vmem:[%s1419_s3 + $0xd8] sm:$0xff] }
  0x1a   :  { %v241_v6 = vadd.f32 %v748_v5, %v170_v58  ;;  %v242_v7 = vadd.f32 %v748_v5, %v171_v59  ;;  %v174_v10 = vmul.f32 %v596_v60, %v740_v1  ;;  %v175_v11 = vmul.f32 %v597_v61, %v740_v1  ;;  %v315_v60 = vld [vmem:[%s1419_s3 + $0xe0] sm:$0xff]  ;;  %v316_v61 = vld [vmem:[%s1419_s3 + $0xe8] sm:$0xff] }
  0x1b   :  { %v367_v12 = vadd.f32 %v303_v56, %v239_v62  ;;  %v368_v13 = vadd.f32 %v304_v57, %v240_v63  ;;  %v243_v14 = vadd.f32 %v748_v5, %v172_v3  ;;  %v244_v15 = vadd.f32 %v748_v5, %v173_v4 }
  0x1c   :  { %v369_v18 = vadd.f32 %v305_v0, %v241_v6  ;;  %v370_v19 = vadd.f32 %v306_v2, %v242_v7  ;;  %v245_v20 = vadd.f32 %v748_v5, %v174_v10  ;;  %v246_v21 = vadd.f32 %v748_v5, %v175_v11  ;;  %v317_v6 = vld [vmem:[%s1419_s3 + $0xf0] sm:$0xff]  ;;  %v318_v7 = vld [vmem:[%s1419_s3 + $0xf8] sm:$0xff] }
  0x1d   :  { %v431_v23 = vmax.f32 %v367_v12, 0.0  ;;  %v432_v24 = vmax.f32 %v368_v13, 0.0  ;;  %v371_v25 = vadd.f32 %v307_v8, %v243_v14  ;;  %v372_v26 = vadd.f32 %v308_v9, %v244_v15  ;;  %v693_v12 = vld [vmem:[%s1416_s0 + $0x80] sm:$0xff]  }
  0x1e   :  { %v433_v28 = vmax.f32 %v369_v18, 0.0  ;;  %v434_v29 = vmax.f32 %v370_v19, 0.0  ;;  %v373_v30 = vadd.f32 %v309_v16, %v245_v20  ;;  %v374_v31 = vadd.f32 %v310_v17, %v246_v21  ;;  %v694_v17 = vld [vmem:[%s1416_s0 + $0x88] sm:$0xff]  }
  0x1f   :  { %496 = vst.msk [vmem:[%s1420_s4 + $0x80] sm:$0xff] %vm479_vm0, %v431_v23  ;;  %497 = vst.msk [vmem:[%s1420_s4 + $0x88] sm:$0xff] %vm479_vm0, %v432_v24  ;;  %v435_v33 = vmax.f32 %v371_v25, 0.0  ;;  %v436_v34 = vmax.f32 %v372_v26, 0.0  ;;  %v600_v35 = vunpack.c.l.bf16 %v689_v22  ;;  %v601_v36 = vunpack.c.h.bf16 %v689_v22  ;;  %v695_v22 = vld [vmem:[%s1416_s0 + $0x90] sm:$0xff]  }
  0x20   :  { %498 = vst.msk [vmem:[%s1420_s4 + $0x90] sm:$0xff] %vm479_vm0, %v433_v28  ;;  %499 = vst.msk [vmem:[%s1420_s4 + $0x98] sm:$0xff] %vm479_vm0, %v434_v29  ;;  %v437_v38 = vmax.f32 %v373_v30, 0.0  ;;  %v438_v39 = vmax.f32 %v374_v31, 0.0  ;;  %v604_v40 = vunpack.c.l.bf16 %v690_v27  ;;  %v605_v41 = vunpack.c.h.bf16 %v690_v27  ;;  %v696_v27 = vld [vmem:[%s1416_s0 + $0x98] sm:$0xff]  }
  0x21   :  { %500 = vst.msk [vmem:[%s1420_s4 + $0xa0] sm:$0xff] %vm479_vm0, %v435_v33  ;;  %501 = vst.msk [vmem:[%s1420_s4 + $0xa8] sm:$0xff] %vm479_vm0, %v436_v34  ;;  %v176_v42 = vmul.f32 %v600_v35, %v740_v1  ;;  %v177_v43 = vmul.f32 %v601_v36, %v740_v1  ;;  %v608_v44 = vunpack.c.l.bf16 %v691_v32  ;;  %v609_v45 = vunpack.c.h.bf16 %v691_v32  ;;  %v319_v36 = vld [vmem:[%s1419_s3 + $0x100] sm:$0xff] }
  0x22   :  { %502 = vst.msk [vmem:[%s1420_s4 + $0xb0] sm:$0xff] %vm479_vm0, %v437_v38  ;;  %503 = vst.msk [vmem:[%s1420_s4 + $0xb8] sm:$0xff] %vm479_vm0, %v438_v39  ;;  %v178_v48 = vmul.f32 %v604_v40, %v740_v1  ;;  %v179_v49 = vmul.f32 %v605_v41, %v740_v1  ;;  %v612_v50 = vunpack.c.l.bf16 %v692_v37  ;;  %v613_v51 = vunpack.c.h.bf16 %v692_v37  ;;  %v320_v37 = vld [vmem:[%s1419_s3 + $0x108] sm:$0xff] }
  0x23   :  { %v247_v52 = vadd.f32 %v748_v5, %v176_v42  ;;  %v248_v53 = vadd.f32 %v748_v5, %v177_v43  ;;  %v180_v56 = vmul.f32 %v608_v44, %v740_v1  ;;  %v181_v57 = vmul.f32 %v609_v45, %v740_v1  ;;  %v321_v44 = vld [vmem:[%s1419_s3 + $0x110] sm:$0xff]  ;;  %v322_v45 = vld [vmem:[%s1419_s3 + $0x118] sm:$0xff] }
  0x24   :  { %v249_v58 = vadd.f32 %v748_v5, %v178_v48  ;;  %v250_v59 = vadd.f32 %v748_v5, %v179_v49  ;;  %v182_v62 = vmul.f32 %v612_v50, %v740_v1  ;;  %v183_v63 = vmul.f32 %v613_v51, %v740_v1  ;;  %v323_v50 = vld [vmem:[%s1419_s3 + $0x120] sm:$0xff]  ;;  %v324_v51 = vld [vmem:[%s1419_s3 + $0x128] sm:$0xff] }
  0x25   :  { %v375_v0 = vadd.f32 %v311_v46, %v247_v52  ;;  %v376_v2 = vadd.f32 %v312_v47, %v248_v53  ;;  %v251_v3 = vadd.f32 %v748_v5, %v180_v56  ;;  %v252_v4 = vadd.f32 %v748_v5, %v181_v57 }
  0x26   :  { %v377_v8 = vadd.f32 %v313_v54, %v249_v58  ;;  %v378_v9 = vadd.f32 %v314_v55, %v250_v59  ;;  %v253_v10 = vadd.f32 %v748_v5, %v182_v62  ;;  %v254_v11 = vadd.f32 %v748_v5, %v183_v63  ;;  %v325_v58 = vld [vmem:[%s1419_s3 + $0x130] sm:$0xff]  ;;  %v326_v59 = vld [vmem:[%s1419_s3 + $0x138] sm:$0xff] }
  0x27   :  { %v439_v13 = vmax.f32 %v375_v0, 0.0  ;;  %v440_v14 = vmax.f32 %v376_v2, 0.0  ;;  %v379_v15 = vadd.f32 %v315_v60, %v251_v3  ;;  %v380_v16 = vadd.f32 %v316_v61, %v252_v4  ;;  %v697_v0 = vld [vmem:[%s1416_s0 + $0xa0] sm:$0xff]  }
  0x28   :  { %v441_v18 = vmax.f32 %v377_v8, 0.0  ;;  %v442_v19 = vmax.f32 %v378_v9, 0.0  ;;  %v381_v20 = vadd.f32 %v317_v6, %v253_v10  ;;  %v382_v21 = vadd.f32 %v318_v7, %v254_v11  ;;  %v698_v7 = vld [vmem:[%s1416_s0 + $0xa8] sm:$0xff]  }
  0x29   :  { %504 = vst.msk [vmem:[%s1420_s4 + $0xc0] sm:$0xff] %vm479_vm0, %v439_v13  ;;  %505 = vst.msk [vmem:[%s1420_s4 + $0xc8] sm:$0xff] %vm479_vm0, %v440_v14  ;;  %v443_v23 = vmax.f32 %v379_v15, 0.0  ;;  %v444_v24 = vmax.f32 %v380_v16, 0.0  ;;  %v616_v25 = vunpack.c.l.bf16 %v693_v12  ;;  %v617_v26 = vunpack.c.h.bf16 %v693_v12  ;;  %v699_v12 = vld [vmem:[%s1416_s0 + $0xb0] sm:$0xff]  }
  0x2a   :  { %506 = vst.msk [vmem:[%s1420_s4 + $0xd0] sm:$0xff] %vm479_vm0, %v441_v18  ;;  %507 = vst.msk [vmem:[%s1420_s4 + $0xd8] sm:$0xff] %vm479_vm0, %v442_v19  ;;  %v445_v28 = vmax.f32 %v381_v20, 0.0  ;;  %v446_v29 = vmax.f32 %v382_v21, 0.0  ;;  %v620_v30 = vunpack.c.l.bf16 %v694_v17  ;;  %v621_v31 = vunpack.c.h.bf16 %v694_v17  ;;  %v700_v17 = vld [vmem:[%s1416_s0 + $0xb8] sm:$0xff]  }
  0x2b   :  { %508 = vst.msk [vmem:[%s1420_s4 + $0xe0] sm:$0xff] %vm479_vm0, %v443_v23  ;;  %509 = vst.msk [vmem:[%s1420_s4 + $0xe8] sm:$0xff] %vm479_vm0, %v444_v24  ;;  %v184_v32 = vmul.f32 %v616_v25, %v740_v1  ;;  %v185_v33 = vmul.f32 %v617_v26, %v740_v1  ;;  %v624_v34 = vunpack.c.l.bf16 %v695_v22  ;;  %v625_v35 = vunpack.c.h.bf16 %v695_v22  ;;  %v327_v26 = vld [vmem:[%s1419_s3 + $0x140] sm:$0xff] }
  0x2c   :  { %510 = vst.msk [vmem:[%s1420_s4 + $0xf0] sm:$0xff] %vm479_vm0, %v445_v28  ;;  %511 = vst.msk [vmem:[%s1420_s4 + $0xf8] sm:$0xff] %vm479_vm0, %v446_v29  ;;  %v186_v38 = vmul.f32 %v620_v30, %v740_v1  ;;  %v187_v39 = vmul.f32 %v621_v31, %v740_v1  ;;  %v628_v40 = vunpack.c.l.bf16 %v696_v27  ;;  %v629_v41 = vunpack.c.h.bf16 %v696_v27  ;;  %v328_v27 = vld [vmem:[%s1419_s3 + $0x148] sm:$0xff] }
  0x2d   :  { %v255_v42 = vadd.f32 %v748_v5, %v184_v32  ;;  %v256_v43 = vadd.f32 %v748_v5, %v185_v33  ;;  %v188_v46 = vmul.f32 %v624_v34, %v740_v1  ;;  %v189_v47 = vmul.f32 %v625_v35, %v740_v1  ;;  %v329_v34 = vld [vmem:[%s1419_s3 + $0x150] sm:$0xff]  ;;  %v330_v35 = vld [vmem:[%s1419_s3 + $0x158] sm:$0xff] }
  0x2e   :  { %v257_v48 = vadd.f32 %v748_v5, %v186_v38  ;;  %v258_v49 = vadd.f32 %v748_v5, %v187_v39  ;;  %v190_v52 = vmul.f32 %v628_v40, %v740_v1  ;;  %v191_v53 = vmul.f32 %v629_v41, %v740_v1  ;;  %v331_v40 = vld [vmem:[%s1419_s3 + $0x160] sm:$0xff]  ;;  %v332_v41 = vld [vmem:[%s1419_s3 + $0x168] sm:$0xff] }
  0x2f   :  { %v383_v54 = vadd.f32 %v319_v36, %v255_v42  ;;  %v384_v55 = vadd.f32 %v320_v37, %v256_v43  ;;  %v259_v56 = vadd.f32 %v748_v5, %v188_v46  ;;  %v260_v57 = vadd.f32 %v748_v5, %v189_v47 }
  0x30   :  { %v385_v60 = vadd.f32 %v321_v44, %v257_v48  ;;  %v386_v61 = vadd.f32 %v322_v45, %v258_v49  ;;  %v261_v62 = vadd.f32 %v748_v5, %v190_v52  ;;  %v262_v63 = vadd.f32 %v748_v5, %v191_v53  ;;  %v333_v48 = vld [vmem:[%s1419_s3 + $0x170] sm:$0xff]  ;;  %v334_v49 = vld [vmem:[%s1419_s3 + $0x178] sm:$0xff] }
  0x31   :  { %v447_v2 = vmax.f32 %v383_v54, 0.0  ;;  %v448_v3 = vmax.f32 %v384_v55, 0.0  ;;  %v387_v4 = vadd.f32 %v323_v50, %v259_v56  ;;  %v388_v6 = vadd.f32 %v324_v51, %v260_v57  ;;  %v701_v54 = vld [vmem:[%s1416_s0 + $0xc0] sm:$0xff]  }
  0x32   :  { %v449_v8 = vmax.f32 %v385_v60, 0.0  ;;  %v450_v9 = vmax.f32 %v386_v61, 0.0  ;;  %v389_v10 = vadd.f32 %v325_v58, %v261_v62  ;;  %v390_v11 = vadd.f32 %v326_v59, %v262_v63  ;;  %v702_v59 = vld [vmem:[%s1416_s0 + $0xc8] sm:$0xff]  }
  0x33   :  { %512 = vst.msk [vmem:[%s1420_s4 + $0x100] sm:$0xff] %vm479_vm0, %v447_v2  ;;  %513 = vst.msk [vmem:[%s1420_s4 + $0x108] sm:$0xff] %vm479_vm0, %v448_v3  ;;  %v451_v13 = vmax.f32 %v387_v4, 0.0  ;;  %v452_v14 = vmax.f32 %v388_v6, 0.0  ;;  %v632_v15 = vunpack.c.l.bf16 %v697_v0  ;;  %v633_v16 = vunpack.c.h.bf16 %v697_v0  ;;  %v703_v0 = vld [vmem:[%s1416_s0 + $0xd0] sm:$0xff]  }
  0x34   :  { %514 = vst.msk [vmem:[%s1420_s4 + $0x110] sm:$0xff] %vm479_vm0, %v449_v8  ;;  %515 = vst.msk [vmem:[%s1420_s4 + $0x118] sm:$0xff] %vm479_vm0, %v450_v9  ;;  %v453_v18 = vmax.f32 %v389_v10, 0.0  ;;  %v454_v19 = vmax.f32 %v390_v11, 0.0  ;;  %v636_v20 = vunpack.c.l.bf16 %v698_v7  ;;  %v637_v21 = vunpack.c.h.bf16 %v698_v7  ;;  %v704_v7 = vld [vmem:[%s1416_s0 + $0xd8] sm:$0xff]  }
  0x35   :  { %516 = vst.msk [vmem:[%s1420_s4 + $0x120] sm:$0xff] %vm479_vm0, %v451_v13  ;;  %517 = vst.msk [vmem:[%s1420_s4 + $0x128] sm:$0xff] %vm479_vm0, %v452_v14  ;;  %v192_v22 = vmul.f32 %v632_v15, %v740_v1  ;;  %v193_v23 = vmul.f32 %v633_v16, %v740_v1  ;;  %v640_v24 = vunpack.c.l.bf16 %v699_v12  ;;  %v641_v25 = vunpack.c.h.bf16 %v699_v12  ;;  %v335_v16 = vld [vmem:[%s1419_s3 + $0x180] sm:$0xff] }
  0x36   :  { %518 = vst.msk [vmem:[%s1420_s4 + $0x130] sm:$0xff] %vm479_vm0, %v453_v18  ;;  %519 = vst.msk [vmem:[%s1420_s4 + $0x138] sm:$0xff] %vm479_vm0, %v454_v19  ;;  %v194_v28 = vmul.f32 %v636_v20, %v740_v1  ;;  %v195_v29 = vmul.f32 %v637_v21, %v740_v1  ;;  %v644_v30 = vunpack.c.l.bf16 %v700_v17  ;;  %v645_v31 = vunpack.c.h.bf16 %v700_v17  ;;  %v336_v17 = vld [vmem:[%s1419_s3 + $0x188] sm:$0xff] }
  0x37   :  { %v263_v32 = vadd.f32 %v748_v5, %v192_v22  ;;  %v264_v33 = vadd.f32 %v748_v5, %v193_v23  ;;  %v196_v36 = vmul.f32 %v640_v24, %v740_v1  ;;  %v197_v37 = vmul.f32 %v641_v25, %v740_v1  ;;  %v337_v24 = vld [vmem:[%s1419_s3 + $0x190] sm:$0xff]  ;;  %v338_v25 = vld [vmem:[%s1419_s3 + $0x198] sm:$0xff] }
  0x38   :  { %v265_v38 = vadd.f32 %v748_v5, %v194_v28  ;;  %v266_v39 = vadd.f32 %v748_v5, %v195_v29  ;;  %v198_v42 = vmul.f32 %v644_v30, %v740_v1  ;;  %v199_v43 = vmul.f32 %v645_v31, %v740_v1  ;;  %v339_v30 = vld [vmem:[%s1419_s3 + $0x1a0] sm:$0xff]  ;;  %v340_v31 = vld [vmem:[%s1419_s3 + $0x1a8] sm:$0xff] }
  0x39   :  { %v391_v44 = vadd.f32 %v327_v26, %v263_v32  ;;  %v392_v45 = vadd.f32 %v328_v27, %v264_v33  ;;  %v267_v46 = vadd.f32 %v748_v5, %v196_v36  ;;  %v268_v47 = vadd.f32 %v748_v5, %v197_v37 }
  0x3a   :  { %v393_v50 = vadd.f32 %v329_v34, %v265_v38  ;;  %v394_v51 = vadd.f32 %v330_v35, %v266_v39  ;;  %v269_v52 = vadd.f32 %v748_v5, %v198_v42  ;;  %v270_v53 = vadd.f32 %v748_v5, %v199_v43  ;;  %v341_v38 = vld [vmem:[%s1419_s3 + $0x1b0] sm:$0xff]  ;;  %v342_v39 = vld [vmem:[%s1419_s3 + $0x1b8] sm:$0xff] }
  0x3b   :  { %v455_v55 = vmax.f32 %v391_v44, 0.0  ;;  %v456_v56 = vmax.f32 %v392_v45, 0.0  ;;  %v395_v57 = vadd.f32 %v331_v40, %v267_v46  ;;  %v396_v58 = vadd.f32 %v332_v41, %v268_v47  ;;  %v705_v44 = vld [vmem:[%s1416_s0 + $0xe0] sm:$0xff]  }
  0x3c   :  { %v457_v60 = vmax.f32 %v393_v50, 0.0  ;;  %v458_v61 = vmax.f32 %v394_v51, 0.0  ;;  %v397_v62 = vadd.f32 %v333_v48, %v269_v52  ;;  %v398_v63 = vadd.f32 %v334_v49, %v270_v53  ;;  %v706_v49 = vld [vmem:[%s1416_s0 + $0xe8] sm:$0xff]  }
  0x3d   :  { %520 = vst.msk [vmem:[%s1420_s4 + $0x140] sm:$0xff] %vm479_vm0, %v455_v55  ;;  %521 = vst.msk [vmem:[%s1420_s4 + $0x148] sm:$0xff] %vm479_vm0, %v456_v56  ;;  %v459_v2 = vmax.f32 %v395_v57, 0.0  ;;  %v460_v3 = vmax.f32 %v396_v58, 0.0  ;;  %v648_v4 = vunpack.c.l.bf16 %v701_v54  ;;  %v649_v6 = vunpack.c.h.bf16 %v701_v54  ;;  %v707_v54 = vld [vmem:[%s1416_s0 + $0xf0] sm:$0xff]  }
  0x3e   :  { %522 = vst.msk [vmem:[%s1420_s4 + $0x150] sm:$0xff] %vm479_vm0, %v457_v60  ;;  %523 = vst.msk [vmem:[%s1420_s4 + $0x158] sm:$0xff] %vm479_vm0, %v458_v61  ;;  %v461_v8 = vmax.f32 %v397_v62, 0.0  ;;  %v462_v9 = vmax.f32 %v398_v63, 0.0  ;;  %v652_v10 = vunpack.c.l.bf16 %v702_v59  ;;  %v653_v11 = vunpack.c.h.bf16 %v702_v59  ;;  %v708_v59 = vld [vmem:[%s1416_s0 + $0xf8] sm:$0xff]  }
  0x3f   :  { %524 = vst.msk [vmem:[%s1420_s4 + $0x160] sm:$0xff] %vm479_vm0, %v459_v2  ;;  %525 = vst.msk [vmem:[%s1420_s4 + $0x168] sm:$0xff] %vm479_vm0, %v460_v3  ;;  %v200_v12 = vmul.f32 %v648_v4, %v740_v1  ;;  %v201_v13 = vmul.f32 %v649_v6, %v740_v1  ;;  %v656_v14 = vunpack.c.l.bf16 %v703_v0  ;;  %v657_v15 = vunpack.c.h.bf16 %v703_v0  ;;  %v343_v6 = vld [vmem:[%s1419_s3 + $0x1c0] sm:$0xff] }
  0x40   :  { %526 = vst.msk [vmem:[%s1420_s4 + $0x170] sm:$0xff] %vm479_vm0, %v461_v8  ;;  %527 = vst.msk [vmem:[%s1420_s4 + $0x178] sm:$0xff] %vm479_vm0, %v462_v9  ;;  %v202_v18 = vmul.f32 %v652_v10, %v740_v1  ;;  %v203_v19 = vmul.f32 %v653_v11, %v740_v1  ;;  %v660_v20 = vunpack.c.l.bf16 %v704_v7  ;;  %v661_v21 = vunpack.c.h.bf16 %v704_v7  ;;  %v344_v7 = vld [vmem:[%s1419_s3 + $0x1c8] sm:$0xff] }
  0x41   :  { %v271_v22 = vadd.f32 %v748_v5, %v200_v12  ;;  %v272_v23 = vadd.f32 %v748_v5, %v201_v13  ;;  %v204_v26 = vmul.f32 %v656_v14, %v740_v1  ;;  %v205_v27 = vmul.f32 %v657_v15, %v740_v1  ;;  %v345_v14 = vld [vmem:[%s1419_s3 + $0x1d0] sm:$0xff]  ;;  %v346_v15 = vld [vmem:[%s1419_s3 + $0x1d8] sm:$0xff] }
  0x42   :  { %v273_v28 = vadd.f32 %v748_v5, %v202_v18  ;;  %v274_v29 = vadd.f32 %v748_v5, %v203_v19  ;;  %v206_v32 = vmul.f32 %v660_v20, %v740_v1  ;;  %v207_v33 = vmul.f32 %v661_v21, %v740_v1  ;;  %v347_v20 = vld [vmem:[%s1419_s3 + $0x1e0] sm:$0xff]  ;;  %v348_v21 = vld [vmem:[%s1419_s3 + $0x1e8] sm:$0xff] }
  0x43   :  { %v399_v34 = vadd.f32 %v335_v16, %v271_v22  ;;  %v400_v35 = vadd.f32 %v336_v17, %v272_v23  ;;  %v275_v36 = vadd.f32 %v748_v5, %v204_v26  ;;  %v276_v37 = vadd.f32 %v748_v5, %v205_v27 }
  0x44   :  { %v401_v40 = vadd.f32 %v337_v24, %v273_v28  ;;  %v402_v41 = vadd.f32 %v338_v25, %v274_v29  ;;  %v277_v42 = vadd.f32 %v748_v5, %v206_v32  ;;  %v278_v43 = vadd.f32 %v748_v5, %v207_v33  ;;  %v349_v28 = vld [vmem:[%s1419_s3 + $0x1f0] sm:$0xff]  ;;  %v350_v29 = vld [vmem:[%s1419_s3 + $0x1f8] sm:$0xff] }
  0x45   :  { %v463_v45 = vmax.f32 %v399_v34, 0.0  ;;  %v464_v46 = vmax.f32 %v400_v35, 0.0  ;;  %v403_v47 = vadd.f32 %v339_v30, %v275_v36  ;;  %v404_v48 = vadd.f32 %v340_v31, %v276_v37 }
  0x46   :  { %v465_v50 = vmax.f32 %v401_v40, 0.0  ;;  %v466_v51 = vmax.f32 %v402_v41, 0.0  ;;  %v405_v52 = vadd.f32 %v341_v38, %v277_v42  ;;  %v406_v53 = vadd.f32 %v342_v39, %v278_v43 }
  0x47   :  { %528 = vst.msk [vmem:[%s1420_s4 + $0x180] sm:$0xff] %vm479_vm0, %v463_v45  ;;  %529 = vst.msk [vmem:[%s1420_s4 + $0x188] sm:$0xff] %vm479_vm0, %v464_v46  ;;  %v467_v55 = vmax.f32 %v403_v47, 0.0  ;;  %v468_v56 = vmax.f32 %v404_v48, 0.0  ;;  %v664_v57 = vunpack.c.l.bf16 %v705_v44  ;;  %v665_v58 = vunpack.c.h.bf16 %v705_v44 }
  0x48   :  { %530 = vst.msk [vmem:[%s1420_s4 + $0x190] sm:$0xff] %vm479_vm0, %v465_v50  ;;  %531 = vst.msk [vmem:[%s1420_s4 + $0x198] sm:$0xff] %vm479_vm0, %v466_v51  ;;  %v469_v60 = vmax.f32 %v405_v52, 0.0  ;;  %v470_v61 = vmax.f32 %v406_v53, 0.0  ;;  %v668_v62 = vunpack.c.l.bf16 %v706_v49  ;;  %v669_v63 = vunpack.c.h.bf16 %v706_v49 }
  0x49   :  { %532 = vst.msk [vmem:[%s1420_s4 + $0x1a0] sm:$0xff] %vm479_vm0, %v467_v55  ;;  %533 = vst.msk [vmem:[%s1420_s4 + $0x1a8] sm:$0xff] %vm479_vm0, %v468_v56  ;;  %v208_v0 = vmul.f32 %v664_v57, %v740_v1  ;;  %v209_v2 = vmul.f32 %v665_v58, %v740_v1  ;;  %v672_v3 = vunpack.c.l.bf16 %v707_v54  ;;  %v673_v4 = vunpack.c.h.bf16 %v707_v54 }
  0x4a   :  { %534 = vst.msk [vmem:[%s1420_s4 + $0x1b0] sm:$0xff] %vm479_vm0, %v469_v60  ;;  %535 = vst.msk [vmem:[%s1420_s4 + $0x1b8] sm:$0xff] %vm479_vm0, %v470_v61  ;;  %v210_v8 = vmul.f32 %v668_v62, %v740_v1  ;;  %v211_v9 = vmul.f32 %v669_v63, %v740_v1  ;;  %v676_v10 = vunpack.c.l.bf16 %v708_v59  ;;  %v677_v11 = vunpack.c.h.bf16 %v708_v59 }
  0x4b   :  { %v279_v12 = vadd.f32 %v748_v5, %v208_v0  ;;  %v280_v13 = vadd.f32 %v748_v5, %v209_v2  ;;  %v212_v16 = vmul.f32 %v672_v3, %v740_v1  ;;  %v213_v17 = vmul.f32 %v673_v4, %v740_v1 }
  0x4c   :  { %v281_v18 = vadd.f32 %v748_v5, %v210_v8  ;;  %v282_v19 = vadd.f32 %v748_v5, %v211_v9  ;;  %v214_v22 = vmul.f32 %v676_v10, %v740_v1  ;;  %v215_v23 = vmul.f32 %v677_v11, %v740_v1 }
  0x4d   :  { %v407_v24 = vadd.f32 %v343_v6, %v279_v12  ;;  %v408_v25 = vadd.f32 %v344_v7, %v280_v13  ;;  %v283_v26 = vadd.f32 %v748_v5, %v212_v16  ;;  %v284_v27 = vadd.f32 %v748_v5, %v213_v17 }
  0x4e   :  { %v409_v30 = vadd.f32 %v345_v14, %v281_v18  ;;  %v410_v31 = vadd.f32 %v346_v15, %v282_v19  ;;  %v285_v32 = vadd.f32 %v748_v5, %v214_v22  ;;  %v286_v1 = vadd.f32 %v748_v5, %v215_v23 }
  0x4f   :  { %v471_v33 = vmax.f32 %v407_v24, 0.0  ;;  %v472_v34 = vmax.f32 %v408_v25, 0.0  ;;  %v411_v35 = vadd.f32 %v347_v20, %v283_v26  ;;  %v412_v36 = vadd.f32 %v348_v21, %v284_v27 }
  0x50   :  { %v473_v37 = vmax.f32 %v409_v30, 0.0  ;;  %v474_v38 = vmax.f32 %v410_v31, 0.0  ;;  %v413_v39 = vadd.f32 %v349_v28, %v285_v32  ;;  %v414_v40 = vadd.f32 %v350_v29, %v286_v1 }
  0x51   :  { %536 = vst.msk [vmem:[%s1420_s4 + $0x1c0] sm:$0xff] %vm479_vm0, %v471_v33  ;;  %537 = vst.msk [vmem:[%s1420_s4 + $0x1c8] sm:$0xff] %vm479_vm0, %v472_v34  ;;  %v475_v41 = vmax.f32 %v411_v35, 0.0  ;;  %v476_v5 = vmax.f32 %v412_v36, 0.0 }
  0x52   :  { %538 = vst.msk [vmem:[%s1420_s4 + $0x1d0] sm:$0xff] %vm479_vm0, %v473_v37  ;;  %539 = vst.msk [vmem:[%s1420_s4 + $0x1d8] sm:$0xff] %vm479_vm0, %v474_v38  ;;  %v477_v42 = vmax.f32 %v413_v39, 0.0  ;;  %v478_v43 = vmax.f32 %v414_v40, 0.0 }
  0x53   :  { %540 = vst.msk [vmem:[%s1420_s4 + $0x1e0] sm:$0xff] %vm479_vm0, %v475_v41  ;;  %541 = vst.msk [vmem:[%s1420_s4 + $0x1e8] sm:$0xff] %vm479_vm0, %v476_v5 }
  0x54   :  { %542 = vst.msk [vmem:[%s1420_s4 + $0x1f0] sm:$0xff] %vm479_vm0, %v477_v42  ;;  %543 = vst.msk [vmem:[%s1420_s4 + $0x1f8] sm:$0xff] %vm479_vm0, %v478_v43 }

// kernel: basic_block_forward.3
= control target key start
LH: loop header
LB: loop body
LE: loop exit
PB: predicated region body
PF: predicated region fallthrough
CT: control target
= control target key end

     0   :  { %vm523_vm0 = vcmask 1041408   ;;  %vm15_vm1 = vcmask 31744   ;;  %vm18_vm2 = vcmask 25600   ;;  %v7561_v2 = vmov 0.0   ;;  %s9139_s1 = inlined_call_operand.vmem [shape: bf16[9,4,4], index: 1, kind: input, shape index: {}]   ;;  %s9140_s0 = inlined_call_operand.vmem [shape: f32[2,16,16,4], index: 0, kind: input, shape index: {}]   ;;  %s9141_s2 = inlined_call_operand.vmem [shape: bf16[2,16,16,4], index: 2, kind: output, shape index: {0}]   ;;  %s9142_s3 = inlined_call_operand.vmem [shape: f32[1,1,4], index: 3, kind: output, shape index: {1}]   ;;  %s9143_s4 = inlined_call_operand.vmem [shape: f32[1,1,4], index: 4, kind: output, shape index: {2}]  }
   0x1   :  { %v5720_v0 = vld [vmem:[%s9139_s1 + $0x2] sm:$0x3]  ;;  %v5851_v1 = vld [vmem:[%s9139_s1 + $0x8] sm:$0x3]  ;;  %16 = vst.msk [vmem:[#allocation2] sm:$0xff] %vm15_vm1, %v7561_v2  ;;  %17 = vst.msk [vmem:[#allocation2 + $0x8] sm:$0xff] %vm15_vm1, %v7561_v2 }
   0x2   :  { %19 = vst.msk [vmem:[#allocation2 + $0x10] sm:$0x3] %vm18_vm2, %v7561_v2  ;;  %vm30_vm3 = vcmask 24576   ;;  %22 = vst.msk [vmem:[#allocation2 + $0x1c0] sm:$0x3] %vm18_vm2, %v7561_v2  ;;  %v7620_v3 = vld [vmem:[%s9140_s0] sm:$0xff]  ;;  %7549 = vmatprep.subr.msk.bf16.mxu1 %vm523_vm0, %v5720_v0  ;;  %7553 = vmatprep.subr.msk.bf16.mxu0 %vm523_vm0, %v5851_v1 }
   0x3   :  { %20 = vst.msk [vmem:[#allocation2 + $0x1b0] sm:$0xff] %vm15_vm1, %v7561_v2  ;;  %21 = vst.msk [vmem:[#allocation2 + $0x1b8] sm:$0xff] %vm15_vm1, %v7561_v2  ;;  %v7625_v4 = vsel %vm523_vm0, %v5720_v0, 0  ;;  %v7628_v5 = vsel %vm523_vm0, %v5851_v1, 0  ;;  %v104_v6 = vld [vmem:[%s9140_s0 + $0x8] sm:$0xff]  ;;  %v105_v8 = vld [vmem:[%s9140_s0 + $0x10] sm:$0xff] }
   0x4   :  { %24 = vst.msk [vmem:[#allocation2 + $0x198] sm:$0xff] %vm15_vm1, %v7561_v2  ;;  %25 = vst.msk [vmem:[#allocation2 + $0x1a0] sm:$0xff] %vm15_vm1, %v7561_v2  ;;  %v328_v7 = vld [vmem:[%s9139_s1] sm:$0x3]  ;;  %6442 = vmatpush3.bf16.msra.mxu1 %v7625_v4  ;;  %6706 = vmatpush3.bf16.msra.mxu0 %v7628_v5  ;;  %v5884_v9 = vld [vmem:[%s9139_s1 + $0xa] sm:$0x3] }
   0x5   :  { %26 = vst.msk [vmem:[#allocation2 + $0x1a8] sm:$0x3] %vm18_vm2, %v7561_v2  ;;  %29 = vst.msk [vmem:[#allocation2 + $0x358] sm:$0x3] %vm18_vm2, %v7561_v2  ;;  %v106_v10 = vld [vmem:[%s9140_s0 + $0x18] sm:$0xff]  ;;  %v107_v11 = vld [vmem:[%s9140_s0 + $0x20] sm:$0xff]  ;;  %7550 = vmatprep.subr.msk.bf16.mxu1 %vm523_vm0, %v328_v7  ;;  %7555 = vmatprep.subr.msk.bf16.mxu0 %vm523_vm0, %v5884_v9 }
   0x6   :  { %27 = vst.msk [vmem:[#allocation2 + $0x348] sm:$0xff] %vm15_vm1, %v7561_v2  ;;  %28 = vst.msk [vmem:[#allocation2 + $0x350] sm:$0xff] %vm15_vm1, %v7561_v2  ;;  %v108_v12 = vld [vmem:[%s9140_s0 + $0x28] sm:$0xff]  ;;  %v109_v13 = vld [vmem:[%s9140_s0 + $0x30] sm:$0xff]  ;;  %v913_v35 = vsel %vm523_vm0, %v328_v7, 0  ;;  %v3049_v40 = vsel %vm523_vm0, %v5884_v9, 0 }
   0x7   :  { %31 = vst.msk [vmem:[#allocation2] sm:$0x1] %vm30_vm3, %v7561_v2  ;;  %67 = vst.msk [vmem:[#allocation2 + $0x11] sm:$0x1] %vm30_vm3, %v7561_v2  ;;  %v110_v14 = vld [vmem:[%s9140_s0 + $0x38] sm:$0xff]  ;;  %v111_v15 = vld [vmem:[%s9140_s0 + $0x40] sm:$0xff] }
   0x8   :  { %32 = vst.msk [vmem:[#allocation2 + $0x18] sm:$0x1] %vm30_vm3, %v7561_v2  ;;  %33 = vst.msk [vmem:[#allocation2 + $0x30] sm:$0x1] %vm30_vm3, %v7561_v2  ;;  %v112_v16 = vld [vmem:[%s9140_s0 + $0x48] sm:$0xff]  ;;  %v113_v17 = vld [vmem:[%s9140_s0 + $0x50] sm:$0xff] }
   0x9   :  { %34 = vst.msk [vmem:[#allocation2 + $0x48] sm:$0x1] %vm30_vm3, %v7561_v2  ;;  %35 = vst.msk [vmem:[#allocation2 + $0x60] sm:$0x1] %vm30_vm3, %v7561_v2  ;;  %v114_v18 = vld [vmem:[%s9140_s0 + $0x58] sm:$0xff]  ;;  %v115_v19 = vld [vmem:[%s9140_s0 + $0x60] sm:$0xff] }
   0xa   :  { %36 = vst.msk [vmem:[#allocation2 + $0x78] sm:$0x1] %vm30_vm3, %v7561_v2  ;;  %37 = vst.msk [vmem:[#allocation2 + $0x90] sm:$0x1] %vm30_vm3, %v7561_v2  ;;  %v116_v20 = vld [vmem:[%s9140_s0 + $0x68] sm:$0xff]  ;;  %v117_v21 = vld [vmem:[%s9140_s0 + $0x70] sm:$0xff] }
   0xb   :  { %38 = vst.msk [vmem:[#allocation2 + $0xa8] sm:$0x1] %vm30_vm3, %v7561_v2  ;;  %39 = vst.msk [vmem:[#allocation2 + $0xc0] sm:$0x1] %vm30_vm3, %v7561_v2  ;;  %v118_v22 = vld [vmem:[%s9140_s0 + $0x78] sm:$0xff]  ;;  %v119_v23 = vld [vmem:[%s9140_s0 + $0x80] sm:$0xff] }
   0xc   :  { %40 = vst.msk [vmem:[#allocation2 + $0xd8] sm:$0x1] %vm30_vm3, %v7561_v2  ;;  %41 = vst.msk [vmem:[#allocation2 + $0xf0] sm:$0x1] %vm30_vm3, %v7561_v2  ;;  %v329_v24 = vld [vmem:[#allocation2 + $0x1] sm:$0xff]  ;;  %v330_v25 = vld [vmem:[#allocation2 + $0x9] sm:$0xff] }
   0xd   :  { %42 = vst.msk [vmem:[#allocation2 + $0x108] sm:$0x1] %vm30_vm3, %v7561_v2  ;;  %43 = vst.msk [vmem:[#allocation2 + $0x120] sm:$0x1] %vm30_vm3, %v7561_v2  ;;  %v120_v26 = vld [vmem:[%s9140_s0 + $0x88] sm:$0xff]  ;;  %v393_v27 = vpack.c.bf16 %v330_v25, %v329_v24  ;;  %v121_v29 = vld [vmem:[%s9140_s0 + $0x90] sm:$0xff] }
   0xe   :  { %44 = vst.msk [vmem:[#allocation2 + $0x138] sm:$0x1] %vm30_vm3, %v7561_v2  ;;  %45 = vst.msk [vmem:[#allocation2 + $0x150] sm:$0x1] %vm30_vm3, %v7561_v2  ;;  %v122_v30 = vld [vmem:[%s9140_s0 + $0x98] sm:$0xff]  ;;  %v123_v33 = vld [vmem:[%s9140_s0 + $0xa0] sm:$0xff] }
   0xf   :  { %46 = vst.msk [vmem:[#allocation2 + $0x168] sm:$0x1] %vm30_vm3, %v7561_v2  ;;  %47 = vst.msk [vmem:[#allocation2 + $0x180] sm:$0x1] %vm30_vm3, %v7561_v2  ;;  %6443 = vmatprep.mubr.msk.bf16.mxu1 %vm15_vm1, %v393_v27  ;;  %v124_v38 = vld [vmem:[%s9140_s0 + $0xa8] sm:$0xff]  ;;  %v125_v47 = vld [vmem:[%s9140_s0 + $0xb0] sm:$0xff] }
  0x10   :  { %50 = vst.msk [vmem:[#allocation2 + $0x1c8] sm:$0x1] %vm30_vm3, %v7561_v2  ;;  %51 = vst.msk [vmem:[#allocation2 + $0x1e0] sm:$0x1] %vm30_vm3, %v7561_v2  ;;  %v126_v48 = vld [vmem:[%s9140_s0 + $0xb8] sm:$0xff]  ;;  %v127_v49 = vld [vmem:[%s9140_s0 + $0xc0] sm:$0xff] }
  0x11   :  { %52 = vst.msk [vmem:[#allocation2 + $0x1f8] sm:$0x1] %vm30_vm3, %v7561_v2  ;;  %53 = vst.msk [vmem:[#allocation2 + $0x210] sm:$0x1] %vm30_vm3, %v7561_v2  ;;  %v128_v51 = vld [vmem:[%s9140_s0 + $0xc8] sm:$0xff]  ;;  %v129_v52 = vld [vmem:[%s9140_s0 + $0xd0] sm:$0xff] }
  0x12   :  { %54 = vst.msk [vmem:[#allocation2 + $0x228] sm:$0x1] %vm30_vm3, %v7561_v2  ;;  %55 = vst.msk [vmem:[#allocation2 + $0x240] sm:$0x1] %vm30_vm3, %v7561_v2  ;;  %v130_v54 = vld [vmem:[%s9140_s0 + $0xd8] sm:$0xff]  ;;  %v131_v55 = vld [vmem:[%s9140_s0 + $0xe0] sm:$0xff] }
  0x13   :  { %56 = vst.msk [vmem:[#allocation2 + $0x258] sm:$0x1] %vm30_vm3, %v7561_v2  ;;  %57 = vst.msk [vmem:[#allocation2 + $0x270] sm:$0x1] %vm30_vm3, %v7561_v2  ;;  %v132_v56 = vld [vmem:[%s9140_s0 + $0xe8] sm:$0xff]  ;;  %v133_v57 = vld [vmem:[%s9140_s0 + $0xf0] sm:$0xff] }
  0x14   :  { %58 = vst.msk [vmem:[#allocation2 + $0x288] sm:$0x1] %vm30_vm3, %v7561_v2  ;;  %59 = vst.msk [vmem:[#allocation2 + $0x2a0] sm:$0x1] %vm30_vm3, %v7561_v2  ;;  %v134_v58 = vld [vmem:[%s9140_s0 + $0xf8] sm:$0xff]  ;;  %v135_v59 = vld [vmem:[%s9140_s0 + $0x100] sm:$0xff] }
  0x15   :  { %60 = vst.msk [vmem:[#allocation2 + $0x2b8] sm:$0x1] %vm30_vm3, %v7561_v2  ;;  %61 = vst.msk [vmem:[#allocation2 + $0x2d0] sm:$0x1] %vm30_vm3, %v7561_v2  ;;  %v136_v60 = vld [vmem:[%s9140_s0 + $0x108] sm:$0xff]  ;;  %v139_v4 = vld [vmem:[%s9140_s0 + $0x120] sm:$0xff] }
  0x16   :  { %62 = vst.msk [vmem:[#allocation2 + $0x2e8] sm:$0x1] %vm30_vm3, %v7561_v2  ;;  %63 = vst.msk [vmem:[#allocation2 + $0x300] sm:$0x1] %vm30_vm3, %v7561_v2  ;;  %v7933_v63 = vld [vmem:[%s9139_s1 + $0xc] sm:$0x3] }
  0x17   :  { %64 = vst.msk [vmem:[#allocation2 + $0x318] sm:$0x1] %vm30_vm3, %v7561_v2  ;;  %65 = vst.msk [vmem:[#allocation2 + $0x330] sm:$0x1] %vm30_vm3, %v7561_v2  ;;  %v140_v7 = vld [vmem:[%s9140_s0 + $0x128] sm:$0xff]  ;;  %v150_v24 = vld [vmem:[%s9140_s0 + $0x178] sm:$0xff] }
  0x18   :  { %68 = vst.msk [vmem:[#allocation2 + $0x29] sm:$0x1] %vm30_vm3, %v7561_v2  ;;  %69 = vst.msk [vmem:[#allocation2 + $0x41] sm:$0x1] %vm30_vm3, %v7561_v2  ;;  %v151_v25 = vld [vmem:[%s9140_s0 + $0x180] sm:$0xff]  ;;  %vm5311_vm4 = vcmask 27648  }
  0x19   :  { %70 = vst.msk [vmem:[#allocation2 + $0x59] sm:$0x1] %vm30_vm3, %v7561_v2  ;;  %71 = vst.msk [vmem:[#allocation2 + $0x71] sm:$0x1] %vm30_vm3, %v7561_v2 }
  0x1a   :  { %72 = vst.msk [vmem:[#allocation2 + $0x89] sm:$0x1] %vm30_vm3, %v7561_v2  ;;  %73 = vst.msk [vmem:[#allocation2 + $0xa1] sm:$0x1] %vm30_vm3, %v7561_v2 }
  0x1b   :  { %74 = vst.msk [vmem:[#allocation2 + $0xb9] sm:$0x1] %vm30_vm3, %v7561_v2  ;;  %75 = vst.msk [vmem:[#allocation2 + $0xd1] sm:$0x1] %vm30_vm3, %v7561_v2 }
  0x1c   :  { %76 = vst.msk [vmem:[#allocation2 + $0xe9] sm:$0x1] %vm30_vm3, %v7561_v2  ;;  %77 = vst.msk [vmem:[#allocation2 + $0x101] sm:$0x1] %vm30_vm3, %v7561_v2 }
  0x1d   :  { %78 = vst.msk [vmem:[#allocation2 + $0x119] sm:$0x1] %vm30_vm3, %v7561_v2  ;;  %79 = vst.msk [vmem:[#allocation2 + $0x131] sm:$0x1] %vm30_vm3, %v7561_v2 }
  0x1e   :  { %80 = vst.msk [vmem:[#allocation2 + $0x149] sm:$0x1] %vm30_vm3, %v7561_v2  ;;  %81 = vst.msk [vmem:[#allocation2 + $0x161] sm:$0x1] %vm30_vm3, %v7561_v2 }
  0x1f   :  { %82 = vst.msk [vmem:[#allocation2 + $0x179] sm:$0x1] %vm30_vm3, %v7561_v2  ;;  %83 = vst.msk [vmem:[#allocation2 + $0x191] sm:$0x1] %vm30_vm3, %v7561_v2 }
  0x20   :  { %86 = vst.msk [vmem:[#allocation2 + $0x1d9] sm:$0x1] %vm30_vm3, %v7561_v2  ;;  %87 = vst.msk [vmem:[#allocation2 + $0x1f1] sm:$0x1] %vm30_vm3, %v7561_v2 }
  0x21   :  { %88 = vst.msk [vmem:[#allocation2 + $0x209] sm:$0x1] %vm30_vm3, %v7561_v2  ;;  %89 = vst.msk [vmem:[#allocation2 + $0x221] sm:$0x1] %vm30_vm3, %v7561_v2 }
  0x22   :  { %90 = vst.msk [vmem:[#allocation2 + $0x239] sm:$0x1] %vm30_vm3, %v7561_v2  ;;  %91 = vst.msk [vmem:[#allocation2 + $0x251] sm:$0x1] %vm30_vm3, %v7561_v2 }
  0x23   :  { %92 = vst.msk [vmem:[#allocation2 + $0x269] sm:$0x1] %vm30_vm3, %v7561_v2  ;;  %93 = vst.msk [vmem:[#allocation2 + $0x281] sm:$0x1] %vm30_vm3, %v7561_v2 }
  0x24   :  { %94 = vst.msk [vmem:[#allocation2 + $0x299] sm:$0x1] %vm30_vm3, %v7561_v2  ;;  %95 = vst.msk [vmem:[#allocation2 + $0x2b1] sm:$0x1] %vm30_vm3, %v7561_v2 }
  0x25   :  { %96 = vst.msk [vmem:[#allocation2 + $0x2c9] sm:$0x1] %vm30_vm3, %v7561_v2  ;;  %97 = vst.msk [vmem:[#allocation2 + $0x2e1] sm:$0x1] %vm30_vm3, %v7561_v2 }
  0x26   :  { %98 = vst.msk [vmem:[#allocation2 + $0x2f9] sm:$0x1] %vm30_vm3, %v7561_v2  ;;  %99 = vst.msk [vmem:[#allocation2 + $0x311] sm:$0x1] %vm30_vm3, %v7561_v2 }
  0x27   :  { %100 = vst.msk [vmem:[#allocation2 + $0x329] sm:$0x1] %vm30_vm3, %v7561_v2  ;;  %101 = vst.msk [vmem:[#allocation2 + $0x341] sm:$0x1] %vm30_vm3, %v7561_v2 }
  0x28   :  { %168 = vst.msk [vmem:[#allocation2 + $0x19] sm:$0xff] %vm15_vm1, %v7620_v3  ;;  %169 = vst.msk [vmem:[#allocation2 + $0x21] sm:$0xff] %vm15_vm1, %v104_v6  ;;  %v138_v3 = vld [vmem:[%s9140_s0 + $0x118] sm:$0xff] }
  0x29   :  { %48 = vst.msk [vmem:[#allocation2 + $0x198] sm:$0x1] %vm30_vm3, %v7561_v2  ;;  %49 = vst.msk [vmem:[#allocation2 + $0x1b0] sm:$0x1] %vm30_vm3, %v7561_v2 }
  0x2a   :  { %66 = vst.msk [vmem:[#allocation2 + $0x348] sm:$0x1] %vm30_vm3, %v7561_v2  ;;  %84 = vst.msk [vmem:[#allocation2 + $0x1a9] sm:$0x1] %vm30_vm3, %v7561_v2 }
  0x2b   :  { %85 = vst.msk [vmem:[#allocation2 + $0x1c1] sm:$0x1] %vm30_vm3, %v7561_v2  ;;  %102 = vst.msk [vmem:[#allocation2 + $0x359] sm:$0x1] %vm30_vm3, %v7561_v2  ;;  %v137_v2 = vld [vmem:[%s9140_s0 + $0x110] sm:$0xff] }
  0x2c   :  { %170 = vst.msk [vmem:[#allocation2 + $0x31] sm:$0xff] %vm15_vm1, %v105_v8  ;;  %171 = vst.msk [vmem:[#allocation2 + $0x39] sm:$0xff] %vm15_vm1, %v106_v10 }
  0x2d   :  { %172 = vst.msk [vmem:[#allocation2 + $0x49] sm:$0xff] %vm15_vm1, %v107_v11  ;;  %173 = vst.msk [vmem:[#allocation2 + $0x51] sm:$0xff] %vm15_vm1, %v108_v12  ;;  %v141_v11 = vld [vmem:[%s9140_s0 + $0x130] sm:$0xff]  ;;  %v142_v12 = vld [vmem:[%s9140_s0 + $0x138] sm:$0xff] }
  0x2e   :  { %174 = vst.msk [vmem:[#allocation2 + $0x61] sm:$0xff] %vm15_vm1, %v109_v13  ;;  %175 = vst.msk [vmem:[#allocation2 + $0x69] sm:$0xff] %vm15_vm1, %v110_v14  ;;  %v143_v13 = vld [vmem:[%s9140_s0 + $0x140] sm:$0xff]  ;;  %v144_v14 = vld [vmem:[%s9140_s0 + $0x148] sm:$0xff] }
  0x2f   :  { %176 = vst.msk [vmem:[#allocation2 + $0x79] sm:$0xff] %vm15_vm1, %v111_v15  ;;  %177 = vst.msk [vmem:[#allocation2 + $0x81] sm:$0xff] %vm15_vm1, %v112_v16  ;;  %v331_v28 = vld [vmem:[#allocation2 + $0x19] sm:$0xff]  ;;  %v332_v31 = vld [vmem:[#allocation2 + $0x21] sm:$0xff] }
  0x30   :  { %178 = vst.msk [vmem:[#allocation2 + $0x91] sm:$0xff] %vm15_vm1, %v113_v17  ;;  %179 = vst.msk [vmem:[#allocation2 + $0x99] sm:$0xff] %vm15_vm1, %v114_v18  ;;  %v394_v34 = vpack.c.bf16 %v332_v31, %v331_v28  ;;  %v145_v18 = vld [vmem:[%s9140_s0 + $0x150] sm:$0xff] }
  0x31   :  { %180 = vst.msk [vmem:[#allocation2 + $0xa9] sm:$0xff] %vm15_vm1, %v115_v19  ;;  %181 = vst.msk [vmem:[#allocation2 + $0xb1] sm:$0xff] %vm15_vm1, %v116_v20  ;;  %v146_v20 = vld [vmem:[%s9140_s0 + $0x158] sm:$0xff]  ;;  %v153_v31 = vld [vmem:[%s9140_s0 + $0x190] sm:$0xff] }
  0x32   :  { %182 = vst.msk [vmem:[#allocation2 + $0xc1] sm:$0xff] %vm15_vm1, %v117_v21  ;;  %183 = vst.msk [vmem:[#allocation2 + $0xc9] sm:$0xff] %vm15_vm1, %v118_v22  ;;  %6444 = vmatmul.mubr.msk.bf16.vlgmr.msra.gmra.mrb[0].mxu1 %vm15_vm1, %v394_v34  ;;  %6707 = vmatprep.mubr.msk.bf16.mxu0 %vm15_vm1, %v394_v34  ;;  %v147_v21 = vld [vmem:[%s9140_s0 + $0x160] sm:$0xff]  ;;  %v148_v22 = vld [vmem:[%s9140_s0 + $0x168] sm:$0xff] }
  0x33   :  { %184 = vst.msk [vmem:[#allocation2 + $0xd9] sm:$0xff] %vm15_vm1, %v119_v23  ;;  %185 = vst.msk [vmem:[#allocation2 + $0xe1] sm:$0xff] %vm15_vm1, %v120_v26  ;;  %v2306_v32 = vld [vmem:[#allocation2 + $0x31] sm:$0xff]  ;;  %v2307_v36 = vld [vmem:[#allocation2 + $0x39] sm:$0xff]  ;;  %6508 = vmatpush3.bf16.msra.mxu1 %v913_v35 }
  0x34   :  { %186 = vst.msk [vmem:[#allocation2 + $0xf1] sm:$0xff] %vm15_vm1, %v121_v29  ;;  %187 = vst.msk [vmem:[#allocation2 + $0xf9] sm:$0xff] %vm15_vm1, %v122_v30  ;;  %v335_v37 = vld [vmem:[#allocation2 + $0x49] sm:$0xff]  ;;  %v2369_v39 = vpack.c.bf16 %v2307_v36, %v2306_v32  ;;  %v336_v41 = vld [vmem:[#allocation2 + $0x51] sm:$0xff] }
  0x35   :  { %188 = vst.msk [vmem:[#allocation2 + $0x109] sm:$0xff] %vm15_vm1, %v123_v33  ;;  %189 = vst.msk [vmem:[#allocation2 + $0x111] sm:$0xff] %vm15_vm1, %v124_v38  ;;  %v396_v42 = vpack.c.bf16 %v336_v41, %v335_v37  ;;  %v2310_v43 = vld [vmem:[#allocation2 + $0x61] sm:$0xff]  ;;  %v2311_v44 = vld [vmem:[#allocation2 + $0x69] sm:$0xff] }
  0x36   :  { %6708 = vmatmul.mubr.msk.bf16.vlgmr.msra.gmra.mrb[0].mxu0 %vm15_vm1, %v2369_v39  ;;  %6447 = vmatprep.mubr.msk.bf16.mxu1 %vm15_vm1, %v2369_v39  ;;  %v339_v45 = vld [vmem:[#allocation2 + $0x79] sm:$0xff]  ;;  %v340_v46 = vld [vmem:[#allocation2 + $0x81] sm:$0xff]  ;;  %190 = vst.msk [vmem:[#allocation2 + $0x121] sm:$0xff] %vm15_vm1, %v125_v47  ;;  %191 = vst.msk [vmem:[#allocation2 + $0x129] sm:$0xff] %vm15_vm1, %v126_v48  ;;  %v2371_v50 = vpack.c.bf16 %v2311_v44, %v2310_v43 }
  0x37   :  { %6772 = vmatpush3.bf16.msra.mxu0 %v3049_v40  ;;  %6711 = vmatprep.mubr.msk.bf16.mxu0 %vm15_vm1, %v396_v42  ;;  %192 = vst.msk [vmem:[#allocation2 + $0x139] sm:$0xff] %vm15_vm1, %v127_v49  ;;  %v398_v53 = vpack.c.bf16 %v340_v46, %v339_v45  ;;  %193 = vst.msk [vmem:[#allocation2 + $0x141] sm:$0xff] %vm15_vm1, %v128_v51  ;;  %v2314_v61 = vld [vmem:[#allocation2 + $0x91] sm:$0xff]  ;;  %v2315_v62 = vld [vmem:[#allocation2 + $0x99] sm:$0xff] }
  0x38   :  { %194 = vst.msk [vmem:[#allocation2 + $0x151] sm:$0xff] %vm15_vm1, %v129_v52  ;;  %195 = vst.msk [vmem:[#allocation2 + $0x159] sm:$0xff] %vm15_vm1, %v130_v54  ;;  %v343_v0 = vld [vmem:[#allocation2 + $0xa9] sm:$0xff]  ;;  %v344_v1 = vld [vmem:[#allocation2 + $0xb1] sm:$0xff]  ;;  %7556 = vmatprep.subr.msk.bf16.mxu0 %vm523_vm0, %v7933_v63  ;;  %v2373_v6 = vpack.c.bf16 %v2315_v62, %v2314_v61 }
  0x39   :  { %196 = vst.msk [vmem:[#allocation2 + $0x169] sm:$0xff] %vm15_vm1, %v131_v55  ;;  %197 = vst.msk [vmem:[#allocation2 + $0x171] sm:$0xff] %vm15_vm1, %v132_v56  ;;  %v400_v8 = vpack.c.bf16 %v344_v1, %v343_v0  ;;  %v2318_v9 = vld [vmem:[#allocation2 + $0xc1] sm:$0xff]  ;;  %v2319_v10 = vld [vmem:[#allocation2 + $0xc9] sm:$0xff] }
  0x3a   :  { %6448 = vmatmul.mubr.msk.bf16.gmra.mrb[4].mxu1 %vm15_vm1, %v396_v42  ;;  %198 = vst.msk [vmem:[#allocation2 + $0x181] sm:$0xff] %vm15_vm1, %v133_v57  ;;  %199 = vst.msk [vmem:[#allocation2 + $0x189] sm:$0xff] %vm15_vm1, %v134_v58  ;;  %v347_v15 = vld [vmem:[#allocation2 + $0xd9] sm:$0xff]  ;;  %v348_v16 = vld [vmem:[#allocation2 + $0xe1] sm:$0xff]  ;;  %v2375_v17 = vpack.c.bf16 %v2319_v10, %v2318_v9 }
  0x3b   :  { %6451 = vmatprep.mubr.msk.bf16.mxu1 %vm15_vm1, %v2371_v50  ;;  %200 = vst.msk [vmem:[#allocation2 + $0x1c9] sm:$0xff] %vm15_vm1, %v135_v59  ;;  %201 = vst.msk [vmem:[#allocation2 + $0x1d1] sm:$0xff] %vm15_vm1, %v136_v60  ;;  %v402_v19 = vpack.c.bf16 %v348_v16, %v347_v15  ;;  %v149_v23 = vld [vmem:[%s9140_s0 + $0x170] sm:$0xff]  ;;  %v152_v26 = vld [vmem:[%s9140_s0 + $0x188] sm:$0xff] }
  0x3c   :  { %202 = vst.msk [vmem:[#allocation2 + $0x1e1] sm:$0xff] %vm15_vm1, %v137_v2  ;;  %203 = vst.msk [vmem:[#allocation2 + $0x1e9] sm:$0xff] %vm15_vm1, %v138_v3  ;;  %v2322_v27 = vld [vmem:[#allocation2 + $0xf1] sm:$0xff]  ;;  %v2323_v28 = vld [vmem:[#allocation2 + $0xf9] sm:$0xff] }
  0x3d   :  { %204 = vst.msk [vmem:[#allocation2 + $0x1f9] sm:$0xff] %vm15_vm1, %v139_v4  ;;  %205 = vst.msk [vmem:[#allocation2 + $0x201] sm:$0xff] %vm15_vm1, %v140_v7  ;;  %v351_v29 = vld [vmem:[#allocation2 + $0x109] sm:$0xff]  ;;  %v352_v30 = vld [vmem:[#allocation2 + $0x111] sm:$0xff]  ;;  %v2377_v33 = vpack.c.bf16 %v2323_v28, %v2322_v27 }
  0x3e   :  { %6712 = vmatmul.mubr.msk.bf16.gmra.mrb[4].mxu0 %vm15_vm1, %v2371_v50  ;;  %206 = vst.msk [vmem:[#allocation2 + $0x211] sm:$0xff] %vm15_vm1, %v141_v11  ;;  %207 = vst.msk [vmem:[#allocation2 + $0x219] sm:$0xff] %vm15_vm1, %v142_v12  ;;  %v154_v32 = vld [vmem:[%s9140_s0 + $0x198] sm:$0xff]  ;;  %v155_v34 = vld [vmem:[%s9140_s0 + $0x1a0] sm:$0xff]  ;;  %v404_v36 = vpack.c.bf16 %v352_v30, %v351_v29 }
  0x3f   :  { %6715 = vmatprep.mubr.msk.bf16.mxu0 %vm15_vm1, %v398_v53  ;;  %208 = vst.msk [vmem:[#allocation2 + $0x229] sm:$0xff] %vm15_vm1, %v143_v13  ;;  %209 = vst.msk [vmem:[#allocation2 + $0x231] sm:$0xff] %vm15_vm1, %v144_v14  ;;  %v156_v35 = vld [vmem:[%s9140_s0 + $0x1a8] sm:$0xff]  ;;  %v157_v39 = vld [vmem:[%s9140_s0 + $0x1b0] sm:$0xff] }
  0x40   :  { %210 = vst.msk [vmem:[#allocation2 + $0x241] sm:$0xff] %vm15_vm1, %v145_v18  ;;  %211 = vst.msk [vmem:[#allocation2 + $0x249] sm:$0xff] %vm15_vm1, %v146_v20  ;;  %v2326_v37 = vld [vmem:[#allocation2 + $0x121] sm:$0xff]  ;;  %v2327_v38 = vld [vmem:[#allocation2 + $0x129] sm:$0xff] }
  0x41   :  { %212 = vst.msk [vmem:[#allocation2 + $0x259] sm:$0xff] %vm15_vm1, %v147_v21  ;;  %213 = vst.msk [vmem:[#allocation2 + $0x261] sm:$0xff] %vm15_vm1, %v148_v22  ;;  %v158_v40 = vld [vmem:[%s9140_s0 + $0x1b8] sm:$0xff]  ;;  %v159_v41 = vld [vmem:[%s9140_s0 + $0x1c0] sm:$0xff]  ;;  %v2379_v45 = vpack.c.bf16 %v2327_v38, %v2326_v37 }
  0x42   :  { %6452 = vmatmul.mubr.msk.bf16.gmra.mrb[8].mxu1 %vm15_vm1, %v398_v53  ;;  %214 = vst.msk [vmem:[#allocation2 + $0x271] sm:$0xff] %vm15_vm1, %v149_v23  ;;  %215 = vst.msk [vmem:[#allocation2 + $0x279] sm:$0xff] %vm15_vm1, %v150_v24  ;;  %v160_v42 = vld [vmem:[%s9140_s0 + $0x1c8] sm:$0xff]  ;;  %v355_v43 = vld [vmem:[#allocation2 + $0x139] sm:$0xff] }
  0x43   :  { %6455 = vmatprep.mubr.msk.bf16.mxu1 %vm15_vm1, %v2373_v6  ;;  %216 = vst.msk [vmem:[#allocation2 + $0x289] sm:$0xff] %vm15_vm1, %v151_v25  ;;  %217 = vst.msk [vmem:[#allocation2 + $0x291] sm:$0xff] %vm15_vm1, %v152_v26  ;;  %v356_v44 = vld [vmem:[#allocation2 + $0x141] sm:$0xff]  ;;  %v161_v46 = vld [vmem:[%s9140_s0 + $0x1d0] sm:$0xff] }
  0x44   :  { %218 = vst.msk [vmem:[#allocation2 + $0x2a1] sm:$0xff] %vm15_vm1, %v153_v31  ;;  %219 = vst.msk [vmem:[#allocation2 + $0x2a9] sm:$0xff] %vm15_vm1, %v154_v32  ;;  %v406_v47 = vpack.c.bf16 %v356_v44, %v355_v43  ;;  %v162_v48 = vld [vmem:[%s9140_s0 + $0x1d8] sm:$0xff]  ;;  %v163_v49 = vld [vmem:[%s9140_s0 + $0x1e0] sm:$0xff] }
  0x45   :  { %220 = vst.msk [vmem:[#allocation2 + $0x2b9] sm:$0xff] %vm15_vm1, %v155_v34  ;;  %221 = vst.msk [vmem:[#allocation2 + $0x2c1] sm:$0xff] %vm15_vm1, %v156_v35  ;;  %v164_v50 = vld [vmem:[%s9140_s0 + $0x1e8] sm:$0xff]  ;;  %v2330_v51 = vld [vmem:[#allocation2 + $0x151] sm:$0xff] }
  0x46   :  { %6716 = vmatmul.mubr.msk.bf16.gmra.mrb[8].mxu0 %vm15_vm1, %v2373_v6  ;;  %222 = vst.msk [vmem:[#allocation2 + $0x2d1] sm:$0xff] %vm15_vm1, %v157_v39  ;;  %223 = vst.msk [vmem:[#allocation2 + $0x2d9] sm:$0xff] %vm15_vm1, %v158_v40  ;;  %v2331_v52 = vld [vmem:[#allocation2 + $0x159] sm:$0xff]  ;;  %v359_v53 = vld [vmem:[#allocation2 + $0x169] sm:$0xff] }
  0x47   :  { %6719 = vmatprep.mubr.msk.bf16.mxu0 %vm15_vm1, %v400_v8  ;;  %224 = vst.msk [vmem:[#allocation2 + $0x2e9] sm:$0xff] %vm15_vm1, %v159_v41  ;;  %225 = vst.msk [vmem:[#allocation2 + $0x2f1] sm:$0xff] %vm15_vm1, %v160_v42  ;;  %v360_v54 = vld [vmem:[#allocation2 + $0x171] sm:$0xff]  ;;  %v8068_v55 = vld [vmem:[%s9139_s1 + $0x4] sm:$0x3]  ;;  %v2381_v56 = vpack.c.bf16 %v2331_v52, %v2330_v51 }
  0x48   :  { %226 = vst.msk [vmem:[#allocation2 + $0x301] sm:$0xff] %vm15_vm1, %v161_v46  ;;  %227 = vst.msk [vmem:[#allocation2 + $0x309] sm:$0xff] %vm15_vm1, %v162_v48  ;;  %7551 = vmatprep.subr.msk.bf16.mxu1 %vm523_vm0, %v8068_v55  ;;  %v408_v57 = vpack.c.bf16 %v360_v54, %v359_v53  ;;  %v361_v58 = vld [vmem:[#allocation2 + $0x1b1] sm:$0xff]  ;;  %v2334_v59 = vld [vmem:[#allocation2 + $0x181] sm:$0xff] }
  0x49   :  { %228 = vst.msk [vmem:[#allocation2 + $0x319] sm:$0xff] %vm15_vm1, %v163_v49  ;;  %229 = vst.msk [vmem:[#allocation2 + $0x321] sm:$0xff] %vm15_vm1, %v164_v50  ;;  %v2335_v60 = vld [vmem:[#allocation2 + $0x189] sm:$0xff]  ;;  %v362_v61 = vld [vmem:[#allocation2 + $0x1b9] sm:$0xff] }
  0x4a   :  { %6456 = vmatmul.mubr.msk.bf16.gmra.mrb[12].mxu1 %vm15_vm1, %v400_v8  ;;  %v2854_v62 = vld [vmem:[#allocation2 + $0x1a] sm:$0xff]  ;;  %v2855_v0 = vld [vmem:[#allocation2 + $0x22] sm:$0xff]  ;;  %v2383_v1 = vpack.c.bf16 %v2335_v60, %v2334_v59  ;;  %v409_v2 = vpack.c.bf16 %v362_v61, %v361_v58  ;;  %v364_v6 = vld [vmem:[#allocation2 + $0x1d1] sm:$0xff] }
  0x4b   :  { %6459 = vmatprep.mubr.msk.bf16.mxu1 %vm15_vm1, %v2375_v17  ;;  %v8076_v3 = vpack.c.bf16 %v2855_v0, %v2854_v62  ;;  %v363_v4 = vld [vmem:[#allocation2 + $0x1c9] sm:$0xff]  ;;  %v2856_v7 = vld [vmem:[#allocation2 + $0x32] sm:$0xff]  ;;  %v2857_v8 = vld [vmem:[#allocation2 + $0x3a] sm:$0xff] }
  0x4c   :  { %v365_v9 = vld [vmem:[#allocation2 + $0x1e1] sm:$0xff]  ;;  %v366_v10 = vld [vmem:[#allocation2 + $0x1e9] sm:$0xff]  ;;  %v2859_v12 = vld [vmem:[#allocation2 + $0x52] sm:$0xff]  ;;  %v410_v13 = vpack.c.bf16 %v364_v6, %v363_v4  ;;  %v8083_v14 = vpack.c.bf16 %v2857_v8, %v2856_v7 }
  0x4d   :  { %v2858_v11 = vld [vmem:[#allocation2 + $0x4a] sm:$0xff]  ;;  %v411_v15 = vpack.c.bf16 %v366_v10, %v365_v9  ;;  %v2860_v18 = vld [vmem:[#allocation2 + $0x62] sm:$0xff]  ;;  %v166_v20 = vld [vmem:[%s9140_s0 + $0x1f8] sm:$0xff] }
  0x4e   :  { %6720 = vmatmul.mubr.msk.bf16.gmra.mrb[12].mxu0 %vm15_vm1, %v2375_v17  ;;  %v8085_v16 = vpack.c.bf16 %v2859_v12, %v2858_v11  ;;  %v3600_v17 = vsel %vm523_vm0, %v7933_v63, 0  ;;  %v367_v21 = vld [vmem:[#allocation2 + $0x1f9] sm:$0xff]  ;;  %v368_v22 = vld [vmem:[#allocation2 + $0x201] sm:$0xff]  ;;  %v2861_v23 = vld [vmem:[#allocation2 + $0x6a] sm:$0xff]  ;;  %231 = vst.msk [vmem:[#allocation2 + $0x339] sm:$0xff] %vm15_vm1, %v166_v20 }
  0x4f   :  { %6723 = vmatprep.mubr.msk.bf16.mxu0 %vm15_vm1, %v402_v19  ;;  %v369_v63 = vld [vmem:[#allocation2 + $0x211] sm:$0xff]  ;;  %v370_v24 = vld [vmem:[#allocation2 + $0x219] sm:$0xff]  ;;  %v8106_v25 = vld [vmem:[%s9139_s1 + $0xe] sm:$0x3]  ;;  %v412_v28 = vpack.c.bf16 %v368_v22, %v367_v21  ;;  %v8110_v29 = vpack.c.bf16 %v2861_v23, %v2860_v18 }
  0x50   :  { %v2862_v26 = vld [vmem:[#allocation2 + $0x7a] sm:$0xff]  ;;  %v2863_v27 = vld [vmem:[#allocation2 + $0x82] sm:$0xff]  ;;  %v413_v30 = vpack.c.bf16 %v370_v24, %v369_v63  ;;  %v2864_v34 = vld [vmem:[#allocation2 + $0x92] sm:$0xff] }
  0x51   :  { %v8112_v31 = vpack.c.bf16 %v2863_v27, %v2862_v26  ;;  %v371_v32 = vld [vmem:[#allocation2 + $0x229] sm:$0xff]  ;;  %v2865_v35 = vld [vmem:[#allocation2 + $0x9a] sm:$0xff]  ;;  %v2867_v39 = vld [vmem:[#allocation2 + $0xb2] sm:$0xff] }
  0x52   :  { %6460 = vmatmul.mubr.msk.bf16.gmra.mrb[16].mxu1 %vm15_vm1, %v402_v19  ;;  %v165_v19 = vld [vmem:[%s9140_s0 + $0x1f0] sm:$0xff]  ;;  %v8120_v41 = vpack.c.bf16 %v2865_v35, %v2864_v34  ;;  %v375_v44 = vld [vmem:[#allocation2 + $0x259] sm:$0xff]  ;;  %v2868_v46 = vld [vmem:[#allocation2 + $0xc2] sm:$0xff] }
  0x53   :  { %6463 = vmatprep.mubr.msk.bf16.mxu1 %vm15_vm1, %v2377_v33  ;;  %230 = vst.msk [vmem:[#allocation2 + $0x331] sm:$0xff] %vm15_vm1, %v165_v19  ;;  %v374_v37 = vld [vmem:[#allocation2 + $0x249] sm:$0xff]  ;;  %v377_v48 = vld [vmem:[#allocation2 + $0x271] sm:$0xff]  ;;  %v378_v49 = vld [vmem:[#allocation2 + $0x279] sm:$0xff] }
  0x54   :  { %v2866_v38 = vld [vmem:[#allocation2 + $0xaa] sm:$0xff]  ;;  %v2870_v50 = vld [vmem:[#allocation2 + $0xda] sm:$0xff]  ;;  %v2871_v51 = vld [vmem:[#allocation2 + $0xe2] sm:$0xff]  ;;  %v417_v54 = vpack.c.bf16 %v378_v49, %v377_v48 }
  0x55   :  { %v8122_v43 = vpack.c.bf16 %v2867_v39, %v2866_v38  ;;  %v380_v58 = vld [vmem:[#allocation2 + $0x291] sm:$0xff]  ;;  %v2873_v60 = vld [vmem:[#allocation2 + $0xfa] sm:$0xff]  ;;  %v382_v62 = vld [vmem:[#allocation2 + $0x2a9] sm:$0xff] }
  0x56   :  { %6724 = vmatmul.mubr.msk.bf16.gmra.mrb[16].mxu0 %vm15_vm1, %v2377_v33  ;;  %v372_v33 = vld [vmem:[#allocation2 + $0x231] sm:$0xff]  ;;  %v381_v61 = vld [vmem:[#allocation2 + $0x2a1] sm:$0xff]  ;;  %v383_v8 = vld [vmem:[#allocation2 + $0x2b9] sm:$0xff] }
  0x57   :  { %6727 = vmatprep.mubr.msk.bf16.mxu0 %vm15_vm1, %v404_v36  ;;  %v414_v40 = vpack.c.bf16 %v372_v33, %v371_v32  ;;  %v2872_v59 = vld [vmem:[#allocation2 + $0xf2] sm:$0xff]  ;;  %v2874_v0 = vld [vmem:[#allocation2 + $0x10a] sm:$0xff]  ;;  %v419_v6 = vpack.c.bf16 %v382_v62, %v381_v61  ;;  %v384_v9 = vld [vmem:[#allocation2 + $0x2c1] sm:$0xff] }
  0x58   :  { %v8140_v4 = vpack.c.bf16 %v2873_v60, %v2872_v59  ;;  %v2876_v10 = vld [vmem:[#allocation2 + $0x122] sm:$0xff]  ;;  %v2877_v11 = vld [vmem:[#allocation2 + $0x12a] sm:$0xff]  ;;  %v420_v18 = vpack.c.bf16 %v384_v9, %v383_v8  ;;  %v2880_v63 = vld [vmem:[#allocation2 + $0x152] sm:$0xff] }
  0x59   :  { %v385_v12 = vld [vmem:[#allocation2 + $0x2d1] sm:$0xff]  ;;  %v8150_v19 = vpack.c.bf16 %v2877_v11, %v2876_v10  ;;  %v387_v22 = vld [vmem:[#allocation2 + $0x2e9] sm:$0xff]  ;;  %v2881_v24 = vld [vmem:[#allocation2 + $0x15a] sm:$0xff] }
  0x5a   :  { %6464 = vmatmul.mubr.msk.bf16.gmra.mrb[20].mxu1 %vm15_vm1, %v404_v36  ;;  %v373_v36 = vld [vmem:[#allocation2 + $0x241] sm:$0xff]  ;;  %v388_v23 = vld [vmem:[#allocation2 + $0x2f1] sm:$0xff]  ;;  %v390_v27 = vld [vmem:[#allocation2 + $0x309] sm:$0xff]  ;;  %v8160_v33 = vpack.c.bf16 %v2881_v24, %v2880_v63 }
  0x5b   :  { %6467 = vmatprep.mubr.msk.bf16.mxu1 %vm15_vm1, %v2379_v45  ;;  %v415_v42 = vpack.c.bf16 %v374_v37, %v373_v36  ;;  %v389_v26 = vld [vmem:[#allocation2 + $0x301] sm:$0xff]  ;;  %v422_v32 = vpack.c.bf16 %v388_v23, %v387_v22  ;;  %v391_v36 = vld [vmem:[#allocation2 + $0x319] sm:$0xff]  ;;  %v2885_v39 = vld [vmem:[#allocation2 + $0x18a] sm:$0xff] }
  0x5c   :  { %v423_v34 = vpack.c.bf16 %v390_v27, %v389_v26  ;;  %v392_v37 = vld [vmem:[#allocation2 + $0x321] sm:$0xff]  ;;  %v239_v9 = vld [vmem:[#allocation2 + $0x50] sm:$0xff]  ;;  %v242_v23 = vld [vmem:[#allocation2 + $0x78] sm:$0xff] }
  0x5d   :  { %v2884_v38 = vld [vmem:[#allocation2 + $0x182] sm:$0xff]  ;;  %v2890_v59 = vld [vmem:[#allocation2 + $0x1fa] sm:$0xff]  ;;  %v2892_v10 = vld [vmem:[#allocation2 + $0x212] sm:$0xff] }
  0x5e   :  { %6728 = vmatmul.mubr.msk.bf16.gmra.mrb[20].mxu0 %vm15_vm1, %v2379_v45  ;;  %v376_v45 = vld [vmem:[#allocation2 + $0x261] sm:$0xff]  ;;  %v2897_v26 = vld [vmem:[#allocation2 + $0x24a] sm:$0xff] }
  0x5f   :  { %6731 = vmatprep.mubr.msk.bf16.mxu0 %vm15_vm1, %v406_v47  ;;  %v416_v52 = vpack.c.bf16 %v376_v45, %v375_v44  ;;  %v2886_v44 = vld [vmem:[#allocation2 + $0x1ca] sm:$0xff]  ;;  %v2887_v45 = vld [vmem:[#allocation2 + $0x1d2] sm:$0xff]  ;;  %v2891_v60 = vld [vmem:[#allocation2 + $0x202] sm:$0xff] }
  0x60   :  { %v8170_v49 = vpack.c.bf16 %v2887_v45, %v2886_v44  ;;  %v238_v8 = vld [vmem:[#allocation2 + $0x48] sm:$0xff]  ;;  %v240_v11 = vld [vmem:[#allocation2 + $0x60] sm:$0xff]  ;;  %v244_v27 = vld [vmem:[#allocation2 + $0x90] sm:$0xff] }
  0x61   :  { %v243_v63 = vld [vmem:[#allocation2 + $0x80] sm:$0xff] }
  0x62   :  { %6468 = vmatmul.mubr.msk.bf16.gmra.mrb[24].mxu1 %vm15_vm1, %v406_v47  ;;  %v2869_v47 = vld [vmem:[#allocation2 + $0xca] sm:$0xff]  ;;  %v2896_v24 = vld [vmem:[#allocation2 + $0x242] sm:$0xff]  ;;  %v2901_v44 = vld [vmem:[#allocation2 + $0x27a] sm:$0xff] }
  0x63   :  { %6471 = vmatprep.mubr.msk.bf16.mxu1 %vm15_vm1, %v2381_v56  ;;  %v8130_v53 = vpack.c.bf16 %v2869_v47, %v2868_v46  ;;  %v424_v46 = vpack.c.bf16 %v392_v37, %v391_v36  ;;  %v2933_v47 = vpack.c.bf16 %v2885_v39, %v2884_v38  ;;  %v8217_v36 = vpack.c.bf16 %v2897_v26, %v2896_v24  ;;  %v246_v39 = vld [vmem:[#allocation2 + $0xa8] sm:$0xff]  ;;  %v248_v45 = vld [vmem:[#allocation2 + $0xc0] sm:$0xff] }
  0x64   :  { %v256_v24 = vld [vmem:[#allocation2 + $0x120] sm:$0xff]  ;;  %v257_v26 = vld [vmem:[#allocation2 + $0x128] sm:$0xff] }
  0x66   :  { %6732 = vmatmul.mubr.msk.bf16.gmra.mrb[24].mxu0 %vm15_vm1, %v2381_v56  ;;  %v8132_v56 = vpack.c.bf16 %v2871_v51, %v2870_v50  ;;  %v234_v50 = vld [vmem:[#allocation2 + $0x18] sm:$0xff]  ;;  %v235_v51 = vld [vmem:[#allocation2 + $0x20] sm:$0xff] }
  0x67   :  { %6735 = vmatprep.mubr.msk.bf16.mxu0 %vm15_vm1, %v408_v57  ;;  %v297_v61 = vpack.c.bf16 %v235_v51, %v234_v50 }
  0x6a   :  { %6472 = vmatmul.mubr.msk.bf16.gmra.mrb[28].mxu1 %vm15_vm1, %v408_v57  ;;  %v379_v57 = vld [vmem:[#allocation2 + $0x289] sm:$0xff] }
  0x6b   :  { %6475 = vmatprep.mubr.msk.bf16.mxu1 %vm15_vm1, %v409_v2  ;;  %v418_v2 = vpack.c.bf16 %v380_v58, %v379_v57  ;;  %v236_v57 = vld [vmem:[#allocation2 + $0x30] sm:$0xff]  ;;  %v237_v58 = vld [vmem:[#allocation2 + $0x38] sm:$0xff] }
  0x6e   :  { %6736 = vmatmul.mubr.msk.bf16.gmra.mrb[28].mxu0 %vm15_vm1, %v2383_v1  ;;  %v2875_v1 = vld [vmem:[#allocation2 + $0x112] sm:$0xff] }
  0x6f   :  { %6773 = vmatprep.mubr.msk.bf16.mxu0 %vm15_vm1, %v8076_v3  ;;  %v8142_v7 = vpack.c.bf16 %v2875_v1, %v2874_v0  ;;  %v1399_v0 = vsel %vm523_vm0, %v8068_v55, 0  ;;  %v8181_v1 = vpack.c.bf16 %v237_v58, %v236_v57  ;;  %v2893_v55 = vld [vmem:[#allocation2 + $0x21a] sm:$0xff] }
  0x70   :  { %v250_v57 = vld [vmem:[#allocation2 + $0xd8] sm:$0xff]  ;;  %v251_v58 = vld [vmem:[#allocation2 + $0xe0] sm:$0xff] }
  0x72   :  { %6476 = vmatmul.mubr.msk.bf16.gmra.mrb[32].mxu1 %vm15_vm1, %v410_v13  ;;  %v386_v13 = vld [vmem:[#allocation2 + $0x2d9] sm:$0xff] }
  0x73   :  { %6479 = vmatprep.mubr.msk.bf16.mxu1 %vm15_vm1, %v411_v15  ;;  %v2878_v15 = vld [vmem:[#allocation2 + $0x13a] sm:$0xff]  ;;  %v421_v20 = vpack.c.bf16 %v386_v13, %v385_v12  ;;  %v241_v12 = vld [vmem:[#allocation2 + $0x68] sm:$0xff] }
  0x74   :  { %v2894_v13 = vld [vmem:[#allocation2 + $0x22a] sm:$0xff] }
  0x76   :  { %6774 = vmatmul.mubr.msk.bf16.vlgmr.msra.gmra.mrb[0].mxu0 %vm15_vm1, %v8083_v14 }
  0x77   :  { %6838 = vmatpush3.bf16.msra.mxu0 %v3600_v17  ;;  %6777 = vmatprep.mubr.msk.bf16.mxu0 %vm15_vm1, %v8085_v16  ;;  %v2879_v17 = vld [vmem:[#allocation2 + $0x142] sm:$0xff] }
  0x78   :  { %7557 = vmatprep.subr.msk.bf16.mxu0 %vm523_vm0, %v8106_v25  ;;  %v8152_v21 = vpack.c.bf16 %v2879_v17, %v2878_v15  ;;  %v2895_v15 = vld [vmem:[#allocation2 + $0x232] sm:$0xff]  ;;  %v8199_v17 = vpack.c.bf16 %v239_v9, %v238_v8  ;;  %v2906_v8 = vld [vmem:[#allocation2 + $0x2ba] sm:$0xff]  ;;  %v2907_v9 = vld [vmem:[#allocation2 + $0x2c2] sm:$0xff] }
  0x79   :  { %v8205_v22 = vpack.c.bf16 %v2895_v15, %v2894_v13  ;;  %v254_v13 = vld [vmem:[#allocation2 + $0x108] sm:$0xff]  ;;  %v255_v15 = vld [vmem:[#allocation2 + $0x110] sm:$0xff] }
  0x7a   :  { %6480 = vmatmul.mubr.msk.bf16.gmra.mrb[36].mxu1 %vm15_vm1, %v412_v28  ;;  %v2882_v28 = vld [vmem:[#allocation2 + $0x16a] sm:$0xff] }
  0x7b   :  { %6483 = vmatprep.mubr.msk.bf16.mxu1 %vm15_vm1, %v413_v30  ;;  %v2883_v30 = vld [vmem:[#allocation2 + $0x172] sm:$0xff] }
  0x7c   :  { %v8162_v35 = vpack.c.bf16 %v2883_v30, %v2882_v28  ;;  %v245_v28 = vld [vmem:[#allocation2 + $0x98] sm:$0xff] }
  0x7d   :  { %v2898_v30 = vld [vmem:[#allocation2 + $0x25a] sm:$0xff]  ;;  %v8219_v37 = vpack.c.bf16 %v245_v28, %v244_v27  ;;  %v2910_v27 = vld [vmem:[#allocation2 + $0x2ea] sm:$0xff]  ;;  %v2911_v28 = vld [vmem:[#allocation2 + $0x2f2] sm:$0xff] }
  0x7e   :  { %6778 = vmatmul.mubr.msk.bf16.gmra.mrb[4].mxu0 %vm15_vm1, %v8110_v29 }
  0x7f   :  { %6781 = vmatprep.mubr.msk.bf16.mxu0 %vm15_vm1, %v8112_v31 }
  0x82   :  { %6484 = vmatmul.mubr.msk.bf16.gmra.mrb[40].mxu1 %vm15_vm1, %v414_v40  ;;  %v232_v40 = vld [vmem:[#allocation2] sm:$0xff] }
  0x83   :  { %6487 = vmatprep.mubr.msk.bf16.mxu1 %vm15_vm1, %v415_v42  ;;  %v233_v42 = vld [vmem:[#allocation2 + $0x8] sm:$0xff] }
  0x84   :  { %v296_v48 = vpack.c.bf16 %v233_v42, %v232_v40  ;;  %v247_v40 = vld [vmem:[#allocation2 + $0xb0] sm:$0xff] }
  0x85   :  { %v2900_v42 = vld [vmem:[#allocation2 + $0x272] sm:$0xff]  ;;  %v8231_v50 = vpack.c.bf16 %v247_v40, %v246_v39  ;;  %v8267_v39 = vpack.c.bf16 %v257_v26, %v256_v24  ;;  %v8269_v40 = vpack.c.bf16 %v2911_v28, %v2910_v27  ;;  %v266_v28 = vld [vmem:[#allocation2 + $0x1c8] sm:$0xff] }
  0x86   :  { %6782 = vmatmul.mubr.msk.bf16.gmra.mrb[8].mxu0 %vm15_vm1, %v8120_v41  ;;  %v8233_v51 = vpack.c.bf16 %v2901_v44, %v2900_v42  ;;  %v258_v42 = vld [vmem:[#allocation2 + $0x138] sm:$0xff]  ;;  %v259_v44 = vld [vmem:[#allocation2 + $0x140] sm:$0xff] }
  0x87   :  { %6785 = vmatprep.mubr.msk.bf16.mxu0 %vm15_vm1, %v8122_v43 }
  0x8a   :  { %6488 = vmatmul.mubr.msk.bf16.gmra.mrb[44].mxu1 %vm15_vm1, %v416_v52  ;;  %v2888_v52 = vld [vmem:[#allocation2 + $0x1e2] sm:$0xff] }
  0x8b   :  { %6491 = vmatprep.mubr.msk.bf16.mxu1 %vm15_vm1, %v417_v54  ;;  %v2889_v54 = vld [vmem:[#allocation2 + $0x1ea] sm:$0xff] }
  0x8c   :  { %v8177_v62 = vpack.c.bf16 %v2889_v54, %v2888_v52 }
  0x8e   :  { %6786 = vmatmul.mubr.msk.bf16.gmra.mrb[12].mxu0 %vm15_vm1, %v8130_v53 }
  0x8f   :  { %6789 = vmatprep.mubr.msk.bf16.mxu0 %vm15_vm1, %v8132_v56 }
  0x92   :  { %6492 = vmatmul.mubr.msk.bf16.gmra.mrb[48].mxu1 %vm15_vm1, %v418_v2  ;;  %v8183_v2 = vpack.c.bf16 %v2891_v60, %v2890_v59  ;;  %v2904_v59 = vld [vmem:[#allocation2 + $0x2a2] sm:$0xff]  ;;  %v2905_v60 = vld [vmem:[#allocation2 + $0x2aa] sm:$0xff] }
  0x93   :  { %6495 = vmatprep.mubr.msk.bf16.mxu1 %vm15_vm1, %v419_v6  ;;  %v8189_v6 = vld [vmem:[%s9139_s1 + $0x6] sm:$0x3] }
  0x96   :  { %6790 = vmatmul.mubr.msk.bf16.gmra.mrb[16].mxu0 %vm15_vm1, %v8140_v4 }
  0x97   :  { %6793 = vmatprep.mubr.msk.bf16.mxu0 %vm15_vm1, %v8142_v7 }
  0x9a   :  { %6496 = vmatmul.mubr.msk.bf16.gmra.mrb[52].mxu1 %vm15_vm1, %v420_v18  ;;  %v8201_v18 = vpack.c.bf16 %v2893_v55, %v2892_v10  ;;  %v8247_v10 = vpack.c.bf16 %v251_v58, %v250_v57  ;;  %v8249_v55 = vpack.c.bf16 %v2905_v60, %v2904_v59  ;;  %v2914_v57 = vld [vmem:[#allocation2 + $0x31a] sm:$0xff]  ;;  %v2915_v58 = vld [vmem:[#allocation2 + $0x322] sm:$0xff]  ;;  %v8279_v59 = vpack.c.bf16 %v259_v44, %v258_v42  ;;  %v267_v42 = vld [vmem:[#allocation2 + $0x1d0] sm:$0xff] }
  0x9b   :  { %6499 = vmatprep.mubr.msk.bf16.mxu1 %vm15_vm1, %v421_v20  ;;  %v8203_v20 = vpack.c.bf16 %v241_v12, %v240_v11  ;;  %v8253_v12 = vpack.c.bf16 %v2907_v9, %v2906_v8  ;;  %v262_v8 = vld [vmem:[#allocation2 + $0x168] sm:$0xff]  ;;  %v263_v9 = vld [vmem:[#allocation2 + $0x170] sm:$0xff]  ;;  %v268_v44 = vld [vmem:[#allocation2 + $0x1e0] sm:$0xff] }
  0x9c   :  { %v8295_v24 = vpack.c.bf16 %v263_v9, %v262_v8  ;;  %v273_v8 = vld [vmem:[#allocation2 + $0x218] sm:$0xff] }
  0x9e   :  { %6794 = vmatmul.mubr.msk.bf16.gmra.mrb[20].mxu0 %vm15_vm1, %v8150_v19 }
  0x9f   :  { %6797 = vmatprep.mubr.msk.bf16.mxu0 %vm15_vm1, %v8152_v21 }
  0xa2   :  { %6500 = vmatmul.mubr.msk.bf16.gmra.mrb[56].mxu1 %vm15_vm1, %v422_v32  ;;  %v2899_v32 = vld [vmem:[#allocation2 + $0x262] sm:$0xff] }
  0xa3   :  { %6503 = vmatprep.mubr.msk.bf16.mxu1 %vm15_vm1, %v423_v34  ;;  %v8215_v34 = vpack.c.bf16 %v243_v63, %v242_v23  ;;  %v8221_v38 = vpack.c.bf16 %v2899_v32, %v2898_v30  ;;  %v2908_v23 = vld [vmem:[#allocation2 + $0x2d2] sm:$0xff]  ;;  %v2909_v63 = vld [vmem:[#allocation2 + $0x2da] sm:$0xff]  ;;  %v8263_v30 = vpack.c.bf16 %v255_v15, %v254_v13 }
  0xa4   :  { %v8265_v32 = vpack.c.bf16 %v2909_v63, %v2908_v23  ;;  %v264_v13 = vld [vmem:[#allocation2 + $0x1b0] sm:$0xff]  ;;  %v2917_v23 = vld [vmem:[#allocation2 + $0x33a] sm:$0xff] }
  0xa5   :  { %v2916_v15 = vld [vmem:[#allocation2 + $0x332] sm:$0xff] }
  0xa6   :  { %6798 = vmatmul.mubr.msk.bf16.gmra.mrb[24].mxu0 %vm15_vm1, %v8160_v33  ;;  %v265_v63 = vld [vmem:[#allocation2 + $0x1b8] sm:$0xff]  ;;  %v2949_v26 = vpack.c.bf16 %v2917_v23, %v2916_v15  ;;  %v276_v15 = vld [vmem:[#allocation2 + $0x240] sm:$0xff]  ;;  %v277_v23 = vld [vmem:[#allocation2 + $0x248] sm:$0xff] }
  0xa7   :  { %6801 = vmatprep.mubr.msk.bf16.mxu0 %vm15_vm1, %v8162_v35  ;;  %v312_v27 = vpack.c.bf16 %v265_v63, %v264_v13 }
  0xaa   :  { %6504 = vmatmul.mubr.msk.bf16.gmra.mrb[60].mxu1 %vm15_vm1, %v424_v46  ;;  %v249_v46 = vld [vmem:[#allocation2 + $0xc8] sm:$0xff] }
  0xab   :  { %6509 = vmatprep.mubr.msk.bf16.mxu1 %vm15_vm1, %v296_v48  ;;  %v2903_v48 = vld [vmem:[#allocation2 + $0x292] sm:$0xff]  ;;  %v8235_v52 = vpack.c.bf16 %v249_v46, %v248_v45  ;;  %v2912_v45 = vld [vmem:[#allocation2 + $0x302] sm:$0xff]  ;;  %v2913_v46 = vld [vmem:[#allocation2 + $0x30a] sm:$0xff] }
  0xac   :  { %v8281_v60 = vpack.c.bf16 %v2913_v46, %v2912_v45  ;;  %v269_v45 = vld [vmem:[#allocation2 + $0x1e8] sm:$0xff]  ;;  %v313_v46 = vpack.c.bf16 %v267_v42, %v266_v28  ;;  %v281_v28 = vld [vmem:[#allocation2 + $0x278] sm:$0xff] }
  0xae   :  { %6802 = vmatmul.mubr.msk.bf16.gmra.mrb[28].mxu0 %vm15_vm1, %v2933_v47  ;;  %v2902_v47 = vld [vmem:[#allocation2 + $0x28a] sm:$0xff] }
  0xaf   :  { %6805 = vmatprep.mubr.msk.bf16.mxu0 %vm15_vm1, %v8170_v49  ;;  %v8237_v54 = vpack.c.bf16 %v2903_v48, %v2902_v47  ;;  %v260_v47 = vld [vmem:[#allocation2 + $0x150] sm:$0xff]  ;;  %v261_v48 = vld [vmem:[#allocation2 + $0x158] sm:$0xff] }
  0xb2   :  { %6510 = vmatmul.mubr.msk.bf16.vlgmr.msra.gmra.mrb[0].mxu1 %vm15_vm1, %v297_v61  ;;  %v252_v61 = vld [vmem:[#allocation2 + $0xf0] sm:$0xff] }
  0xb3   :  { %6574 = vmatpush3.bf16.msra.mxu1 %v1399_v0  ;;  %6513 = vmatprep.mubr.msk.bf16.mxu1 %vm15_vm1, %v8181_v1  ;;  %v253_v0 = vld [vmem:[#allocation2 + $0xf8] sm:$0xff] }
  0xb4   :  { %7552 = vmatprep.subr.msk.bf16.mxu1 %vm523_vm0, %v8189_v6  ;;  %v8251_v11 = vpack.c.bf16 %v253_v0, %v252_v61  ;;  %v8283_v61 = vpack.c.bf16 %v261_v48, %v260_v47  ;;  %v8285_v0 = vpack.c.bf16 %v2915_v58, %v2914_v57  ;;  %v8303_v47 = vpack.c.bf16 %v269_v45, %v268_v44  ;;  %v8311_v57 = vld [vmem:[%s9139_s1 + $0x10] sm:$0x3]  ;;  %v271_v58 = vld [vmem:[#allocation2 + $0x200] sm:$0xff] }
  0xb5   :  { %v4150_v48 = vsel %vm523_vm0, %v8106_v25, 0  ;;  %v272_v25 = vld [vmem:[#allocation2 + $0x210] sm:$0xff] }
  0xb6   :  { %6806 = vmatmul.mubr.msk.bf16.gmra.mrb[32].mxu0 %vm15_vm1, %v8177_v62  ;;  %v8323_v13 = vpack.c.bf16 %v273_v8, %v272_v25  ;;  %v283_v45 = vld [vmem:[#allocation2 + $0x290] sm:$0xff] }
  0xb7   :  { %6809 = vmatprep.mubr.msk.bf16.mxu0 %vm15_vm1, %v8183_v2  ;;  %v288_v25 = vld [vmem:[#allocation2 + $0x2d0] sm:$0xff] }
  0xba   :  { %6514 = vmatmul.mubr.msk.bf16.gmra.mrb[4].mxu1 %vm15_vm1, %v8199_v17 }
  0xbb   :  { %6517 = vmatprep.mubr.msk.bf16.mxu1 %vm15_vm1, %v8203_v20 }
  0xbe   :  { %6810 = vmatmul.mubr.msk.bf16.gmra.mrb[36].mxu0 %vm15_vm1, %v8201_v18 }
  0xbf   :  { %6813 = vmatprep.mubr.msk.bf16.mxu0 %vm15_vm1, %v8205_v22 }
  0xc2   :  { %6518 = vmatmul.mubr.msk.bf16.gmra.mrb[8].mxu1 %vm15_vm1, %v8215_v34 }
  0xc3   :  { %6521 = vmatprep.mubr.msk.bf16.mxu1 %vm15_vm1, %v8219_v37 }
  0xc6   :  { %6814 = vmatmul.mubr.msk.bf16.gmra.mrb[40].mxu0 %vm15_vm1, %v8217_v36 }
  0xc7   :  { %6817 = vmatprep.mubr.msk.bf16.mxu0 %vm15_vm1, %v8221_v38 }
  0xca   :  { %6522 = vmatmul.mubr.msk.bf16.gmra.mrb[12].mxu1 %vm15_vm1, %v8231_v50 }
  0xcb   :  { %6525 = vmatprep.mubr.msk.bf16.mxu1 %vm15_vm1, %v8235_v52 }
  0xce   :  { %6818 = vmatmul.mubr.msk.bf16.gmra.mrb[44].mxu0 %vm15_vm1, %v8233_v51 }
  0xcf   :  { %6821 = vmatprep.mubr.msk.bf16.mxu0 %vm15_vm1, %v8237_v54 }
  0xd2   :  { %6526 = vmatmul.mubr.msk.bf16.gmra.mrb[16].mxu1 %vm15_vm1, %v8247_v10 }
  0xd3   :  { %6529 = vmatprep.mubr.msk.bf16.mxu1 %vm15_vm1, %v8251_v11 }
  0xd6   :  { %6822 = vmatmul.mubr.msk.bf16.gmra.mrb[48].mxu0 %vm15_vm1, %v8249_v55 }
  0xd7   :  { %6825 = vmatprep.mubr.msk.bf16.mxu0 %vm15_vm1, %v8253_v12 }
  0xda   :  { %6530 = vmatmul.mubr.msk.bf16.gmra.mrb[20].mxu1 %vm15_vm1, %v8263_v30 }
  0xdb   :  { %6533 = vmatprep.mubr.msk.bf16.mxu1 %vm15_vm1, %v8267_v39 }
  0xde   :  { %6826 = vmatmul.mubr.msk.bf16.gmra.mrb[52].mxu0 %vm15_vm1, %v8265_v32 }
  0xdf   :  { %6829 = vmatprep.mubr.msk.bf16.mxu0 %vm15_vm1, %v8269_v40 }
  0xe2   :  { %6534 = vmatmul.mubr.msk.bf16.gmra.mrb[24].mxu1 %vm15_vm1, %v8279_v59 }
  0xe3   :  { %6537 = vmatprep.mubr.msk.bf16.mxu1 %vm15_vm1, %v8283_v61 }
  0xe6   :  { %6830 = vmatmul.mubr.msk.bf16.gmra.mrb[56].mxu0 %vm15_vm1, %v8281_v60 }
  0xe7   :  { %6833 = vmatprep.mubr.msk.bf16.mxu0 %vm15_vm1, %v8285_v0 }
  0xea   :  { %6538 = vmatmul.mubr.msk.bf16.gmra.mrb[28].mxu1 %vm15_vm1, %v8295_v24 }
  0xeb   :  { %6541 = vmatprep.mubr.msk.bf16.mxu1 %vm15_vm1, %v312_v27  ;;  %v279_v27 = vld [vmem:[#allocation2 + $0x260] sm:$0xff] }
  0xee   :  { %6834 = vmatmul.mubr.msk.bf16.gmra.mrb[60].mxu0 %vm15_vm1, %v2949_v26  ;;  %v8335_v26 = vpack.c.bf16 %v277_v23, %v276_v15  ;;  %v292_v15 = vld [vmem:[#allocation2 + $0x300] sm:$0xff] }
  0xef   :  { %6839 = vmatprep.mubr.msk.bf16.mxu0 %vm15_vm1, %v8181_v1  ;;  %v270_v1 = vld [vmem:[#allocation2 + $0x1f8] sm:$0xff]  ;;  %v3433_v23 = vld [vmem:[#allocation2 + $0x180] sm:$0xff] }
  0xf0   :  { %v8321_v9 = vpack.c.bf16 %v271_v58, %v270_v1  ;;  %v287_v58 = vld [vmem:[#allocation2 + $0x2c0] sm:$0xff] }
  0xf2   :  { %6542 = vmatmul.mubr.msk.bf16.gmra.mrb[32].mxu1 %vm15_vm1, %v313_v46  ;;  %v285_v46 = vld [vmem:[#allocation2 + $0x2a8] sm:$0xff] }
  0xf3   :  { %6545 = vmatprep.mubr.msk.bf16.mxu1 %vm15_vm1, %v8303_v47 }
  0xf6   :  { %6840 = vmatmul.mubr.msk.bf16.vlgmr.msra.gmra.mrb[0].mxu0 %vm15_vm1, %v8199_v17  ;;  %v274_v17 = vld [vmem:[#allocation2 + $0x228] sm:$0xff] }
  0xf7   :  { %6904 = vmatpush3.bf16.msra.mxu0 %v4150_v48  ;;  %6843 = vmatprep.mubr.msk.bf16.mxu0 %vm15_vm1, %v8203_v20  ;;  %v275_v20 = vld [vmem:[#allocation2 + $0x230] sm:$0xff] }
  0xf8   :  { %7558 = vmatprep.subr.msk.bf16.mxu0 %vm523_vm0, %v8311_v57  ;;  %v8333_v63 = vpack.c.bf16 %v275_v20, %v274_v17  ;;  %v291_v20 = vld [vmem:[#allocation2 + $0x2f0] sm:$0xff] }
  0xfa   :  { %6546 = vmatmul.mubr.msk.bf16.gmra.mrb[36].mxu1 %vm15_vm1, %v8321_v9 }
  0xfb   :  { %6549 = vmatprep.mubr.msk.bf16.mxu1 %vm15_vm1, %v8323_v13 }
  0xfe   :  { %6844 = vmatmul.mubr.msk.bf16.gmra.mrb[4].mxu0 %vm15_vm1, %v8215_v34  ;;  %v278_v34 = vld [vmem:[#allocation2 + $0x258] sm:$0xff] }
  0xff   :  { %6847 = vmatprep.mubr.msk.bf16.mxu0 %vm15_vm1, %v8219_v37  ;;  %v280_v37 = vld [vmem:[#allocation2 + $0x270] sm:$0xff]  ;;  %v8345_v42 = vpack.c.bf16 %v279_v27, %v278_v34  ;;  %v3434_v34 = vld [vmem:[#allocation2 + $0x188] sm:$0xff] }
 0x100   :  { %v8347_v44 = vpack.c.bf16 %v281_v28, %v280_v37  ;;  %v8377_v28 = vpack.c.bf16 %v3434_v34, %v3433_v23  ;;  %v3968_v23 = vld [vmem:[#allocation2 + $0xc9] sm:$0xff] }
 0x102   :  { %6550 = vmatmul.mubr.msk.bf16.gmra.mrb[40].mxu1 %vm15_vm1, %v8333_v63 }
 0x103   :  { %6553 = vmatprep.mubr.msk.bf16.mxu1 %vm15_vm1, %v8335_v26 }
 0x106   :  { %6848 = vmatmul.mubr.msk.bf16.gmra.mrb[8].mxu0 %vm15_vm1, %v8231_v50  ;;  %v282_v50 = vld [vmem:[#allocation2 + $0x288] sm:$0xff] }
 0x107   :  { %6851 = vmatprep.mubr.msk.bf16.mxu0 %vm15_vm1, %v8235_v52  ;;  %v284_v52 = vld [vmem:[#allocation2 + $0x2a0] sm:$0xff]  ;;  %v321_v48 = vpack.c.bf16 %v283_v45, %v282_v50 }
 0x108   :  { %v8357_v1 = vpack.c.bf16 %v285_v46, %v284_v52  ;;  %v295_v50 = vld [vmem:[#allocation2 + $0x320] sm:$0xff]  ;;  %v1205_v46 = vld [vmem:[#allocation2 + $0xa] sm:$0xff] }
 0x109   :  { %v3436_v45 = vld [vmem:[#allocation2 + $0x1a0] sm:$0xff] }
 0x10a   :  { %6554 = vmatmul.mubr.msk.bf16.gmra.mrb[44].mxu1 %vm15_vm1, %v8345_v42  ;;  %v1204_v52 = vld [vmem:[#allocation2 + $0x2] sm:$0xff] }
 0x10b   :  { %6557 = vmatprep.mubr.msk.bf16.mxu1 %vm15_vm1, %v8347_v44 }
 0x10e   :  { %6852 = vmatmul.mubr.msk.bf16.gmra.mrb[12].mxu0 %vm15_vm1, %v8247_v10  ;;  %v286_v10 = vld [vmem:[#allocation2 + $0x2b8] sm:$0xff] }
 0x10f   :  { %6855 = vmatprep.mubr.msk.bf16.mxu0 %vm15_vm1, %v8251_v11  ;;  %v289_v11 = vld [vmem:[#allocation2 + $0x2d8] sm:$0xff]  ;;  %v323_v8 = vpack.c.bf16 %v287_v58, %v286_v10 }
 0x110   :  { %v8366_v17 = vpack.c.bf16 %v289_v11, %v288_v25  ;;  %v1268_v25 = vpack.c.bf16 %v1205_v46, %v1204_v52  ;;  %v7560_v11 = vld [vmem:[%s9139_s1 + $0x8] sm:$0x3] }
 0x111   :  { %v3975_v52 = vld [vmem:[#allocation2 + $0x121] sm:$0xff]  ;;  %v3976_v46 = vld [vmem:[#allocation2 + $0x129] sm:$0xff] }
 0x112   :  { %6558 = vmatmul.mubr.msk.bf16.gmra.mrb[48].mxu1 %vm15_vm1, %v321_v48 }
 0x113   :  { %6561 = vmatprep.mubr.msk.bf16.mxu1 %vm15_vm1, %v8357_v1 }
 0x116   :  { %6856 = vmatmul.mubr.msk.bf16.gmra.mrb[16].mxu0 %vm15_vm1, %v8263_v30  ;;  %v290_v30 = vld [vmem:[#allocation2 + $0x2e8] sm:$0xff] }
 0x117   :  { %6859 = vmatprep.mubr.msk.bf16.mxu0 %vm15_vm1, %v8267_v39  ;;  %v293_v39 = vld [vmem:[#allocation2 + $0x308] sm:$0xff]  ;;  %v325_v27 = vpack.c.bf16 %v291_v20, %v290_v30  ;;  %v3963_v30 = vld [vmem:[#allocation2 + $0x91] sm:$0xff]  ;;  %v3964_v20 = vld [vmem:[#allocation2 + $0x99] sm:$0xff] }
 0x118   :  { %v8375_v37 = vpack.c.bf16 %v293_v39, %v292_v15  ;;  %v4023_v39 = vpack.c.bf16 %v3964_v20, %v3963_v30  ;;  %v1760_v20 = vld [vmem:[#allocation2 + $0x60] sm:$0xff] }
 0x11a   :  { %6562 = vmatmul.mubr.msk.bf16.gmra.mrb[52].mxu1 %vm15_vm1, %v323_v8 }
 0x11b   :  { %6565 = vmatprep.mubr.msk.bf16.mxu1 %vm15_vm1, %v8366_v17 }
 0x11e   :  { %6860 = vmatmul.mubr.msk.bf16.gmra.mrb[20].mxu0 %vm15_vm1, %v8279_v59  ;;  %v294_v59 = vld [vmem:[#allocation2 + $0x318] sm:$0xff] }
 0x11f   :  { %6863 = vmatprep.mubr.msk.bf16.mxu0 %vm15_vm1, %v8283_v61  ;;  %v3435_v61 = vld [vmem:[#allocation2 + $0x198] sm:$0xff]  ;;  %v327_v10 = vpack.c.bf16 %v295_v50, %v294_v59 }
 0x120   :  { %v3484_v58 = vpack.c.bf16 %v3436_v45, %v3435_v61  ;;  %v3971_v59 = vld [vmem:[#allocation2 + $0xf1] sm:$0xff]  ;;  %v3972_v50 = vld [vmem:[#allocation2 + $0xf9] sm:$0xff] }
 0x121   :  { %v4027_v45 = vpack.c.bf16 %v3972_v50, %v3971_v59  ;;  %v1764_v59 = vld [vmem:[#allocation2 + $0x90] sm:$0xff]  ;;  %v1765_v50 = vld [vmem:[#allocation2 + $0x98] sm:$0xff] }
 0x122   :  { %6566 = vmatmul.mubr.msk.bf16.gmra.mrb[56].mxu1 %vm15_vm1, %v325_v27 }
 0x123   :  { %6569 = vmatprep.mubr.msk.bf16.mxu1 %vm15_vm1, %v8375_v37 }
 0x126   :  { %6864 = vmatmul.mubr.msk.bf16.gmra.mrb[24].mxu0 %vm15_vm1, %v8295_v24  ;;  %v1949_v24 = vsel %vm523_vm0, %v8189_v6, 0  ;;  %v3959_v6 = vld [vmem:[#allocation2 + $0x61] sm:$0xff] }
 0x127   :  { %6867 = vmatprep.mubr.msk.bf16.mxu0 %vm15_vm1, %v8377_v28 }
 0x12a   :  { %6570 = vmatmul.mubr.msk.bf16.gmra.mrb[60].mxu1 %vm15_vm1, %v327_v10 }
 0x12b   :  { %6575 = vmatprep.mubr.msk.bf16.mxu1 %vm15_vm1, %v1268_v25  ;;  %v3979_v25 = vld [vmem:[#allocation2 + $0x151] sm:$0xff] }
 0x12e   :  { %6868 = vmatmul.mubr.msk.bf16.gmra.mrb[28].mxu0 %vm15_vm1, %v3484_v58  ;;  %v4029_v58 = vpack.c.bf16 %v3976_v46, %v3975_v52  ;;  %v3999_v52 = vld [vmem:[#allocation2 + $0x271] sm:$0xff]  ;;  %v4000_v46 = vld [vmem:[#allocation2 + $0x279] sm:$0xff] }
 0x12f   :  { %6871 = vmatprep.mubr.msk.bf16.mxu0 %vm15_vm1, %v8303_v47 }
 0x132   :  { %6576 = vmatmul.mubr.msk.bf16.vlgmr.msra.gmra.mrb[0].mxu1 %vm15_vm1, %v8076_v3  ;;  %v3465_v3 = vld [vmem:[#allocation2 + $0x330] sm:$0xff] }
 0x133   :  { %6640 = vmatpush3.bf16.msra.mxu1 %v1949_v24  ;;  %6579 = vmatprep.mubr.msk.bf16.mxu1 %vm15_vm1, %v8083_v14  ;;  %v3466_v14 = vld [vmem:[#allocation2 + $0x338] sm:$0xff] }
 0x134   :  { %7554 = vmatprep.subr.msk.bf16.mxu1 %vm523_vm0, %v7560_v11  ;;  %v3980_v24 = vld [vmem:[#allocation2 + $0x159] sm:$0xff] }
 0x136   :  { %6872 = vmatmul.mubr.msk.bf16.gmra.mrb[32].mxu0 %vm15_vm1, %v8321_v9  ;;  %v3960_v9 = vld [vmem:[#allocation2 + $0x69] sm:$0xff] }
 0x137   :  { %6875 = vmatprep.mubr.msk.bf16.mxu0 %vm15_vm1, %v8323_v13 }
 0x13a   :  { %6580 = vmatmul.mubr.msk.bf16.gmra.mrb[4].mxu1 %vm15_vm1, %v8085_v16  ;;  %v8442_v16 = vpack.c.bf16 %v3466_v14, %v3465_v3  ;;  %v4031_v3 = vpack.c.bf16 %v3980_v24, %v3979_v25  ;;  %v3983_v14 = vld [vmem:[#allocation2 + $0x181] sm:$0xff] }
 0x13b   :  { %6583 = vmatprep.mubr.msk.bf16.mxu1 %vm15_vm1, %v8110_v29  ;;  %v3467_v29 = vld [vmem:[#allocation2 + $0x348] sm:$0xff]  ;;  %v1768_v25 = vld [vmem:[#allocation2 + $0xc0] sm:$0xff] }
 0x13c   :  { %v1769_v24 = vld [vmem:[#allocation2 + $0xc8] sm:$0xff] }
 0x13e   :  { %6876 = vmatmul.mubr.msk.bf16.gmra.mrb[36].mxu0 %vm15_vm1, %v8333_v63 }
 0x13f   :  { %6879 = vmatprep.mubr.msk.bf16.mxu0 %vm15_vm1, %v8335_v26 }
 0x142   :  { %6584 = vmatmul.mubr.msk.bf16.gmra.mrb[8].mxu1 %vm15_vm1, %v8112_v31  ;;  %v3468_v31 = vld [vmem:[#allocation2 + $0x350] sm:$0xff] }
 0x143   :  { %6587 = vmatprep.mubr.msk.bf16.mxu1 %vm15_vm1, %v8120_v41  ;;  %v1236_v41 = vld [vmem:[#allocation2 + $0x1b2] sm:$0xff] }
 0x146   :  { %6880 = vmatmul.mubr.msk.bf16.gmra.mrb[40].mxu0 %vm15_vm1, %v8345_v42  ;;  %v4021_v42 = vpack.c.bf16 %v3960_v9, %v3959_v6  ;;  %v3990_v6 = vld [vmem:[#allocation2 + $0x201] sm:$0xff] }
 0x147   :  { %6883 = vmatprep.mubr.msk.bf16.mxu0 %vm15_vm1, %v8347_v44  ;;  %v1758_v9 = vld [vmem:[#allocation2 + $0x48] sm:$0xff] }
 0x14a   :  { %6588 = vmatmul.mubr.msk.bf16.gmra.mrb[12].mxu1 %vm15_vm1, %v8122_v43  ;;  %v1237_v43 = vld [vmem:[#allocation2 + $0x1ba] sm:$0xff] }
 0x14b   :  { %6591 = vmatprep.mubr.msk.bf16.mxu1 %vm15_vm1, %v8130_v53  ;;  %v3955_v53 = vld [vmem:[#allocation2 + $0x31] sm:$0xff] }
 0x14e   :  { %6884 = vmatmul.mubr.msk.bf16.gmra.mrb[44].mxu0 %vm15_vm1, %v321_v48  ;;  %v4700_v48 = vsel %vm523_vm0, %v8311_v57, 0  ;;  %v3967_v57 = vld [vmem:[#allocation2 + $0xc1] sm:$0xff] }
 0x14f   :  { %6887 = vmatprep.mubr.msk.bf16.mxu0 %vm15_vm1, %v8357_v1 }
 0x152   :  { %6592 = vmatmul.mubr.msk.bf16.gmra.mrb[16].mxu1 %vm15_vm1, %v8132_v56  ;;  %v3956_v56 = vld [vmem:[#allocation2 + $0x39] sm:$0xff] }
 0x153   :  { %6595 = vmatprep.mubr.msk.bf16.mxu1 %vm15_vm1, %v8140_v4  ;;  %v3500_v4 = vpack.c.bf16 %v3468_v31, %v3467_v29  ;;  %v3984_v29 = vld [vmem:[#allocation2 + $0x189] sm:$0xff] }
 0x156   :  { %6888 = vmatmul.mubr.msk.bf16.gmra.mrb[48].mxu0 %vm15_vm1, %v323_v8  ;;  %v3962_v8 = vld [vmem:[#allocation2 + $0x81] sm:$0xff] }
 0x157   :  { %6891 = vmatprep.mubr.msk.bf16.mxu0 %vm15_vm1, %v8366_v17 }
 0x15a   :  { %6596 = vmatmul.mubr.msk.bf16.gmra.mrb[20].mxu1 %vm15_vm1, %v8142_v7  ;;  %v1284_v7 = vpack.c.bf16 %v1237_v43, %v1236_v41  ;;  %v4033_v41 = vpack.c.bf16 %v3984_v29, %v3983_v14  ;;  %v1754_v43 = vld [vmem:[#allocation2 + $0x18] sm:$0xff]  ;;  %v4003_v14 = vld [vmem:[#allocation2 + $0x2a1] sm:$0xff]  ;;  %v4004_v29 = vld [vmem:[#allocation2 + $0x2a9] sm:$0xff] }
 0x15b   :  { %6599 = vmatprep.mubr.msk.bf16.mxu1 %vm15_vm1, %v8150_v19  ;;  %v4019_v19 = vpack.c.bf16 %v3956_v56, %v3955_v53  ;;  %v1755_v53 = vld [vmem:[#allocation2 + $0x20] sm:$0xff] }
 0x15c   :  { %v3987_v56 = vld [vmem:[#allocation2 + $0x1e1] sm:$0xff] }
 0x15e   :  { %6892 = vmatmul.mubr.msk.bf16.gmra.mrb[52].mxu0 %vm15_vm1, %v325_v27  ;;  %v4025_v27 = vpack.c.bf16 %v3968_v23, %v3967_v57  ;;  %v1763_v57 = vld [vmem:[#allocation2 + $0x80] sm:$0xff] }
 0x15f   :  { %6895 = vmatprep.mubr.msk.bf16.mxu0 %vm15_vm1, %v8375_v37  ;;  %v3995_v23 = vld [vmem:[#allocation2 + $0x241] sm:$0xff] }
 0x162   :  { %6600 = vmatmul.mubr.msk.bf16.gmra.mrb[24].mxu1 %vm15_vm1, %v8152_v21  ;;  %v3957_v21 = vld [vmem:[#allocation2 + $0x49] sm:$0xff] }
 0x163   :  { %6603 = vmatprep.mubr.msk.bf16.mxu1 %vm15_vm1, %v8160_v33  ;;  %v3958_v33 = vld [vmem:[#allocation2 + $0x51] sm:$0xff] }
 0x164   :  { %v4020_v63 = vpack.c.bf16 %v3958_v33, %v3957_v21  ;;  %v3989_v33 = vld [vmem:[#allocation2 + $0x1f9] sm:$0xff] }
 0x166   :  { %6896 = vmatmul.mubr.msk.bf16.gmra.mrb[56].mxu0 %vm15_vm1, %v327_v10 }
 0x167   :  { %6899 = vmatprep.mubr.msk.bf16.mxu0 %vm15_vm1, %v8442_v16 }
 0x16a   :  { %6604 = vmatmul.mubr.msk.bf16.gmra.mrb[28].mxu1 %vm15_vm1, %v8162_v35  ;;  %v3961_v35 = vld [vmem:[#allocation2 + $0x79] sm:$0xff] }
 0x16b   :  { %6607 = vmatprep.mubr.msk.bf16.mxu1 %vm15_vm1, %v1284_v7  ;;  %v4022_v15 = vpack.c.bf16 %v3962_v8, %v3961_v35  ;;  %v8508_v8 = vpack.c.bf16 %v3990_v6, %v3989_v33 }
 0x16e   :  { %6900 = vmatmul.mubr.msk.bf16.gmra.mrb[60].mxu0 %vm15_vm1, %v3500_v4  ;;  %v3988_v4 = vld [vmem:[#allocation2 + $0x1e9] sm:$0xff] }
 0x16f   :  { %6905 = vmatprep.mubr.msk.bf16.mxu0 %vm15_vm1, %v4019_v19  ;;  %v1818_v19 = vpack.c.bf16 %v1755_v53, %v1754_v43  ;;  %v8500_v21 = vpack.c.bf16 %v3988_v4, %v3987_v56  ;;  %v1772_v43 = vld [vmem:[#allocation2 + $0xf0] sm:$0xff]  ;;  %v1773_v53 = vld [vmem:[#allocation2 + $0xf8] sm:$0xff]  ;;  %v4006_v4 = vld [vmem:[#allocation2 + $0x2c1] sm:$0xff] }
 0x170   :  { %v4005_v56 = vld [vmem:[#allocation2 + $0x2b9] sm:$0xff]  ;;  %v1827_v33 = vpack.c.bf16 %v1773_v53, %v1772_v43 }
 0x171   :  { %v8549_v6 = vpack.c.bf16 %v4006_v4, %v4005_v56  ;;  %v4508_v43 = vld [vmem:[#allocation2 + $0x52] sm:$0xff]  ;;  %v1791_v56 = vld [vmem:[#allocation2 + $0x200] sm:$0xff] }
 0x172   :  { %6608 = vmatmul.mubr.msk.bf16.gmra.mrb[32].mxu1 %vm15_vm1, %v8170_v49  ;;  %v3965_v49 = vld [vmem:[#allocation2 + $0xa9] sm:$0xff]  ;;  %v1790_v53 = vld [vmem:[#allocation2 + $0x1f8] sm:$0xff] }
 0x173   :  { %6611 = vmatprep.mubr.msk.bf16.mxu1 %vm15_vm1, %v8177_v62  ;;  %v3966_v62 = vld [vmem:[#allocation2 + $0xb1] sm:$0xff]  ;;  %v4509_v4 = vld [vmem:[#allocation2 + $0x62] sm:$0xff] }
 0x174   :  { %v4024_v34 = vpack.c.bf16 %v3966_v62, %v3965_v49  ;;  %v3994_v49 = vld [vmem:[#allocation2 + $0x231] sm:$0xff] }
 0x175   :  { %v1762_v62 = vld [vmem:[#allocation2 + $0x78] sm:$0xff] }
 0x176   :  { %6906 = vmatmul.mubr.msk.bf16.vlgmr.msra.gmra.mrb[0].mxu0 %vm15_vm1, %v4020_v63  ;;  %v1759_v63 = vld [vmem:[#allocation2 + $0x50] sm:$0xff] }
 0x177   :  { %6970 = vmatpush3.bf16.msra.mxu0 %v4700_v48  ;;  %6909 = vmatprep.mubr.msk.bf16.mxu0 %vm15_vm1, %v4021_v42  ;;  %v3991_v42 = vld [vmem:[#allocation2 + $0x211] sm:$0xff]  ;;  %v3992_v48 = vld [vmem:[#allocation2 + $0x219] sm:$0xff]  ;;  %v1820_v30 = vpack.c.bf16 %v1759_v63, %v1758_v9 }
 0x17a   :  { %6612 = vmatmul.mubr.msk.bf16.gmra.mrb[36].mxu1 %vm15_vm1, %v8183_v2  ;;  %v3969_v2 = vld [vmem:[#allocation2 + $0xd9] sm:$0xff] }
 0x17b   :  { %6615 = vmatprep.mubr.msk.bf16.mxu1 %vm15_vm1, %v8201_v18  ;;  %v3970_v18 = vld [vmem:[#allocation2 + $0xe1] sm:$0xff] }
 0x17c   :  { %v4026_v61 = vpack.c.bf16 %v3970_v18, %v3969_v2 }
 0x17e   :  { %6910 = vmatmul.mubr.msk.bf16.gmra.mrb[4].mxu0 %vm15_vm1, %v4022_v15  ;;  %v1761_v15 = vld [vmem:[#allocation2 + $0x68] sm:$0xff] }
 0x17f   :  { %6913 = vmatprep.mubr.msk.bf16.mxu0 %vm15_vm1, %v4023_v39  ;;  %v3993_v39 = vld [vmem:[#allocation2 + $0x229] sm:$0xff] }
 0x180   :  { %v8519_v2 = vpack.c.bf16 %v3994_v49, %v3993_v39  ;;  %v4011_v39 = vld [vmem:[#allocation2 + $0x301] sm:$0xff]  ;;  %v4012_v49 = vld [vmem:[#allocation2 + $0x309] sm:$0xff] }
 0x182   :  { %6616 = vmatmul.mubr.msk.bf16.gmra.mrb[40].mxu1 %vm15_vm1, %v8205_v22  ;;  %v3973_v22 = vld [vmem:[#allocation2 + $0x109] sm:$0xff] }
 0x183   :  { %6619 = vmatprep.mubr.msk.bf16.mxu1 %vm15_vm1, %v8217_v36  ;;  %v3974_v36 = vld [vmem:[#allocation2 + $0x111] sm:$0xff] }
 0x184   :  { %v4028_v10 = vpack.c.bf16 %v3974_v36, %v3973_v22  ;;  %v1766_v22 = vld [vmem:[#allocation2 + $0xa8] sm:$0xff]  ;;  %v1767_v36 = vld [vmem:[#allocation2 + $0xb0] sm:$0xff] }
 0x186   :  { %6914 = vmatmul.mubr.msk.bf16.gmra.mrb[8].mxu0 %vm15_vm1, %v4024_v34  ;;  %v3996_v34 = vld [vmem:[#allocation2 + $0x249] sm:$0xff] }
 0x187   :  { %6917 = vmatprep.mubr.msk.bf16.mxu0 %vm15_vm1, %v4025_v27  ;;  %v1821_v27 = vpack.c.bf16 %v1761_v15, %v1760_v20  ;;  %v8521_v18 = vpack.c.bf16 %v3996_v34, %v3995_v23  ;;  %v1778_v20 = vld [vmem:[#allocation2 + $0x138] sm:$0xff]  ;;  %v1779_v15 = vld [vmem:[#allocation2 + $0x140] sm:$0xff]  ;;  %v8561_v34 = vpack.c.bf16 %v4012_v49, %v4011_v39 }
 0x188   :  { %v1830_v23 = vpack.c.bf16 %v1779_v15, %v1778_v20  ;;  %v4516_v39 = vld [vmem:[#allocation2 + $0xb2] sm:$0xff] }
 0x189   :  { %v1798_v49 = vld [vmem:[#allocation2 + $0x258] sm:$0xff] }
 0x18a   :  { %6620 = vmatmul.mubr.msk.bf16.gmra.mrb[44].mxu1 %vm15_vm1, %v8221_v38  ;;  %v3977_v38 = vld [vmem:[#allocation2 + $0x139] sm:$0xff] }
 0x18b   :  { %6623 = vmatprep.mubr.msk.bf16.mxu1 %vm15_vm1, %v8233_v51  ;;  %v3978_v51 = vld [vmem:[#allocation2 + $0x141] sm:$0xff] }
 0x18c   :  { %v4030_v11 = vpack.c.bf16 %v3978_v51, %v3977_v38  ;;  %v1824_v38 = vpack.c.bf16 %v1767_v36, %v1766_v22  ;;  %v8531_v51 = vpack.c.bf16 %v4000_v46, %v3999_v52  ;;  %v4015_v22 = vld [vmem:[#allocation2 + $0x331] sm:$0xff]  ;;  %v4016_v36 = vld [vmem:[#allocation2 + $0x339] sm:$0xff] }
 0x18e   :  { %6918 = vmatmul.mubr.msk.bf16.gmra.mrb[12].mxu0 %vm15_vm1, %v4026_v61  ;;  %v3997_v61 = vld [vmem:[#allocation2 + $0x259] sm:$0xff] }
 0x18f   :  { %6921 = vmatprep.mubr.msk.bf16.mxu0 %vm15_vm1, %v4027_v45  ;;  %v3998_v45 = vld [vmem:[#allocation2 + $0x261] sm:$0xff] }
 0x192   :  { %6624 = vmatmul.mubr.msk.bf16.gmra.mrb[48].mxu1 %vm15_vm1, %v8237_v54  ;;  %v3981_v54 = vld [vmem:[#allocation2 + $0x169] sm:$0xff] }
 0x193   :  { %6627 = vmatprep.mubr.msk.bf16.mxu1 %vm15_vm1, %v8249_v55  ;;  %v3982_v55 = vld [vmem:[#allocation2 + $0x171] sm:$0xff] }
 0x194   :  { %v4032_v31 = vpack.c.bf16 %v3982_v55, %v3981_v54  ;;  %v1770_v54 = vld [vmem:[#allocation2 + $0xd8] sm:$0xff]  ;;  %v1771_v55 = vld [vmem:[#allocation2 + $0xe0] sm:$0xff] }
 0x196   :  { %6922 = vmatmul.mubr.msk.bf16.gmra.mrb[16].mxu0 %vm15_vm1, %v4028_v10  ;;  %v1823_v10 = vpack.c.bf16 %v1765_v50, %v1764_v59  ;;  %v4013_v59 = vld [vmem:[#allocation2 + $0x319] sm:$0xff]  ;;  %v4014_v50 = vld [vmem:[#allocation2 + $0x321] sm:$0xff] }
 0x197   :  { %6925 = vmatprep.mubr.msk.bf16.mxu0 %vm15_vm1, %v4029_v58  ;;  %v8529_v58 = vpack.c.bf16 %v3998_v45, %v3997_v61  ;;  %v1782_v61 = vld [vmem:[#allocation2 + $0x168] sm:$0xff]  ;;  %v1783_v45 = vld [vmem:[#allocation2 + $0x170] sm:$0xff]  ;;  %v8569_v46 = vpack.c.bf16 %v4014_v50, %v4013_v59 }
 0x19a   :  { %6628 = vmatmul.mubr.msk.bf16.gmra.mrb[52].mxu1 %vm15_vm1, %v8253_v12  ;;  %v3985_v12 = vld [vmem:[#allocation2 + $0x199] sm:$0xff] }
 0x19b   :  { %6631 = vmatprep.mubr.msk.bf16.mxu1 %vm15_vm1, %v8265_v32  ;;  %v3986_v32 = vld [vmem:[#allocation2 + $0x1a1] sm:$0xff] }
 0x19c   :  { %v4034_v7 = vpack.c.bf16 %v3986_v32, %v3985_v12  ;;  %v1826_v12 = vpack.c.bf16 %v1771_v55, %v1770_v54  ;;  %v8541_v32 = vpack.c.bf16 %v4004_v29, %v4003_v14  ;;  %v4505_v54 = vld [vmem:[#allocation2 + $0x32] sm:$0xff]  ;;  %v4506_v55 = vld [vmem:[#allocation2 + $0x3a] sm:$0xff] }
 0x19e   :  { %6926 = vmatmul.mubr.msk.bf16.gmra.mrb[20].mxu0 %vm15_vm1, %v4030_v11  ;;  %v4001_v11 = vld [vmem:[#allocation2 + $0x289] sm:$0xff] }
 0x19f   :  { %6929 = vmatprep.mubr.msk.bf16.mxu0 %vm15_vm1, %v4031_v3  ;;  %v4002_v3 = vld [vmem:[#allocation2 + $0x291] sm:$0xff] }
 0x1a2   :  { %6632 = vmatmul.mubr.msk.bf16.gmra.mrb[56].mxu1 %vm15_vm1, %v8269_v40  ;;  %v1756_v40 = vld [vmem:[#allocation2 + $0x30] sm:$0xff] }
 0x1a3   :  { %6635 = vmatprep.mubr.msk.bf16.mxu1 %vm15_vm1, %v8281_v60  ;;  %v1757_v60 = vld [vmem:[#allocation2 + $0x38] sm:$0xff] }
 0x1a4   :  { %v1819_v35 = vpack.c.bf16 %v1757_v60, %v1756_v40  ;;  %v4007_v40 = vld [vmem:[#allocation2 + $0x2d1] sm:$0xff]  ;;  %v4008_v60 = vld [vmem:[#allocation2 + $0x2d9] sm:$0xff] }
 0x1a5   :  { %v8551_v63 = vpack.c.bf16 %v4008_v60, %v4007_v40  ;;  %v1836_v40 = vpack.c.bf16 %v1791_v56, %v1790_v53  ;;  %v1810_v53 = vld [vmem:[#allocation2 + $0x2e8] sm:$0xff]  ;;  %v1811_v56 = vld [vmem:[#allocation2 + $0x2f0] sm:$0xff] }
 0x1a6   :  { %6930 = vmatmul.mubr.msk.bf16.gmra.mrb[24].mxu0 %vm15_vm1, %v4032_v31  ;;  %v1825_v31 = vpack.c.bf16 %v1769_v24, %v1768_v25  ;;  %v4017_v25 = vld [vmem:[#allocation2 + $0x349] sm:$0xff]  ;;  %v4018_v24 = vld [vmem:[#allocation2 + $0x351] sm:$0xff] }
 0x1a7   :  { %6933 = vmatprep.mubr.msk.bf16.mxu0 %vm15_vm1, %v4033_v41  ;;  %v8539_v41 = vpack.c.bf16 %v4002_v3, %v4001_v11  ;;  %v1786_v11 = vld [vmem:[#allocation2 + $0x1c8] sm:$0xff]  ;;  %v1787_v3 = vld [vmem:[#allocation2 + $0x1d0] sm:$0xff]  ;;  %v4050_v14 = vpack.c.bf16 %v4018_v24, %v4017_v25 }
 0x1a8   :  { %v1834_v29 = vpack.c.bf16 %v1787_v3, %v1786_v11  ;;  %v4524_v11 = vld [vmem:[#allocation2 + $0x112] sm:$0xff] }
 0x1a9   :  { %v1806_v3 = vld [vmem:[#allocation2 + $0x2b8] sm:$0xff] }
 0x1aa   :  { %6636 = vmatmul.mubr.msk.bf16.gmra.mrb[60].mxu1 %vm15_vm1, %v8285_v0  ;;  %v8510_v0 = vpack.c.bf16 %v3992_v48, %v3991_v42  ;;  %v1776_v42 = vld [vmem:[#allocation2 + $0x120] sm:$0xff]  ;;  %v1777_v48 = vld [vmem:[#allocation2 + $0x128] sm:$0xff] }
 0x1ab   :  { %6641 = vmatprep.mubr.msk.bf16.mxu1 %vm15_vm1, %v1818_v19  ;;  %v1775_v19 = vld [vmem:[#allocation2 + $0x110] sm:$0xff] }
 0x1ae   :  { %6934 = vmatmul.mubr.msk.bf16.gmra.mrb[28].mxu0 %vm15_vm1, %v4034_v7  ;;  %v1774_v7 = vld [vmem:[#allocation2 + $0x108] sm:$0xff] }
 0x1af   :  { %6937 = vmatprep.mubr.msk.bf16.mxu0 %vm15_vm1, %v8500_v21  ;;  %v1828_v9 = vpack.c.bf16 %v1775_v19, %v1774_v7  ;;  %v4510_v7 = vld [vmem:[#allocation2 + $0x6a] sm:$0xff] }
 0x1b0   :  { %v4571_v60 = vpack.c.bf16 %v4510_v7, %v4509_v4  ;;  %v4529_v4 = vld [vmem:[#allocation2 + $0x152] sm:$0xff]  ;;  %v4530_v7 = vld [vmem:[#allocation2 + $0x15a] sm:$0xff] }
 0x1b2   :  { %6642 = vmatmul.mubr.msk.bf16.vlgmr.msra.gmra.mrb[0].mxu1 %vm15_vm1, %v1819_v35  ;;  %v4009_v35 = vld [vmem:[#allocation2 + $0x2e9] sm:$0xff] }
 0x1b3   :  { %7036 = vmatpush3.bf16.msra.mxu1 %v7628_v5  ;;  %6645 = vmatprep.mubr.msk.bf16.mxu1 %vm15_vm1, %v1820_v30  ;;  %v1822_v5 = vpack.c.bf16 %v1763_v57, %v1762_v62  ;;  %v4010_v30 = vld [vmem:[#allocation2 + $0x2f1] sm:$0xff]  ;;  %v1829_v62 = vpack.c.bf16 %v1777_v48, %v1776_v42 }
 0x1b4   :  { %v8559_v57 = vpack.c.bf16 %v4010_v30, %v4009_v35  ;;  %v1795_v42 = vld [vmem:[#allocation2 + $0x230] sm:$0xff]  ;;  %v4514_v35 = vld [vmem:[#allocation2 + $0x9a] sm:$0xff] }
 0x1b5   :  { %v4513_v48 = vld [vmem:[#allocation2 + $0x92] sm:$0xff] }
 0x1b6   :  { %6938 = vmatmul.mubr.msk.bf16.gmra.mrb[32].mxu0 %vm15_vm1, %v8508_v8  ;;  %v4573_v15 = vpack.c.bf16 %v4514_v35, %v4513_v48  ;;  %v4534_v48 = vld [vmem:[#allocation2 + $0x18a] sm:$0xff] }
 0x1b7   :  { %6941 = vmatprep.mubr.msk.bf16.mxu0 %vm15_vm1, %v8510_v0 }
 0x1ba   :  { %6646 = vmatmul.mubr.msk.bf16.gmra.mrb[4].mxu1 %vm15_vm1, %v1821_v27  ;;  %v1780_v27 = vld [vmem:[#allocation2 + $0x150] sm:$0xff] }
 0x1bb   :  { %6649 = vmatprep.mubr.msk.bf16.mxu1 %vm15_vm1, %v1822_v5  ;;  %v1781_v5 = vld [vmem:[#allocation2 + $0x158] sm:$0xff] }
 0x1bc   :  { %v1831_v52 = vpack.c.bf16 %v1781_v5, %v1780_v27  ;;  %v4518_v27 = vld [vmem:[#allocation2 + $0xca] sm:$0xff] }
 0x1be   :  { %6942 = vmatmul.mubr.msk.bf16.gmra.mrb[36].mxu0 %vm15_vm1, %v8519_v2 }
 0x1bf   :  { %6945 = vmatprep.mubr.msk.bf16.mxu0 %vm15_vm1, %v8521_v18 }
 0x1c2   :  { %6650 = vmatmul.mubr.msk.bf16.gmra.mrb[8].mxu1 %vm15_vm1, %v1823_v10  ;;  %v1832_v10 = vpack.c.bf16 %v1783_v45, %v1782_v61  ;;  %v4520_v61 = vld [vmem:[#allocation2 + $0xe2] sm:$0xff] }
 0x1c3   :  { %6653 = vmatprep.mubr.msk.bf16.mxu1 %vm15_vm1, %v1824_v38  ;;  %v8571_v38 = vpack.c.bf16 %v4016_v36, %v4015_v22  ;;  %v1802_v45 = vld [vmem:[#allocation2 + $0x288] sm:$0xff]  ;;  %v1803_v22 = vld [vmem:[#allocation2 + $0x290] sm:$0xff] }
 0x1c4   :  { %v4521_v36 = vld [vmem:[#allocation2 + $0xf2] sm:$0xff]  ;;  %v1842_v25 = vpack.c.bf16 %v1803_v22, %v1802_v45 }
 0x1c5   :  { %v4544_v22 = vld [vmem:[#allocation2 + $0x232] sm:$0xff] }
 0x1c6   :  { %6946 = vmatmul.mubr.msk.bf16.gmra.mrb[40].mxu0 %vm15_vm1, %v8529_v58 }
 0x1c7   :  { %6949 = vmatprep.mubr.msk.bf16.mxu0 %vm15_vm1, %v8531_v51 }
 0x1ca   :  { %6654 = vmatmul.mubr.msk.bf16.gmra.mrb[12].mxu1 %vm15_vm1, %v1825_v31  ;;  %v4569_v31 = vpack.c.bf16 %v4506_v55, %v4505_v54  ;;  %v1807_v54 = vld [vmem:[#allocation2 + $0x2c0] sm:$0xff] }
 0x1cb   :  { %6657 = vmatprep.mubr.msk.bf16.mxu1 %vm15_vm1, %v1826_v12  ;;  %v4507_v12 = vld [vmem:[#allocation2 + $0x4a] sm:$0xff]  ;;  %v4525_v55 = vld [vmem:[#allocation2 + $0x122] sm:$0xff] }
 0x1cc   :  { %v4570_v19 = vpack.c.bf16 %v4508_v43, %v4507_v12  ;;  %v4528_v43 = vld [vmem:[#allocation2 + $0x142] sm:$0xff] }
 0x1ce   :  { %6950 = vmatmul.mubr.msk.bf16.gmra.mrb[44].mxu0 %vm15_vm1, %v8539_v41 }
 0x1cf   :  { %6953 = vmatprep.mubr.msk.bf16.mxu0 %vm15_vm1, %v8541_v32 }
 0x1d2   :  { %6658 = vmatmul.mubr.msk.bf16.gmra.mrb[16].mxu1 %vm15_vm1, %v1827_v33  ;;  %v4512_v33 = vld [vmem:[#allocation2 + $0x82] sm:$0xff] }
 0x1d3   :  { %6661 = vmatprep.mubr.msk.bf16.mxu1 %vm15_vm1, %v1828_v9  ;;  %v1794_v9 = vld [vmem:[#allocation2 + $0x228] sm:$0xff] }
 0x1d4   :  { %v1838_v20 = vpack.c.bf16 %v1795_v42, %v1794_v9  ;;  %v1815_v9 = vld [vmem:[#allocation2 + $0x320] sm:$0xff] }
 0x1d5   :  { %v4533_v42 = vld [vmem:[#allocation2 + $0x182] sm:$0xff] }
 0x1d6   :  { %6954 = vmatmul.mubr.msk.bf16.gmra.mrb[48].mxu0 %vm15_vm1, %v8549_v6 }
 0x1d7   :  { %6957 = vmatprep.mubr.msk.bf16.mxu0 %vm15_vm1, %v8551_v63 }
 0x1da   :  { %6662 = vmatmul.mubr.msk.bf16.gmra.mrb[20].mxu1 %vm15_vm1, %v1829_v62  ;;  %v1799_v62 = vld [vmem:[#allocation2 + $0x260] sm:$0xff] }
 0x1db   :  { %6665 = vmatprep.mubr.msk.bf16.mxu1 %vm15_vm1, %v1830_v23  ;;  %v4517_v23 = vld [vmem:[#allocation2 + $0xc2] sm:$0xff]  ;;  %v1840_v59 = vpack.c.bf16 %v1799_v62, %v1798_v49  ;;  %v4538_v62 = vld [vmem:[#allocation2 + $0x1ea] sm:$0xff] }
 0x1dc   :  { %v4575_v50 = vpack.c.bf16 %v4518_v27, %v4517_v23  ;;  %v4537_v49 = vld [vmem:[#allocation2 + $0x1e2] sm:$0xff] }
 0x1de   :  { %6958 = vmatmul.mubr.msk.bf16.gmra.mrb[52].mxu0 %vm15_vm1, %v8559_v57 }
 0x1df   :  { %6961 = vmatprep.mubr.msk.bf16.mxu0 %vm15_vm1, %v8561_v34 }
 0x1e2   :  { %6666 = vmatmul.mubr.msk.bf16.gmra.mrb[24].mxu1 %vm15_vm1, %v1831_v52  ;;  %v4522_v52 = vld [vmem:[#allocation2 + $0xfa] sm:$0xff] }
 0x1e3   :  { %6669 = vmatprep.mubr.msk.bf16.mxu1 %vm15_vm1, %v1832_v10  ;;  %v4577_v24 = vpack.c.bf16 %v4522_v52, %v4521_v36  ;;  %v4545_v36 = vld [vmem:[#allocation2 + $0x242] sm:$0xff]  ;;  %v4546_v52 = vld [vmem:[#allocation2 + $0x24a] sm:$0xff] }
 0x1e6   :  { %6962 = vmatmul.mubr.msk.bf16.gmra.mrb[56].mxu0 %vm15_vm1, %v8569_v46 }
 0x1e7   :  { %6965 = vmatprep.mubr.msk.bf16.mxu0 %vm15_vm1, %v8571_v38 }
 0x1ea   :  { %6670 = vmatmul.mubr.msk.bf16.gmra.mrb[28].mxu1 %vm15_vm1, %v8377_v28  ;;  %v4511_v28 = vld [vmem:[#allocation2 + $0x7a] sm:$0xff] }
 0x1eb   :  { %6673 = vmatprep.mubr.msk.bf16.mxu1 %vm15_vm1, %v1834_v29  ;;  %v4572_v30 = vpack.c.bf16 %v4512_v33, %v4511_v28  ;;  %v4532_v28 = vld [vmem:[#allocation2 + $0x172] sm:$0xff] }
 0x1ec   :  { %v1814_v33 = vld [vmem:[#allocation2 + $0x318] sm:$0xff] }
 0x1ee   :  { %6966 = vmatmul.mubr.msk.bf16.gmra.mrb[60].mxu0 %vm15_vm1, %v4050_v14  ;;  %v4526_v14 = vld [vmem:[#allocation2 + $0x12a] sm:$0xff] }
 0x1ef   :  { %6971 = vmatprep.mubr.msk.bf16.mxu0 %vm15_vm1, %v4569_v31  ;;  %v1844_v31 = vpack.c.bf16 %v1807_v54, %v1806_v3  ;;  %v4579_v12 = vpack.c.bf16 %v4526_v14, %v4525_v55  ;;  %v4553_v54 = vld [vmem:[#allocation2 + $0x2a2] sm:$0xff]  ;;  %v4554_v55 = vld [vmem:[#allocation2 + $0x2aa] sm:$0xff] }
 0x1f2   :  { %6674 = vmatmul.mubr.msk.bf16.gmra.mrb[32].mxu1 %vm15_vm1, %v8303_v47  ;;  %v4515_v47 = vld [vmem:[#allocation2 + $0xaa] sm:$0xff] }
 0x1f3   :  { %6677 = vmatprep.mubr.msk.bf16.mxu1 %vm15_vm1, %v1836_v40  ;;  %v4574_v5 = vpack.c.bf16 %v4516_v39, %v4515_v47  ;;  %v1846_v40 = vpack.c.bf16 %v1811_v56, %v1810_v53  ;;  %v2336_v47 = vld [vmem:[#allocation2 + $0x1c9] sm:$0xff]  ;;  %v2337_v39 = vld [vmem:[#allocation2 + $0x1d1] sm:$0xff] }
 0x1f4   :  { %v2384_v27 = vpack.c.bf16 %v2337_v39, %v2336_v47  ;;  %v4561_v53 = vld [vmem:[#allocation2 + $0x302] sm:$0xff]  ;;  %v4562_v56 = vld [vmem:[#allocation2 + $0x30a] sm:$0xff] }
 0x1f6   :  { %6972 = vmatmul.mubr.msk.bf16.vlgmr.msra.gmra.mrb[0].mxu0 %vm15_vm1, %v4570_v19 }
 0x1f7   :  { %6975 = vmatprep.mubr.msk.bf16.mxu0 %vm15_vm1, %v4571_v60  ;;  %v4581_v60 = vpack.c.bf16 %v4530_v7, %v4529_v4  ;;  %v4597_v7 = vpack.c.bf16 %v4562_v56, %v4561_v53 }
 0x1fa   :  { %6678 = vmatmul.mubr.msk.bf16.gmra.mrb[36].mxu1 %vm15_vm1, %v8323_v13  ;;  %v4519_v13 = vld [vmem:[#allocation2 + $0xda] sm:$0xff] }
 0x1fb   :  { %6681 = vmatprep.mubr.msk.bf16.mxu1 %vm15_vm1, %v1838_v20  ;;  %v4576_v10 = vpack.c.bf16 %v4520_v61, %v4519_v13  ;;  %v4583_v20 = vpack.c.bf16 %v4534_v48, %v4533_v42  ;;  %v4542_v13 = vld [vmem:[#allocation2 + $0x21a] sm:$0xff] }
 0x1fe   :  { %6976 = vmatmul.mubr.msk.bf16.gmra.mrb[4].mxu0 %vm15_vm1, %v4572_v30  ;;  %v1848_v30 = vpack.c.bf16 %v1815_v9, %v1814_v33 }
 0x1ff   :  { %6979 = vmatprep.mubr.msk.bf16.mxu0 %vm15_vm1, %v4573_v15  ;;  %v4536_v15 = vld [vmem:[#allocation2 + $0x1a2] sm:$0xff] }
 0x202   :  { %6682 = vmatmul.mubr.msk.bf16.gmra.mrb[40].mxu1 %vm15_vm1, %v8335_v26  ;;  %v4523_v26 = vld [vmem:[#allocation2 + $0x10a] sm:$0xff] }
 0x203   :  { %6685 = vmatprep.mubr.msk.bf16.mxu1 %vm15_vm1, %v1840_v59  ;;  %v4578_v29 = vpack.c.bf16 %v4524_v11, %v4523_v26  ;;  %v4540_v59 = vld [vmem:[#allocation2 + $0x202] sm:$0xff]  ;;  %v4550_v26 = vld [vmem:[#allocation2 + $0x27a] sm:$0xff] }
 0x206   :  { %6980 = vmatmul.mubr.msk.bf16.gmra.mrb[8].mxu0 %vm15_vm1, %v4574_v5  ;;  %v4585_v5 = vpack.c.bf16 %v4538_v62, %v4537_v49 }
 0x207   :  { %6983 = vmatprep.mubr.msk.bf16.mxu0 %vm15_vm1, %v4575_v50  ;;  %v4541_v50 = vld [vmem:[#allocation2 + $0x212] sm:$0xff] }
 0x208   :  { %v4587_v45 = vpack.c.bf16 %v4542_v13, %v4541_v50 }
 0x20a   :  { %6686 = vmatmul.mubr.msk.bf16.gmra.mrb[44].mxu1 %vm15_vm1, %v8347_v44  ;;  %v4527_v44 = vld [vmem:[#allocation2 + $0x13a] sm:$0xff] }
 0x20b   :  { %6689 = vmatprep.mubr.msk.bf16.mxu1 %vm15_vm1, %v1842_v25  ;;  %v4580_v19 = vpack.c.bf16 %v4528_v43, %v4527_v44  ;;  %v4589_v25 = vpack.c.bf16 %v4546_v52, %v4545_v36 }
 0x20e   :  { %6984 = vmatmul.mubr.msk.bf16.gmra.mrb[12].mxu0 %vm15_vm1, %v4576_v10 }
 0x20f   :  { %6987 = vmatprep.mubr.msk.bf16.mxu0 %vm15_vm1, %v4577_v24  ;;  %v4549_v24 = vld [vmem:[#allocation2 + $0x272] sm:$0xff] }
 0x210   :  { %v4591_v3 = vpack.c.bf16 %v4550_v26, %v4549_v24 }
 0x212   :  { %6690 = vmatmul.mubr.msk.bf16.gmra.mrb[48].mxu1 %vm15_vm1, %v8357_v1  ;;  %v4531_v1 = vld [vmem:[#allocation2 + $0x16a] sm:$0xff] }
 0x213   :  { %6693 = vmatprep.mubr.msk.bf16.mxu1 %vm15_vm1, %v1844_v31  ;;  %v4582_v35 = vpack.c.bf16 %v4532_v28, %v4531_v1  ;;  %v4557_v31 = vld [vmem:[#allocation2 + $0x2d2] sm:$0xff] }
 0x216   :  { %6988 = vmatmul.mubr.msk.bf16.gmra.mrb[16].mxu0 %vm15_vm1, %v4578_v29  ;;  %v4593_v29 = vpack.c.bf16 %v4554_v55, %v4553_v54 }
 0x217   :  { %6991 = vmatprep.mubr.msk.bf16.mxu0 %vm15_vm1, %v4579_v12  ;;  %v4558_v12 = vld [vmem:[#allocation2 + $0x2da] sm:$0xff] }
 0x218   :  { %v4595_v43 = vpack.c.bf16 %v4558_v12, %v4557_v31 }
 0x21a   :  { %6694 = vmatmul.mubr.msk.bf16.gmra.mrb[52].mxu1 %vm15_vm1, %v8366_v17  ;;  %v4535_v17 = vld [vmem:[#allocation2 + $0x19a] sm:$0xff] }
 0x21b   :  { %6697 = vmatprep.mubr.msk.bf16.mxu1 %vm15_vm1, %v1846_v40  ;;  %v4584_v23 = vpack.c.bf16 %v4536_v15, %v4535_v17  ;;  %v4566_v40 = vld [vmem:[#allocation2 + $0x33a] sm:$0xff] }
 0x21e   :  { %6992 = vmatmul.mubr.msk.bf16.gmra.mrb[20].mxu0 %vm15_vm1, %v4580_v19  ;;  %v4565_v19 = vld [vmem:[#allocation2 + $0x332] sm:$0xff] }
 0x21f   :  { %6995 = vmatprep.mubr.msk.bf16.mxu0 %vm15_vm1, %v4581_v60  ;;  %v4599_v1 = vpack.c.bf16 %v4566_v40, %v4565_v19 }
 0x222   :  { %6698 = vmatmul.mubr.msk.bf16.gmra.mrb[56].mxu1 %vm15_vm1, %v8375_v37  ;;  %v4539_v37 = vld [vmem:[#allocation2 + $0x1fa] sm:$0xff] }
 0x223   :  { %6701 = vmatprep.mubr.msk.bf16.mxu1 %vm15_vm1, %v1848_v30  ;;  %v4586_v61 = vpack.c.bf16 %v4540_v59, %v4539_v37 }
 0x226   :  { %6996 = vmatmul.mubr.msk.bf16.gmra.mrb[24].mxu0 %vm15_vm1, %v4582_v35 }
 0x227   :  { %6999 = vmatprep.mubr.msk.bf16.mxu0 %vm15_vm1, %v4583_v20 }
 0x22a   :  { %6702 = vmatmul.mubr.msk.bf16.gmra.mrb[60].mxu1 %vm15_vm1, %v8442_v16  ;;  %v4543_v16 = vld [vmem:[#allocation2 + $0x22a] sm:$0xff] }
 0x22b   :  { %6739 = vmatprep.mubr.msk.bf16.mxu1 %vm15_vm1, %v2384_v27  ;;  %v4588_v10 = vpack.c.bf16 %v4544_v22, %v4543_v16 }
 0x22e   :  { %7000 = vmatmul.mubr.msk.bf16.gmra.mrb[28].mxu0 %vm15_vm1, %v4584_v23 }
 0x22f   :  { %7003 = vmatprep.mubr.msk.bf16.mxu0 %vm15_vm1, %v4585_v5 }
 0x232   :  { %6740 = vmatmul.mubr.msk.bf16.vlgmr.msra.gmra.mrb[32].mxu1 %vm15_vm1, %v8500_v21  ;;  %v4547_v21 = vld [vmem:[#allocation2 + $0x25a] sm:$0xff] }
 0x233   :  { %6743 = vmatprep.mubr.msk.bf16.mxu1 %vm15_vm1, %v8508_v8  ;;  %v4548_v8 = vld [vmem:[#allocation2 + $0x262] sm:$0xff] }
 0x234   :  { %v4590_v11 = vpack.c.bf16 %v4548_v8, %v4547_v21 }
 0x236   :  { %7004 = vmatmul.mubr.msk.bf16.gmra.mrb[32].mxu0 %vm15_vm1, %v4586_v61 }
 0x237   :  { %7007 = vmatprep.mubr.msk.bf16.mxu0 %vm15_vm1, %v4587_v45 }
 0x23a   :  { %6744 = vmatmul.mubr.msk.bf16.gmra.mrb[36].mxu1 %vm15_vm1, %v8510_v0  ;;  %v4551_v0 = vld [vmem:[#allocation2 + $0x28a] sm:$0xff] }
 0x23b   :  { %6747 = vmatprep.mubr.msk.bf16.mxu1 %vm15_vm1, %v8519_v2  ;;  %v4552_v2 = vld [vmem:[#allocation2 + $0x292] sm:$0xff] }
 0x23c   :  { %v4592_v14 = vpack.c.bf16 %v4552_v2, %v4551_v0 }
 0x23e   :  { %7008 = vmatmul.mubr.msk.bf16.gmra.mrb[36].mxu0 %vm15_vm1, %v4588_v10 }
 0x23f   :  { %7011 = vmatprep.mubr.msk.bf16.mxu0 %vm15_vm1, %v4589_v25 }
 0x242   :  { %6748 = vmatmul.mubr.msk.bf16.gmra.mrb[40].mxu1 %vm15_vm1, %v8521_v18  ;;  %v4555_v18 = vld [vmem:[#allocation2 + $0x2ba] sm:$0xff] }
 0x243   :  { %6751 = vmatprep.mubr.msk.bf16.mxu1 %vm15_vm1, %v8529_v58  ;;  %v4556_v58 = vld [vmem:[#allocation2 + $0x2c2] sm:$0xff] }
 0x244   :  { %v4594_v44 = vpack.c.bf16 %v4556_v58, %v4555_v18 }
 0x246   :  { %7012 = vmatmul.mubr.msk.bf16.gmra.mrb[40].mxu0 %vm15_vm1, %v4590_v11 }
 0x247   :  { %7015 = vmatprep.mubr.msk.bf16.mxu0 %vm15_vm1, %v4591_v3 }
 0x24a   :  { %6752 = vmatmul.mubr.msk.bf16.gmra.mrb[44].mxu1 %vm15_vm1, %v8531_v51  ;;  %v4559_v51 = vld [vmem:[#allocation2 + $0x2ea] sm:$0xff] }
 0x24b   :  { %6755 = vmatprep.mubr.msk.bf16.mxu1 %vm15_vm1, %v8539_v41  ;;  %v4560_v41 = vld [vmem:[#allocation2 + $0x2f2] sm:$0xff] }
 0x24c   :  { %v4596_v4 = vpack.c.bf16 %v4560_v41, %v4559_v51 }
 0x24e   :  { %7016 = vmatmul.mubr.msk.bf16.gmra.mrb[44].mxu0 %vm15_vm1, %v4592_v14 }
 0x24f   :  { %7019 = vmatprep.mubr.msk.bf16.mxu0 %vm15_vm1, %v4593_v29 }
 0x252   :  { %6756 = vmatmul.mubr.msk.bf16.gmra.mrb[48].mxu1 %vm15_vm1, %v8541_v32  ;;  %v4563_v32 = vld [vmem:[#allocation2 + $0x31a] sm:$0xff] }
 0x253   :  { %6759 = vmatprep.mubr.msk.bf16.mxu1 %vm15_vm1, %v8549_v6  ;;  %v4564_v6 = vld [vmem:[#allocation2 + $0x322] sm:$0xff] }
 0x254   :  { %v4598_v60 = vpack.c.bf16 %v4564_v6, %v4563_v32 }
 0x256   :  { %7020 = vmatmul.mubr.msk.bf16.gmra.mrb[48].mxu0 %vm15_vm1, %v4594_v44 }
 0x257   :  { %7023 = vmatprep.mubr.msk.bf16.mxu0 %vm15_vm1, %v4595_v43 }
 0x25a   :  { %6760 = vmatmul.mubr.msk.bf16.gmra.mrb[52].mxu1 %vm15_vm1, %v8551_v63  ;;  %v4567_v63 = vld [vmem:[#allocation2 + $0x34a] sm:$0xff] }
 0x25b   :  { %6763 = vmatprep.mubr.msk.bf16.mxu1 %vm15_vm1, %v8559_v57  ;;  %v4568_v57 = vld [vmem:[#allocation2 + $0x352] sm:$0xff] }
 0x25c   :  { %v4600_v28 = vpack.c.bf16 %v4568_v57, %v4567_v63 }
 0x25e   :  { %7024 = vmatmul.mubr.msk.bf16.gmra.mrb[52].mxu0 %vm15_vm1, %v4596_v4 }
 0x25f   :  { %7027 = vmatprep.mubr.msk.bf16.mxu0 %vm15_vm1, %v4597_v7 }
 0x262   :  { %6764 = vmatmul.mubr.msk.bf16.gmra.mrb[56].mxu1 %vm15_vm1, %v8561_v34 }
 0x263   :  { %6767 = vmatprep.mubr.msk.bf16.mxu1 %vm15_vm1, %v8569_v46 }
 0x266   :  { %7028 = vmatmul.mubr.msk.bf16.gmra.mrb[56].mxu0 %vm15_vm1, %v4598_v60 }
 0x267   :  { %7031 = vmatprep.mubr.msk.bf16.mxu0 %vm15_vm1, %v4599_v1 }
 0x26a   :  { %6768 = vmatmul.mubr.msk.bf16.gmra.mrb[60].mxu1 %vm15_vm1, %v8571_v38 }
 0x26e   :  { %7032 = vmatmul.mubr.msk.bf16.gmra.mrb[60].mxu0 %vm15_vm1, %v4600_v28 }
 0x285   :  { %v6643_v33 = vpop.f32.mrb[0].mxu1 }
 0x286   :  { %v1985_v9 = vpop.f32.mrb[1].mxu1 }
 0x287   :  { %v6644_v42 = vpop.f32.mrb[2].mxu1 }
 0x288   :  { %v1988_v48 = vpop.f32.mrb[3].mxu1 }
 0x28d   :  { %v6647_v34 = vpop.f32.mrb[4].mxu1 }
 0x28e   :  { %v2001_v35 = vpop.f32.mrb[5].mxu1 }
 0x28f   :  { %v8669_v30 = vpop.f32.mrb[6].mxu1 }
 0x290   :  { %v8671_v20 = vpop.f32.mrb[7].mxu1 }
 0x295   :  { %v8673_v46 = vpop.f32.mrb[8].mxu1 }
 0x296   :  { %v8675_v17 = vpop.f32.mrb[9].mxu1 }
 0x297   :  { %v8677_v15 = vpop.f32.mrb[10].mxu1 }
 0x298   :  { %v8679_v47 = vpop.f32.mrb[11].mxu1 }
 0x29d   :  { %v8681_v38 = vpop.f32.mrb[12].mxu1 }
 0x29e   :  { %v8683_v39 = vpop.f32.mrb[13].mxu1 }
 0x29f   :  { %v8685_v49 = vpop.f32.mrb[14].mxu1 }
 0x2a0   :  { %v8687_v62 = vpop.f32.mrb[15].mxu1 }
 0x2a5   :  { %v8689_v23 = vpop.f32.mrb[16].mxu1 }
 0x2a6   :  { %v8691_v27 = vpop.f32.mrb[17].mxu1 }
 0x2a7   :  { %v8693_v5 = vpop.f32.mrb[18].mxu1 }
 0x2a8   :  { %v8695_v37 = vpop.f32.mrb[19].mxu1 }
 0x2ad   :  { %v8697_v59 = vpop.f32.mrb[20].mxu1 }
 0x2ae   :  { %v8699_v50 = vpop.f32.mrb[21].mxu1 }
 0x2af   :  { %v8701_v13 = vpop.f32.mrb[22].mxu1 }
 0x2b0   :  { %v8703_v61 = vpop.f32.mrb[23].mxu1 }
 0x2b5   :  { %v8705_v45 = vpop.f32.mrb[24].mxu1 }
 0x2b6   :  { %v8707_v16 = vpop.f32.mrb[25].mxu1 }
 0x2b7   :  { %v8709_v22 = vpop.f32.mrb[26].mxu1 }
 0x2b8   :  { %v8711_v36 = vpop.f32.mrb[27].mxu1 }
 0x2bd   :  { %v8713_v52 = vpop.f32.mrb[28].mxu1 }
 0x2be   :  { %v8715_v10 = vpop.f32.mrb[29].mxu1 }
 0x2bf   :  { %v8717_v25 = vpop.f32.mrb[30].mxu1 }
 0x2c0   :  { %v8719_v21 = vpop.f32.mrb[31].mxu1 }
 0x2c9   :  { %v6973_v8 = vpop.f32.mrb[0].mxu0 }
 0x2ca   :  { %v7037_v24 = vadd.f32 %v6973_v8, %v6643_v33  ;;  %v4736_v26 = vpop.f32.mrb[1].mxu0 }
 0x2cb   :  { %v7038_v11 = vadd.f32 %v4736_v26, %v1985_v9  ;;  %v6974_v3 = vpop.f32.mrb[2].mxu0 }
 0x2cc   :  { %v6082_v0 = vpack.c.bf16 %v7037_v24, %v7037_v24  ;;  %v7039_v2 = vadd.f32 %v6974_v3, %v6644_v42  ;;  %v4739_v54 = vpop.f32.mrb[3].mxu0  ;;  %v5512_v18 = vmul.f32 %v7037_v24, %v7037_v24  ;;  %v5379_v53 = vsel %vm15_vm1, %v7037_v24, 0.0 }
 0x2cd   :  { %v6080_v55 = vpack.c.bf16 %v7038_v11, %v7038_v11  ;;  %v5510_v14 = vmul.f32 %v7038_v11, %v7038_v11  ;;  %v7040_v29 = vadd.f32 %v4739_v54, %v1988_v48  ;;  %v5376_v31 = vsel %vm15_vm1, %v7038_v11, 0.0 }
 0x2ce   :  { %5314 = vst.msk [vmem:[%s9141_s2 + $0x8] sm:$0xf] %vm5311_vm4, %v6082_v0  ;;  %v6083_v58 = vpack.c.bf16 %v7039_v2, %v7039_v2  ;;  %v5513_v51 = vmul.f32 %v7039_v2, %v7039_v2  ;;  %v5577_v60 = vsel %vm15_vm1, %v5512_v18, 0.0  ;;  %v5381_v57 = vsel %vm15_vm1, %v7039_v2, 0.0 }
 0x2cf   :  { %5312 = vst.msk [vmem:[%s9141_s2] sm:$0xf] %vm5311_vm4, %v6080_v55  ;;  %v6081_v12 = vpack.c.bf16 %v7040_v29, %v7040_v29  ;;  %v5377_v44 = vsel %vm15_vm1, %v7040_v29, 0.0  ;;  %v5511_v43 = vmul.f32 %v7040_v29, %v7040_v29  ;;  %v5574_v56 = vsel %vm15_vm1, %v5510_v14, 0.0 }
 0x2d0   :  { %5315 = vst.msk [vmem:[%s9141_s2 + $0xc] sm:$0xf] %vm5311_vm4, %v6083_v58  ;;  %v5378_v41 = vadd.f32 %v5377_v44, %v5376_v31  ;;  %v5579_v28 = vsel %vm15_vm1, %v5513_v51, 0.0 }
 0x2d1   :  { %5313 = vst.msk [vmem:[%s9141_s2 + $0x4] sm:$0xf] %vm5311_vm4, %v6081_v12  ;;  %v5575_v4 = vsel %vm15_vm1, %v5511_v43, 0.0  ;;  %v6977_v7 = vpop.f32.mrb[4].mxu0 }
 0x2d2   :  { %v5380_v32 = vadd.f32 %v5379_v53, %v5378_v41  ;;  %v5576_v6 = vadd.f32 %v5575_v4, %v5574_v56  ;;  %v7041_v19 = vadd.f32 %v6977_v7, %v6647_v34  ;;  %v4752_v40 = vpop.f32.mrb[5].mxu0 }
 0x2d3   :  { %v7042_v1 = vadd.f32 %v4752_v40, %v2001_v35  ;;  %v6978_v63 = vpop.f32.mrb[6].mxu0 }
 0x2d4   :  { %v5578_v33 = vadd.f32 %v5577_v60, %v5576_v6  ;;  %v6086_v9 = vpack.c.bf16 %v7041_v19, %v7041_v19  ;;  %v4755_v42 = vpop.f32.mrb[7].mxu0  ;;  %v5382_v8 = vadd.f32 %v5381_v57, %v5380_v32  ;;  %v7043_v35 = vadd.f32 %v6978_v63, %v8669_v30 }
 0x2d5   :  { %v6084_v48 = vpack.c.bf16 %v7042_v1, %v7042_v1  ;;  %v5383_v24 = vsel %vm15_vm1, %v7042_v1, 0.0  ;;  %v5514_v26 = vmul.f32 %v7042_v1, %v7042_v1  ;;  %v7044_v11 = vadd.f32 %v4755_v42, %v8671_v20 }
 0x2d6   :  { %5318 = vst.msk [vmem:[%s9141_s2 + $0x18] sm:$0xf] %vm5311_vm4, %v6086_v9  ;;  %v5580_v34 = vadd.f32 %v5579_v28, %v5578_v33  ;;  %v5384_v3 = vadd.f32 %v5383_v24, %v5382_v8  ;;  %v5516_v2 = vmul.f32 %v7041_v19, %v7041_v19  ;;  %v6087_v55 = vpack.c.bf16 %v7043_v35, %v7043_v35 }
 0x2d7   :  { %5316 = vst.msk [vmem:[%s9141_s2 + $0x10] sm:$0xf] %vm5311_vm4, %v6084_v48  ;;  %v5581_v0 = vsel %vm15_vm1, %v5514_v26, 0.0  ;;  %v6085_v14 = vpack.c.bf16 %v7044_v11, %v7044_v11  ;;  %v5385_v29 = vsel %vm15_vm1, %v7044_v11, 0.0  ;;  %v5515_v18 = vmul.f32 %v7044_v11, %v7044_v11 }
 0x2d8   :  { %v5582_v54 = vadd.f32 %v5581_v0, %v5580_v34  ;;  %5319 = vst.msk [vmem:[%s9141_s2 + $0x1c] sm:$0xf] %vm5311_vm4, %v6087_v55  ;;  %v5386_v30 = vadd.f32 %v5385_v29, %v5384_v3  ;;  %v5387_v12 = vsel %vm15_vm1, %v7041_v19, 0.0  ;;  %v5517_v44 = vmul.f32 %v7043_v35, %v7043_v35 }
 0x2d9   :  { %v6981_v58 = vpop.f32.mrb[8].mxu0  ;;  %5317 = vst.msk [vmem:[%s9141_s2 + $0x14] sm:$0xf] %vm5311_vm4, %v6085_v14  ;;  %v5583_v43 = vsel %vm15_vm1, %v5515_v18, 0.0  ;;  %v5585_v53 = vsel %vm15_vm1, %v5516_v2, 0.0  ;;  %v5389_v32 = vsel %vm15_vm1, %v7043_v35, 0.0 }
 0x2da   :  { %v7045_v20 = vadd.f32 %v6981_v58, %v8673_v46  ;;  %v4768_v31 = vpop.f32.mrb[9].mxu0  ;;  %v5388_v56 = vadd.f32 %v5387_v12, %v5386_v30  ;;  %v5584_v4 = vadd.f32 %v5583_v43, %v5582_v54  ;;  %v5587_v57 = vsel %vm15_vm1, %v5517_v44, 0.0 }
 0x2db   :  { %v7046_v51 = vadd.f32 %v4768_v31, %v8675_v17  ;;  %v6982_v41 = vpop.f32.mrb[10].mxu0 }
 0x2dc   :  { %v6090_v7 = vpack.c.bf16 %v7045_v20, %v7045_v20  ;;  %v4771_v46 = vpop.f32.mrb[11].mxu0  ;;  %v5586_v60 = vadd.f32 %v5585_v53, %v5584_v4  ;;  %v5390_v17 = vadd.f32 %v5389_v32, %v5388_v56  ;;  %v7047_v1 = vadd.f32 %v6982_v41, %v8677_v15 }
 0x2dd   :  { %v6088_v6 = vpack.c.bf16 %v7046_v51, %v7046_v51  ;;  %v5391_v19 = vsel %vm15_vm1, %v7046_v51, 0.0  ;;  %v5518_v40 = vmul.f32 %v7046_v51, %v7046_v51  ;;  %v7048_v63 = vadd.f32 %v4771_v46, %v8679_v47 }
 0x2de   :  { %5322 = vst.msk [vmem:[%s9141_s2 + $0x28] sm:$0xf] %vm5311_vm4, %v6090_v7  ;;  %v5520_v33 = vmul.f32 %v7045_v20, %v7045_v20  ;;  %v5392_v9 = vadd.f32 %v5391_v19, %v5390_v17  ;;  %v5588_v42 = vadd.f32 %v5587_v57, %v5586_v60  ;;  %v6091_v48 = vpack.c.bf16 %v7047_v1, %v7047_v1 }
 0x2df   :  { %5320 = vst.msk [vmem:[%s9141_s2 + $0x20] sm:$0xf] %vm5311_vm4, %v6088_v6  ;;  %v5589_v28 = vsel %vm15_vm1, %v5518_v40, 0.0  ;;  %v6089_v8 = vpack.c.bf16 %v7048_v63, %v7048_v63  ;;  %v5393_v24 = vsel %vm15_vm1, %v7048_v63, 0.0  ;;  %v5519_v26 = vmul.f32 %v7048_v63, %v7048_v63 }
 0x2e0   :  { %v5590_v34 = vadd.f32 %v5589_v28, %v5588_v42  ;;  %5323 = vst.msk [vmem:[%s9141_s2 + $0x2c] sm:$0xf] %vm5311_vm4, %v6091_v48  ;;  %v5394_v47 = vadd.f32 %v5393_v24, %v5392_v9  ;;  %v5395_v3 = vsel %vm15_vm1, %v7045_v20, 0.0  ;;  %v5521_v0 = vmul.f32 %v7047_v1, %v7047_v1 }
 0x2e1   :  { %v6985_v15 = vpop.f32.mrb[12].mxu0  ;;  %5321 = vst.msk [vmem:[%s9141_s2 + $0x24] sm:$0xf] %vm5311_vm4, %v6089_v8  ;;  %v5591_v2 = vsel %vm15_vm1, %v5519_v26, 0.0  ;;  %v5593_v14 = vsel %vm15_vm1, %v5520_v33, 0.0  ;;  %v5397_v30 = vsel %vm15_vm1, %v7047_v1, 0.0 }
 0x2e2   :  { %v7049_v35 = vadd.f32 %v6985_v15, %v8681_v38  ;;  %v4784_v11 = vpop.f32.mrb[13].mxu0  ;;  %v5396_v29 = vadd.f32 %v5395_v3, %v5394_v47  ;;  %v5592_v18 = vadd.f32 %v5591_v2, %v5590_v34  ;;  %v5595_v41 = vsel %vm15_vm1, %v5521_v0, 0.0 }
 0x2e3   :  { %v7050_v54 = vadd.f32 %v4784_v11, %v8683_v39  ;;  %v6986_v55 = vpop.f32.mrb[14].mxu0 }
 0x2e4   :  { %v6094_v58 = vpack.c.bf16 %v7049_v35, %v7049_v35  ;;  %v4787_v38 = vpop.f32.mrb[15].mxu0  ;;  %v5594_v44 = vadd.f32 %v5593_v14, %v5592_v18  ;;  %v5398_v39 = vadd.f32 %v5397_v30, %v5396_v29  ;;  %v7051_v43 = vadd.f32 %v6986_v55, %v8685_v49 }
 0x2e5   :  { %v6092_v20 = vpack.c.bf16 %v7050_v54, %v7050_v54  ;;  %v5399_v31 = vsel %vm15_vm1, %v7050_v54, 0.0  ;;  %v5522_v12 = vmul.f32 %v7050_v54, %v7050_v54  ;;  %v7052_v51 = vadd.f32 %v4787_v38, %v8687_v62 }
 0x2e6   :  { %5326 = vst.msk [vmem:[%s9141_s2 + $0x38] sm:$0xf] %vm5311_vm4, %v6094_v58  ;;  %v5524_v56 = vmul.f32 %v7049_v35, %v7049_v35  ;;  %v5400_v4 = vadd.f32 %v5399_v31, %v5398_v39  ;;  %v5596_v7 = vadd.f32 %v5595_v41, %v5594_v44  ;;  %v6095_v46 = vpack.c.bf16 %v7051_v43, %v7051_v43 }
 0x2e7   :  { %5324 = vst.msk [vmem:[%s9141_s2 + $0x30] sm:$0xf] %vm5311_vm4, %v6092_v20  ;;  %v5597_v53 = vsel %vm15_vm1, %v5522_v12, 0.0  ;;  %v6093_v32 = vpack.c.bf16 %v7052_v51, %v7052_v51  ;;  %v5401_v6 = vsel %vm15_vm1, %v7052_v51, 0.0  ;;  %v5523_v19 = vmul.f32 %v7052_v51, %v7052_v51 }
 0x2e8   :  { %v5598_v40 = vadd.f32 %v5597_v53, %v5596_v7  ;;  %5327 = vst.msk [vmem:[%s9141_s2 + $0x3c] sm:$0xf] %vm5311_vm4, %v6095_v46  ;;  %v5402_v62 = vadd.f32 %v5401_v6, %v5400_v4  ;;  %v5403_v1 = vsel %vm15_vm1, %v7049_v35, 0.0  ;;  %v5525_v63 = vmul.f32 %v7051_v43, %v7051_v43 }
 0x2e9   :  { %v6989_v49 = vpop.f32.mrb[16].mxu0  ;;  %5325 = vst.msk [vmem:[%s9141_s2 + $0x34] sm:$0xf] %vm5311_vm4, %v6093_v32  ;;  %v5599_v57 = vsel %vm15_vm1, %v5523_v19, 0.0  ;;  %v5601_v9 = vsel %vm15_vm1, %v5524_v56, 0.0  ;;  %v5405_v24 = vsel %vm15_vm1, %v7051_v43, 0.0 }
 0x2ea   :  { %v7053_v60 = vadd.f32 %v6989_v49, %v8689_v23  ;;  %v4800_v17 = vpop.f32.mrb[17].mxu0  ;;  %v5404_v42 = vadd.f32 %v5403_v1, %v5402_v62  ;;  %v5600_v48 = vadd.f32 %v5599_v57, %v5598_v40  ;;  %v5603_v3 = vsel %vm15_vm1, %v5525_v63, 0.0 }
 0x2eb   :  { %v7054_v28 = vadd.f32 %v4800_v17, %v8691_v27  ;;  %v6990_v33 = vpop.f32.mrb[18].mxu0 }
 0x2ec   :  { %v6098_v8 = vpack.c.bf16 %v7053_v60, %v7053_v60  ;;  %v4803_v23 = vpop.f32.mrb[19].mxu0  ;;  %v5602_v47 = vadd.f32 %v5601_v9, %v5600_v48  ;;  %v5406_v27 = vadd.f32 %v5405_v24, %v5404_v42  ;;  %v7055_v35 = vadd.f32 %v6990_v33, %v8693_v5 }
 0x2ed   :  { %v6096_v26 = vpack.c.bf16 %v7054_v28, %v7054_v28  ;;  %v5407_v15 = vsel %vm15_vm1, %v7054_v28, 0.0  ;;  %v5526_v34 = vmul.f32 %v7054_v28, %v7054_v28  ;;  %v7056_v11 = vadd.f32 %v4803_v23, %v8695_v37 }
 0x2ee   :  { %5330 = vst.msk [vmem:[%s9141_s2 + $0x48] sm:$0xf] %vm5311_vm4, %v6098_v8  ;;  %v5528_v2 = vmul.f32 %v7053_v60, %v7053_v60  ;;  %v5408_v54 = vadd.f32 %v5407_v15, %v5406_v27  ;;  %v5604_v55 = vadd.f32 %v5603_v3, %v5602_v47  ;;  %v6099_v14 = vpack.c.bf16 %v7055_v35, %v7055_v35 }
 0x2ef   :  { %5328 = vst.msk [vmem:[%s9141_s2 + $0x40] sm:$0xf] %vm5311_vm4, %v6096_v26  ;;  %v5605_v0 = vsel %vm15_vm1, %v5526_v34, 0.0  ;;  %v6097_v29 = vpack.c.bf16 %v7056_v11, %v7056_v11  ;;  %v5409_v18 = vsel %vm15_vm1, %v7056_v11, 0.0  ;;  %v5527_v58 = vmul.f32 %v7056_v11, %v7056_v11 }
 0x2f0   :  { %v5606_v38 = vadd.f32 %v5605_v0, %v5604_v55  ;;  %5331 = vst.msk [vmem:[%s9141_s2 + $0x4c] sm:$0xf] %vm5311_vm4, %v6099_v14  ;;  %v5410_v37 = vadd.f32 %v5409_v18, %v5408_v54  ;;  %v5411_v31 = vsel %vm15_vm1, %v7053_v60, 0.0  ;;  %v5529_v12 = vmul.f32 %v7055_v35, %v7055_v35 }
 0x2f1   :  { %v6993_v5 = vpop.f32.mrb[20].mxu0  ;;  %5329 = vst.msk [vmem:[%s9141_s2 + $0x44] sm:$0xf] %vm5311_vm4, %v6097_v29  ;;  %v5607_v44 = vsel %vm15_vm1, %v5527_v58, 0.0  ;;  %v5609_v51 = vsel %vm15_vm1, %v5528_v2, 0.0  ;;  %v5413_v4 = vsel %vm15_vm1, %v7055_v35, 0.0 }
 0x2f2   :  { %v7057_v30 = vadd.f32 %v6993_v5, %v8697_v59  ;;  %v4816_v20 = vpop.f32.mrb[21].mxu0  ;;  %v5412_v41 = vadd.f32 %v5411_v31, %v5410_v37  ;;  %v5608_v53 = vadd.f32 %v5607_v44, %v5606_v38  ;;  %v5611_v40 = vsel %vm15_vm1, %v5529_v12, 0.0 }
 0x2f3   :  { %v7058_v39 = vadd.f32 %v4816_v20, %v8699_v50  ;;  %v6994_v43 = vpop.f32.mrb[22].mxu0 }
 0x2f4   :  { %v6102_v56 = vpack.c.bf16 %v7057_v30, %v7057_v30  ;;  %v4819_v59 = vpop.f32.mrb[23].mxu0  ;;  %v5610_v6 = vadd.f32 %v5609_v51, %v5608_v53  ;;  %v5414_v50 = vadd.f32 %v5413_v4, %v5412_v41  ;;  %v7059_v19 = vadd.f32 %v6994_v43, %v8701_v13 }
 0x2f5   :  { %v6100_v7 = vpack.c.bf16 %v7058_v39, %v7058_v39  ;;  %v5415_v46 = vsel %vm15_vm1, %v7058_v39, 0.0  ;;  %v5530_v32 = vmul.f32 %v7058_v39, %v7058_v39  ;;  %v7060_v49 = vadd.f32 %v4819_v59, %v8703_v61 }
 0x2f6   :  { %5334 = vst.msk [vmem:[%s9141_s2 + $0x58] sm:$0xf] %vm5311_vm4, %v6102_v56  ;;  %v5532_v60 = vmul.f32 %v7057_v30, %v7057_v30  ;;  %v5416_v17 = vadd.f32 %v5415_v46, %v5414_v50  ;;  %v5612_v1 = vadd.f32 %v5611_v40, %v5610_v6  ;;  %v6103_v63 = vpack.c.bf16 %v7059_v19, %v7059_v19 }
 0x2f7   :  { %5332 = vst.msk [vmem:[%s9141_s2 + $0x50] sm:$0xf] %vm5311_vm4, %v6100_v7  ;;  %v5613_v62 = vsel %vm15_vm1, %v5530_v32, 0.0  ;;  %v6101_v57 = vpack.c.bf16 %v7060_v49, %v7060_v49  ;;  %v5417_v28 = vsel %vm15_vm1, %v7060_v49, 0.0  ;;  %v5531_v33 = vmul.f32 %v7060_v49, %v7060_v49 }
 0x2f8   :  { %v5614_v9 = vadd.f32 %v5613_v62, %v5612_v1  ;;  %5335 = vst.msk [vmem:[%s9141_s2 + $0x5c] sm:$0xf] %vm5311_vm4, %v6103_v63  ;;  %v5418_v61 = vadd.f32 %v5417_v28, %v5416_v17  ;;  %v5419_v8 = vsel %vm15_vm1, %v7057_v30, 0.0  ;;  %v5533_v23 = vmul.f32 %v7059_v19, %v7059_v19 }
 0x2f9   :  { %v6997_v13 = vpop.f32.mrb[24].mxu0  ;;  %5333 = vst.msk [vmem:[%s9141_s2 + $0x54] sm:$0xf] %vm5311_vm4, %v6101_v57  ;;  %v5615_v24 = vsel %vm15_vm1, %v5531_v33, 0.0  ;;  %v5617_v34 = vsel %vm15_vm1, %v5532_v60, 0.0  ;;  %v5421_v11 = vsel %vm15_vm1, %v7059_v19, 0.0 }
 0x2fa   :  { %v7061_v42 = vadd.f32 %v6997_v13, %v8705_v45  ;;  %v4832_v48 = vpop.f32.mrb[25].mxu0  ;;  %v5420_v47 = vadd.f32 %v5419_v8, %v5418_v61  ;;  %v5616_v27 = vadd.f32 %v5615_v24, %v5614_v9  ;;  %v5619_v29 = vsel %vm15_vm1, %v5533_v23, 0.0 }
 0x2fb   :  { %v7062_v26 = vadd.f32 %v4832_v48, %v8707_v16  ;;  %v6998_v15 = vpop.f32.mrb[26].mxu0 }
 0x2fc   :  { %v6106_v35 = vpack.c.bf16 %v7061_v42, %v7061_v42  ;;  %v4835_v45 = vpop.f32.mrb[27].mxu0  ;;  %v5618_v54 = vadd.f32 %v5617_v34, %v5616_v27  ;;  %v5422_v16 = vadd.f32 %v5421_v11, %v5420_v47  ;;  %v7063_v55 = vadd.f32 %v6998_v15, %v8709_v22 }
 0x2fd   :  { %v6104_v3 = vpack.c.bf16 %v7062_v26, %v7062_v26  ;;  %v5423_v0 = vsel %vm15_vm1, %v7062_v26, 0.0  ;;  %v5534_v2 = vmul.f32 %v7062_v26, %v7062_v26  ;;  %v7064_v14 = vadd.f32 %v4835_v45, %v8711_v36 }
 0x2fe   :  { %5338 = vst.msk [vmem:[%s9141_s2 + $0x68] sm:$0xf] %vm5311_vm4, %v6106_v35  ;;  %v5536_v58 = vmul.f32 %v7061_v42, %v7061_v42  ;;  %v5424_v5 = vadd.f32 %v5423_v0, %v5422_v16  ;;  %v5620_v38 = vadd.f32 %v5619_v29, %v5618_v54  ;;  %v6107_v37 = vpack.c.bf16 %v7063_v55, %v7063_v55 }
 0x2ff   :  { %5336 = vst.msk [vmem:[%s9141_s2 + $0x60] sm:$0xf] %vm5311_vm4, %v6104_v3  ;;  %v5621_v18 = vsel %vm15_vm1, %v5534_v2, 0.0  ;;  %v6105_v30 = vpack.c.bf16 %v7064_v14, %v7064_v14  ;;  %v5425_v20 = vsel %vm15_vm1, %v7064_v14, 0.0  ;;  %v5535_v31 = vmul.f32 %v7064_v14, %v7064_v14 }
 0x300   :  { %v5622_v12 = vadd.f32 %v5621_v18, %v5620_v38  ;;  %5339 = vst.msk [vmem:[%s9141_s2 + $0x6c] sm:$0xf] %vm5311_vm4, %v6107_v37  ;;  %v5426_v36 = vadd.f32 %v5425_v20, %v5424_v5  ;;  %v5427_v43 = vsel %vm15_vm1, %v7061_v42, 0.0  ;;  %v5537_v51 = vmul.f32 %v7063_v55, %v7063_v55 }
 0x301   :  { %v7001_v22 = vpop.f32.mrb[28].mxu0  ;;  %5337 = vst.msk [vmem:[%s9141_s2 + $0x64] sm:$0xf] %vm5311_vm4, %v6105_v30  ;;  %v5623_v41 = vsel %vm15_vm1, %v5535_v31, 0.0  ;;  %v5625_v59 = vsel %vm15_vm1, %v5536_v58, 0.0  ;;  %v5429_v32 = vsel %vm15_vm1, %v7063_v55, 0.0 }
 0x302   :  { %v7065_v44 = vadd.f32 %v7001_v22, %v8713_v52  ;;  %v4848_v39 = vpop.f32.mrb[29].mxu0  ;;  %v5428_v4 = vadd.f32 %v5427_v43, %v5426_v36  ;;  %v5624_v7 = vadd.f32 %v5623_v41, %v5622_v12  ;;  %v5627_v60 = vsel %vm15_vm1, %v5537_v51, 0.0 }
 0x303   :  { %v7066_v53 = vadd.f32 %v4848_v39, %v8715_v10  ;;  %v7002_v56 = vpop.f32.mrb[30].mxu0 }
 0x304   :  { %v6110_v46 = vpack.c.bf16 %v7065_v44, %v7065_v44  ;;  %v4851_v52 = vpop.f32.mrb[31].mxu0  ;;  %v5626_v49 = vadd.f32 %v5625_v59, %v5624_v7  ;;  %v5430_v10 = vadd.f32 %v5429_v32, %v5428_v4  ;;  %v7067_v40 = vadd.f32 %v7002_v56, %v8717_v25 }
 0x305   :  { %v6108_v6 = vpack.c.bf16 %v7066_v53, %v7066_v53  ;;  %v5431_v50 = vsel %vm15_vm1, %v7066_v53, 0.0  ;;  %v5538_v19 = vmul.f32 %v7066_v53, %v7066_v53  ;;  %v7068_v62 = vadd.f32 %v4851_v52, %v8719_v21  ;;  %v6741_v33 = vpop.f32.mrb[32].mxu1 }
 0x306   :  { %5342 = vst.msk [vmem:[%s9141_s2 + $0x78] sm:$0xf] %vm5311_vm4, %v6110_v46  ;;  %v5540_v1 = vmul.f32 %v7065_v44, %v7065_v44  ;;  %v5432_v63 = vadd.f32 %v5431_v50, %v5430_v10  ;;  %v5628_v57 = vadd.f32 %v5627_v60, %v5626_v49  ;;  %v6111_v28 = vpack.c.bf16 %v7067_v40, %v7067_v40  ;;  %v2663_v61 = vpop.f32.mrb[33].mxu1 }
 0x307   :  { %5340 = vst.msk [vmem:[%s9141_s2 + $0x70] sm:$0xf] %vm5311_vm4, %v6108_v6  ;;  %v5629_v17 = vsel %vm15_vm1, %v5538_v19, 0.0  ;;  %v6109_v13 = vpack.c.bf16 %v7068_v62, %v7068_v62  ;;  %v5433_v9 = vsel %vm15_vm1, %v7068_v62, 0.0  ;;  %v5539_v25 = vmul.f32 %v7068_v62, %v7068_v62  ;;  %v6742_v23 = vpop.f32.mrb[34].mxu1 }
 0x308   :  { %v5630_v42 = vadd.f32 %v5629_v17, %v5628_v57  ;;  %5343 = vst.msk [vmem:[%s9141_s2 + $0x7c] sm:$0xf] %vm5311_vm4, %v6111_v28  ;;  %v5434_v48 = vadd.f32 %v5433_v9, %v5432_v63  ;;  %v5435_v26 = vsel %vm15_vm1, %v7065_v44, 0.0  ;;  %v5541_v15 = vmul.f32 %v7067_v40, %v7067_v40  ;;  %v2666_v27 = vpop.f32.mrb[35].mxu1 }
 0x309   :  { %v7005_v21 = vpop.f32.mrb[32].mxu0  ;;  %5341 = vst.msk [vmem:[%s9141_s2 + $0x74] sm:$0xf] %vm5311_vm4, %v6109_v13  ;;  %v5631_v34 = vsel %vm15_vm1, %v5539_v25, 0.0  ;;  %v5633_v45 = vsel %vm15_vm1, %v5540_v1, 0.0  ;;  %v5437_v54 = vsel %vm15_vm1, %v7067_v40, 0.0 }
 0x30a   :  { %v7069_v8 = vadd.f32 %v7005_v21, %v6741_v33  ;;  %v4864_v24 = vpop.f32.mrb[33].mxu0  ;;  %v5436_v11 = vadd.f32 %v5435_v26, %v5434_v48  ;;  %v5632_v3 = vadd.f32 %v5631_v34, %v5630_v42  ;;  %v5635_v38 = vsel %vm15_vm1, %v5541_v15, 0.0 }
 0x30b   :  { %v7070_v47 = vadd.f32 %v4864_v24, %v2663_v61  ;;  %v7006_v35 = vpop.f32.mrb[34].mxu0 }
 0x30c   :  { %v6114_v0 = vpack.c.bf16 %v7069_v8, %v7069_v8  ;;  %v4867_v2 = vpop.f32.mrb[35].mxu0  ;;  %v5634_v29 = vadd.f32 %v5633_v45, %v5632_v3  ;;  %v5438_v18 = vadd.f32 %v5437_v54, %v5436_v11  ;;  %v7071_v58 = vadd.f32 %v7006_v35, %v6742_v23 }
 0x30d   :  { %v6112_v16 = vpack.c.bf16 %v7070_v47, %v7070_v47  ;;  %v5439_v55 = vsel %vm15_vm1, %v7070_v47, 0.0  ;;  %v5542_v14 = vmul.f32 %v7070_v47, %v7070_v47  ;;  %v7072_v5 = vadd.f32 %v4867_v2, %v2666_v27  ;;  %v6745_v12 = vpop.f32.mrb[36].mxu1 }
 0x30e   :  { %5346 = vst.msk [vmem:[%s9141_s2 + $0x88] sm:$0xf] %vm5311_vm4, %v6114_v0  ;;  %v5544_v30 = vmul.f32 %v7069_v8, %v7069_v8  ;;  %v5440_v20 = vadd.f32 %v5439_v55, %v5438_v18  ;;  %v5636_v31 = vadd.f32 %v5635_v38, %v5634_v29  ;;  %v6115_v22 = vpack.c.bf16 %v7071_v58, %v7071_v58  ;;  %v2679_v43 = vpop.f32.mrb[37].mxu1 }
 0x30f   :  { %5344 = vst.msk [vmem:[%s9141_s2 + $0x80] sm:$0xf] %vm5311_vm4, %v6112_v16  ;;  %v5637_v37 = vsel %vm15_vm1, %v5542_v14, 0.0  ;;  %v6113_v36 = vpack.c.bf16 %v7072_v5, %v7072_v5  ;;  %v5441_v44 = vsel %vm15_vm1, %v7072_v5, 0.0  ;;  %v5543_v39 = vmul.f32 %v7072_v5, %v7072_v5  ;;  %v6746_v59 = vpop.f32.mrb[38].mxu1 }
 0x310   :  { %v5638_v41 = vadd.f32 %v5637_v37, %v5636_v31  ;;  %5347 = vst.msk [vmem:[%s9141_s2 + $0x8c] sm:$0xf] %vm5311_vm4, %v6115_v22  ;;  %v5442_v53 = vadd.f32 %v5441_v44, %v5440_v20  ;;  %v5443_v7 = vsel %vm15_vm1, %v7069_v8, 0.0  ;;  %v5545_v46 = vmul.f32 %v7071_v58, %v7071_v58  ;;  %v2682_v6 = vpop.f32.mrb[39].mxu1 }
 0x311   :  { %v7009_v51 = vpop.f32.mrb[36].mxu0  ;;  %5345 = vst.msk [vmem:[%s9141_s2 + $0x84] sm:$0xf] %vm5311_vm4, %v6113_v36  ;;  %v5639_v52 = vsel %vm15_vm1, %v5543_v39, 0.0  ;;  %v5641_v19 = vsel %vm15_vm1, %v5544_v30, 0.0  ;;  %v5445_v60 = vsel %vm15_vm1, %v7071_v58, 0.0 }
 0x312   :  { %v7073_v56 = vadd.f32 %v7009_v51, %v6745_v12  ;;  %v4880_v4 = vpop.f32.mrb[37].mxu0  ;;  %v5444_v49 = vadd.f32 %v5443_v7, %v5442_v53  ;;  %v5640_v10 = vadd.f32 %v5639_v52, %v5638_v41  ;;  %v5643_v9 = vsel %vm15_vm1, %v5545_v46, 0.0 }
 0x313   :  { %v7074_v32 = vadd.f32 %v4880_v4, %v2679_v43  ;;  %v7010_v50 = vpop.f32.mrb[38].mxu0 }
 0x314   :  { %v6118_v40 = vpack.c.bf16 %v7073_v56, %v7073_v56  ;;  %v4883_v62 = vpop.f32.mrb[39].mxu0  ;;  %v5642_v57 = vadd.f32 %v5641_v19, %v5640_v10  ;;  %v5446_v28 = vadd.f32 %v5445_v60, %v5444_v49  ;;  %v7075_v33 = vadd.f32 %v7010_v50, %v6746_v59 }
 0x315   :  { %v6116_v17 = vpack.c.bf16 %v7074_v32, %v7074_v32  ;;  %v5447_v1 = vsel %vm15_vm1, %v7074_v32, 0.0  ;;  %v5546_v63 = vmul.f32 %v7074_v32, %v7074_v32  ;;  %v7076_v13 = vadd.f32 %v4883_v62, %v2682_v6  ;;  %v6749_v8 = vpop.f32.mrb[40].mxu1 }
 0x316   :  { %5350 = vst.msk [vmem:[%s9141_s2 + $0x98] sm:$0xf] %vm5311_vm4, %v6118_v40  ;;  %v5548_v61 = vmul.f32 %v7073_v56, %v7073_v56  ;;  %v5448_v21 = vadd.f32 %v5447_v1, %v5446_v28  ;;  %v5644_v42 = vadd.f32 %v5643_v9, %v5642_v57  ;;  %v6119_v48 = vpack.c.bf16 %v7075_v33, %v7075_v33  ;;  %v2695_v15 = vpop.f32.mrb[41].mxu1 }
 0x317   :  { %5348 = vst.msk [vmem:[%s9141_s2 + $0x90] sm:$0xf] %vm5311_vm4, %v6116_v17  ;;  %v5645_v25 = vsel %vm15_vm1, %v5546_v63, 0.0  ;;  %v6117_v23 = vpack.c.bf16 %v7076_v13, %v7076_v13  ;;  %v5449_v24 = vsel %vm15_vm1, %v7076_v13, 0.0  ;;  %v5547_v26 = vmul.f32 %v7076_v13, %v7076_v13  ;;  %v6750_v45 = vpop.f32.mrb[42].mxu1 }
 0x318   :  { %v5646_v47 = vadd.f32 %v5645_v25, %v5644_v42  ;;  %5351 = vst.msk [vmem:[%s9141_s2 + $0x9c] sm:$0xf] %vm5311_vm4, %v6119_v48  ;;  %v5450_v27 = vadd.f32 %v5449_v24, %v5448_v21  ;;  %v5451_v3 = vsel %vm15_vm1, %v7073_v56, 0.0  ;;  %v5549_v0 = vmul.f32 %v7075_v33, %v7075_v33  ;;  %v2698_v16 = vpop.f32.mrb[43].mxu1 }
 0x319   :  { %v7013_v34 = vpop.f32.mrb[40].mxu0  ;;  %5349 = vst.msk [vmem:[%s9141_s2 + $0x94] sm:$0xf] %vm5311_vm4, %v6117_v23  ;;  %v5647_v2 = vsel %vm15_vm1, %v5547_v26, 0.0  ;;  %v5649_v14 = vsel %vm15_vm1, %v5548_v61, 0.0  ;;  %v5453_v38 = vsel %vm15_vm1, %v7075_v33, 0.0 }
 0x31a   :  { %v7077_v35 = vadd.f32 %v7013_v34, %v6749_v8  ;;  %v4896_v11 = vpop.f32.mrb[41].mxu0  ;;  %v5452_v29 = vadd.f32 %v5451_v3, %v5450_v27  ;;  %v5648_v18 = vadd.f32 %v5647_v2, %v5646_v47  ;;  %v5651_v44 = vsel %vm15_vm1, %v5549_v0, 0.0 }
 0x31b   :  { %v7078_v54 = vadd.f32 %v4896_v11, %v2695_v15  ;;  %v7014_v55 = vpop.f32.mrb[42].mxu0 }
 0x31c   :  { %v6122_v58 = vpack.c.bf16 %v7077_v35, %v7077_v35  ;;  %v4899_v5 = vpop.f32.mrb[43].mxu0  ;;  %v5650_v31 = vadd.f32 %v5649_v14, %v5648_v18  ;;  %v5454_v22 = vadd.f32 %v5453_v38, %v5452_v29  ;;  %v7079_v12 = vadd.f32 %v7014_v55, %v6750_v45 }
 0x31d   :  { %v6120_v37 = vpack.c.bf16 %v7078_v54, %v7078_v54  ;;  %v5455_v30 = vsel %vm15_vm1, %v7078_v54, 0.0  ;;  %v5550_v20 = vmul.f32 %v7078_v54, %v7078_v54  ;;  %v7080_v36 = vadd.f32 %v4899_v5, %v2698_v16  ;;  %v6753_v56 = vpop.f32.mrb[44].mxu1 }
 0x31e   :  { %5354 = vst.msk [vmem:[%s9141_s2 + $0xa8] sm:$0xf] %vm5311_vm4, %v6122_v58  ;;  %v5552_v43 = vmul.f32 %v7077_v35, %v7077_v35  ;;  %v5456_v51 = vadd.f32 %v5455_v30, %v5454_v22  ;;  %v5652_v41 = vadd.f32 %v5651_v44, %v5650_v31  ;;  %v6123_v53 = vpack.c.bf16 %v7079_v12, %v7079_v12  ;;  %v2711_v46 = vpop.f32.mrb[45].mxu1 }
 0x31f   :  { %5352 = vst.msk [vmem:[%s9141_s2 + $0xa0] sm:$0xf] %vm5311_vm4, %v6120_v37  ;;  %v5653_v39 = vsel %vm15_vm1, %v5550_v20, 0.0  ;;  %v6121_v59 = vpack.c.bf16 %v7080_v36, %v7080_v36  ;;  %v5457_v4 = vsel %vm15_vm1, %v7080_v36, 0.0  ;;  %v5551_v7 = vmul.f32 %v7080_v36, %v7080_v36  ;;  %v6754_v19 = vpop.f32.mrb[46].mxu1 }
 0x320   :  { %v5654_v32 = vadd.f32 %v5653_v39, %v5652_v41  ;;  %5355 = vst.msk [vmem:[%s9141_s2 + $0xac] sm:$0xf] %vm5311_vm4, %v6123_v53  ;;  %v5458_v6 = vadd.f32 %v5457_v4, %v5456_v51  ;;  %v5459_v10 = vsel %vm15_vm1, %v7077_v35, 0.0  ;;  %v5553_v40 = vmul.f32 %v7079_v12, %v7079_v12  ;;  %v2714_v17 = vpop.f32.mrb[47].mxu1 }
 0x321   :  { %v7017_v52 = vpop.f32.mrb[44].mxu0  ;;  %5353 = vst.msk [vmem:[%s9141_s2 + $0xa4] sm:$0xf] %vm5311_vm4, %v6121_v59  ;;  %v5655_v62 = vsel %vm15_vm1, %v5551_v7, 0.0  ;;  %v5657_v63 = vsel %vm15_vm1, %v5552_v43, 0.0  ;;  %v5461_v9 = vsel %vm15_vm1, %v7079_v12, 0.0 }
 0x322   :  { %v7081_v50 = vadd.f32 %v7017_v52, %v6753_v56  ;;  %v4912_v49 = vpop.f32.mrb[45].mxu0  ;;  %v5460_v57 = vadd.f32 %v5459_v10, %v5458_v6  ;;  %v5656_v28 = vadd.f32 %v5655_v62, %v5654_v32  ;;  %v5659_v24 = vsel %vm15_vm1, %v5553_v40, 0.0 }
 0x323   :  { %v7082_v60 = vadd.f32 %v4912_v49, %v2711_v46  ;;  %v7018_v1 = vpop.f32.mrb[46].mxu0 }
 0x324   :  { %v6126_v33 = vpack.c.bf16 %v7081_v50, %v7081_v50  ;;  %v4915_v13 = vpop.f32.mrb[47].mxu0  ;;  %v5658_v42 = vadd.f32 %v5657_v63, %v5656_v28  ;;  %v5462_v48 = vadd.f32 %v5461_v9, %v5460_v57  ;;  %v7083_v8 = vadd.f32 %v7018_v1, %v6754_v19 }
 0x325   :  { %v6124_v25 = vpack.c.bf16 %v7082_v60, %v7082_v60  ;;  %v5463_v61 = vsel %vm15_vm1, %v7082_v60, 0.0  ;;  %v5554_v21 = vmul.f32 %v7082_v60, %v7082_v60  ;;  %v7084_v23 = vadd.f32 %v4915_v13, %v2714_v17  ;;  %v6757_v35 = vpop.f32.mrb[48].mxu1 }
 0x326   :  { %5358 = vst.msk [vmem:[%s9141_s2 + $0xb8] sm:$0xf] %vm5311_vm4, %v6126_v33  ;;  %v5556_v15 = vmul.f32 %v7081_v50, %v7081_v50  ;;  %v5464_v34 = vadd.f32 %v5463_v61, %v5462_v48  ;;  %v5660_v47 = vadd.f32 %v5659_v24, %v5658_v42  ;;  %v6127_v27 = vpack.c.bf16 %v7083_v8, %v7083_v8  ;;  %v2727_v0 = vpop.f32.mrb[49].mxu1 }
 0x327   :  { %5356 = vst.msk [vmem:[%s9141_s2 + $0xb0] sm:$0xf] %vm5311_vm4, %v6124_v25  ;;  %v5661_v26 = vsel %vm15_vm1, %v5554_v21, 0.0  ;;  %v6125_v45 = vpack.c.bf16 %v7084_v23, %v7084_v23  ;;  %v5465_v11 = vsel %vm15_vm1, %v7084_v23, 0.0  ;;  %v5555_v3 = vmul.f32 %v7084_v23, %v7084_v23  ;;  %v6758_v14 = vpop.f32.mrb[50].mxu1 }
 0x328   :  { %v5662_v54 = vadd.f32 %v5661_v26, %v5660_v47  ;;  %5359 = vst.msk [vmem:[%s9141_s2 + $0xbc] sm:$0xf] %vm5311_vm4, %v6127_v27  ;;  %v5466_v16 = vadd.f32 %v5465_v11, %v5464_v34  ;;  %v5467_v18 = vsel %vm15_vm1, %v7081_v50, 0.0  ;;  %v5557_v58 = vmul.f32 %v7083_v8, %v7083_v8  ;;  %v2730_v37 = vpop.f32.mrb[51].mxu1 }
 0x329   :  { %v7021_v2 = vpop.f32.mrb[48].mxu0  ;;  %5357 = vst.msk [vmem:[%s9141_s2 + $0xb4] sm:$0xf] %vm5311_vm4, %v6125_v45  ;;  %v5663_v5 = vsel %vm15_vm1, %v5555_v3, 0.0  ;;  %v5665_v20 = vsel %vm15_vm1, %v5556_v15, 0.0  ;;  %v5469_v44 = vsel %vm15_vm1, %v7083_v8, 0.0 }
 0x32a   :  { %v7085_v55 = vadd.f32 %v7021_v2, %v6757_v35  ;;  %v4928_v29 = vpop.f32.mrb[49].mxu0  ;;  %v5468_v31 = vadd.f32 %v5467_v18, %v5466_v16  ;;  %v5664_v22 = vadd.f32 %v5663_v5, %v5662_v54  ;;  %v5667_v4 = vsel %vm15_vm1, %v5557_v58, 0.0 }
 0x32b   :  { %v7086_v38 = vadd.f32 %v4928_v29, %v2727_v0  ;;  %v7022_v30 = vpop.f32.mrb[50].mxu0 }
 0x32c   :  { %v6130_v12 = vpack.c.bf16 %v7085_v55, %v7085_v55  ;;  %v4931_v36 = vpop.f32.mrb[51].mxu0  ;;  %v5666_v41 = vadd.f32 %v5665_v20, %v5664_v22  ;;  %v5470_v53 = vadd.f32 %v5469_v44, %v5468_v31  ;;  %v7087_v56 = vadd.f32 %v7022_v30, %v6758_v14 }
 0x32d   :  { %v6128_v39 = vpack.c.bf16 %v7086_v38, %v7086_v38  ;;  %v5471_v43 = vsel %vm15_vm1, %v7086_v38, 0.0  ;;  %v5558_v51 = vmul.f32 %v7086_v38, %v7086_v38  ;;  %v7088_v59 = vadd.f32 %v4931_v36, %v2730_v37  ;;  %v6761_v50 = vpop.f32.mrb[52].mxu1 }
 0x32e   :  { %5362 = vst.msk [vmem:[%s9141_s2 + $0xc8] sm:$0xf] %vm5311_vm4, %v6130_v12  ;;  %v5560_v46 = vmul.f32 %v7085_v55, %v7085_v55  ;;  %v5472_v52 = vadd.f32 %v5471_v43, %v5470_v53  ;;  %v5668_v32 = vadd.f32 %v5667_v4, %v5666_v41  ;;  %v6131_v6 = vpack.c.bf16 %v7087_v56, %v7087_v56  ;;  %v2743_v40 = vpop.f32.mrb[53].mxu1 }
 0x32f   :  { %5360 = vst.msk [vmem:[%s9141_s2 + $0xc0] sm:$0xf] %vm5311_vm4, %v6128_v39  ;;  %v5669_v7 = vsel %vm15_vm1, %v5558_v51, 0.0  ;;  %v6129_v19 = vpack.c.bf16 %v7088_v59, %v7088_v59  ;;  %v5473_v49 = vsel %vm15_vm1, %v7088_v59, 0.0  ;;  %v5559_v10 = vmul.f32 %v7088_v59, %v7088_v59  ;;  %v6762_v63 = vpop.f32.mrb[54].mxu1 }
 0x330   :  { %v5670_v60 = vadd.f32 %v5669_v7, %v5668_v32  ;;  %5363 = vst.msk [vmem:[%s9141_s2 + $0xcc] sm:$0xf] %vm5311_vm4, %v6131_v6  ;;  %v5474_v17 = vadd.f32 %v5473_v49, %v5472_v52  ;;  %v5475_v28 = vsel %vm15_vm1, %v7085_v55, 0.0  ;;  %v5561_v33 = vmul.f32 %v7087_v56, %v7087_v56  ;;  %v2746_v25 = vpop.f32.mrb[55].mxu1 }
 0x331   :  { %v7025_v62 = vpop.f32.mrb[52].mxu0  ;;  %5361 = vst.msk [vmem:[%s9141_s2 + $0xc4] sm:$0xf] %vm5311_vm4, %v6129_v19  ;;  %v5671_v13 = vsel %vm15_vm1, %v5559_v10, 0.0  ;;  %v5673_v21 = vsel %vm15_vm1, %v5560_v46, 0.0  ;;  %v5477_v24 = vsel %vm15_vm1, %v7087_v56, 0.0 }
 0x332   :  { %v7089_v1 = vadd.f32 %v7025_v62, %v6761_v50  ;;  %v4944_v57 = vpop.f32.mrb[53].mxu0  ;;  %v5476_v42 = vadd.f32 %v5475_v28, %v5474_v17  ;;  %v5672_v48 = vadd.f32 %v5671_v13, %v5670_v60  ;;  %v5675_v11 = vsel %vm15_vm1, %v5561_v33, 0.0 }
 0x333   :  { %v7090_v9 = vadd.f32 %v4944_v57, %v2743_v40  ;;  %v7026_v61 = vpop.f32.mrb[54].mxu0 }
 0x334   :  { %v6134_v8 = vpack.c.bf16 %v7089_v1, %v7089_v1  ;;  %v4947_v23 = vpop.f32.mrb[55].mxu0  ;;  %v5674_v47 = vadd.f32 %v5673_v21, %v5672_v48  ;;  %v5478_v27 = vadd.f32 %v5477_v24, %v5476_v42  ;;  %v7091_v35 = vadd.f32 %v7026_v61, %v6762_v63 }
 0x335   :  { %v6132_v26 = vpack.c.bf16 %v7090_v9, %v7090_v9  ;;  %v5479_v15 = vsel %vm15_vm1, %v7090_v9, 0.0  ;;  %v5562_v34 = vmul.f32 %v7090_v9, %v7090_v9  ;;  %v7092_v45 = vadd.f32 %v4947_v23, %v2746_v25  ;;  %v6765_v55 = vpop.f32.mrb[56].mxu1 }
 0x336   :  { %5366 = vst.msk [vmem:[%s9141_s2 + $0xd8] sm:$0xf] %vm5311_vm4, %v6134_v8  ;;  %v5564_v0 = vmul.f32 %v7089_v1, %v7089_v1  ;;  %v5480_v2 = vadd.f32 %v5479_v15, %v5478_v27  ;;  %v5676_v54 = vadd.f32 %v5675_v11, %v5674_v47  ;;  %v6135_v16 = vpack.c.bf16 %v7091_v35, %v7091_v35  ;;  %v2759_v58 = vpop.f32.mrb[57].mxu1 }
 0x337   :  { %5364 = vst.msk [vmem:[%s9141_s2 + $0xd0] sm:$0xf] %vm5311_vm4, %v6132_v26  ;;  %v5677_v3 = vsel %vm15_vm1, %v5562_v34, 0.0  ;;  %v6133_v14 = vpack.c.bf16 %v7092_v45, %v7092_v45  ;;  %v5481_v29 = vsel %vm15_vm1, %v7092_v45, 0.0  ;;  %v5563_v18 = vmul.f32 %v7092_v45, %v7092_v45  ;;  %v6766_v20 = vpop.f32.mrb[58].mxu1 }
 0x338   :  { %v5678_v38 = vadd.f32 %v5677_v3, %v5676_v54  ;;  %5367 = vst.msk [vmem:[%s9141_s2 + $0xdc] sm:$0xf] %vm5311_vm4, %v6135_v16  ;;  %v5482_v37 = vadd.f32 %v5481_v29, %v5480_v2  ;;  %v5483_v22 = vsel %vm15_vm1, %v7089_v1, 0.0  ;;  %v5565_v12 = vmul.f32 %v7091_v35, %v7091_v35  ;;  %v2762_v39 = vpop.f32.mrb[59].mxu1 }
 0x339   :  { %v7029_v5 = vpop.f32.mrb[56].mxu0  ;;  %5365 = vst.msk [vmem:[%s9141_s2 + $0xd4] sm:$0xf] %vm5311_vm4, %v6133_v14  ;;  %v5679_v36 = vsel %vm15_vm1, %v5563_v18, 0.0  ;;  %v5681_v51 = vsel %vm15_vm1, %v5564_v0, 0.0  ;;  %v5485_v4 = vsel %vm15_vm1, %v7091_v35, 0.0 }
 0x33a   :  { %v7093_v30 = vadd.f32 %v7029_v5, %v6765_v55  ;;  %v4960_v31 = vpop.f32.mrb[57].mxu0  ;;  %v5484_v41 = vadd.f32 %v5483_v22, %v5482_v37  ;;  %v5680_v53 = vadd.f32 %v5679_v36, %v5678_v38  ;;  %v5683_v49 = vsel %vm15_vm1, %v5565_v12, 0.0 }
 0x33b   :  { %v7094_v44 = vadd.f32 %v4960_v31, %v2759_v58  ;;  %v7030_v43 = vpop.f32.mrb[58].mxu0 }
 0x33c   :  { %v6138_v56 = vpack.c.bf16 %v7093_v30, %v7093_v30  ;;  %v4963_v59 = vpop.f32.mrb[59].mxu0  ;;  %v5682_v32 = vadd.f32 %v5681_v51, %v5680_v53  ;;  %v5486_v6 = vadd.f32 %v5485_v4, %v5484_v41  ;;  %v7095_v50 = vadd.f32 %v7030_v43, %v6766_v20 }
 0x33d   :  { %v6136_v7 = vpack.c.bf16 %v7094_v44, %v7094_v44  ;;  %v5487_v46 = vsel %vm15_vm1, %v7094_v44, 0.0  ;;  %v5566_v52 = vmul.f32 %v7094_v44, %v7094_v44  ;;  %v7096_v19 = vadd.f32 %v4963_v59, %v2762_v39  ;;  %v6769_v1 = vpop.f32.mrb[60].mxu1 }
 0x33e   :  { %5370 = vst.msk [vmem:[%s9141_s2 + $0xe8] sm:$0xf] %vm5311_vm4, %v6138_v56  ;;  %v5568_v40 = vmul.f32 %v7093_v30, %v7093_v30  ;;  %v5488_v62 = vadd.f32 %v5487_v46, %v5486_v6  ;;  %v5684_v60 = vadd.f32 %v5683_v49, %v5682_v32  ;;  %v6139_v17 = vpack.c.bf16 %v7095_v50, %v7095_v50  ;;  %v2775_v33 = vpop.f32.mrb[61].mxu1 }
 0x33f   :  { %5368 = vst.msk [vmem:[%s9141_s2 + $0xe0] sm:$0xf] %vm5311_vm4, %v6136_v7  ;;  %v5685_v10 = vsel %vm15_vm1, %v5566_v52, 0.0  ;;  %v6137_v63 = vpack.c.bf16 %v7096_v19, %v7096_v19  ;;  %v5489_v57 = vsel %vm15_vm1, %v7096_v19, 0.0  ;;  %v5567_v28 = vmul.f32 %v7096_v19, %v7096_v19  ;;  %v6770_v21 = vpop.f32.mrb[62].mxu1 }
 0x340   :  { %v5686_v9 = vadd.f32 %v5685_v10, %v5684_v60  ;;  %5371 = vst.msk [vmem:[%s9141_s2 + $0xec] sm:$0xf] %vm5311_vm4, %v6139_v17  ;;  %v5490_v25 = vadd.f32 %v5489_v57, %v5488_v62  ;;  %v5491_v48 = vsel %vm15_vm1, %v7093_v30, 0.0  ;;  %v5569_v8 = vmul.f32 %v7095_v50, %v7095_v50  ;;  %v2778_v26 = vpop.f32.mrb[63].mxu1 }
 0x341   :  { %v7033_v13 = vpop.f32.mrb[60].mxu0  ;;  %5369 = vst.msk [vmem:[%s9141_s2 + $0xe4] sm:$0xf] %vm5311_vm4, %v6137_v63  ;;  %v5687_v23 = vsel %vm15_vm1, %v5567_v28, 0.0  ;;  %v5689_v34 = vsel %vm15_vm1, %v5568_v40, 0.0  ;;  %v5493_v11 = vsel %vm15_vm1, %v7095_v50, 0.0 }
 0x342   :  { %v7097_v61 = vadd.f32 %v7033_v13, %v6769_v1  ;;  %v4976_v42 = vpop.f32.mrb[61].mxu0  ;;  %v5492_v47 = vadd.f32 %v5491_v48, %v5490_v25  ;;  %v5688_v27 = vadd.f32 %v5687_v23, %v5686_v9  ;;  %v5691_v29 = vsel %vm15_vm1, %v5569_v8, 0.0 }
 0x343   :  { %v7098_v24 = vadd.f32 %v4976_v42, %v2775_v33  ;;  %v7034_v15 = vpop.f32.mrb[62].mxu0 }
 0x344   :  { %v6142_v35 = vpack.c.bf16 %v7097_v61, %v7097_v61  ;;  %v4979_v45 = vpop.f32.mrb[63].mxu0  ;;  %v5690_v54 = vadd.f32 %v5689_v34, %v5688_v27  ;;  %v5494_v16 = vadd.f32 %v5493_v11, %v5492_v47  ;;  %v7099_v55 = vadd.f32 %v7034_v15, %v6770_v21 }
 0x345   :  { %v6140_v3 = vpack.c.bf16 %v7098_v24, %v7098_v24  ;;  %v5495_v0 = vsel %vm15_vm1, %v7098_v24, 0.0  ;;  %v5570_v2 = vmul.f32 %v7098_v24, %v7098_v24  ;;  %v7100_v14 = vadd.f32 %v4979_v45, %v2778_v26 }
 0x346   :  { %5374 = vst.msk [vmem:[%s9141_s2 + $0xf8] sm:$0xf] %vm5311_vm4, %v6142_v35  ;;  %v5496_v58 = vadd.f32 %v5495_v0, %v5494_v16  ;;  %v5692_v5 = vadd.f32 %v5691_v29, %v5690_v54  ;;  %v6143_v38 = vpack.c.bf16 %v7099_v55, %v7099_v55  ;;  %v5572_v37 = vmul.f32 %v7097_v61, %v7097_v61 }
 0x347   :  { %5372 = vst.msk [vmem:[%s9141_s2 + $0xf0] sm:$0xf] %vm5311_vm4, %v6140_v3  ;;  %v5693_v18 = vsel %vm15_vm1, %v5570_v2, 0.0  ;;  %v6141_v30 = vpack.c.bf16 %v7100_v14, %v7100_v14  ;;  %v5497_v20 = vsel %vm15_vm1, %v7100_v14, 0.0  ;;  %v5571_v31 = vmul.f32 %v7100_v14, %v7100_v14 }
 0x348   :  { %v5694_v22 = vadd.f32 %v5693_v18, %v5692_v5  ;;  %5375 = vst.msk [vmem:[%s9141_s2 + $0xfc] sm:$0xf] %vm5311_vm4, %v6143_v38  ;;  %v5498_v12 = vadd.f32 %v5497_v20, %v5496_v58  ;;  %v5499_v36 = vsel %vm15_vm1, %v7097_v61, 0.0  ;;  %v5573_v44 = vmul.f32 %v7099_v55, %v7099_v55 }
 0x349   :  { %5373 = vst.msk [vmem:[%s9141_s2 + $0xf4] sm:$0xf] %vm5311_vm4, %v6141_v30  ;;  %v5695_v39 = vsel %vm15_vm1, %v5571_v31, 0.0  ;;  %v5697_v41 = vsel %vm15_vm1, %v5572_v37, 0.0  ;;  %v5501_v53 = vsel %vm15_vm1, %v7099_v55, 0.0 }
 0x34a   :  { %v5500_v43 = vadd.f32 %v5499_v36, %v5498_v12  ;;  %v5696_v51 = vadd.f32 %v5695_v39, %v5694_v22  ;;  %v5699_v4 = vsel %vm15_vm1, %v5573_v44, 0.0 }
 0x34c   :  { %v5502_v56 = vadd.f32 %v5501_v53, %v5500_v43  ;;  %v5698_v59 = vadd.f32 %v5697_v41, %v5696_v51 }
 0x34e   :  { %v5503_v7 = vrot.slane %v5502_v56, 4  ;;  %v5700_v46 = vadd.f32 %v5699_v4, %v5698_v59 }
 0x350   :  { %v5504_v52 = vadd.f32 %v5503_v7, %v5502_v56  ;;  %v5701_v32 = vrot.slane %v5700_v46, 4 }
 0x352   :  { %v5505_v6 = vrot.slane %v5504_v52, 2  ;;  %v5702_v50 = vadd.f32 %v5701_v32, %v5700_v46 }
 0x354   :  { %v5506_v19 = vadd.f32 %v5505_v6, %v5504_v52  ;;  %v5703_v49 = vrot.slane %v5702_v50, 2 }
 0x356   :  { %v5507_v10 = vrot.slane %v5506_v19, 1  ;;  %v5704_v40 = vadd.f32 %v5703_v49, %v5702_v50 }
 0x358   :  { %v5508_v62 = vadd.f32 %v5507_v10, %v5506_v19  ;;  %v5705_v60 = vrot.slane %v5704_v40, 1 }
 0x35a   :  { %5509 = vst.msk [vmem:[%s9142_s3] sm:$0x1] %vm30_vm3, %v5508_v62  ;;  %v5706_v17 = vadd.f32 %v5705_v60, %v5704_v40 }
 0x35c   :  { %5707 = vst.msk [vmem:[%s9143_s4] sm:$0x1] %vm30_vm3, %v5706_v17 }

// kernel: basic_block_forward.4
= control target key start
LH: loop header
LB: loop body
LE: loop exit
PB: predicated region body
PF: predicated region fallthrough
CT: control target
= control target key end

     0   :  { %vm799_vm0 = vcmask 1041408   ;;  %vm21_vm1 = vcmask 31744   ;;  %vm24_vm2 = vcmask 25600   ;;  %v7998_v2 = vmov 0.0   ;;  %s9647_s3 = inlined_call_operand.vmem [shape: bf16[9,4,4], index: 3, kind: input, shape index: {}]   ;;  %s9648_s0 = inlined_call_operand.vmem [shape: bf16[2,16,16,4], index: 0, kind: input, shape index: {}]   ;;  %s9649_s1 = inlined_call_operand.vmem [shape: f32[1,4], index: 1, kind: input, shape index: {}]   ;;  %s9650_s2 = inlined_call_operand.vmem [shape: f32[1,4], index: 2, kind: input, shape index: {}]   ;;  %s9651_s4 = inlined_call_operand.vmem [shape: bf16[2,16,16,4], index: 4, kind: output, shape index: {0}]   ;;  %s9652_s5 = inlined_call_operand.vmem [shape: f32[1,1,4], index: 5, kind: output, shape index: {1}]   ;;  %s9653_s6 = inlined_call_operand.vmem [shape: f32[1,1,4], index: 6, kind: output, shape index: {2}]  }
   0x1   :  { %v5998_v0 = vld [vmem:[%s9647_s3 + $0x2] sm:$0x3]  ;;  %v6129_v1 = vld [vmem:[%s9647_s3 + $0x8] sm:$0x3]  ;;  %22 = vst.msk [vmem:[#allocation2] sm:$0xff] %vm21_vm1, %v7998_v2  ;;  %23 = vst.msk [vmem:[#allocation2 + $0x8] sm:$0xff] %vm21_vm1, %v7998_v2 }
   0x2   :  { %25 = vst.msk [vmem:[#allocation2 + $0x10] sm:$0x3] %vm24_vm2, %v7998_v2  ;;  %vm36_vm3 = vcmask 24576   ;;  %28 = vst.msk [vmem:[#allocation2 + $0x1c0] sm:$0x3] %vm24_vm2, %v7998_v2  ;;  %v8067_v3 = vld [vmem:[%s9648_s0] sm:$0xff]   ;;  %7986 = vmatprep.subr.msk.bf16.mxu1 %vm799_vm0, %v5998_v0  ;;  %7990 = vmatprep.subr.msk.bf16.mxu0 %vm799_vm0, %v6129_v1 }
   0x3   :  { %26 = vst.msk [vmem:[#allocation2 + $0x1b0] sm:$0xff] %vm21_vm1, %v7998_v2  ;;  %27 = vst.msk [vmem:[#allocation2 + $0x1b8] sm:$0xff] %vm21_vm1, %v7998_v2  ;;  %v8072_v4 = vsel %vm799_vm0, %v5998_v0, 0  ;;  %v8075_v5 = vsel %vm799_vm0, %v6129_v1, 0  ;;  %v6424_v6 = vunpack.c.l.bf16 %v8067_v3  ;;  %v6425_v7 = vunpack.c.h.bf16 %v8067_v3  ;;  %v8214_v8 = vld [vmem:[%s9649_s1] ss:$0 sm:$0xff] }
   0x4   :  { %30 = vst.msk [vmem:[#allocation2 + $0x198] sm:$0xff] %vm21_vm1, %v7998_v2  ;;  %31 = vst.msk [vmem:[#allocation2 + $0x1a0] sm:$0xff] %vm21_vm1, %v7998_v2  ;;  %v8219_v9 = vld [vmem:[%s9650_s2] ss:$0 sm:$0xff]  ;;  %6879 = vmatpush3.bf16.msra.mxu1 %v8072_v4  ;;  %7143 = vmatpush3.bf16.msra.mxu0 %v8075_v5  ;;  %v6162_v11 = vld [vmem:[%s9647_s3 + $0xa] sm:$0x3] }
   0x5   :  { %32 = vst.msk [vmem:[#allocation2 + $0x1a8] sm:$0x3] %vm24_vm2, %v7998_v2  ;;  %35 = vst.msk [vmem:[#allocation2 + $0x358] sm:$0x3] %vm24_vm2, %v7998_v2  ;;  %v604_v10 = vld [vmem:[%s9647_s3] sm:$0x3]  ;;  %v244_v13 = vmul.f32 %v6424_v6, %v8214_v8  ;;  %v245_v14 = vmul.f32 %v6425_v7, %v8214_v8  ;;  %7992 = vmatprep.subr.msk.bf16.mxu0 %vm799_vm0, %v6162_v11 }
   0x6   :  { %33 = vst.msk [vmem:[#allocation2 + $0x348] sm:$0xff] %vm21_vm1, %v7998_v2  ;;  %34 = vst.msk [vmem:[#allocation2 + $0x350] sm:$0xff] %vm21_vm1, %v7998_v2  ;;  %v6550_v12 = vld [vmem:[%s9648_s0 + $0x8] sm:$0xff]   ;;  %7987 = vmatprep.subr.msk.bf16.mxu1 %vm799_vm0, %v604_v10  ;;  %v8249_v15 = vsel %vm799_vm0, %v604_v10, 0  ;;  %v6551_v17 = vld [vmem:[%s9648_s0 + $0x10] sm:$0xff]   ;;  %v8258_v20 = vsel %vm799_vm0, %v6162_v11, 0 }
   0x7   :  { %37 = vst.msk [vmem:[#allocation2] sm:$0x1] %vm36_vm3, %v7998_v2  ;;  %73 = vst.msk [vmem:[#allocation2 + $0x11] sm:$0x1] %vm36_vm3, %v7998_v2  ;;  %v6428_v16 = vunpack.c.l.bf16 %v6550_v12  ;;  %v6552_v18 = vld [vmem:[%s9648_s0 + $0x18] sm:$0xff]   ;;  %v6429_v19 = vunpack.c.h.bf16 %v6550_v12  ;;  %v6432_v21 = vunpack.c.l.bf16 %v6551_v17  ;;  %v6433_v22 = vunpack.c.h.bf16 %v6551_v17  ;;  %v6553_v31 = vld [vmem:[%s9648_s0 + $0x20] sm:$0xff]  }
   0x8   :  { %38 = vst.msk [vmem:[#allocation2 + $0x18] sm:$0x1] %vm36_vm3, %v7998_v2  ;;  %39 = vst.msk [vmem:[#allocation2 + $0x30] sm:$0x1] %vm36_vm3, %v7998_v2  ;;  %v315_v23 = vadd.f32 %v8219_v9, %v244_v13  ;;  %v316_v24 = vadd.f32 %v8219_v9, %v245_v14  ;;  %v6436_v26 = vunpack.c.l.bf16 %v6552_v18  ;;  %v6437_v30 = vunpack.c.h.bf16 %v6552_v18  ;;  %v605_v32 = vld [vmem:[#allocation2 + $0x1] sm:$0xff]  ;;  %v6555_v47 = vld [vmem:[%s9648_s0 + $0x30] sm:$0xff]  }
   0x9   :  { %40 = vst.msk [vmem:[#allocation2 + $0x48] sm:$0x1] %vm36_vm3, %v7998_v2  ;;  %41 = vst.msk [vmem:[#allocation2 + $0x60] sm:$0x1] %vm36_vm3, %v7998_v2  ;;  %v246_v25 = vmul.f32 %v6428_v16, %v8214_v8  ;;  %v247_v27 = vmul.f32 %v6429_v19, %v8214_v8  ;;  %v248_v28 = vmul.f32 %v6432_v21, %v8214_v8  ;;  %v606_v33 = vld [vmem:[#allocation2 + $0x9] sm:$0xff]  ;;  %v6440_v46 = vunpack.c.l.bf16 %v6553_v31  ;;  %v6556_v52 = vld [vmem:[%s9648_s0 + $0x38] sm:$0xff]  }
   0xa   :  { %42 = vst.msk [vmem:[#allocation2 + $0x78] sm:$0x1] %vm36_vm3, %v7998_v2  ;;  %43 = vst.msk [vmem:[#allocation2 + $0x90] sm:$0x1] %vm36_vm3, %v7998_v2  ;;  %v249_v29 = vmul.f32 %v6433_v22, %v8214_v8  ;;  %v379_v34 = vmax.f32 %v315_v23, 0.0  ;;  %v380_v35 = vmax.f32 %v316_v24, 0.0  ;;  %v250_v37 = vmul.f32 %v6436_v26, %v8214_v8 }
   0xb   :  { %44 = vst.msk [vmem:[#allocation2 + $0xa8] sm:$0x1] %vm36_vm3, %v7998_v2  ;;  %45 = vst.msk [vmem:[#allocation2 + $0xc0] sm:$0x1] %vm36_vm3, %v7998_v2  ;;  %v317_v36 = vadd.f32 %v8219_v9, %v246_v25  ;;  %v669_v38 = vpack.c.bf16 %v606_v33, %v605_v32  ;;  %v318_v39 = vadd.f32 %v8219_v9, %v247_v27  ;;  %v6554_v42 = vld [vmem:[%s9648_s0 + $0x28] sm:$0xff]   ;;  %v6441_v51 = vunpack.c.h.bf16 %v6553_v31  ;;  %v6557_v12 = vld [vmem:[%s9648_s0 + $0x40] sm:$0xff]  }
   0xc   :  { %46 = vst.msk [vmem:[#allocation2 + $0xd8] sm:$0x1] %vm36_vm3, %v7998_v2  ;;  %47 = vst.msk [vmem:[#allocation2 + $0xf0] sm:$0x1] %vm36_vm3, %v7998_v2  ;;  %v319_v40 = vadd.f32 %v8219_v9, %v248_v28  ;;  %v320_v41 = vadd.f32 %v8219_v9, %v249_v29  ;;  %v251_v44 = vmul.f32 %v6437_v30, %v8214_v8  ;;  %v6444_v56 = vunpack.c.l.bf16 %v6554_v42  ;;  %v6558_v21 = vld [vmem:[%s9648_s0 + $0x48] sm:$0xff]   ;;  %v6559_v31 = vld [vmem:[%s9648_s0 + $0x50] sm:$0xff]  }
   0xd   :  { %48 = vst.msk [vmem:[#allocation2 + $0x108] sm:$0x1] %vm36_vm3, %v7998_v2  ;;  %49 = vst.msk [vmem:[#allocation2 + $0x120] sm:$0x1] %vm36_vm3, %v7998_v2  ;;  %v381_v43 = vmax.f32 %v317_v36, 0.0  ;;  %v321_v45 = vadd.f32 %v8219_v9, %v250_v37  ;;  %6880 = vmatprep.mubr.msk.bf16.mxu1 %vm21_vm1, %v669_v38  ;;  %v382_v48 = vmax.f32 %v318_v39, 0.0  ;;  %v252_v55 = vmul.f32 %v6440_v46, %v8214_v8 }
   0xe   :  { %50 = vst.msk [vmem:[#allocation2 + $0x138] sm:$0x1] %vm36_vm3, %v7998_v2  ;;  %51 = vst.msk [vmem:[#allocation2 + $0x150] sm:$0x1] %vm36_vm3, %v7998_v2  ;;  %v383_v49 = vmax.f32 %v319_v40, 0.0  ;;  %v384_v50 = vmax.f32 %v320_v41, 0.0  ;;  %v322_v53 = vadd.f32 %v8219_v9, %v251_v44  ;;  %v253_v57 = vmul.f32 %v6441_v51, %v8214_v8 }
   0xf   :  { %52 = vst.msk [vmem:[#allocation2 + $0x168] sm:$0x1] %vm36_vm3, %v7998_v2  ;;  %53 = vst.msk [vmem:[#allocation2 + $0x180] sm:$0x1] %vm36_vm3, %v7998_v2  ;;  %v385_v54 = vmax.f32 %v321_v45, 0.0  ;;  %v6445_v58 = vunpack.c.h.bf16 %v6554_v42  ;;  %v6448_v59 = vunpack.c.l.bf16 %v6555_v47  ;;  %v6449_v60 = vunpack.c.h.bf16 %v6555_v47  ;;  %v6560_v32 = vld [vmem:[%s9648_s0 + $0x58] sm:$0xff]  }
  0x10   :  { %56 = vst.msk [vmem:[#allocation2 + $0x1c8] sm:$0x1] %vm36_vm3, %v7998_v2  ;;  %57 = vst.msk [vmem:[#allocation2 + $0x1e0] sm:$0x1] %vm36_vm3, %v7998_v2  ;;  %v386_v61 = vmax.f32 %v322_v53, 0.0  ;;  %v323_v62 = vadd.f32 %v8219_v9, %v252_v55  ;;  %v254_v63 = vmul.f32 %v6444_v56, %v8214_v8  ;;  %v6452_v0 = vunpack.c.l.bf16 %v6556_v52 }
  0x11   :  { %58 = vst.msk [vmem:[#allocation2 + $0x1f8] sm:$0x1] %vm36_vm3, %v7998_v2  ;;  %59 = vst.msk [vmem:[#allocation2 + $0x210] sm:$0x1] %vm36_vm3, %v7998_v2  ;;  %v324_v1 = vadd.f32 %v8219_v9, %v253_v57  ;;  %v256_v3 = vmul.f32 %v6448_v59, %v8214_v8  ;;  %v257_v4 = vmul.f32 %v6449_v60, %v8214_v8  ;;  %v6453_v10 = vunpack.c.h.bf16 %v6556_v52 }
  0x12   :  { %60 = vst.msk [vmem:[#allocation2 + $0x228] sm:$0x1] %vm36_vm3, %v7998_v2  ;;  %61 = vst.msk [vmem:[#allocation2 + $0x240] sm:$0x1] %vm36_vm3, %v7998_v2  ;;  %v387_v6 = vmax.f32 %v323_v62, 0.0  ;;  %v325_v7 = vadd.f32 %v8219_v9, %v254_v63  ;;  %v258_v11 = vmul.f32 %v6452_v0, %v8214_v8  ;;  %v6456_v30 = vunpack.c.l.bf16 %v6557_v12 }
  0x13   :  { %62 = vst.msk [vmem:[#allocation2 + $0x258] sm:$0x1] %vm36_vm3, %v7998_v2  ;;  %63 = vst.msk [vmem:[#allocation2 + $0x270] sm:$0x1] %vm36_vm3, %v7998_v2  ;;  %v388_v16 = vmax.f32 %v324_v1, 0.0  ;;  %v327_v18 = vadd.f32 %v8219_v9, %v256_v3  ;;  %v328_v19 = vadd.f32 %v8219_v9, %v257_v4  ;;  %v259_v24 = vmul.f32 %v6453_v10, %v8214_v8 }
  0x14   :  { %64 = vst.msk [vmem:[#allocation2 + $0x288] sm:$0x1] %vm36_vm3, %v7998_v2  ;;  %65 = vst.msk [vmem:[#allocation2 + $0x2a0] sm:$0x1] %vm36_vm3, %v7998_v2  ;;  %v389_v23 = vmax.f32 %v325_v7, 0.0  ;;  %v329_v25 = vadd.f32 %v8219_v9, %v258_v11  ;;  %v6457_v38 = vunpack.c.h.bf16 %v6557_v12  ;;  %v6460_v39 = vunpack.c.l.bf16 %v6558_v21 }
  0x15   :  { %66 = vst.msk [vmem:[#allocation2 + $0x2b8] sm:$0x1] %vm36_vm3, %v7998_v2  ;;  %67 = vst.msk [vmem:[#allocation2 + $0x2d0] sm:$0x1] %vm36_vm3, %v7998_v2  ;;  %v391_v28 = vmax.f32 %v327_v18, 0.0  ;;  %v392_v29 = vmax.f32 %v328_v19, 0.0  ;;  %v330_v36 = vadd.f32 %v8219_v9, %v259_v24  ;;  %v6461_v44 = vunpack.c.h.bf16 %v6558_v21 }
  0x16   :  { %68 = vst.msk [vmem:[#allocation2 + $0x2e8] sm:$0x1] %vm36_vm3, %v7998_v2  ;;  %69 = vst.msk [vmem:[#allocation2 + $0x300] sm:$0x1] %vm36_vm3, %v7998_v2  ;;  %v393_v37 = vmax.f32 %v329_v25, 0.0  ;;  %v261_v46 = vmul.f32 %v6457_v38, %v8214_v8  ;;  %v262_v47 = vmul.f32 %v6460_v39, %v8214_v8  ;;  %v6465_v53 = vunpack.c.h.bf16 %v6559_v31  ;;  %v6563_v18 = vld [vmem:[%s9648_s0 + $0x70] sm:$0xff]  }
  0x17   :  { %70 = vst.msk [vmem:[#allocation2 + $0x318] sm:$0x1] %vm36_vm3, %v7998_v2  ;;  %71 = vst.msk [vmem:[#allocation2 + $0x330] sm:$0x1] %vm36_vm3, %v7998_v2  ;;  %v394_v45 = vmax.f32 %v330_v36, 0.0  ;;  %v263_v52 = vmul.f32 %v6461_v44, %v8214_v8  ;;  %v6564_v24 = vld [vmem:[%s9648_s0 + $0x78] sm:$0xff]  }
  0x18   :  { %74 = vst.msk [vmem:[#allocation2 + $0x29] sm:$0x1] %vm36_vm3, %v7998_v2  ;;  %75 = vst.msk [vmem:[#allocation2 + $0x41] sm:$0x1] %vm36_vm3, %v7998_v2  ;;  %v332_v56 = vadd.f32 %v8219_v9, %v261_v46  ;;  %v333_v57 = vadd.f32 %v8219_v9, %v262_v47  ;;  %v265_v63 = vmul.f32 %v6465_v53, %v8214_v8  ;;  %v6484_v36 = vunpack.c.l.bf16 %v6564_v24 }
  0x19   :  { %76 = vst.msk [vmem:[#allocation2 + $0x59] sm:$0x1] %vm36_vm3, %v7998_v2  ;;  %77 = vst.msk [vmem:[#allocation2 + $0x71] sm:$0x1] %vm36_vm3, %v7998_v2  ;;  %vm5587_vm4 = vcmask 27648  }
  0x1a   :  { %78 = vst.msk [vmem:[#allocation2 + $0x89] sm:$0x1] %vm36_vm3, %v7998_v2  ;;  %79 = vst.msk [vmem:[#allocation2 + $0xa1] sm:$0x1] %vm36_vm3, %v7998_v2  ;;  %v396_v1 = vmax.f32 %v332_v56, 0.0  ;;  %v336_v11 = vadd.f32 %v8219_v9, %v265_v63  ;;  %v274_v46 = vmul.f32 %v6484_v36, %v8214_v8  ;;  %v6566_v63 = vld [vmem:[%s9648_s0 + $0x88] sm:$0xff]  }
  0x1b   :  { %80 = vst.msk [vmem:[#allocation2 + $0xb9] sm:$0x1] %vm36_vm3, %v7998_v2  ;;  %81 = vst.msk [vmem:[#allocation2 + $0xd1] sm:$0x1] %vm36_vm3, %v7998_v2 }
  0x1c   :  { %82 = vst.msk [vmem:[#allocation2 + $0xe9] sm:$0x1] %vm36_vm3, %v7998_v2  ;;  %83 = vst.msk [vmem:[#allocation2 + $0x101] sm:$0x1] %vm36_vm3, %v7998_v2 }
  0x1d   :  { %84 = vst.msk [vmem:[#allocation2 + $0x119] sm:$0x1] %vm36_vm3, %v7998_v2  ;;  %85 = vst.msk [vmem:[#allocation2 + $0x131] sm:$0x1] %vm36_vm3, %v7998_v2 }
  0x1e   :  { %86 = vst.msk [vmem:[#allocation2 + $0x149] sm:$0x1] %vm36_vm3, %v7998_v2  ;;  %87 = vst.msk [vmem:[#allocation2 + $0x161] sm:$0x1] %vm36_vm3, %v7998_v2 }
  0x1f   :  { %88 = vst.msk [vmem:[#allocation2 + $0x179] sm:$0x1] %vm36_vm3, %v7998_v2  ;;  %89 = vst.msk [vmem:[#allocation2 + $0x191] sm:$0x1] %vm36_vm3, %v7998_v2 }
  0x20   :  { %92 = vst.msk [vmem:[#allocation2 + $0x1d9] sm:$0x1] %vm36_vm3, %v7998_v2  ;;  %93 = vst.msk [vmem:[#allocation2 + $0x1f1] sm:$0x1] %vm36_vm3, %v7998_v2 }
  0x21   :  { %94 = vst.msk [vmem:[#allocation2 + $0x209] sm:$0x1] %vm36_vm3, %v7998_v2  ;;  %95 = vst.msk [vmem:[#allocation2 + $0x221] sm:$0x1] %vm36_vm3, %v7998_v2 }
  0x22   :  { %96 = vst.msk [vmem:[#allocation2 + $0x239] sm:$0x1] %vm36_vm3, %v7998_v2  ;;  %97 = vst.msk [vmem:[#allocation2 + $0x251] sm:$0x1] %vm36_vm3, %v7998_v2 }
  0x23   :  { %98 = vst.msk [vmem:[#allocation2 + $0x269] sm:$0x1] %vm36_vm3, %v7998_v2  ;;  %99 = vst.msk [vmem:[#allocation2 + $0x281] sm:$0x1] %vm36_vm3, %v7998_v2 }
  0x24   :  { %100 = vst.msk [vmem:[#allocation2 + $0x299] sm:$0x1] %vm36_vm3, %v7998_v2  ;;  %101 = vst.msk [vmem:[#allocation2 + $0x2b1] sm:$0x1] %vm36_vm3, %v7998_v2 }
  0x25   :  { %102 = vst.msk [vmem:[#allocation2 + $0x2c9] sm:$0x1] %vm36_vm3, %v7998_v2  ;;  %103 = vst.msk [vmem:[#allocation2 + $0x2e1] sm:$0x1] %vm36_vm3, %v7998_v2 }
  0x26   :  { %104 = vst.msk [vmem:[#allocation2 + $0x2f9] sm:$0x1] %vm36_vm3, %v7998_v2  ;;  %105 = vst.msk [vmem:[#allocation2 + $0x311] sm:$0x1] %vm36_vm3, %v7998_v2 }
  0x27   :  { %106 = vst.msk [vmem:[#allocation2 + $0x329] sm:$0x1] %vm36_vm3, %v7998_v2  ;;  %107 = vst.msk [vmem:[#allocation2 + $0x341] sm:$0x1] %vm36_vm3, %v7998_v2 }
  0x28   :  { %54 = vst.msk [vmem:[#allocation2 + $0x198] sm:$0x1] %vm36_vm3, %v7998_v2  ;;  %55 = vst.msk [vmem:[#allocation2 + $0x1b0] sm:$0x1] %vm36_vm3, %v7998_v2 }
  0x29   :  { %72 = vst.msk [vmem:[#allocation2 + $0x348] sm:$0x1] %vm36_vm3, %v7998_v2  ;;  %90 = vst.msk [vmem:[#allocation2 + $0x1a9] sm:$0x1] %vm36_vm3, %v7998_v2 }
  0x2a   :  { %91 = vst.msk [vmem:[#allocation2 + $0x1c1] sm:$0x1] %vm36_vm3, %v7998_v2  ;;  %108 = vst.msk [vmem:[#allocation2 + $0x359] sm:$0x1] %vm36_vm3, %v7998_v2  ;;  %v255_v2 = vmul.f32 %v6445_v58, %v8214_v8  ;;  %v6469_v58 = vunpack.c.h.bf16 %v6560_v32 }
  0x2b   :  { %444 = vst.msk [vmem:[#allocation2 + $0x19] sm:$0xff] %vm21_vm1, %v379_v34  ;;  %445 = vst.msk [vmem:[#allocation2 + $0x21] sm:$0xff] %vm21_vm1, %v380_v35 }
  0x2c   :  { %446 = vst.msk [vmem:[#allocation2 + $0x31] sm:$0xff] %vm21_vm1, %v381_v43  ;;  %447 = vst.msk [vmem:[#allocation2 + $0x39] sm:$0xff] %vm21_vm1, %v382_v48  ;;  %v326_v17 = vadd.f32 %v8219_v9, %v255_v2  ;;  %v260_v43 = vmul.f32 %v6456_v30, %v8214_v8  ;;  %v8339_v48 = vld [vmem:[%s9647_s3 + $0xc] sm:$0x3]  ;;  %v397_v2 = vmax.f32 %v333_v57, 0.0  ;;  %v267_v4 = vmul.f32 %v6469_v58, %v8214_v8 }
  0x2d   :  { %448 = vst.msk [vmem:[#allocation2 + $0x49] sm:$0xff] %vm21_vm1, %v383_v49  ;;  %449 = vst.msk [vmem:[#allocation2 + $0x51] sm:$0xff] %vm21_vm1, %v384_v50  ;;  %v8344_v49 = vld [vmem:[%s9647_s3 + $0x4] sm:$0x3] }
  0x2e   :  { %450 = vst.msk [vmem:[#allocation2 + $0x61] sm:$0xff] %vm21_vm1, %v385_v54  ;;  %451 = vst.msk [vmem:[#allocation2 + $0x69] sm:$0xff] %vm21_vm1, %v386_v61  ;;  %v390_v27 = vmax.f32 %v326_v17, 0.0  ;;  %v331_v51 = vadd.f32 %v8219_v9, %v260_v43  ;;  %v6468_v54 = vunpack.c.l.bf16 %v6560_v32  ;;  %v334_v61 = vadd.f32 %v8219_v9, %v263_v52  ;;  %v6562_v17 = vld [vmem:[%s9648_s0 + $0x68] sm:$0xff]   ;;  %v6565_v52 = vld [vmem:[%s9648_s0 + $0x80] sm:$0xff]  }
  0x2f   :  { %452 = vst.msk [vmem:[#allocation2 + $0x79] sm:$0xff] %vm21_vm1, %v387_v6  ;;  %453 = vst.msk [vmem:[#allocation2 + $0x81] sm:$0xff] %vm21_vm1, %v388_v16  ;;  %v6477_v30 = vunpack.c.h.bf16 %v6562_v17  ;;  %v6481_v32 = vunpack.c.h.bf16 %v6563_v18 }
  0x30   :  { %454 = vst.msk [vmem:[#allocation2 + $0x91] sm:$0xff] %vm21_vm1, %v389_v23  ;;  %455 = vst.msk [vmem:[#allocation2 + $0x99] sm:$0xff] %vm21_vm1, %v390_v27  ;;  %v395_v60 = vmax.f32 %v331_v51, 0.0  ;;  %v266_v3 = vmul.f32 %v6468_v54, %v8214_v8  ;;  %v398_v7 = vmax.f32 %v334_v61, 0.0  ;;  %v400_v23 = vmax.f32 %v336_v11, 0.0 }
  0x31   :  { %456 = vst.msk [vmem:[#allocation2 + $0xa9] sm:$0xff] %vm21_vm1, %v391_v28  ;;  %457 = vst.msk [vmem:[#allocation2 + $0xb1] sm:$0xff] %vm21_vm1, %v392_v29  ;;  %v6476_v29 = vunpack.c.l.bf16 %v6562_v17  ;;  %v6492_v11 = vunpack.c.l.bf16 %v6566_v63 }
  0x32   :  { %v607_v13 = vld [vmem:[#allocation2 + $0x19] sm:$0xff]  ;;  %v608_v14 = vld [vmem:[#allocation2 + $0x21] sm:$0xff]  ;;  %458 = vst.msk [vmem:[#allocation2 + $0xc1] sm:$0xff] %vm21_vm1, %v393_v37  ;;  %459 = vst.msk [vmem:[#allocation2 + $0xc9] sm:$0xff] %vm21_vm1, %v394_v45  ;;  %v337_v12 = vadd.f32 %v8219_v9, %v266_v3  ;;  %v6485_v45 = vunpack.c.h.bf16 %v6564_v24 }
  0x33   :  { %v670_v22 = vpack.c.bf16 %v608_v14, %v607_v13  ;;  %v2582_v26 = vld [vmem:[#allocation2 + $0x31] sm:$0xff]  ;;  %v2583_v33 = vld [vmem:[#allocation2 + $0x39] sm:$0xff]  ;;  %460 = vst.msk [vmem:[#allocation2 + $0xd9] sm:$0xff] %vm21_vm1, %v395_v60  ;;  %461 = vst.msk [vmem:[#allocation2 + $0xe1] sm:$0xff] %vm21_vm1, %v396_v1  ;;  %v338_v13 = vadd.f32 %v8219_v9, %v267_v4  ;;  %v270_v39 = vmul.f32 %v6476_v29, %v8214_v8 }
  0x34   :  { %v611_v34 = vld [vmem:[#allocation2 + $0x49] sm:$0xff]  ;;  %v612_v35 = vld [vmem:[#allocation2 + $0x51] sm:$0xff]  ;;  %v2645_v40 = vpack.c.bf16 %v2583_v33, %v2582_v26  ;;  %462 = vst.msk [vmem:[#allocation2 + $0xf1] sm:$0xff] %vm21_vm1, %v397_v2  ;;  %463 = vst.msk [vmem:[#allocation2 + $0xf9] sm:$0xff] %vm21_vm1, %v398_v7  ;;  %v401_v25 = vmax.f32 %v337_v12, 0.0  ;;  %v275_v54 = vmul.f32 %v6485_v45, %v8214_v8  ;;  %v6489_v2 = vunpack.c.h.bf16 %v6565_v52 }
  0x35   :  { %6881 = vmatmul.mubr.msk.bf16.vlgmr.msra.gmra.mrb[0].mxu1 %vm21_vm1, %v670_v22  ;;  %7144 = vmatprep.mubr.msk.bf16.mxu0 %vm21_vm1, %v670_v22  ;;  %v672_v41 = vpack.c.bf16 %v612_v35, %v611_v34  ;;  %v2586_v42 = vld [vmem:[#allocation2 + $0x61] sm:$0xff]  ;;  %v2587_v50 = vld [vmem:[#allocation2 + $0x69] sm:$0xff]  ;;  %v402_v26 = vmax.f32 %v338_v13, 0.0  ;;  %465 = vst.msk [vmem:[#allocation2 + $0x111] sm:$0xff] %vm21_vm1, %v400_v23  ;;  %v341_v47 = vadd.f32 %v8219_v9, %v270_v39  ;;  %v6493_v12 = vunpack.c.h.bf16 %v6566_v63 }
  0x36   :  { %6945 = vmatpush3.bf16.msra.mxu1 %v8249_v15  ;;  %v6464_v15 = vunpack.c.l.bf16 %v6559_v31  ;;  %7145 = vmatmul.mubr.msk.bf16.vlgmr.msra.gmra.mrb[0].mxu0 %vm21_vm1, %v2645_v40  ;;  %v2647_v55 = vpack.c.bf16 %v2587_v50, %v2586_v42  ;;  %v615_v59 = vld [vmem:[#allocation2 + $0x79] sm:$0xff]  ;;  %v616_v0 = vld [vmem:[#allocation2 + $0x81] sm:$0xff]  ;;  %v6480_v31 = vunpack.c.l.bf16 %v6563_v18  ;;  %466 = vst.msk [vmem:[#allocation2 + $0x121] sm:$0xff] %vm21_vm1, %v401_v25  ;;  %v273_v42 = vmul.f32 %v6481_v32, %v8214_v8 }
  0x37   :  { %6884 = vmatprep.mubr.msk.bf16.mxu1 %vm21_vm1, %v2645_v40  ;;  %7209 = vmatpush3.bf16.msra.mxu0 %v8258_v20  ;;  %v6561_v20 = vld [vmem:[%s9648_s0 + $0x60] sm:$0xff]   ;;  %v674_v6 = vpack.c.bf16 %v616_v0, %v615_v59  ;;  %v2590_v19 = vld [vmem:[#allocation2 + $0x91] sm:$0xff]  ;;  %467 = vst.msk [vmem:[#allocation2 + $0x129] sm:$0xff] %vm21_vm1, %v402_v26  ;;  %v271_v40 = vmul.f32 %v6477_v30, %v8214_v8  ;;  %v405_v56 = vmax.f32 %v341_v47, 0.0 }
  0x38   :  { %7148 = vmatprep.mubr.msk.bf16.mxu0 %vm21_vm1, %v672_v41  ;;  %v264_v62 = vmul.f32 %v6464_v15, %v8214_v8  ;;  %7993 = vmatprep.subr.msk.bf16.mxu0 %vm799_vm0, %v8339_v48  ;;  %v6472_v14 = vunpack.c.l.bf16 %v6561_v20  ;;  %v6473_v16 = vunpack.c.h.bf16 %v6561_v20  ;;  %v2591_v21 = vld [vmem:[#allocation2 + $0x99] sm:$0xff]  ;;  %v619_v37 = vld [vmem:[#allocation2 + $0xa9] sm:$0xff]  ;;  %v620_v38 = vld [vmem:[#allocation2 + $0xb1] sm:$0xff]  ;;  %v344_v51 = vadd.f32 %v8219_v9, %v273_v42 }
  0x39   :  { %7988 = vmatprep.subr.msk.bf16.mxu1 %vm799_vm0, %v8344_v49  ;;  %v2649_v33 = vpack.c.bf16 %v2591_v21, %v2590_v19  ;;  %v342_v15 = vadd.f32 %v8219_v9, %v271_v40  ;;  %v676_v53 = vpack.c.bf16 %v620_v38, %v619_v37  ;;  %v346_v60 = vadd.f32 %v8219_v9, %v275_v54  ;;  %v6567_v20 = vld [vmem:[%s9648_s0 + $0x90] sm:$0xff]   ;;  %v2594_v0 = vld [vmem:[#allocation2 + $0xc1] sm:$0xff] }
  0x3a   :  { %v335_v10 = vadd.f32 %v8219_v9, %v264_v62  ;;  %v268_v27 = vmul.f32 %v6472_v14, %v8214_v8  ;;  %v269_v28 = vmul.f32 %v6473_v16, %v8214_v8  ;;  %v408_v59 = vmax.f32 %v344_v51, 0.0  ;;  %v2595_v1 = vld [vmem:[#allocation2 + $0xc9] sm:$0xff]  ;;  %470 = vst.msk [vmem:[#allocation2 + $0x151] sm:$0xff] %vm21_vm1, %v405_v56  ;;  %v624_v7 = vld [vmem:[#allocation2 + $0xe1] sm:$0xff]  ;;  %v6568_v14 = vld [vmem:[%s9648_s0 + $0x98] sm:$0xff]  }
  0x3b   :  { %v406_v57 = vmax.f32 %v342_v15, 0.0  ;;  %v6488_v62 = vunpack.c.l.bf16 %v6565_v52  ;;  %v410_v3 = vmax.f32 %v346_v60, 0.0  ;;  %v6496_v13 = vunpack.c.l.bf16 %v6567_v20  ;;  %v6569_v24 = vld [vmem:[%s9648_s0 + $0xa0] sm:$0xff]   ;;  %v2598_v37 = vld [vmem:[#allocation2 + $0xf1] sm:$0xff]  ;;  %v6570_v42 = vld [vmem:[%s9648_s0 + $0xa8] sm:$0xff]  }
  0x3c   :  { %v399_v22 = vmax.f32 %v335_v10, 0.0  ;;  %v339_v34 = vadd.f32 %v8219_v9, %v268_v27  ;;  %v340_v35 = vadd.f32 %v8219_v9, %v269_v28  ;;  %473 = vst.msk [vmem:[#allocation2 + $0x171] sm:$0xff] %vm21_vm1, %v408_v59  ;;  %v277_v10 = vmul.f32 %v6489_v2, %v8214_v8  ;;  %v2599_v38 = vld [vmem:[#allocation2 + $0xf9] sm:$0xff]  ;;  %v628_v15 = vld [vmem:[#allocation2 + $0x111] sm:$0xff] }
  0x3d   :  { %6885 = vmatmul.mubr.msk.bf16.gmra.mrb[4].mxu1 %vm21_vm1, %v672_v41  ;;  %v272_v41 = vmul.f32 %v6480_v31, %v8214_v8  ;;  %471 = vst.msk [vmem:[#allocation2 + $0x159] sm:$0xff] %vm21_vm1, %v406_v57  ;;  %v276_v4 = vmul.f32 %v6488_v62, %v8214_v8  ;;  %v2651_v16 = vpack.c.bf16 %v2595_v1, %v2594_v0  ;;  %475 = vst.msk [vmem:[#allocation2 + $0x189] sm:$0xff] %vm21_vm1, %v410_v3  ;;  %v6572_v60 = vld [vmem:[%s9648_s0 + $0xb8] sm:$0xff]  }
  0x3e   :  { %6888 = vmatprep.mubr.msk.bf16.mxu1 %vm21_vm1, %v2647_v55  ;;  %7149 = vmatmul.mubr.msk.bf16.gmra.mrb[4].mxu0 %vm21_vm1, %v2647_v55  ;;  %464 = vst.msk [vmem:[#allocation2 + $0x109] sm:$0xff] %vm21_vm1, %v399_v22  ;;  %v403_v43 = vmax.f32 %v339_v34, 0.0  ;;  %v404_v44 = vmax.f32 %v340_v35, 0.0  ;;  %v345_v55 = vadd.f32 %v8219_v9, %v274_v46  ;;  %v6497_v18 = vunpack.c.h.bf16 %v6567_v20  ;;  %v6571_v46 = vld [vmem:[%s9648_s0 + $0xb0] sm:$0xff]  }
  0x3f   :  { %7152 = vmatprep.mubr.msk.bf16.mxu0 %vm21_vm1, %v674_v6  ;;  %v343_v50 = vadd.f32 %v8219_v9, %v272_v41  ;;  %v347_v17 = vadd.f32 %v8219_v9, %v276_v4  ;;  %v348_v19 = vadd.f32 %v8219_v9, %v277_v10  ;;  %v278_v21 = vmul.f32 %v6492_v11, %v8214_v8  ;;  %v6573_v10 = vld [vmem:[%s9648_s0 + $0xc0] sm:$0xff]  }
  0x40   :  { %468 = vst.msk [vmem:[#allocation2 + $0x139] sm:$0xff] %vm21_vm1, %v403_v43  ;;  %469 = vst.msk [vmem:[#allocation2 + $0x141] sm:$0xff] %vm21_vm1, %v404_v44  ;;  %v409_v61 = vmax.f32 %v345_v55, 0.0  ;;  %v279_v22 = vmul.f32 %v6493_v12, %v8214_v8  ;;  %v280_v23 = vmul.f32 %v6496_v13, %v8214_v8  ;;  %v281_v27 = vmul.f32 %v6497_v18, %v8214_v8  ;;  %v2602_v11 = vld [vmem:[#allocation2 + $0x121] sm:$0xff] }
  0x41   :  { %v407_v58 = vmax.f32 %v343_v50, 0.0  ;;  %v411_v26 = vmax.f32 %v347_v17, 0.0  ;;  %v6500_v28 = vunpack.c.l.bf16 %v6568_v14  ;;  %v412_v29 = vmax.f32 %v348_v19, 0.0 }
  0x42   :  { %474 = vst.msk [vmem:[#allocation2 + $0x181] sm:$0xff] %vm21_vm1, %v409_v61  ;;  %v349_v30 = vadd.f32 %v8219_v9, %v278_v21  ;;  %v350_v31 = vadd.f32 %v8219_v9, %v279_v22  ;;  %v351_v32 = vadd.f32 %v8219_v9, %v280_v23  ;;  %v6501_v34 = vunpack.c.h.bf16 %v6568_v14 }
  0x43   :  { %472 = vst.msk [vmem:[#allocation2 + $0x169] sm:$0xff] %vm21_vm1, %v407_v58  ;;  %476 = vst.msk [vmem:[#allocation2 + $0x1c9] sm:$0xff] %vm21_vm1, %v411_v26  ;;  %v282_v35 = vmul.f32 %v6500_v28, %v8214_v8  ;;  %v6504_v36 = vunpack.c.l.bf16 %v6569_v24  ;;  %v6505_v50 = vunpack.c.h.bf16 %v6569_v24  ;;  %v2653_v52 = vpack.c.bf16 %v2599_v38, %v2598_v37 }
  0x44   :  { %477 = vst.msk [vmem:[#allocation2 + $0x1d1] sm:$0xff] %vm21_vm1, %v412_v29  ;;  %v413_v39 = vmax.f32 %v349_v30, 0.0  ;;  %v414_v40 = vmax.f32 %v350_v31, 0.0  ;;  %v415_v41 = vmax.f32 %v351_v32, 0.0  ;;  %v283_v44 = vmul.f32 %v6501_v34, %v8214_v8  ;;  %v6575_v31 = vld [vmem:[%s9648_s0 + $0xd0] sm:$0xff]  }
  0x45   :  { %6889 = vmatmul.mubr.msk.bf16.gmra.mrb[8].mxu1 %vm21_vm1, %v674_v6  ;;  %v623_v6 = vld [vmem:[#allocation2 + $0xd9] sm:$0xff]  ;;  %v353_v45 = vadd.f32 %v8219_v9, %v282_v35  ;;  %v627_v47 = vld [vmem:[#allocation2 + $0x109] sm:$0xff]  ;;  %v284_v51 = vmul.f32 %v6504_v36, %v8214_v8  ;;  %v6508_v55 = vunpack.c.l.bf16 %v6570_v42  ;;  %v285_v56 = vmul.f32 %v6505_v50, %v8214_v8 }
  0x46   :  { %6892 = vmatprep.mubr.msk.bf16.mxu1 %vm21_vm1, %v2649_v33  ;;  %7153 = vmatmul.mubr.msk.bf16.gmra.mrb[8].mxu0 %vm21_vm1, %v2649_v33  ;;  %v678_v25 = vpack.c.bf16 %v624_v7, %v623_v6  ;;  %v352_v33 = vadd.f32 %v8219_v9, %v281_v27  ;;  %478 = vst.msk [vmem:[#allocation2 + $0x1e1] sm:$0xff] %vm21_vm1, %v413_v39  ;;  %479 = vst.msk [vmem:[#allocation2 + $0x1e9] sm:$0xff] %vm21_vm1, %v414_v40  ;;  %v6509_v58 = vunpack.c.h.bf16 %v6570_v42  ;;  %v6574_v27 = vld [vmem:[%s9648_s0 + $0xc8] sm:$0xff]  }
  0x47   :  { %7156 = vmatprep.mubr.msk.bf16.mxu0 %vm21_vm1, %v676_v53  ;;  %480 = vst.msk [vmem:[#allocation2 + $0x1f9] sm:$0xff] %vm21_vm1, %v415_v41  ;;  %v417_v54 = vmax.f32 %v353_v45, 0.0  ;;  %v355_v57 = vadd.f32 %v8219_v9, %v284_v51  ;;  %v6512_v59 = vunpack.c.l.bf16 %v6571_v46  ;;  %v680_v61 = vpack.c.bf16 %v628_v15, %v627_v47  ;;  %v631_v17 = vld [vmem:[#allocation2 + $0x139] sm:$0xff]  ;;  %v632_v18 = vld [vmem:[#allocation2 + $0x141] sm:$0xff] }
  0x48   :  { %v416_v43 = vmax.f32 %v352_v33, 0.0  ;;  %v286_v63 = vmul.f32 %v6508_v55, %v8214_v8  ;;  %v6513_v20 = vunpack.c.h.bf16 %v6571_v46  ;;  %v356_v0 = vadd.f32 %v8219_v9, %v285_v56 }
  0x49   :  { %482 = vst.msk [vmem:[#allocation2 + $0x211] sm:$0xff] %vm21_vm1, %v417_v54  ;;  %v419_v1 = vmax.f32 %v355_v57, 0.0  ;;  %v287_v2 = vmul.f32 %v6509_v58, %v8214_v8  ;;  %v288_v3 = vmul.f32 %v6512_v59, %v8214_v8  ;;  %v6516_v7 = vunpack.c.l.bf16 %v6572_v60  ;;  %v2607_v54 = vld [vmem:[#allocation2 + $0x159] sm:$0xff]  ;;  %v636_v59 = vld [vmem:[#allocation2 + $0x171] sm:$0xff] }
  0x4a   :  { %481 = vst.msk [vmem:[#allocation2 + $0x201] sm:$0xff] %vm21_vm1, %v416_v43  ;;  %v357_v4 = vadd.f32 %v8219_v9, %v286_v63  ;;  %v289_v6 = vmul.f32 %v6513_v20, %v8214_v8  ;;  %v420_v12 = vmax.f32 %v356_v0, 0.0  ;;  %v6517_v22 = vunpack.c.h.bf16 %v6572_v60  ;;  %v6577_v57 = vld [vmem:[%s9648_s0 + $0xe0] sm:$0xff]   ;;  %v635_v58 = vld [vmem:[#allocation2 + $0x169] sm:$0xff] }
  0x4b   :  { %484 = vst.msk [vmem:[#allocation2 + $0x229] sm:$0xff] %vm21_vm1, %v419_v1  ;;  %v358_v13 = vadd.f32 %v8219_v9, %v287_v2  ;;  %v359_v14 = vadd.f32 %v8219_v9, %v288_v3  ;;  %v290_v23 = vmul.f32 %v6516_v7, %v8214_v8  ;;  %v6520_v26 = vunpack.c.l.bf16 %v6573_v10  ;;  %v6578_v2 = vld [vmem:[%s9648_s0 + $0xe8] sm:$0xff]  }
  0x4c   :  { %v421_v19 = vmax.f32 %v357_v4, 0.0  ;;  %v360_v21 = vadd.f32 %v8219_v9, %v289_v6  ;;  %485 = vst.msk [vmem:[#allocation2 + $0x231] sm:$0xff] %vm21_vm1, %v420_v12  ;;  %v291_v29 = vmul.f32 %v6517_v22, %v8214_v8  ;;  %v682_v33 = vpack.c.bf16 %v632_v18, %v631_v17  ;;  %v638_v17 = vld [vmem:[#allocation2 + $0x1b9] sm:$0xff] }
  0x4d   :  { %6893 = vmatmul.mubr.msk.bf16.gmra.mrb[12].mxu1 %vm21_vm1, %v676_v53  ;;  %v354_v53 = vadd.f32 %v8219_v9, %v283_v44  ;;  %v422_v24 = vmax.f32 %v358_v13, 0.0  ;;  %v361_v30 = vadd.f32 %v8219_v9, %v290_v23  ;;  %v6521_v34 = vunpack.c.h.bf16 %v6573_v10 }
  0x4e   :  { %6896 = vmatprep.mubr.msk.bf16.mxu1 %vm21_vm1, %v2651_v16  ;;  %7157 = vmatmul.mubr.msk.bf16.gmra.mrb[12].mxu0 %vm21_vm1, %v2651_v16  ;;  %v2603_v16 = vld [vmem:[#allocation2 + $0x129] sm:$0xff]  ;;  %486 = vst.msk [vmem:[#allocation2 + $0x241] sm:$0xff] %vm21_vm1, %v421_v19  ;;  %v424_v28 = vmax.f32 %v360_v21, 0.0  ;;  %v292_v35 = vmul.f32 %v6520_v26, %v8214_v8  ;;  %v362_v36 = vadd.f32 %v8219_v9, %v291_v29  ;;  %v6524_v38 = vunpack.c.l.bf16 %v6574_v27  ;;  %v2610_v29 = vld [vmem:[#allocation2 + $0x181] sm:$0xff] }
  0x4f   :  { %7160 = vmatprep.mubr.msk.bf16.mxu0 %vm21_vm1, %v678_v25  ;;  %v418_v62 = vmax.f32 %v354_v53, 0.0  ;;  %v2655_v32 = vpack.c.bf16 %v2603_v16, %v2602_v11  ;;  %487 = vst.msk [vmem:[#allocation2 + $0x249] sm:$0xff] %vm21_vm1, %v422_v24  ;;  %v425_v37 = vmax.f32 %v361_v30, 0.0  ;;  %v6525_v39 = vunpack.c.h.bf16 %v6574_v27  ;;  %v2606_v53 = vld [vmem:[#allocation2 + $0x151] sm:$0xff]  ;;  %v2611_v30 = vld [vmem:[#allocation2 + $0x189] sm:$0xff] }
  0x50   :  { %489 = vst.msk [vmem:[#allocation2 + $0x261] sm:$0xff] %vm21_vm1, %v424_v28  ;;  %v293_v40 = vmul.f32 %v6521_v34, %v8214_v8  ;;  %v363_v41 = vadd.f32 %v8219_v9, %v292_v35  ;;  %v6528_v42 = vunpack.c.l.bf16 %v6575_v31  ;;  %v6529_v43 = vunpack.c.h.bf16 %v6575_v31  ;;  %v637_v16 = vld [vmem:[#allocation2 + $0x1b1] sm:$0xff]  ;;  %v3130_v35 = vld [vmem:[#allocation2 + $0x1a] sm:$0xff] }
  0x51   :  { %483 = vst.msk [vmem:[#allocation2 + $0x219] sm:$0xff] %vm21_vm1, %v418_v62  ;;  %v426_v44 = vmax.f32 %v362_v36, 0.0  ;;  %490 = vst.msk [vmem:[#allocation2 + $0x271] sm:$0xff] %vm21_vm1, %v425_v37  ;;  %v294_v45 = vmul.f32 %v6524_v38, %v8214_v8  ;;  %v295_v46 = vmul.f32 %v6525_v39, %v8214_v8  ;;  %v2657_v3 = vpack.c.bf16 %v2607_v54, %v2606_v53  ;;  %v3131_v36 = vld [vmem:[#allocation2 + $0x22] sm:$0xff] }
  0x52   :  { %v364_v47 = vadd.f32 %v8219_v9, %v293_v40  ;;  %v427_v15 = vmax.f32 %v363_v41, 0.0  ;;  %v296_v50 = vmul.f32 %v6528_v42, %v8214_v8  ;;  %v297_v51 = vmul.f32 %v6529_v43, %v8214_v8  ;;  %v641_v54 = vld [vmem:[#allocation2 + $0x1e1] sm:$0xff] }
  0x53   :  { %491 = vst.msk [vmem:[#allocation2 + $0x279] sm:$0xff] %vm21_vm1, %v426_v44  ;;  %v365_v55 = vadd.f32 %v8219_v9, %v294_v45  ;;  %v366_v56 = vadd.f32 %v8219_v9, %v295_v46  ;;  %v6536_v7 = vunpack.c.l.bf16 %v6577_v57  ;;  %v684_v10 = vpack.c.bf16 %v636_v59, %v635_v58  ;;  %v3132_v58 = vld [vmem:[#allocation2 + $0x32] sm:$0xff]  ;;  %v3133_v59 = vld [vmem:[#allocation2 + $0x3a] sm:$0xff] }
  0x54   :  { %v428_v60 = vmax.f32 %v364_v47, 0.0  ;;  %492 = vst.msk [vmem:[#allocation2 + $0x289] sm:$0xff] %vm21_vm1, %v427_v15  ;;  %v368_v62 = vadd.f32 %v8219_v9, %v297_v51  ;;  %v6537_v13 = vunpack.c.h.bf16 %v6577_v57  ;;  %v6540_v19 = vunpack.c.l.bf16 %v6578_v2  ;;  %v640_v51 = vld [vmem:[#allocation2 + $0x1d1] sm:$0xff] }
  0x55   :  { %6897 = vmatmul.mubr.msk.bf16.gmra.mrb[16].mxu1 %vm21_vm1, %v678_v25  ;;  %v423_v25 = vmax.f32 %v359_v14, 0.0  ;;  %v429_v63 = vmax.f32 %v365_v55, 0.0  ;;  %v430_v20 = vmax.f32 %v366_v56, 0.0  ;;  %v6579_v14 = vld [vmem:[%s9648_s0 + $0xf0] sm:$0xff]   ;;  %v300_v18 = vmul.f32 %v6536_v7, %v8214_v8 }
  0x56   :  { %6900 = vmatprep.mubr.msk.bf16.mxu1 %vm21_vm1, %v2653_v52  ;;  %7161 = vmatmul.mubr.msk.bf16.gmra.mrb[16].mxu0 %vm21_vm1, %v2653_v52  ;;  %v6576_v52 = vld [vmem:[%s9648_s0 + $0xd8] sm:$0xff]   ;;  %493 = vst.msk [vmem:[#allocation2 + $0x291] sm:$0xff] %vm21_vm1, %v428_v60  ;;  %v432_v6 = vmax.f32 %v368_v62, 0.0  ;;  %v301_v23 = vmul.f32 %v6537_v13, %v8214_v8  ;;  %v6541_v24 = vunpack.c.h.bf16 %v6578_v2  ;;  %v302_v26 = vmul.f32 %v6540_v19, %v8214_v8  ;;  %v642_v55 = vld [vmem:[#allocation2 + $0x1e9] sm:$0xff] }
  0x57   :  { %7164 = vmatprep.mubr.msk.bf16.mxu0 %vm21_vm1, %v680_v61  ;;  %488 = vst.msk [vmem:[#allocation2 + $0x259] sm:$0xff] %vm21_vm1, %v423_v25  ;;  %v6532_v0 = vunpack.c.l.bf16 %v6576_v52  ;;  %v6533_v1 = vunpack.c.h.bf16 %v6576_v52  ;;  %494 = vst.msk [vmem:[#allocation2 + $0x2a1] sm:$0xff] %vm21_vm1, %v429_v63  ;;  %v371_v25 = vadd.f32 %v8219_v9, %v300_v18  ;;  %v6544_v27 = vunpack.c.l.bf16 %v6579_v14  ;;  %v3135_v62 = vld [vmem:[#allocation2 + $0x52] sm:$0xff]  ;;  %v3138_v18 = vld [vmem:[#allocation2 + $0x7a] sm:$0xff] }
  0x58   :  { %495 = vst.msk [vmem:[#allocation2 + $0x2a9] sm:$0xff] %vm21_vm1, %v430_v20  ;;  %497 = vst.msk [vmem:[#allocation2 + $0x2c1] sm:$0xff] %vm21_vm1, %v432_v6  ;;  %v6545_v28 = vunpack.c.h.bf16 %v6579_v14  ;;  %v685_v31 = vpack.c.bf16 %v638_v17, %v637_v16  ;;  %v372_v34 = vadd.f32 %v8219_v9, %v301_v23  ;;  %v303_v38 = vmul.f32 %v6541_v24, %v8214_v8  ;;  %v6580_v63 = vld [vmem:[%s9648_s0 + $0xf8] sm:$0xff]   ;;  %v3136_v14 = vld [vmem:[#allocation2 + $0x62] sm:$0xff] }
  0x59   :  { %v298_v11 = vmul.f32 %v6532_v0, %v8214_v8  ;;  %v299_v12 = vmul.f32 %v6533_v1, %v8214_v8  ;;  %v435_v37 = vmax.f32 %v371_v25, 0.0  ;;  %v373_v39 = vadd.f32 %v8219_v9, %v302_v26  ;;  %v643_v2 = vld [vmem:[#allocation2 + $0x1f9] sm:$0xff]  ;;  %v645_v7 = vld [vmem:[#allocation2 + $0x211] sm:$0xff]  ;;  %v3139_v19 = vld [vmem:[#allocation2 + $0x82] sm:$0xff] }
  0x5a   :  { %v304_v40 = vmul.f32 %v6544_v27, %v8214_v8  ;;  %v436_v41 = vmax.f32 %v372_v34, 0.0  ;;  %v305_v42 = vmul.f32 %v6545_v28, %v8214_v8  ;;  %v2659_v43 = vpack.c.bf16 %v2611_v30, %v2610_v29  ;;  %v3137_v16 = vld [vmem:[#allocation2 + $0x6a] sm:$0xff]  ;;  %v649_v28 = vld [vmem:[#allocation2 + $0x241] sm:$0xff]  ;;  %v3140_v30 = vld [vmem:[#allocation2 + $0x92] sm:$0xff] }
  0x5b   :  { %v369_v21 = vadd.f32 %v8219_v9, %v298_v11  ;;  %v370_v22 = vadd.f32 %v8219_v9, %v299_v12  ;;  %500 = vst.msk [vmem:[#allocation2 + $0x2e9] sm:$0xff] %vm21_vm1, %v435_v37  ;;  %v374_v44 = vadd.f32 %v8219_v9, %v303_v38  ;;  %v437_v45 = vmax.f32 %v373_v39, 0.0  ;;  %v8585_v11 = vld [vmem:[%s9647_s3 + $0xe] sm:$0x3]  ;;  %v648_v27 = vld [vmem:[#allocation2 + $0x231] sm:$0xff]  ;;  %v652_v38 = vld [vmem:[#allocation2 + $0x261] sm:$0xff] }
  0x5c   :  { %v375_v46 = vadd.f32 %v8219_v9, %v304_v40  ;;  %v3194_v47 = vpack.c.bf16 %v3131_v36, %v3130_v35  ;;  %501 = vst.msk [vmem:[#allocation2 + $0x2f1] sm:$0xff] %vm21_vm1, %v436_v41  ;;  %v376_v15 = vadd.f32 %v8219_v9, %v305_v42  ;;  %v687_v60 = vpack.c.bf16 %v642_v55, %v641_v54  ;;  %v647_v26 = vld [vmem:[#allocation2 + $0x229] sm:$0xff]  ;;  %v3143_v34 = vld [vmem:[#allocation2 + $0xb2] sm:$0xff] }
  0x5d   :  { %6901 = vmatmul.mubr.msk.bf16.gmra.mrb[20].mxu1 %vm21_vm1, %v680_v61  ;;  %v367_v61 = vadd.f32 %v8219_v9, %v296_v50  ;;  %v639_v50 = vld [vmem:[#allocation2 + $0x1c9] sm:$0xff]  ;;  %v438_v52 = vmax.f32 %v374_v44, 0.0  ;;  %502 = vst.msk [vmem:[#allocation2 + $0x301] sm:$0xff] %vm21_vm1, %v437_v45  ;;  %v3195_v20 = vpack.c.bf16 %v3133_v59, %v3132_v58  ;;  %v3876_v1 = vsel %vm799_vm0, %v8339_v48, 0  ;;  %v653_v39 = vld [vmem:[#allocation2 + $0x271] sm:$0xff]  ;;  %v654_v40 = vld [vmem:[#allocation2 + $0x279] sm:$0xff] }
  0x5e   :  { %6904 = vmatprep.mubr.msk.bf16.mxu1 %vm21_vm1, %v2655_v32  ;;  %7165 = vmatmul.mubr.msk.bf16.gmra.mrb[20].mxu0 %vm21_vm1, %v2655_v32  ;;  %v433_v32 = vmax.f32 %v369_v21, 0.0  ;;  %v439_v53 = vmax.f32 %v375_v46, 0.0  ;;  %v440_v56 = vmax.f32 %v376_v15, 0.0  ;;  %v686_v57 = vpack.c.bf16 %v640_v51, %v639_v50  ;;  %v650_v29 = vld [vmem:[#allocation2 + $0x249] sm:$0xff]  ;;  %v651_v37 = vld [vmem:[#allocation2 + $0x259] sm:$0xff]  ;;  %v656_v51 = vld [vmem:[#allocation2 + $0x291] sm:$0xff] }
  0x5f   :  { %7168 = vmatprep.mubr.msk.bf16.mxu0 %vm21_vm1, %v682_v33  ;;  %v431_v4 = vmax.f32 %v367_v61, 0.0  ;;  %503 = vst.msk [vmem:[#allocation2 + $0x309] sm:$0xff] %vm21_vm1, %v438_v52  ;;  %v3134_v61 = vld [vmem:[#allocation2 + $0x4a] sm:$0xff]  ;;  %v6549_v6 = vunpack.c.h.bf16 %v6580_v63  ;;  %v3197_v23 = vpack.c.bf16 %v3137_v16, %v3136_v14  ;;  %v692_v41 = vpack.c.bf16 %v652_v38, %v651_v37  ;;  %v3144_v42 = vld [vmem:[#allocation2 + $0xc2] sm:$0xff]  ;;  %v3146_v45 = vld [vmem:[#allocation2 + $0xda] sm:$0xff] }
  0x60   :  { %498 = vst.msk [vmem:[#allocation2 + $0x2d1] sm:$0xff] %vm21_vm1, %v433_v32  ;;  %504 = vst.msk [vmem:[#allocation2 + $0x319] sm:$0xff] %vm21_vm1, %v439_v53  ;;  %v3196_v0 = vpack.c.bf16 %v3135_v62, %v3134_v61  ;;  %v691_v32 = vpack.c.bf16 %v650_v29, %v649_v28  ;;  %v693_v44 = vpack.c.bf16 %v654_v40, %v653_v39  ;;  %v3147_v46 = vld [vmem:[#allocation2 + $0xe2] sm:$0xff]  ;;  %v3148_v55 = vld [vmem:[#allocation2 + $0xf2] sm:$0xff] }
  0x61   :  { %496 = vst.msk [vmem:[#allocation2 + $0x2b9] sm:$0xff] %vm21_vm1, %v431_v4  ;;  %505 = vst.msk [vmem:[#allocation2 + $0x321] sm:$0xff] %vm21_vm1, %v440_v56  ;;  %v6548_v4 = vunpack.c.l.bf16 %v6580_v63  ;;  %v307_v13 = vmul.f32 %v6549_v6, %v8214_v8  ;;  %v8611_v15 = vpack.c.bf16 %v3147_v46, %v3146_v45  ;;  %v655_v50 = vld [vmem:[#allocation2 + $0x289] sm:$0xff]  ;;  %v657_v52 = vld [vmem:[#allocation2 + $0x2a1] sm:$0xff] }
  0x62   :  { %v658_v53 = vld [vmem:[#allocation2 + $0x2a9] sm:$0xff]  ;;  %v694_v54 = vpack.c.bf16 %v656_v51, %v655_v50  ;;  %v3149_v56 = vld [vmem:[#allocation2 + $0xfa] sm:$0xff]  ;;  %v3151_v59 = vld [vmem:[#allocation2 + $0x112] sm:$0xff]  ;;  %v1675_v50 = vsel %vm799_vm0, %v8344_v49, 0 }
  0x63   :  { %v306_v12 = vmul.f32 %v6548_v4, %v8214_v8  ;;  %v3198_v8 = vpack.c.bf16 %v3139_v19, %v3138_v18  ;;  %v3150_v58 = vld [vmem:[#allocation2 + $0x10a] sm:$0xff]  ;;  %v660_v63 = vld [vmem:[#allocation2 + $0x2c1] sm:$0xff]  ;;  %v3156_v18 = vld [vmem:[#allocation2 + $0x152] sm:$0xff] }
  0x64   :  { %v8621_v61 = vpack.c.bf16 %v3151_v59, %v3150_v58  ;;  %v3154_v6 = vld [vmem:[#allocation2 + $0x13a] sm:$0xff]  ;;  %v509_v28 = vld [vmem:[#allocation2 + $0x8] sm:$0xff]  ;;  %v512_v39 = vld [vmem:[#allocation2 + $0x30] sm:$0xff] }
  0x65   :  { %6905 = vmatmul.mubr.msk.bf16.gmra.mrb[24].mxu1 %vm21_vm1, %v682_v33  ;;  %v434_v33 = vmax.f32 %v370_v22, 0.0  ;;  %v377_v21 = vadd.f32 %v8219_v9, %v306_v12  ;;  %v378_v22 = vadd.f32 %v8219_v9, %v307_v13  ;;  %v690_v9 = vpack.c.bf16 %v648_v27, %v647_v26  ;;  %v663_v13 = vld [vmem:[#allocation2 + $0x2e9] sm:$0xff]  ;;  %v665_v14 = vld [vmem:[#allocation2 + $0x301] sm:$0xff]  ;;  %v510_v37 = vld [vmem:[#allocation2 + $0x18] sm:$0xff] }
  0x66   :  { %6908 = vmatprep.mubr.msk.bf16.mxu1 %vm21_vm1, %v2657_v3  ;;  %7169 = vmatmul.mubr.msk.bf16.gmra.mrb[24].mxu0 %vm21_vm1, %v2657_v3  ;;  %v644_v3 = vld [vmem:[#allocation2 + $0x201] sm:$0xff]  ;;  %v666_v16 = vld [vmem:[#allocation2 + $0x309] sm:$0xff]  ;;  %v513_v40 = vld [vmem:[#allocation2 + $0x38] sm:$0xff] }
  0x67   :  { %7172 = vmatprep.mubr.msk.bf16.mxu0 %vm21_vm1, %v684_v10  ;;  %499 = vst.msk [vmem:[#allocation2 + $0x2d9] sm:$0xff] %vm21_vm1, %v434_v33  ;;  %v688_v48 = vpack.c.bf16 %v644_v3, %v643_v2  ;;  %v441_v24 = vmax.f32 %v377_v21, 0.0  ;;  %v442_v25 = vmax.f32 %v378_v22, 0.0  ;;  %v3142_v33 = vld [vmem:[#allocation2 + $0xaa] sm:$0xff]  ;;  %v3152_v2 = vld [vmem:[#allocation2 + $0x122] sm:$0xff]  ;;  %v3157_v19 = vld [vmem:[#allocation2 + $0x15a] sm:$0xff]  ;;  %v699_v21 = vpack.c.bf16 %v666_v16, %v665_v14 }
  0x68   :  { %v8602_v36 = vpack.c.bf16 %v3143_v34, %v3142_v33  ;;  %v659_v62 = vld [vmem:[#allocation2 + $0x2b9] sm:$0xff]  ;;  %v3153_v3 = vld [vmem:[#allocation2 + $0x12a] sm:$0xff]  ;;  %v668_v26 = vld [vmem:[#allocation2 + $0x321] sm:$0xff] }
  0x69   :  { %506 = vst.msk [vmem:[#allocation2 + $0x331] sm:$0xff] %vm21_vm1, %v441_v24  ;;  %507 = vst.msk [vmem:[#allocation2 + $0x339] sm:$0xff] %vm21_vm1, %v442_v25  ;;  %v3158_v22 = vld [vmem:[#allocation2 + $0x16a] sm:$0xff]  ;;  %v8638_v24 = vpack.c.bf16 %v3157_v19, %v3156_v18  ;;  %v508_v27 = vld [vmem:[#allocation2] sm:$0xff] }
  0x6a   :  { %v3163_v33 = vld [vmem:[#allocation2 + $0x1d2] sm:$0xff]  ;;  %v511_v38 = vld [vmem:[#allocation2 + $0x20] sm:$0xff] }
  0x6b   :  { %v3166_v45 = vld [vmem:[#allocation2 + $0x1fa] sm:$0xff]  ;;  %v3167_v46 = vld [vmem:[#allocation2 + $0x202] sm:$0xff]  ;;  %v3168_v58 = vld [vmem:[#allocation2 + $0x212] sm:$0xff] }
  0x6c   :  { %v3169_v59 = vld [vmem:[#allocation2 + $0x21a] sm:$0xff] }
  0x6d   :  { %6909 = vmatmul.mubr.msk.bf16.gmra.mrb[28].mxu1 %vm21_vm1, %v684_v10  ;;  %v646_v10 = vld [vmem:[#allocation2 + $0x219] sm:$0xff] }
  0x6e   :  { %6912 = vmatprep.mubr.msk.bf16.mxu1 %vm21_vm1, %v685_v31  ;;  %7173 = vmatmul.mubr.msk.bf16.gmra.mrb[28].mxu0 %vm21_vm1, %v2659_v43  ;;  %v689_v17 = vpack.c.bf16 %v646_v10, %v645_v7  ;;  %v3141_v31 = vld [vmem:[#allocation2 + $0x9a] sm:$0xff]  ;;  %v3145_v43 = vld [vmem:[#allocation2 + $0xca] sm:$0xff]  ;;  %v3155_v7 = vld [vmem:[#allocation2 + $0x142] sm:$0xff]  ;;  %v8628_v10 = vpack.c.bf16 %v3153_v3, %v3152_v2 }
  0x6f   :  { %7210 = vmatprep.mubr.msk.bf16.mxu0 %vm21_vm1, %v3194_v47  ;;  %v3199_v35 = vpack.c.bf16 %v3141_v31, %v3140_v30  ;;  %v8608_v47 = vpack.c.bf16 %v3145_v43, %v3144_v42  ;;  %v8631_v12 = vpack.c.bf16 %v3155_v7, %v3154_v6  ;;  %v3161_v30 = vld [vmem:[#allocation2 + $0x18a] sm:$0xff]  ;;  %v572_v31 = vpack.c.bf16 %v509_v28, %v508_v27  ;;  %v3164_v42 = vld [vmem:[#allocation2 + $0x1e2] sm:$0xff]  ;;  %v518_v2 = vld [vmem:[#allocation2 + $0x78] sm:$0xff] }
  0x70   :  { %v3165_v43 = vld [vmem:[#allocation2 + $0x1ea] sm:$0xff]  ;;  %v519_v3 = vld [vmem:[#allocation2 + $0x80] sm:$0xff]  ;;  %v521_v6 = vld [vmem:[#allocation2 + $0x98] sm:$0xff] }
  0x71   :  { %v8659_v51 = vpack.c.bf16 %v3165_v43, %v3164_v42  ;;  %v8691_v7 = vpack.c.bf16 %v519_v3, %v518_v2  ;;  %v3174_v16 = vld [vmem:[#allocation2 + $0x25a] sm:$0xff]  ;;  %v3176_v27 = vld [vmem:[#allocation2 + $0x272] sm:$0xff]  ;;  %v3186_v2 = vld [vmem:[#allocation2 + $0x2ea] sm:$0xff] }
  0x72   :  { %v3177_v28 = vld [vmem:[#allocation2 + $0x27a] sm:$0xff]  ;;  %v3187_v3 = vld [vmem:[#allocation2 + $0x2f2] sm:$0xff] }
  0x73   :  { %v3182_v43 = vld [vmem:[#allocation2 + $0x2ba] sm:$0xff] }
  0x75   :  { %6913 = vmatmul.mubr.msk.bf16.gmra.mrb[32].mxu1 %vm21_vm1, %v686_v57  ;;  %v695_v57 = vpack.c.bf16 %v658_v53, %v657_v52  ;;  %v8662_v52 = vpack.c.bf16 %v3167_v46, %v3166_v45  ;;  %v8667_v53 = vld [vmem:[%s9647_s3 + $0x6] sm:$0x3] }
  0x76   :  { %6916 = vmatprep.mubr.msk.bf16.mxu1 %vm21_vm1, %v687_v60  ;;  %7211 = vmatmul.mubr.msk.bf16.vlgmr.msra.gmra.mrb[0].mxu0 %vm21_vm1, %v3195_v20  ;;  %v8618_v60 = vpack.c.bf16 %v3149_v56, %v3148_v55  ;;  %v661_v20 = vld [vmem:[#allocation2 + $0x2d1] sm:$0xff]  ;;  %v516_v56 = vld [vmem:[#allocation2 + $0x60] sm:$0xff] }
  0x77   :  { %7275 = vmatpush3.bf16.msra.mxu0 %v3876_v1  ;;  %7214 = vmatprep.mubr.msk.bf16.mxu0 %vm21_vm1, %v3196_v0  ;;  %v662_v0 = vld [vmem:[#allocation2 + $0x2d9] sm:$0xff]  ;;  %v696_v1 = vpack.c.bf16 %v660_v63, %v659_v62  ;;  %v515_v55 = vld [vmem:[#allocation2 + $0x50] sm:$0xff]  ;;  %v3183_v45 = vld [vmem:[#allocation2 + $0x2c2] sm:$0xff] }
  0x78   :  { %7994 = vmatprep.subr.msk.bf16.mxu0 %vm799_vm0, %v8585_v11  ;;  %v697_v4 = vpack.c.bf16 %v662_v0, %v661_v20  ;;  %v3170_v63 = vld [vmem:[#allocation2 + $0x22a] sm:$0xff]  ;;  %v3171_v20 = vld [vmem:[#allocation2 + $0x232] sm:$0xff]  ;;  %v8681_v0 = vpack.c.bf16 %v3169_v59, %v3168_v58 }
  0x79   :  { %v3184_v59 = vld [vmem:[#allocation2 + $0x2d2] sm:$0xff] }
  0x7d   :  { %6917 = vmatmul.mubr.msk.bf16.gmra.mrb[36].mxu1 %vm21_vm1, %v688_v48  ;;  %v664_v48 = vld [vmem:[#allocation2 + $0x2f1] sm:$0xff] }
  0x7e   :  { %6920 = vmatprep.mubr.msk.bf16.mxu1 %vm21_vm1, %v689_v17  ;;  %7215 = vmatmul.mubr.msk.bf16.gmra.mrb[4].mxu0 %vm21_vm1, %v3197_v23  ;;  %v698_v17 = vpack.c.bf16 %v664_v48, %v663_v13  ;;  %v3159_v23 = vld [vmem:[#allocation2 + $0x172] sm:$0xff]  ;;  %v3172_v13 = vld [vmem:[#allocation2 + $0x242] sm:$0xff]  ;;  %v3173_v48 = vld [vmem:[#allocation2 + $0x24a] sm:$0xff] }
  0x7f   :  { %7218 = vmatprep.mubr.msk.bf16.mxu0 %vm21_vm1, %v3198_v8  ;;  %v8641_v25 = vpack.c.bf16 %v3159_v23, %v3158_v22  ;;  %v667_v8 = vld [vmem:[#allocation2 + $0x319] sm:$0xff]  ;;  %v8697_v18 = vpack.c.bf16 %v3173_v48, %v3172_v13  ;;  %v523_v22 = vld [vmem:[#allocation2 + $0xb0] sm:$0xff] }
  0x80   :  { %v700_v29 = vpack.c.bf16 %v668_v26, %v667_v8  ;;  %v524_v23 = vld [vmem:[#allocation2 + $0xc0] sm:$0xff]  ;;  %v525_v8 = vld [vmem:[#allocation2 + $0xc8] sm:$0xff]  ;;  %v534_v13 = vld [vmem:[#allocation2 + $0x138] sm:$0xff] }
  0x81   :  { %v535_v48 = vld [vmem:[#allocation2 + $0x140] sm:$0xff] }
  0x85   :  { %6921 = vmatmul.mubr.msk.bf16.gmra.mrb[40].mxu1 %vm21_vm1, %v690_v9  ;;  %v3160_v9 = vld [vmem:[#allocation2 + $0x182] sm:$0xff] }
  0x86   :  { %6924 = vmatprep.mubr.msk.bf16.mxu1 %vm21_vm1, %v691_v32  ;;  %7219 = vmatmul.mubr.msk.bf16.gmra.mrb[8].mxu0 %vm21_vm1, %v3199_v35  ;;  %v3162_v32 = vld [vmem:[#allocation2 + $0x1ca] sm:$0xff]  ;;  %v3209_v34 = vpack.c.bf16 %v3161_v30, %v3160_v9  ;;  %v3179_v30 = vld [vmem:[#allocation2 + $0x292] sm:$0xff] }
  0x87   :  { %7222 = vmatprep.mubr.msk.bf16.mxu0 %vm21_vm1, %v8602_v36  ;;  %v8649_v35 = vpack.c.bf16 %v3163_v33, %v3162_v32  ;;  %v3178_v9 = vld [vmem:[#allocation2 + $0x28a] sm:$0xff]  ;;  %v526_v33 = vld [vmem:[#allocation2 + $0xd8] sm:$0xff] }
  0x88   :  { %v8717_v32 = vpack.c.bf16 %v3179_v30, %v3178_v9 }
  0x8d   :  { %6925 = vmatmul.mubr.msk.bf16.gmra.mrb[44].mxu1 %vm21_vm1, %v692_v41  ;;  %v573_v41 = vpack.c.bf16 %v511_v38, %v510_v37  ;;  %v528_v37 = vld [vmem:[#allocation2 + $0xf0] sm:$0xff]  ;;  %v529_v38 = vld [vmem:[#allocation2 + $0xf8] sm:$0xff] }
  0x8e   :  { %6928 = vmatprep.mubr.msk.bf16.mxu1 %vm21_vm1, %v693_v44  ;;  %7223 = vmatmul.mubr.msk.bf16.gmra.mrb[12].mxu0 %vm21_vm1, %v8608_v47  ;;  %v8655_v44 = vpack.c.bf16 %v513_v40, %v512_v39  ;;  %v3180_v40 = vld [vmem:[#allocation2 + $0x2a2] sm:$0xff]  ;;  %v8727_v42 = vpack.c.bf16 %v529_v38, %v528_v37  ;;  %v540_v37 = vld [vmem:[#allocation2 + $0x1b0] sm:$0xff]  ;;  %v541_v38 = vld [vmem:[#allocation2 + $0x1b8] sm:$0xff] }
  0x8f   :  { %7226 = vmatprep.mubr.msk.bf16.mxu0 %vm21_vm1, %v8611_v15 }
  0x95   :  { %6929 = vmatmul.mubr.msk.bf16.gmra.mrb[48].mxu1 %vm21_vm1, %v694_v54  ;;  %v514_v54 = vld [vmem:[#allocation2 + $0x48] sm:$0xff] }
  0x96   :  { %6932 = vmatprep.mubr.msk.bf16.mxu1 %vm21_vm1, %v695_v57  ;;  %7227 = vmatmul.mubr.msk.bf16.gmra.mrb[16].mxu0 %vm21_vm1, %v8618_v60  ;;  %v517_v57 = vld [vmem:[#allocation2 + $0x68] sm:$0xff]  ;;  %v8675_v49 = vpack.c.bf16 %v515_v55, %v514_v54  ;;  %v531_v55 = vld [vmem:[#allocation2 + $0x110] sm:$0xff] }
  0x97   :  { %7230 = vmatprep.mubr.msk.bf16.mxu0 %vm21_vm1, %v8621_v61  ;;  %v8679_v62 = vpack.c.bf16 %v517_v57, %v516_v56  ;;  %v530_v54 = vld [vmem:[#allocation2 + $0x108] sm:$0xff]  ;;  %v532_v56 = vld [vmem:[#allocation2 + $0x120] sm:$0xff] }
  0x98   :  { %v533_v57 = vld [vmem:[#allocation2 + $0x128] sm:$0xff]  ;;  %v8739_v58 = vpack.c.bf16 %v531_v55, %v530_v54 }
  0x99   :  { %v542_v55 = vld [vmem:[#allocation2 + $0x1c8] sm:$0xff] }
  0x9d   :  { %6933 = vmatmul.mubr.msk.bf16.gmra.mrb[52].mxu1 %vm21_vm1, %v696_v1  ;;  %v8685_v1 = vpack.c.bf16 %v3171_v20, %v3170_v63  ;;  %v3185_v63 = vld [vmem:[#allocation2 + $0x2da] sm:$0xff]  ;;  %v8743_v20 = vpack.c.bf16 %v533_v57, %v532_v56  ;;  %v543_v56 = vld [vmem:[#allocation2 + $0x1d0] sm:$0xff] }
  0x9e   :  { %6936 = vmatprep.mubr.msk.bf16.mxu1 %vm21_vm1, %v697_v4  ;;  %7231 = vmatmul.mubr.msk.bf16.gmra.mrb[20].mxu0 %vm21_vm1, %v8628_v10  ;;  %v520_v4 = vld [vmem:[#allocation2 + $0x90] sm:$0xff]  ;;  %v544_v57 = vld [vmem:[#allocation2 + $0x1e0] sm:$0xff] }
  0x9f   :  { %7234 = vmatprep.mubr.msk.bf16.mxu0 %vm21_vm1, %v8631_v12  ;;  %v8695_v14 = vpack.c.bf16 %v521_v6, %v520_v4  ;;  %v8745_v4 = vpack.c.bf16 %v3185_v63, %v3184_v59  ;;  %v8749_v6 = vpack.c.bf16 %v3187_v3, %v3186_v2  ;;  %v545_v59 = vld [vmem:[#allocation2 + $0x1e8] sm:$0xff]  ;;  %v589_v63 = vpack.c.bf16 %v543_v56, %v542_v55  ;;  %v562_v56 = vld [vmem:[#allocation2 + $0x2b8] sm:$0xff] }
  0xa0   :  { %v8781_v2 = vpack.c.bf16 %v545_v59, %v544_v57  ;;  %v4426_v3 = vsel %vm799_vm0, %v8585_v11, 0  ;;  %v561_v55 = vld [vmem:[#allocation2 + $0x2a8] sm:$0xff]  ;;  %v563_v57 = vld [vmem:[#allocation2 + $0x2c0] sm:$0xff]  ;;  %v564_v59 = vld [vmem:[#allocation2 + $0x2d0] sm:$0xff] }
  0xa5   :  { %6937 = vmatmul.mubr.msk.bf16.gmra.mrb[56].mxu1 %vm21_vm1, %v698_v17  ;;  %v3175_v17 = vld [vmem:[#allocation2 + $0x262] sm:$0xff] }
  0xa6   :  { %6940 = vmatprep.mubr.msk.bf16.mxu1 %vm21_vm1, %v699_v21  ;;  %7235 = vmatmul.mubr.msk.bf16.gmra.mrb[24].mxu0 %vm21_vm1, %v8638_v24  ;;  %v8701_v19 = vpack.c.bf16 %v3175_v17, %v3174_v16  ;;  %v522_v21 = vld [vmem:[#allocation2 + $0xa8] sm:$0xff]  ;;  %v536_v16 = vld [vmem:[#allocation2 + $0x150] sm:$0xff]  ;;  %v537_v17 = vld [vmem:[#allocation2 + $0x158] sm:$0xff] }
  0xa7   :  { %7238 = vmatprep.mubr.msk.bf16.mxu0 %vm21_vm1, %v8641_v25  ;;  %v8707_v26 = vpack.c.bf16 %v523_v22, %v522_v21  ;;  %v8755_v21 = vpack.c.bf16 %v535_v48, %v534_v13  ;;  %v3188_v22 = vld [vmem:[#allocation2 + $0x302] sm:$0xff]  ;;  %v546_v13 = vld [vmem:[#allocation2 + $0x1f8] sm:$0xff] }
  0xa8   :  { %v547_v48 = vld [vmem:[#allocation2 + $0x200] sm:$0xff] }
  0xad   :  { %6941 = vmatmul.mubr.msk.bf16.gmra.mrb[60].mxu1 %vm21_vm1, %v700_v29  ;;  %v8711_v29 = vpack.c.bf16 %v525_v8, %v524_v23  ;;  %v3189_v23 = vld [vmem:[#allocation2 + $0x30a] sm:$0xff]  ;;  %v8759_v8 = vpack.c.bf16 %v537_v17, %v536_v16  ;;  %v549_v17 = vld [vmem:[#allocation2 + $0x218] sm:$0xff] }
  0xae   :  { %6946 = vmatprep.mubr.msk.bf16.mxu1 %vm21_vm1, %v572_v31  ;;  %7239 = vmatmul.mubr.msk.bf16.gmra.mrb[28].mxu0 %vm21_vm1, %v3209_v34  ;;  %v8713_v31 = vpack.c.bf16 %v3177_v28, %v3176_v27  ;;  %v527_v34 = vld [vmem:[#allocation2 + $0xe0] sm:$0xff]  ;;  %v8761_v9 = vpack.c.bf16 %v3189_v23, %v3188_v22  ;;  %v548_v16 = vld [vmem:[#allocation2 + $0x210] sm:$0xff]  ;;  %v550_v23 = vld [vmem:[#allocation2 + $0x228] sm:$0xff] }
  0xaf   :  { %7242 = vmatprep.mubr.msk.bf16.mxu0 %vm21_vm1, %v8649_v35  ;;  %v8723_v39 = vpack.c.bf16 %v527_v34, %v526_v33  ;;  %v3190_v27 = vld [vmem:[#allocation2 + $0x31a] sm:$0xff]  ;;  %v3191_v28 = vld [vmem:[#allocation2 + $0x322] sm:$0xff]  ;;  %v539_v34 = vld [vmem:[#allocation2 + $0x170] sm:$0xff]  ;;  %v8799_v11 = vpack.c.bf16 %v549_v17, %v548_v16 }
  0xb0   :  { %v8765_v30 = vpack.c.bf16 %v3191_v28, %v3190_v27  ;;  %v538_v33 = vld [vmem:[#allocation2 + $0x168] sm:$0xff]  ;;  %v8791_v22 = vld [vmem:[%s9647_s3 + $0x10] sm:$0x3]  ;;  %v3709_v17 = vld [vmem:[#allocation2 + $0x180] sm:$0xff] }
  0xb1   :  { %v551_v27 = vld [vmem:[#allocation2 + $0x230] sm:$0xff]  ;;  %v553_v28 = vld [vmem:[#allocation2 + $0x248] sm:$0xff] }
  0xb2   :  { %v569_v16 = vld [vmem:[#allocation2 + $0x308] sm:$0xff] }
  0xb5   :  { %6947 = vmatmul.mubr.msk.bf16.vlgmr.msra.gmra.mrb[0].mxu1 %vm21_vm1, %v573_v41  ;;  %v3181_v41 = vld [vmem:[#allocation2 + $0x2aa] sm:$0xff] }
  0xb6   :  { %7011 = vmatpush3.bf16.msra.mxu1 %v1675_v50  ;;  %6950 = vmatprep.mubr.msk.bf16.mxu1 %vm21_vm1, %v8655_v44  ;;  %v8729_v46 = vpack.c.bf16 %v3181_v41, %v3180_v40  ;;  %v8733_v50 = vpack.c.bf16 %v3183_v45, %v3182_v43  ;;  %v8771_v40 = vpack.c.bf16 %v539_v34, %v538_v33  ;;  %v3192_v41 = vld [vmem:[#allocation2 + $0x332] sm:$0xff]  ;;  %v3193_v43 = vld [vmem:[#allocation2 + $0x33a] sm:$0xff] }
  0xb7   :  { %7989 = vmatprep.subr.msk.bf16.mxu1 %vm799_vm0, %v8667_v53  ;;  %7243 = vmatmul.mubr.msk.bf16.gmra.mrb[32].mxu0 %vm21_vm1, %v8659_v51  ;;  %v588_v45 = vpack.c.bf16 %v541_v38, %v540_v37  ;;  %v3225_v54 = vpack.c.bf16 %v3193_v43, %v3192_v41  ;;  %v8809_v33 = vpack.c.bf16 %v551_v27, %v550_v23  ;;  %v554_v34 = vld [vmem:[#allocation2 + $0x258] sm:$0xff]  ;;  %v555_v37 = vld [vmem:[#allocation2 + $0x260] sm:$0xff]  ;;  %v556_v38 = vld [vmem:[#allocation2 + $0x270] sm:$0xff] }
  0xb8   :  { %7246 = vmatprep.mubr.msk.bf16.mxu0 %vm21_vm1, %v8662_v52  ;;  %v557_v41 = vld [vmem:[#allocation2 + $0x278] sm:$0xff]  ;;  %v558_v43 = vld [vmem:[#allocation2 + $0x288] sm:$0xff] }
  0xb9   :  { %v3710_v23 = vld [vmem:[#allocation2 + $0x188] sm:$0xff] }
  0xba   :  { %v8865_v27 = vpack.c.bf16 %v3710_v23, %v3709_v17  ;;  %v1490_v23 = vld [vmem:[#allocation2 + $0x7a] sm:$0xff] }
  0xbd   :  { %6951 = vmatmul.mubr.msk.bf16.gmra.mrb[4].mxu1 %vm21_vm1, %v8675_v49 }
  0xbe   :  { %6954 = vmatprep.mubr.msk.bf16.mxu1 %vm21_vm1, %v8679_v62 }
  0xbf   :  { %7247 = vmatmul.mubr.msk.bf16.gmra.mrb[36].mxu0 %vm21_vm1, %v8681_v0 }
  0xc0   :  { %7250 = vmatprep.mubr.msk.bf16.mxu0 %vm21_vm1, %v8685_v1 }
  0xc5   :  { %6955 = vmatmul.mubr.msk.bf16.gmra.mrb[8].mxu1 %vm21_vm1, %v8691_v7 }
  0xc6   :  { %6958 = vmatprep.mubr.msk.bf16.mxu1 %vm21_vm1, %v8695_v14 }
  0xc7   :  { %7251 = vmatmul.mubr.msk.bf16.gmra.mrb[40].mxu0 %vm21_vm1, %v8697_v18 }
  0xc8   :  { %7254 = vmatprep.mubr.msk.bf16.mxu0 %vm21_vm1, %v8701_v19 }
  0xcd   :  { %6959 = vmatmul.mubr.msk.bf16.gmra.mrb[12].mxu1 %vm21_vm1, %v8707_v26 }
  0xce   :  { %6962 = vmatprep.mubr.msk.bf16.mxu1 %vm21_vm1, %v8711_v29 }
  0xcf   :  { %7255 = vmatmul.mubr.msk.bf16.gmra.mrb[44].mxu0 %vm21_vm1, %v8713_v31 }
  0xd0   :  { %7258 = vmatprep.mubr.msk.bf16.mxu0 %vm21_vm1, %v8717_v32 }
  0xd5   :  { %6963 = vmatmul.mubr.msk.bf16.gmra.mrb[16].mxu1 %vm21_vm1, %v8723_v39 }
  0xd6   :  { %6966 = vmatprep.mubr.msk.bf16.mxu1 %vm21_vm1, %v8727_v42 }
  0xd7   :  { %7259 = vmatmul.mubr.msk.bf16.gmra.mrb[48].mxu0 %vm21_vm1, %v8729_v46 }
  0xd8   :  { %7262 = vmatprep.mubr.msk.bf16.mxu0 %vm21_vm1, %v8733_v50 }
  0xdd   :  { %6967 = vmatmul.mubr.msk.bf16.gmra.mrb[20].mxu1 %vm21_vm1, %v8739_v58 }
  0xde   :  { %6970 = vmatprep.mubr.msk.bf16.mxu1 %vm21_vm1, %v8743_v20 }
  0xdf   :  { %7263 = vmatmul.mubr.msk.bf16.gmra.mrb[52].mxu0 %vm21_vm1, %v8745_v4 }
  0xe0   :  { %7266 = vmatprep.mubr.msk.bf16.mxu0 %vm21_vm1, %v8749_v6 }
  0xe5   :  { %6971 = vmatmul.mubr.msk.bf16.gmra.mrb[24].mxu1 %vm21_vm1, %v8755_v21 }
  0xe6   :  { %6974 = vmatprep.mubr.msk.bf16.mxu1 %vm21_vm1, %v8759_v8 }
  0xe7   :  { %7267 = vmatmul.mubr.msk.bf16.gmra.mrb[56].mxu0 %vm21_vm1, %v8761_v9 }
  0xe8   :  { %7270 = vmatprep.mubr.msk.bf16.mxu0 %vm21_vm1, %v8765_v30 }
  0xed   :  { %6975 = vmatmul.mubr.msk.bf16.gmra.mrb[28].mxu1 %vm21_vm1, %v8771_v40 }
  0xee   :  { %6978 = vmatprep.mubr.msk.bf16.mxu1 %vm21_vm1, %v588_v45  ;;  %v559_v45 = vld [vmem:[#allocation2 + $0x290] sm:$0xff] }
  0xef   :  { %7271 = vmatmul.mubr.msk.bf16.gmra.mrb[60].mxu0 %vm21_vm1, %v3225_v54  ;;  %v560_v54 = vld [vmem:[#allocation2 + $0x2a0] sm:$0xff] }
  0xf0   :  { %7276 = vmatprep.mubr.msk.bf16.mxu0 %vm21_vm1, %v8655_v44  ;;  %v8795_v44 = vpack.c.bf16 %v547_v48, %v546_v13  ;;  %v567_v13 = vld [vmem:[#allocation2 + $0x2f0] sm:$0xff]  ;;  %v568_v48 = vld [vmem:[#allocation2 + $0x300] sm:$0xff] }
  0xf5   :  { %6979 = vmatmul.mubr.msk.bf16.gmra.mrb[32].mxu1 %vm21_vm1, %v589_v63  ;;  %v565_v63 = vld [vmem:[#allocation2 + $0x2d8] sm:$0xff] }
  0xf6   :  { %6982 = vmatprep.mubr.msk.bf16.mxu1 %vm21_vm1, %v8781_v2 }
  0xf7   :  { %7277 = vmatmul.mubr.msk.bf16.vlgmr.msra.gmra.mrb[0].mxu0 %vm21_vm1, %v8675_v49  ;;  %v552_v49 = vld [vmem:[#allocation2 + $0x240] sm:$0xff] }
  0xf8   :  { %7341 = vmatpush3.bf16.msra.mxu0 %v4426_v3  ;;  %7280 = vmatprep.mubr.msk.bf16.mxu0 %vm21_vm1, %v8679_v62  ;;  %v8813_v62 = vpack.c.bf16 %v553_v28, %v552_v49  ;;  %v566_v3 = vld [vmem:[#allocation2 + $0x2e8] sm:$0xff]  ;;  %v570_v49 = vld [vmem:[#allocation2 + $0x318] sm:$0xff]  ;;  %v571_v28 = vld [vmem:[#allocation2 + $0x320] sm:$0xff] }
  0xf9   :  { %7995 = vmatprep.subr.msk.bf16.mxu0 %vm799_vm0, %v8791_v22 }
  0xfd   :  { %6983 = vmatmul.mubr.msk.bf16.gmra.mrb[36].mxu1 %vm21_vm1, %v8795_v44 }
  0xfe   :  { %6986 = vmatprep.mubr.msk.bf16.mxu1 %vm21_vm1, %v8799_v11 }
  0xff   :  { %7281 = vmatmul.mubr.msk.bf16.gmra.mrb[4].mxu0 %vm21_vm1, %v8691_v7  ;;  %v8821_v7 = vpack.c.bf16 %v555_v37, %v554_v34  ;;  %v1481_v34 = vld [vmem:[#allocation2 + $0xa] sm:$0xff]  ;;  %v3711_v37 = vld [vmem:[#allocation2 + $0x198] sm:$0xff] }
 0x100   :  { %7284 = vmatprep.mubr.msk.bf16.mxu0 %vm21_vm1, %v8695_v14  ;;  %v8825_v14 = vpack.c.bf16 %v557_v41, %v556_v38  ;;  %v3712_v38 = vld [vmem:[#allocation2 + $0x1a0] sm:$0xff] }
 0x105   :  { %6987 = vmatmul.mubr.msk.bf16.gmra.mrb[40].mxu1 %vm21_vm1, %v8809_v33 }
 0x106   :  { %6990 = vmatprep.mubr.msk.bf16.mxu1 %vm21_vm1, %v8813_v62 }
 0x107   :  { %7285 = vmatmul.mubr.msk.bf16.gmra.mrb[8].mxu0 %vm21_vm1, %v8707_v26  ;;  %v8833_v26 = vpack.c.bf16 %v559_v45, %v558_v43  ;;  %v3760_v43 = vpack.c.bf16 %v3712_v38, %v3711_v37  ;;  %v1482_v45 = vld [vmem:[#allocation2 + $0x1a] sm:$0xff]  ;;  %v4236_v38 = vld [vmem:[#allocation2 + $0x69] sm:$0xff] }
 0x108   :  { %7288 = vmatprep.mubr.msk.bf16.mxu0 %vm21_vm1, %v8711_v29  ;;  %v8837_v29 = vpack.c.bf16 %v561_v55, %v560_v54  ;;  %v1483_v54 = vld [vmem:[#allocation2 + $0x22] sm:$0xff]  ;;  %v1484_v55 = vld [vmem:[#allocation2 + $0x32] sm:$0xff] }
 0x109   :  { %v4235_v37 = vld [vmem:[#allocation2 + $0x61] sm:$0xff] }
 0x10d   :  { %6991 = vmatmul.mubr.msk.bf16.gmra.mrb[44].mxu1 %vm21_vm1, %v8821_v7 }
 0x10e   :  { %6994 = vmatprep.mubr.msk.bf16.mxu1 %vm21_vm1, %v8825_v14 }
 0x10f   :  { %7289 = vmatmul.mubr.msk.bf16.gmra.mrb[12].mxu0 %vm21_vm1, %v8723_v39  ;;  %v8845_v39 = vpack.c.bf16 %v563_v57, %v562_v56  ;;  %v1485_v56 = vld [vmem:[#allocation2 + $0x3a] sm:$0xff] }
 0x110   :  { %7292 = vmatprep.mubr.msk.bf16.mxu0 %vm21_vm1, %v8727_v42  ;;  %v8849_v42 = vpack.c.bf16 %v565_v63, %v564_v59  ;;  %v8881_v57 = vpack.c.bf16 %v1485_v56, %v1484_v55  ;;  %v2225_v59 = vsel %vm799_vm0, %v8667_v53, 0  ;;  %v1486_v63 = vld [vmem:[#allocation2 + $0x4a] sm:$0xff]  ;;  %v4240_v56 = vld [vmem:[#allocation2 + $0x99] sm:$0xff] }
 0x111   :  { %v4239_v55 = vld [vmem:[#allocation2 + $0x91] sm:$0xff] }
 0x115   :  { %6995 = vmatmul.mubr.msk.bf16.gmra.mrb[48].mxu1 %vm21_vm1, %v8833_v26 }
 0x116   :  { %6998 = vmatprep.mubr.msk.bf16.mxu1 %vm21_vm1, %v8837_v29 }
 0x117   :  { %7293 = vmatmul.mubr.msk.bf16.gmra.mrb[16].mxu0 %vm21_vm1, %v8739_v58  ;;  %v8857_v58 = vpack.c.bf16 %v567_v13, %v566_v3  ;;  %v1487_v3 = vld [vmem:[#allocation2 + $0x52] sm:$0xff]  ;;  %v1488_v13 = vld [vmem:[#allocation2 + $0x62] sm:$0xff] }
 0x118   :  { %7296 = vmatprep.mubr.msk.bf16.mxu0 %vm21_vm1, %v8743_v20  ;;  %v8861_v20 = vpack.c.bf16 %v569_v16, %v568_v48  ;;  %v1489_v48 = vld [vmem:[#allocation2 + $0x6a] sm:$0xff]  ;;  %v7997_v16 = vld [vmem:[%s9647_s3 + $0x8] sm:$0x3]  ;;  %v8894_v53 = vpack.c.bf16 %v1487_v3, %v1486_v63 }
 0x119   :  { %v8898_v17 = vpack.c.bf16 %v1489_v48, %v1488_v13  ;;  %v4244_v63 = vld [vmem:[#allocation2 + $0xc9] sm:$0xff]  ;;  %v4247_v48 = vld [vmem:[#allocation2 + $0xf1] sm:$0xff] }
 0x11d   :  { %6999 = vmatmul.mubr.msk.bf16.gmra.mrb[52].mxu1 %vm21_vm1, %v8845_v39 }
 0x11e   :  { %7002 = vmatprep.mubr.msk.bf16.mxu1 %vm21_vm1, %v8849_v42 }
 0x11f   :  { %7297 = vmatmul.mubr.msk.bf16.gmra.mrb[20].mxu0 %vm21_vm1, %v8755_v21  ;;  %v1480_v21 = vld [vmem:[#allocation2 + $0x2] sm:$0xff] }
 0x120   :  { %7300 = vmatprep.mubr.msk.bf16.mxu0 %vm21_vm1, %v8759_v8  ;;  %v8871_v8 = vpack.c.bf16 %v571_v28, %v570_v49  ;;  %v1544_v41 = vpack.c.bf16 %v1481_v34, %v1480_v21  ;;  %v1491_v49 = vld [vmem:[#allocation2 + $0x82] sm:$0xff]  ;;  %v1492_v28 = vld [vmem:[#allocation2 + $0x92] sm:$0xff]  ;;  %v1493_v21 = vld [vmem:[#allocation2 + $0x9a] sm:$0xff] }
 0x121   :  { %v8910_v34 = vpack.c.bf16 %v1493_v21, %v1492_v28  ;;  %v4251_v28 = vld [vmem:[#allocation2 + $0x121] sm:$0xff]  ;;  %v4252_v21 = vld [vmem:[#allocation2 + $0x129] sm:$0xff] }
 0x125   :  { %7003 = vmatmul.mubr.msk.bf16.gmra.mrb[56].mxu1 %vm21_vm1, %v8857_v58 }
 0x126   :  { %7006 = vmatprep.mubr.msk.bf16.mxu1 %vm21_vm1, %v8861_v20 }
 0x127   :  { %7301 = vmatmul.mubr.msk.bf16.gmra.mrb[24].mxu0 %vm21_vm1, %v8771_v40  ;;  %v1545_v40 = vpack.c.bf16 %v1483_v54, %v1482_v45  ;;  %v4976_v45 = vsel %vm799_vm0, %v8791_v22, 0  ;;  %v4238_v54 = vld [vmem:[#allocation2 + $0x81] sm:$0xff]  ;;  %v4242_v22 = vld [vmem:[#allocation2 + $0xb1] sm:$0xff] }
 0x128   :  { %7304 = vmatprep.mubr.msk.bf16.mxu0 %vm21_vm1, %v8865_v27 }
 0x12d   :  { %7007 = vmatmul.mubr.msk.bf16.gmra.mrb[60].mxu1 %vm21_vm1, %v8871_v8 }
 0x12e   :  { %7012 = vmatprep.mubr.msk.bf16.mxu1 %vm21_vm1, %v1544_v41 }
 0x12f   :  { %7305 = vmatmul.mubr.msk.bf16.gmra.mrb[28].mxu0 %vm21_vm1, %v3760_v43  ;;  %v4297_v43 = vpack.c.bf16 %v4236_v38, %v4235_v37  ;;  %v4263_v37 = vld [vmem:[#allocation2 + $0x1e1] sm:$0xff]  ;;  %v4264_v38 = vld [vmem:[#allocation2 + $0x1e9] sm:$0xff] }
 0x130   :  { %7308 = vmatprep.mubr.msk.bf16.mxu0 %vm21_vm1, %v8781_v2 }
 0x135   :  { %7013 = vmatmul.mubr.msk.bf16.vlgmr.msra.gmra.mrb[0].mxu1 %vm21_vm1, %v1545_v40 }
 0x136   :  { %7077 = vmatpush3.bf16.msra.mxu1 %v2225_v59  ;;  %7016 = vmatprep.mubr.msk.bf16.mxu1 %vm21_vm1, %v8881_v57  ;;  %v4243_v59 = vld [vmem:[#allocation2 + $0xc1] sm:$0xff] }
 0x137   :  { %7991 = vmatprep.subr.msk.bf16.mxu1 %vm799_vm0, %v7997_v16  ;;  %7309 = vmatmul.mubr.msk.bf16.gmra.mrb[32].mxu0 %vm21_vm1, %v8795_v44  ;;  %v8906_v44 = vpack.c.bf16 %v1491_v49, %v1490_v23  ;;  %v4301_v13 = vpack.c.bf16 %v4244_v63, %v4243_v59  ;;  %v4248_v16 = vld [vmem:[#allocation2 + $0xf9] sm:$0xff]  ;;  %v2037_v63 = vld [vmem:[#allocation2 + $0x68] sm:$0xff] }
 0x138   :  { %7312 = vmatprep.mubr.msk.bf16.mxu0 %vm21_vm1, %v8799_v11  ;;  %v4303_v49 = vpack.c.bf16 %v4248_v16, %v4247_v48  ;;  %v2036_v59 = vld [vmem:[#allocation2 + $0x60] sm:$0xff]  ;;  %v4270_v48 = vld [vmem:[#allocation2 + $0x231] sm:$0xff] }
 0x13d   :  { %7017 = vmatmul.mubr.msk.bf16.gmra.mrb[4].mxu1 %vm21_vm1, %v8894_v53 }
 0x13e   :  { %7020 = vmatprep.mubr.msk.bf16.mxu1 %vm21_vm1, %v8898_v17 }
 0x13f   :  { %7313 = vmatmul.mubr.msk.bf16.gmra.mrb[36].mxu0 %vm21_vm1, %v8809_v33  ;;  %v3744_v33 = vld [vmem:[#allocation2 + $0x350] sm:$0xff] }
 0x140   :  { %7316 = vmatprep.mubr.msk.bf16.mxu0 %vm21_vm1, %v8813_v62 }
 0x145   :  { %7021 = vmatmul.mubr.msk.bf16.gmra.mrb[8].mxu1 %vm21_vm1, %v8906_v44 }
 0x146   :  { %7024 = vmatprep.mubr.msk.bf16.mxu1 %vm21_vm1, %v8910_v34 }
 0x147   :  { %7317 = vmatmul.mubr.msk.bf16.gmra.mrb[40].mxu0 %vm21_vm1, %v8821_v7 }
 0x148   :  { %7320 = vmatprep.mubr.msk.bf16.mxu0 %vm21_vm1, %v8825_v14 }
 0x14d   :  { %7025 = vmatmul.mubr.msk.bf16.gmra.mrb[12].mxu1 %vm21_vm1, %v8602_v36  ;;  %v3741_v36 = vld [vmem:[#allocation2 + $0x330] sm:$0xff] }
 0x14e   :  { %7028 = vmatprep.mubr.msk.bf16.mxu1 %vm21_vm1, %v8608_v47  ;;  %v3742_v47 = vld [vmem:[#allocation2 + $0x338] sm:$0xff] }
 0x14f   :  { %7321 = vmatmul.mubr.msk.bf16.gmra.mrb[44].mxu0 %vm21_vm1, %v8833_v26  ;;  %v4231_v26 = vld [vmem:[#allocation2 + $0x31] sm:$0xff] }
 0x150   :  { %7324 = vmatprep.mubr.msk.bf16.mxu0 %vm21_vm1, %v8837_v29 }
 0x155   :  { %7029 = vmatmul.mubr.msk.bf16.gmra.mrb[16].mxu1 %vm21_vm1, %v8611_v15  ;;  %v8946_v15 = vpack.c.bf16 %v3742_v47, %v3741_v36  ;;  %v4305_v47 = vpack.c.bf16 %v4252_v21, %v4251_v28  ;;  %v2041_v28 = vld [vmem:[#allocation2 + $0x98] sm:$0xff]  ;;  %v2042_v21 = vld [vmem:[#allocation2 + $0xa8] sm:$0xff] }
 0x156   :  { %7032 = vmatprep.mubr.msk.bf16.mxu1 %vm21_vm1, %v8618_v60  ;;  %v1512_v60 = vld [vmem:[#allocation2 + $0x1b2] sm:$0xff] }
 0x157   :  { %7325 = vmatmul.mubr.msk.bf16.gmra.mrb[48].mxu0 %vm21_vm1, %v8845_v39  ;;  %v4232_v39 = vld [vmem:[#allocation2 + $0x39] sm:$0xff] }
 0x158   :  { %7328 = vmatprep.mubr.msk.bf16.mxu0 %vm21_vm1, %v8849_v42 }
 0x15d   :  { %7033 = vmatmul.mubr.msk.bf16.gmra.mrb[20].mxu1 %vm21_vm1, %v8621_v61  ;;  %v1513_v61 = vld [vmem:[#allocation2 + $0x1ba] sm:$0xff] }
 0x15e   :  { %7036 = vmatprep.mubr.msk.bf16.mxu1 %vm21_vm1, %v8628_v10  ;;  %v3743_v10 = vld [vmem:[#allocation2 + $0x348] sm:$0xff]  ;;  %v1560_v7 = vpack.c.bf16 %v1513_v61, %v1512_v60  ;;  %v4255_v60 = vld [vmem:[#allocation2 + $0x151] sm:$0xff]  ;;  %v4256_v61 = vld [vmem:[#allocation2 + $0x159] sm:$0xff] }
 0x15f   :  { %7329 = vmatmul.mubr.msk.bf16.gmra.mrb[52].mxu0 %vm21_vm1, %v8857_v58  ;;  %v3776_v58 = vpack.c.bf16 %v3744_v33, %v3743_v10  ;;  %v4307_v33 = vpack.c.bf16 %v4256_v61, %v4255_v60  ;;  %v4275_v61 = vld [vmem:[#allocation2 + $0x271] sm:$0xff] }
 0x160   :  { %7332 = vmatprep.mubr.msk.bf16.mxu0 %vm21_vm1, %v8861_v20 }
 0x165   :  { %7037 = vmatmul.mubr.msk.bf16.gmra.mrb[24].mxu1 %vm21_vm1, %v8631_v12  ;;  %v4295_v12 = vpack.c.bf16 %v4232_v39, %v4231_v26  ;;  %v4260_v26 = vld [vmem:[#allocation2 + $0x189] sm:$0xff] }
 0x166   :  { %7040 = vmatprep.mubr.msk.bf16.mxu1 %vm21_vm1, %v8638_v24  ;;  %v4233_v24 = vld [vmem:[#allocation2 + $0x49] sm:$0xff] }
 0x167   :  { %7333 = vmatmul.mubr.msk.bf16.gmra.mrb[56].mxu0 %vm21_vm1, %v8871_v8  ;;  %v4234_v8 = vld [vmem:[#allocation2 + $0x51] sm:$0xff] }
 0x168   :  { %7336 = vmatprep.mubr.msk.bf16.mxu0 %vm21_vm1, %v8946_v15  ;;  %v4296_v41 = vpack.c.bf16 %v4234_v8, %v4233_v24  ;;  %v4262_v24 = vld [vmem:[#allocation2 + $0x1a1] sm:$0xff] }
 0x16d   :  { %7041 = vmatmul.mubr.msk.bf16.gmra.mrb[28].mxu1 %vm21_vm1, %v8641_v25  ;;  %v4237_v25 = vld [vmem:[#allocation2 + $0x79] sm:$0xff] }
 0x16e   :  { %7044 = vmatprep.mubr.msk.bf16.mxu1 %vm21_vm1, %v1560_v7  ;;  %v4298_v40 = vpack.c.bf16 %v4238_v54, %v4237_v25  ;;  %v4259_v7 = vld [vmem:[#allocation2 + $0x181] sm:$0xff]  ;;  %v2035_v25 = vld [vmem:[#allocation2 + $0x50] sm:$0xff] }
 0x16f   :  { %7337 = vmatmul.mubr.msk.bf16.gmra.mrb[60].mxu0 %vm21_vm1, %v3776_v58  ;;  %v4309_v58 = vpack.c.bf16 %v4260_v26, %v4259_v7  ;;  %v2045_v7 = vld [vmem:[#allocation2 + $0xc8] sm:$0xff]  ;;  %v2046_v26 = vld [vmem:[#allocation2 + $0xd8] sm:$0xff] }
 0x170   :  { %7342 = vmatprep.mubr.msk.bf16.mxu0 %vm21_vm1, %v4295_v12  ;;  %v2031_v12 = vld [vmem:[#allocation2 + $0x20] sm:$0xff] }
 0x175   :  { %7045 = vmatmul.mubr.msk.bf16.gmra.mrb[32].mxu1 %vm21_vm1, %v8649_v35  ;;  %v4299_v35 = vpack.c.bf16 %v4240_v56, %v4239_v55  ;;  %v4265_v55 = vld [vmem:[#allocation2 + $0x1f9] sm:$0xff]  ;;  %v4266_v56 = vld [vmem:[#allocation2 + $0x201] sm:$0xff] }
 0x176   :  { %7048 = vmatprep.mubr.msk.bf16.mxu1 %vm21_vm1, %v8659_v51  ;;  %v4241_v51 = vld [vmem:[#allocation2 + $0xa9] sm:$0xff] }
 0x177   :  { %7343 = vmatmul.mubr.msk.bf16.vlgmr.msra.gmra.mrb[0].mxu0 %vm21_vm1, %v4296_v41  ;;  %v4300_v3 = vpack.c.bf16 %v4242_v22, %v4241_v51  ;;  %v4268_v51 = vld [vmem:[#allocation2 + $0x219] sm:$0xff] }
 0x178   :  { %7407 = vmatpush3.bf16.msra.mxu0 %v4976_v45  ;;  %7346 = vmatprep.mubr.msk.bf16.mxu0 %vm21_vm1, %v4297_v43  ;;  %v2033_v43 = vld [vmem:[#allocation2 + $0x38] sm:$0xff]  ;;  %v2034_v45 = vld [vmem:[#allocation2 + $0x48] sm:$0xff] }
 0x17d   :  { %7049 = vmatmul.mubr.msk.bf16.gmra.mrb[36].mxu1 %vm21_vm1, %v8662_v52  ;;  %v4245_v52 = vld [vmem:[#allocation2 + $0xd9] sm:$0xff] }
 0x17e   :  { %7052 = vmatprep.mubr.msk.bf16.mxu1 %vm21_vm1, %v8681_v0  ;;  %v4246_v0 = vld [vmem:[#allocation2 + $0xe1] sm:$0xff] }
 0x17f   :  { %7347 = vmatmul.mubr.msk.bf16.gmra.mrb[4].mxu0 %vm21_vm1, %v4298_v40  ;;  %v4302_v23 = vpack.c.bf16 %v4246_v0, %v4245_v52  ;;  %v2096_v40 = vpack.c.bf16 %v2035_v25, %v2034_v45  ;;  %v2097_v52 = vpack.c.bf16 %v2037_v63, %v2036_v59  ;;  %v4269_v0 = vld [vmem:[#allocation2 + $0x229] sm:$0xff]  ;;  %v2052_v63 = vld [vmem:[#allocation2 + $0x120] sm:$0xff] }
 0x180   :  { %7350 = vmatprep.mubr.msk.bf16.mxu0 %vm21_vm1, %v4299_v35  ;;  %v4267_v35 = vld [vmem:[#allocation2 + $0x211] sm:$0xff] }
 0x181   :  { %v9014_v22 = vpack.c.bf16 %v4268_v51, %v4267_v35  ;;  %v2051_v45 = vld [vmem:[#allocation2 + $0x110] sm:$0xff]  ;;  %v4284_v35 = vld [vmem:[#allocation2 + $0x2d9] sm:$0xff] }
 0x185   :  { %7053 = vmatmul.mubr.msk.bf16.gmra.mrb[40].mxu1 %vm21_vm1, %v8685_v1  ;;  %v4249_v1 = vld [vmem:[#allocation2 + $0x109] sm:$0xff] }
 0x186   :  { %7056 = vmatprep.mubr.msk.bf16.mxu1 %vm21_vm1, %v8697_v18  ;;  %v4250_v18 = vld [vmem:[#allocation2 + $0x111] sm:$0xff] }
 0x187   :  { %7351 = vmatmul.mubr.msk.bf16.gmra.mrb[8].mxu0 %vm21_vm1, %v4300_v3  ;;  %v4304_v36 = vpack.c.bf16 %v4250_v18, %v4249_v1  ;;  %v2038_v3 = vld [vmem:[#allocation2 + $0x78] sm:$0xff]  ;;  %v9022_v1 = vpack.c.bf16 %v4270_v48, %v4269_v0  ;;  %v2040_v18 = vld [vmem:[#allocation2 + $0x90] sm:$0xff] }
 0x188   :  { %7354 = vmatprep.mubr.msk.bf16.mxu0 %vm21_vm1, %v4301_v13  ;;  %v2039_v13 = vld [vmem:[#allocation2 + $0x80] sm:$0xff]  ;;  %v4285_v48 = vld [vmem:[#allocation2 + $0x2e9] sm:$0xff] }
 0x189   :  { %v2098_v16 = vpack.c.bf16 %v2039_v13, %v2038_v3  ;;  %v2053_v3 = vld [vmem:[#allocation2 + $0x128] sm:$0xff]  ;;  %v2054_v13 = vld [vmem:[#allocation2 + $0x138] sm:$0xff] }
 0x18a   :  { %v2105_v0 = vpack.c.bf16 %v2053_v3, %v2052_v63  ;;  %v2078_v63 = vld [vmem:[#allocation2 + $0x288] sm:$0xff]  ;;  %v2079_v3 = vld [vmem:[#allocation2 + $0x290] sm:$0xff] }
 0x18d   :  { %7057 = vmatmul.mubr.msk.bf16.gmra.mrb[44].mxu1 %vm21_vm1, %v8701_v19  ;;  %v4253_v19 = vld [vmem:[#allocation2 + $0x139] sm:$0xff] }
 0x18e   :  { %7060 = vmatprep.mubr.msk.bf16.mxu1 %vm21_vm1, %v8713_v31  ;;  %v4254_v31 = vld [vmem:[#allocation2 + $0x141] sm:$0xff] }
 0x18f   :  { %7355 = vmatmul.mubr.msk.bf16.gmra.mrb[12].mxu0 %vm21_vm1, %v4302_v23  ;;  %v4306_v10 = vpack.c.bf16 %v4254_v31, %v4253_v19  ;;  %v4271_v23 = vld [vmem:[#allocation2 + $0x241] sm:$0xff]  ;;  %v4273_v19 = vld [vmem:[#allocation2 + $0x259] sm:$0xff] }
 0x190   :  { %7358 = vmatprep.mubr.msk.bf16.mxu0 %vm21_vm1, %v4303_v49  ;;  %v4272_v49 = vld [vmem:[#allocation2 + $0x249] sm:$0xff]  ;;  %v4274_v31 = vld [vmem:[#allocation2 + $0x261] sm:$0xff] }
 0x195   :  { %7061 = vmatmul.mubr.msk.bf16.gmra.mrb[48].mxu1 %vm21_vm1, %v8717_v32  ;;  %v4257_v32 = vld [vmem:[#allocation2 + $0x169] sm:$0xff] }
 0x196   :  { %7064 = vmatprep.mubr.msk.bf16.mxu1 %vm21_vm1, %v8729_v46  ;;  %v4258_v46 = vld [vmem:[#allocation2 + $0x171] sm:$0xff] }
 0x197   :  { %7359 = vmatmul.mubr.msk.bf16.gmra.mrb[16].mxu0 %vm21_vm1, %v4304_v36  ;;  %v4308_v39 = vpack.c.bf16 %v4258_v46, %v4257_v32  ;;  %v2043_v36 = vld [vmem:[#allocation2 + $0xb0] sm:$0xff]  ;;  %v2044_v46 = vld [vmem:[#allocation2 + $0xc0] sm:$0xff] }
 0x198   :  { %7362 = vmatprep.mubr.msk.bf16.mxu0 %vm21_vm1, %v4305_v47  ;;  %v2099_v47 = vpack.c.bf16 %v2041_v28, %v2040_v18  ;;  %v2100_v60 = vpack.c.bf16 %v2043_v36, %v2042_v21  ;;  %v4288_v18 = vld [vmem:[#allocation2 + $0x309] sm:$0xff] }
 0x199   :  { %v2056_v36 = vld [vmem:[#allocation2 + $0x150] sm:$0xff] }
 0x19d   :  { %7065 = vmatmul.mubr.msk.bf16.gmra.mrb[52].mxu1 %vm21_vm1, %v8733_v50  ;;  %v2030_v50 = vld [vmem:[#allocation2 + $0x18] sm:$0xff] }
 0x19e   :  { %7068 = vmatprep.mubr.msk.bf16.mxu1 %vm21_vm1, %v8745_v4  ;;  %v4261_v4 = vld [vmem:[#allocation2 + $0x199] sm:$0xff]  ;;  %v2094_v8 = vpack.c.bf16 %v2031_v12, %v2030_v50  ;;  %v4277_v50 = vld [vmem:[#allocation2 + $0x289] sm:$0xff]  ;;  %v4278_v12 = vld [vmem:[#allocation2 + $0x291] sm:$0xff] }
 0x19f   :  { %7363 = vmatmul.mubr.msk.bf16.gmra.mrb[20].mxu0 %vm21_vm1, %v4306_v10  ;;  %v4310_v41 = vpack.c.bf16 %v4262_v24, %v4261_v4  ;;  %v4276_v10 = vld [vmem:[#allocation2 + $0x279] sm:$0xff]  ;;  %v4279_v24 = vld [vmem:[#allocation2 + $0x2a1] sm:$0xff] }
 0x1a0   :  { %7366 = vmatprep.mubr.msk.bf16.mxu0 %vm21_vm1, %v4307_v33  ;;  %v9032_v33 = vpack.c.bf16 %v4274_v31, %v4273_v19  ;;  %v9035_v32 = vpack.c.bf16 %v4276_v10, %v4275_v61  ;;  %v2058_v19 = vld [vmem:[#allocation2 + $0x168] sm:$0xff]  ;;  %v2059_v31 = vld [vmem:[#allocation2 + $0x170] sm:$0xff]  ;;  %v4289_v61 = vld [vmem:[#allocation2 + $0x319] sm:$0xff] }
 0x1a1   :  { %v4290_v10 = vld [vmem:[#allocation2 + $0x321] sm:$0xff] }
 0x1a5   :  { %7069 = vmatmul.mubr.msk.bf16.gmra.mrb[56].mxu1 %vm21_vm1, %v8749_v6  ;;  %v9005_v6 = vpack.c.bf16 %v4264_v38, %v4263_v37  ;;  %v9042_v37 = vpack.c.bf16 %v4278_v12, %v4277_v50  ;;  %v2062_v50 = vld [vmem:[#allocation2 + $0x1c8] sm:$0xff]  ;;  %v2063_v12 = vld [vmem:[#allocation2 + $0x1d0] sm:$0xff] }
 0x1a6   :  { %7072 = vmatprep.mubr.msk.bf16.mxu1 %vm21_vm1, %v8761_v9  ;;  %v2032_v9 = vld [vmem:[#allocation2 + $0x30] sm:$0xff] }
 0x1a7   :  { %7367 = vmatmul.mubr.msk.bf16.gmra.mrb[24].mxu0 %vm21_vm1, %v4308_v39  ;;  %v2095_v54 = vpack.c.bf16 %v2033_v43, %v2032_v9  ;;  %v2047_v39 = vld [vmem:[#allocation2 + $0xe0] sm:$0xff]  ;;  %v2049_v9 = vld [vmem:[#allocation2 + $0xf8] sm:$0xff]  ;;  %v2050_v43 = vld [vmem:[#allocation2 + $0x108] sm:$0xff] }
 0x1a8   :  { %7370 = vmatprep.mubr.msk.bf16.mxu0 %vm21_vm1, %v4309_v58  ;;  %v2101_v58 = vpack.c.bf16 %v2045_v7, %v2044_v46  ;;  %v2102_v4 = vpack.c.bf16 %v2047_v39, %v2046_v26  ;;  %v2108_v46 = vpack.c.bf16 %v2059_v31, %v2058_v19  ;;  %v4291_v7 = vld [vmem:[#allocation2 + $0x331] sm:$0xff]  ;;  %v4292_v26 = vld [vmem:[#allocation2 + $0x339] sm:$0xff]  ;;  %v9072_v39 = vpack.c.bf16 %v4290_v10, %v4289_v61 }
 0x1a9   :  { %v4802_v19 = vld [vmem:[#allocation2 + $0x12a] sm:$0xff]  ;;  %v4803_v10 = vld [vmem:[#allocation2 + $0x13a] sm:$0xff] }
 0x1aa   :  { %v2087_v61 = vld [vmem:[#allocation2 + $0x2f0] sm:$0xff] }
 0x1ad   :  { %7073 = vmatmul.mubr.msk.bf16.gmra.mrb[60].mxu1 %vm21_vm1, %v8765_v30  ;;  %v9011_v30 = vpack.c.bf16 %v4266_v56, %v4265_v55  ;;  %v4282_v55 = vld [vmem:[#allocation2 + $0x2c1] sm:$0xff]  ;;  %v2104_v56 = vpack.c.bf16 %v2051_v45, %v2050_v43 }
 0x1ae   :  { %7078 = vmatprep.mubr.msk.bf16.mxu1 %vm21_vm1, %v2094_v8  ;;  %v4280_v8 = vld [vmem:[#allocation2 + $0x2a9] sm:$0xff]  ;;  %v2067_v43 = vld [vmem:[#allocation2 + $0x200] sm:$0xff] }
 0x1af   :  { %7371 = vmatmul.mubr.msk.bf16.gmra.mrb[28].mxu0 %vm21_vm1, %v4310_v41  ;;  %v9045_v38 = vpack.c.bf16 %v4280_v8, %v4279_v24  ;;  %v2048_v41 = vld [vmem:[#allocation2 + $0xf0] sm:$0xff]  ;;  %v2110_v8 = vpack.c.bf16 %v2063_v12, %v2062_v50  ;;  %v4806_v50 = vld [vmem:[#allocation2 + $0x15a] sm:$0xff] }
 0x1b0   :  { %7374 = vmatprep.mubr.msk.bf16.mxu0 %vm21_vm1, %v9005_v6  ;;  %v2103_v25 = vpack.c.bf16 %v2049_v9, %v2048_v41  ;;  %v4294_v24 = vld [vmem:[#allocation2 + $0x351] sm:$0xff] }
 0x1b1   :  { %v2066_v9 = vld [vmem:[#allocation2 + $0x1f8] sm:$0xff] }
 0x1b2   :  { %v2112_v45 = vpack.c.bf16 %v2067_v43, %v2066_v9  ;;  %v4809_v43 = vld [vmem:[#allocation2 + $0x182] sm:$0xff] }
 0x1b5   :  { %7079 = vmatmul.mubr.msk.bf16.vlgmr.msra.gmra.mrb[0].mxu1 %vm21_vm1, %v2095_v54  ;;  %v4281_v54 = vld [vmem:[#allocation2 + $0x2b9] sm:$0xff] }
 0x1b6   :  { %7473 = vmatpush3.bf16.msra.mxu1 %v8075_v5  ;;  %7082 = vmatprep.mubr.msk.bf16.mxu1 %vm21_vm1, %v2096_v40  ;;  %v9025_v5 = vpack.c.bf16 %v4272_v49, %v4271_v23  ;;  %v4283_v40 = vld [vmem:[#allocation2 + $0x2d1] sm:$0xff]  ;;  %v9052_v51 = vpack.c.bf16 %v4282_v55, %v4281_v54  ;;  %v4287_v49 = vld [vmem:[#allocation2 + $0x301] sm:$0xff] }
 0x1b7   :  { %7375 = vmatmul.mubr.msk.bf16.gmra.mrb[32].mxu0 %vm21_vm1, %v9011_v30  ;;  %v9055_v59 = vpack.c.bf16 %v4284_v35, %v4283_v40  ;;  %v9065_v21 = vpack.c.bf16 %v4288_v18, %v4287_v49  ;;  %v2071_v54 = vld [vmem:[#allocation2 + $0x230] sm:$0xff]  ;;  %v2075_v55 = vld [vmem:[#allocation2 + $0x260] sm:$0xff] }
 0x1b8   :  { %7378 = vmatprep.mubr.msk.bf16.mxu0 %vm21_vm1, %v9014_v22  ;;  %v4793_v40 = vld [vmem:[#allocation2 + $0xc2] sm:$0xff]  ;;  %v4794_v35 = vld [vmem:[#allocation2 + $0xca] sm:$0xff]  ;;  %v4800_v18 = vld [vmem:[#allocation2 + $0x112] sm:$0xff] }
 0x1b9   :  { %v4799_v49 = vld [vmem:[#allocation2 + $0x10a] sm:$0xff] }
 0x1ba   :  { %v4854_v31 = vpack.c.bf16 %v4800_v18, %v4799_v49  ;;  %v4829_v18 = vld [vmem:[#allocation2 + $0x2a2] sm:$0xff] }
 0x1bd   :  { %7083 = vmatmul.mubr.msk.bf16.gmra.mrb[4].mxu1 %vm21_vm1, %v2097_v52  ;;  %v2055_v52 = vld [vmem:[#allocation2 + $0x140] sm:$0xff] }
 0x1be   :  { %7086 = vmatprep.mubr.msk.bf16.mxu1 %vm21_vm1, %v2098_v16  ;;  %v4286_v16 = vld [vmem:[#allocation2 + $0x2f1] sm:$0xff]  ;;  %v2106_v23 = vpack.c.bf16 %v2055_v52, %v2054_v13  ;;  %v2118_v13 = vpack.c.bf16 %v2079_v3, %v2078_v63  ;;  %v4818_v63 = vld [vmem:[#allocation2 + $0x21a] sm:$0xff] }
 0x1bf   :  { %7379 = vmatmul.mubr.msk.bf16.gmra.mrb[36].mxu0 %vm21_vm1, %v9022_v1  ;;  %v9062_v28 = vpack.c.bf16 %v4286_v16, %v4285_v48  ;;  %v4797_v52 = vld [vmem:[#allocation2 + $0xf2] sm:$0xff] }
 0x1c0   :  { %7382 = vmatprep.mubr.msk.bf16.mxu0 %vm21_vm1, %v9025_v5 }
 0x1c5   :  { %7087 = vmatmul.mubr.msk.bf16.gmra.mrb[8].mxu1 %vm21_vm1, %v2099_v47  ;;  %v2057_v47 = vld [vmem:[#allocation2 + $0x158] sm:$0xff] }
 0x1c6   :  { %7090 = vmatprep.mubr.msk.bf16.mxu1 %vm21_vm1, %v2100_v60  ;;  %v2107_v60 = vpack.c.bf16 %v2057_v47, %v2056_v36  ;;  %v4801_v47 = vld [vmem:[#allocation2 + $0x122] sm:$0xff] }
 0x1c7   :  { %7383 = vmatmul.mubr.msk.bf16.gmra.mrb[40].mxu0 %vm21_vm1, %v9032_v33 }
 0x1c8   :  { %7386 = vmatprep.mubr.msk.bf16.mxu0 %vm21_vm1, %v9035_v32 }
 0x1cd   :  { %7091 = vmatmul.mubr.msk.bf16.gmra.mrb[12].mxu1 %vm21_vm1, %v2101_v58  ;;  %v9075_v58 = vpack.c.bf16 %v4292_v26, %v4291_v7  ;;  %v4805_v26 = vld [vmem:[#allocation2 + $0x152] sm:$0xff] }
 0x1ce   :  { %7094 = vmatprep.mubr.msk.bf16.mxu1 %vm21_vm1, %v2102_v4  ;;  %v4293_v4 = vld [vmem:[#allocation2 + $0x349] sm:$0xff] }
 0x1cf   :  { %7387 = vmatmul.mubr.msk.bf16.gmra.mrb[44].mxu0 %vm21_vm1, %v9042_v37  ;;  %v4326_v41 = vpack.c.bf16 %v4294_v24, %v4293_v4  ;;  %v4857_v4 = vpack.c.bf16 %v4806_v50, %v4805_v26  ;;  %v2091_v24 = vld [vmem:[#allocation2 + $0x320] sm:$0xff]  ;;  %v4841_v50 = vld [vmem:[#allocation2 + $0x332] sm:$0xff] }
 0x1d0   :  { %7390 = vmatprep.mubr.msk.bf16.mxu0 %vm21_vm1, %v9045_v38 }
 0x1d5   :  { %7095 = vmatmul.mubr.msk.bf16.gmra.mrb[16].mxu1 %vm21_vm1, %v2103_v25  ;;  %v2070_v25 = vld [vmem:[#allocation2 + $0x228] sm:$0xff] }
 0x1d6   :  { %7098 = vmatprep.mubr.msk.bf16.mxu1 %vm21_vm1, %v2104_v56  ;;  %v4792_v56 = vld [vmem:[#allocation2 + $0xb2] sm:$0xff] }
 0x1d7   :  { %7391 = vmatmul.mubr.msk.bf16.gmra.mrb[48].mxu0 %vm21_vm1, %v9052_v51 }
 0x1d8   :  { %7394 = vmatprep.mubr.msk.bf16.mxu0 %vm21_vm1, %v9055_v59 }
 0x1dd   :  { %7099 = vmatmul.mubr.msk.bf16.gmra.mrb[20].mxu1 %vm21_vm1, %v2105_v0  ;;  %v4798_v0 = vld [vmem:[#allocation2 + $0xfa] sm:$0xff] }
 0x1de   :  { %7102 = vmatprep.mubr.msk.bf16.mxu1 %vm21_vm1, %v2106_v23  ;;  %v4853_v16 = vpack.c.bf16 %v4798_v0, %v4797_v52  ;;  %v2083_v23 = vld [vmem:[#allocation2 + $0x2c0] sm:$0xff]  ;;  %v4822_v52 = vld [vmem:[#allocation2 + $0x24a] sm:$0xff] }
 0x1df   :  { %7395 = vmatmul.mubr.msk.bf16.gmra.mrb[52].mxu0 %vm21_vm1, %v9062_v28 }
 0x1e0   :  { %7398 = vmatprep.mubr.msk.bf16.mxu0 %vm21_vm1, %v9065_v21 }
 0x1e5   :  { %7103 = vmatmul.mubr.msk.bf16.gmra.mrb[24].mxu1 %vm21_vm1, %v2107_v60  ;;  %v4855_v60 = vpack.c.bf16 %v4802_v19, %v4801_v47 }
 0x1e6   :  { %7106 = vmatprep.mubr.msk.bf16.mxu1 %vm21_vm1, %v2108_v46  ;;  %v4804_v46 = vld [vmem:[#allocation2 + $0x142] sm:$0xff] }
 0x1e7   :  { %7399 = vmatmul.mubr.msk.bf16.gmra.mrb[56].mxu0 %vm21_vm1, %v9072_v39  ;;  %v4856_v12 = vpack.c.bf16 %v4804_v46, %v4803_v10  ;;  %v4837_v10 = vld [vmem:[#allocation2 + $0x302] sm:$0xff]  ;;  %v4838_v46 = vld [vmem:[#allocation2 + $0x30a] sm:$0xff] }
 0x1e8   :  { %7402 = vmatprep.mubr.msk.bf16.mxu0 %vm21_vm1, %v9075_v58  ;;  %v4873_v26 = vpack.c.bf16 %v4838_v46, %v4837_v10 }
 0x1ed   :  { %7107 = vmatmul.mubr.msk.bf16.gmra.mrb[28].mxu1 %vm21_vm1, %v8865_v27  ;;  %v2114_v27 = vpack.c.bf16 %v2071_v54, %v2070_v25 }
 0x1ee   :  { %7110 = vmatprep.mubr.msk.bf16.mxu1 %vm21_vm1, %v2110_v8  ;;  %v4807_v8 = vld [vmem:[#allocation2 + $0x16a] sm:$0xff] }
 0x1ef   :  { %7403 = vmatmul.mubr.msk.bf16.gmra.mrb[60].mxu0 %vm21_vm1, %v4326_v41  ;;  %v4808_v41 = vld [vmem:[#allocation2 + $0x172] sm:$0xff] }
 0x1f0   :  { %7408 = vmatprep.mubr.msk.bf16.mxu0 %vm21_vm1, %v8881_v57  ;;  %v2074_v57 = vld [vmem:[#allocation2 + $0x258] sm:$0xff]  ;;  %v4858_v25 = vpack.c.bf16 %v4808_v41, %v4807_v8 }
 0x1f5   :  { %7111 = vmatmul.mubr.msk.bf16.gmra.mrb[32].mxu1 %vm21_vm1, %v8781_v2  ;;  %v4791_v2 = vld [vmem:[#allocation2 + $0xaa] sm:$0xff] }
 0x1f6   :  { %7114 = vmatprep.mubr.msk.bf16.mxu1 %vm21_vm1, %v2112_v45  ;;  %v4810_v45 = vld [vmem:[#allocation2 + $0x18a] sm:$0xff] }
 0x1f7   :  { %7409 = vmatmul.mubr.msk.bf16.vlgmr.msra.gmra.mrb[0].mxu0 %vm21_vm1, %v8894_v53  ;;  %v2116_v53 = vpack.c.bf16 %v2075_v55, %v2074_v57  ;;  %v4859_v54 = vpack.c.bf16 %v4810_v45, %v4809_v43  ;;  %v4811_v57 = vld [vmem:[#allocation2 + $0x19a] sm:$0xff]  ;;  %v4812_v55 = vld [vmem:[#allocation2 + $0x1a2] sm:$0xff] }
 0x1f8   :  { %7412 = vmatprep.mubr.msk.bf16.mxu0 %vm21_vm1, %v8898_v17  ;;  %v4850_v17 = vpack.c.bf16 %v4792_v56, %v4791_v2  ;;  %v4813_v56 = vld [vmem:[#allocation2 + $0x1e2] sm:$0xff] }
 0x1fd   :  { %7115 = vmatmul.mubr.msk.bf16.gmra.mrb[36].mxu1 %vm21_vm1, %v8799_v11  ;;  %v4851_v11 = vpack.c.bf16 %v4794_v35, %v4793_v40  ;;  %v4860_v40 = vpack.c.bf16 %v4812_v55, %v4811_v57 }
 0x1fe   :  { %7118 = vmatprep.mubr.msk.bf16.mxu1 %vm21_vm1, %v2114_v27  ;;  %v2613_v27 = vld [vmem:[#allocation2 + $0x1d1] sm:$0xff] }
 0x1ff   :  { %7413 = vmatmul.mubr.msk.bf16.gmra.mrb[4].mxu0 %vm21_vm1, %v8906_v44  ;;  %v4795_v44 = vld [vmem:[#allocation2 + $0xda] sm:$0xff] }
 0x200   :  { %7416 = vmatprep.mubr.msk.bf16.mxu0 %vm21_vm1, %v8910_v34  ;;  %v4796_v34 = vld [vmem:[#allocation2 + $0xe2] sm:$0xff] }
 0x201   :  { %v4852_v48 = vpack.c.bf16 %v4796_v34, %v4795_v44  ;;  %v4820_v34 = vld [vmem:[#allocation2 + $0x232] sm:$0xff] }
 0x205   :  { %7119 = vmatmul.mubr.msk.bf16.gmra.mrb[40].mxu1 %vm21_vm1, %v8813_v62  ;;  %v2082_v62 = vld [vmem:[#allocation2 + $0x2b8] sm:$0xff] }
 0x206   :  { %7122 = vmatprep.mubr.msk.bf16.mxu1 %vm21_vm1, %v2116_v53  ;;  %v2120_v36 = vpack.c.bf16 %v2083_v23, %v2082_v62  ;;  %v4814_v53 = vld [vmem:[#allocation2 + $0x1ea] sm:$0xff]  ;;  %v4826_v62 = vld [vmem:[#allocation2 + $0x27a] sm:$0xff] }
 0x207   :  { %7417 = vmatmul.mubr.msk.bf16.gmra.mrb[8].mxu0 %vm21_vm1, %v4850_v17  ;;  %v4861_v35 = vpack.c.bf16 %v4814_v53, %v4813_v56  ;;  %v4816_v17 = vld [vmem:[#allocation2 + $0x202] sm:$0xff] }
 0x208   :  { %7420 = vmatprep.mubr.msk.bf16.mxu0 %vm21_vm1, %v4851_v11  ;;  %v4817_v11 = vld [vmem:[#allocation2 + $0x212] sm:$0xff] }
 0x209   :  { %v4863_v44 = vpack.c.bf16 %v4818_v63, %v4817_v11 }
 0x20d   :  { %7123 = vmatmul.mubr.msk.bf16.gmra.mrb[44].mxu1 %vm21_vm1, %v8825_v14  ;;  %v2086_v14 = vld [vmem:[#allocation2 + $0x2e8] sm:$0xff] }
 0x20e   :  { %7126 = vmatprep.mubr.msk.bf16.mxu1 %vm21_vm1, %v2118_v13  ;;  %v2122_v7 = vpack.c.bf16 %v2087_v61, %v2086_v14  ;;  %v4821_v13 = vld [vmem:[#allocation2 + $0x242] sm:$0xff] }
 0x20f   :  { %7421 = vmatmul.mubr.msk.bf16.gmra.mrb[12].mxu0 %vm21_vm1, %v4852_v48  ;;  %v4865_v48 = vpack.c.bf16 %v4822_v52, %v4821_v13 }
 0x210   :  { %7424 = vmatprep.mubr.msk.bf16.mxu0 %vm21_vm1, %v4853_v16  ;;  %v4825_v16 = vld [vmem:[#allocation2 + $0x272] sm:$0xff] }
 0x211   :  { %v4867_v49 = vpack.c.bf16 %v4826_v62, %v4825_v16 }
 0x215   :  { %7127 = vmatmul.mubr.msk.bf16.gmra.mrb[48].mxu1 %vm21_vm1, %v8837_v29  ;;  %v2090_v29 = vld [vmem:[#allocation2 + $0x318] sm:$0xff] }
 0x216   :  { %7130 = vmatprep.mubr.msk.bf16.mxu1 %vm21_vm1, %v2120_v36  ;;  %v2124_v9 = vpack.c.bf16 %v2091_v24, %v2090_v29  ;;  %v4830_v36 = vld [vmem:[#allocation2 + $0x2aa] sm:$0xff] }
 0x217   :  { %7425 = vmatmul.mubr.msk.bf16.gmra.mrb[16].mxu0 %vm21_vm1, %v4854_v31  ;;  %v4869_v19 = vpack.c.bf16 %v4830_v36, %v4829_v18  ;;  %v4833_v31 = vld [vmem:[#allocation2 + $0x2d2] sm:$0xff] }
 0x218   :  { %7428 = vmatprep.mubr.msk.bf16.mxu0 %vm21_vm1, %v4855_v60  ;;  %v4834_v60 = vld [vmem:[#allocation2 + $0x2da] sm:$0xff] }
 0x219   :  { %v4871_v61 = vpack.c.bf16 %v4834_v60, %v4833_v31 }
 0x21d   :  { %7131 = vmatmul.mubr.msk.bf16.gmra.mrb[52].mxu1 %vm21_vm1, %v8849_v42  ;;  %v2612_v42 = vld [vmem:[#allocation2 + $0x1c9] sm:$0xff] }
 0x21e   :  { %7134 = vmatprep.mubr.msk.bf16.mxu1 %vm21_vm1, %v2122_v7  ;;  %v2660_v2 = vpack.c.bf16 %v2613_v27, %v2612_v42 }
 0x21f   :  { %7429 = vmatmul.mubr.msk.bf16.gmra.mrb[20].mxu0 %vm21_vm1, %v4856_v12  ;;  %v4842_v12 = vld [vmem:[#allocation2 + $0x33a] sm:$0xff] }
 0x220   :  { %7432 = vmatprep.mubr.msk.bf16.mxu0 %vm21_vm1, %v4857_v4  ;;  %v4875_v29 = vpack.c.bf16 %v4842_v12, %v4841_v50 }
 0x225   :  { %7135 = vmatmul.mubr.msk.bf16.gmra.mrb[56].mxu1 %vm21_vm1, %v8861_v20  ;;  %v4815_v20 = vld [vmem:[#allocation2 + $0x1fa] sm:$0xff] }
 0x226   :  { %7138 = vmatprep.mubr.msk.bf16.mxu1 %vm21_vm1, %v2124_v9  ;;  %v4862_v3 = vpack.c.bf16 %v4816_v17, %v4815_v20 }
 0x227   :  { %7433 = vmatmul.mubr.msk.bf16.gmra.mrb[24].mxu0 %vm21_vm1, %v4858_v25 }
 0x228   :  { %7436 = vmatprep.mubr.msk.bf16.mxu0 %vm21_vm1, %v4859_v54 }
 0x22d   :  { %7139 = vmatmul.mubr.msk.bf16.gmra.mrb[60].mxu1 %vm21_vm1, %v8946_v15  ;;  %v4819_v15 = vld [vmem:[#allocation2 + $0x22a] sm:$0xff] }
 0x22e   :  { %7176 = vmatprep.mubr.msk.bf16.mxu1 %vm21_vm1, %v2660_v2  ;;  %v4864_v0 = vpack.c.bf16 %v4820_v34, %v4819_v15 }
 0x22f   :  { %7437 = vmatmul.mubr.msk.bf16.gmra.mrb[28].mxu0 %vm21_vm1, %v4860_v40 }
 0x230   :  { %7440 = vmatprep.mubr.msk.bf16.mxu0 %vm21_vm1, %v4861_v35 }
 0x235   :  { %7177 = vmatmul.mubr.msk.bf16.vlgmr.msra.gmra.mrb[32].mxu1 %vm21_vm1, %v9005_v6  ;;  %v4823_v6 = vld [vmem:[#allocation2 + $0x25a] sm:$0xff] }
 0x236   :  { %7180 = vmatprep.mubr.msk.bf16.mxu1 %vm21_vm1, %v9011_v30  ;;  %v4824_v30 = vld [vmem:[#allocation2 + $0x262] sm:$0xff] }
 0x237   :  { %7441 = vmatmul.mubr.msk.bf16.gmra.mrb[32].mxu0 %vm21_vm1, %v4862_v3  ;;  %v4866_v23 = vpack.c.bf16 %v4824_v30, %v4823_v6 }
 0x238   :  { %7444 = vmatprep.mubr.msk.bf16.mxu0 %vm21_vm1, %v4863_v44 }
 0x23d   :  { %7181 = vmatmul.mubr.msk.bf16.gmra.mrb[36].mxu1 %vm21_vm1, %v9014_v22  ;;  %v4827_v22 = vld [vmem:[#allocation2 + $0x28a] sm:$0xff] }
 0x23e   :  { %7184 = vmatprep.mubr.msk.bf16.mxu1 %vm21_vm1, %v9022_v1  ;;  %v4828_v1 = vld [vmem:[#allocation2 + $0x292] sm:$0xff] }
 0x23f   :  { %7445 = vmatmul.mubr.msk.bf16.gmra.mrb[36].mxu0 %vm21_vm1, %v4864_v0  ;;  %v4868_v47 = vpack.c.bf16 %v4828_v1, %v4827_v22 }
 0x240   :  { %7448 = vmatprep.mubr.msk.bf16.mxu0 %vm21_vm1, %v4865_v48 }
 0x245   :  { %7185 = vmatmul.mubr.msk.bf16.gmra.mrb[40].mxu1 %vm21_vm1, %v9025_v5  ;;  %v4831_v5 = vld [vmem:[#allocation2 + $0x2ba] sm:$0xff] }
 0x246   :  { %7188 = vmatprep.mubr.msk.bf16.mxu1 %vm21_vm1, %v9032_v33  ;;  %v4832_v33 = vld [vmem:[#allocation2 + $0x2c2] sm:$0xff] }
 0x247   :  { %7449 = vmatmul.mubr.msk.bf16.gmra.mrb[40].mxu0 %vm21_vm1, %v4866_v23  ;;  %v4870_v14 = vpack.c.bf16 %v4832_v33, %v4831_v5 }
 0x248   :  { %7452 = vmatprep.mubr.msk.bf16.mxu0 %vm21_vm1, %v4867_v49 }
 0x24d   :  { %7189 = vmatmul.mubr.msk.bf16.gmra.mrb[44].mxu1 %vm21_vm1, %v9035_v32  ;;  %v4835_v32 = vld [vmem:[#allocation2 + $0x2ea] sm:$0xff] }
 0x24e   :  { %7192 = vmatprep.mubr.msk.bf16.mxu1 %vm21_vm1, %v9042_v37  ;;  %v4836_v37 = vld [vmem:[#allocation2 + $0x2f2] sm:$0xff] }
 0x24f   :  { %7453 = vmatmul.mubr.msk.bf16.gmra.mrb[44].mxu0 %vm21_vm1, %v4868_v47  ;;  %v4872_v7 = vpack.c.bf16 %v4836_v37, %v4835_v32 }
 0x250   :  { %7456 = vmatprep.mubr.msk.bf16.mxu0 %vm21_vm1, %v4869_v19 }
 0x255   :  { %7193 = vmatmul.mubr.msk.bf16.gmra.mrb[48].mxu1 %vm21_vm1, %v9045_v38  ;;  %v4839_v38 = vld [vmem:[#allocation2 + $0x31a] sm:$0xff] }
 0x256   :  { %7196 = vmatprep.mubr.msk.bf16.mxu1 %vm21_vm1, %v9052_v51  ;;  %v4840_v51 = vld [vmem:[#allocation2 + $0x322] sm:$0xff] }
 0x257   :  { %7457 = vmatmul.mubr.msk.bf16.gmra.mrb[48].mxu0 %vm21_vm1, %v4870_v14  ;;  %v4874_v4 = vpack.c.bf16 %v4840_v51, %v4839_v38 }
 0x258   :  { %7460 = vmatprep.mubr.msk.bf16.mxu0 %vm21_vm1, %v4871_v61 }
 0x25d   :  { %7197 = vmatmul.mubr.msk.bf16.gmra.mrb[52].mxu1 %vm21_vm1, %v9055_v59  ;;  %v4843_v59 = vld [vmem:[#allocation2 + $0x34a] sm:$0xff] }
 0x25e   :  { %7200 = vmatprep.mubr.msk.bf16.mxu1 %vm21_vm1, %v9062_v28  ;;  %v4844_v28 = vld [vmem:[#allocation2 + $0x352] sm:$0xff] }
 0x25f   :  { %7461 = vmatmul.mubr.msk.bf16.gmra.mrb[52].mxu0 %vm21_vm1, %v4872_v7  ;;  %v4876_v24 = vpack.c.bf16 %v4844_v28, %v4843_v59 }
 0x260   :  { %7464 = vmatprep.mubr.msk.bf16.mxu0 %vm21_vm1, %v4873_v26 }
 0x265   :  { %7201 = vmatmul.mubr.msk.bf16.gmra.mrb[56].mxu1 %vm21_vm1, %v9065_v21 }
 0x266   :  { %7204 = vmatprep.mubr.msk.bf16.mxu1 %vm21_vm1, %v9072_v39 }
 0x267   :  { %7465 = vmatmul.mubr.msk.bf16.gmra.mrb[56].mxu0 %vm21_vm1, %v4874_v4 }
 0x268   :  { %7468 = vmatprep.mubr.msk.bf16.mxu0 %vm21_vm1, %v4875_v29 }
 0x26d   :  { %7205 = vmatmul.mubr.msk.bf16.gmra.mrb[60].mxu1 %vm21_vm1, %v9075_v58 }
 0x26f   :  { %7469 = vmatmul.mubr.msk.bf16.gmra.mrb[60].mxu0 %vm21_vm1, %v4876_v24 }
 0x288   :  { %v7080_v8 = vpop.f32.mrb[0].mxu1 }
 0x289   :  { %v2261_v41 = vpop.f32.mrb[1].mxu1 }
 0x28a   :  { %v7081_v9 = vpop.f32.mrb[2].mxu1 }
 0x28b   :  { %v2264_v21 = vpop.f32.mrb[3].mxu1 }
 0x290   :  { %v7084_v43 = vpop.f32.mrb[4].mxu1 }
 0x291   :  { %v2277_v45 = vpop.f32.mrb[5].mxu1 }
 0x292   :  { %v9177_v25 = vpop.f32.mrb[6].mxu1 }
 0x293   :  { %v9179_v39 = vpop.f32.mrb[7].mxu1 }
 0x298   :  { %v9181_v54 = vpop.f32.mrb[8].mxu1 }
 0x299   :  { %v9183_v42 = vpop.f32.mrb[9].mxu1 }
 0x29a   :  { %v9185_v27 = vpop.f32.mrb[10].mxu1 }
 0x29b   :  { %v9187_v57 = vpop.f32.mrb[11].mxu1 }
 0x2a0   :  { %v9189_v58 = vpop.f32.mrb[12].mxu1 }
 0x2a1   :  { %v9191_v55 = vpop.f32.mrb[13].mxu1 }
 0x2a2   :  { %v9193_v2 = vpop.f32.mrb[14].mxu1 }
 0x2a3   :  { %v9195_v56 = vpop.f32.mrb[15].mxu1 }
 0x2a8   :  { %v9197_v53 = vpop.f32.mrb[16].mxu1 }
 0x2a9   :  { %v9199_v40 = vpop.f32.mrb[17].mxu1 }
 0x2aa   :  { %v9201_v35 = vpop.f32.mrb[18].mxu1 }
 0x2ab   :  { %v9203_v20 = vpop.f32.mrb[19].mxu1 }
 0x2b0   :  { %v9205_v17 = vpop.f32.mrb[20].mxu1 }
 0x2b1   :  { %v9207_v11 = vpop.f32.mrb[21].mxu1 }
 0x2b2   :  { %v9209_v63 = vpop.f32.mrb[22].mxu1 }
 0x2b3   :  { %v9211_v3 = vpop.f32.mrb[23].mxu1 }
 0x2b8   :  { %v9213_v44 = vpop.f32.mrb[24].mxu1 }
 0x2b9   :  { %v9215_v15 = vpop.f32.mrb[25].mxu1 }
 0x2ba   :  { %v9217_v34 = vpop.f32.mrb[26].mxu1 }
 0x2bb   :  { %v9219_v13 = vpop.f32.mrb[27].mxu1 }
 0x2c0   :  { %v9221_v52 = vpop.f32.mrb[28].mxu1 }
 0x2c1   :  { %v9223_v0 = vpop.f32.mrb[29].mxu1 }
 0x2c2   :  { %v9225_v48 = vpop.f32.mrb[30].mxu1 }
 0x2c3   :  { %v9227_v6 = vpop.f32.mrb[31].mxu1 }
 0x2ca   :  { %v7410_v30 = vpop.f32.mrb[0].mxu0 }
 0x2cb   :  { %v7474_v16 = vadd.f32 %v7410_v30, %v7080_v8  ;;  %v5012_v62 = vpop.f32.mrb[1].mxu0 }
 0x2cc   :  { %v7475_v23 = vadd.f32 %v5012_v62, %v2261_v41  ;;  %v7411_v49 = vpop.f32.mrb[2].mxu0 }
 0x2cd   :  { %v6360_v22 = vpack.c.bf16 %v7474_v16, %v7474_v16  ;;  %v7476_v1 = vadd.f32 %v7411_v49, %v7081_v9  ;;  %v5015_v18 = vpop.f32.mrb[3].mxu0  ;;  %v5788_v5 = vmul.f32 %v7474_v16, %v7474_v16  ;;  %v5655_v10 = vsel %vm21_vm1, %v7474_v16, 0.0 }
 0x2ce   :  { %v6358_v36 = vpack.c.bf16 %v7475_v23, %v7475_v23  ;;  %v5786_v47 = vmul.f32 %v7475_v23, %v7475_v23  ;;  %v7477_v19 = vadd.f32 %v5015_v18, %v2264_v21  ;;  %v5652_v31 = vsel %vm21_vm1, %v7475_v23, 0.0 }
 0x2cf   :  { %5590 = vst.msk [vmem:[%s9651_s4 + $0x8] sm:$0xf] %vm5587_vm4, %v6360_v22  ;;  %v6361_v33 = vpack.c.bf16 %v7476_v1, %v7476_v1  ;;  %v5789_v32 = vmul.f32 %v7476_v1, %v7476_v1  ;;  %v5853_v4 = vsel %vm21_vm1, %v5788_v5, 0.0  ;;  %v5657_v28 = vsel %vm21_vm1, %v7476_v1, 0.0 }
 0x2d0   :  { %5588 = vst.msk [vmem:[%s9651_s4] sm:$0xf] %vm5587_vm4, %v6358_v36  ;;  %v6359_v60 = vpack.c.bf16 %v7477_v19, %v7477_v19  ;;  %v5653_v14 = vsel %vm21_vm1, %v7477_v19, 0.0  ;;  %v5787_v61 = vmul.f32 %v7477_v19, %v7477_v19  ;;  %v5850_v46 = vsel %vm21_vm1, %v5786_v47, 0.0 }
 0x2d1   :  { %5591 = vst.msk [vmem:[%s9651_s4 + $0xc] sm:$0xf] %vm5587_vm4, %v6361_v33  ;;  %v5654_v37 = vadd.f32 %v5653_v14, %v5652_v31  ;;  %v5855_v24 = vsel %vm21_vm1, %v5789_v32, 0.0 }
 0x2d2   :  { %5589 = vst.msk [vmem:[%s9651_s4 + $0x4] sm:$0xf] %vm5587_vm4, %v6359_v60  ;;  %v5851_v7 = vsel %vm21_vm1, %v5787_v61, 0.0  ;;  %v7414_v26 = vpop.f32.mrb[4].mxu0 }
 0x2d3   :  { %v5656_v38 = vadd.f32 %v5655_v10, %v5654_v37  ;;  %v5852_v51 = vadd.f32 %v5851_v7, %v5850_v46  ;;  %v7478_v50 = vadd.f32 %v7414_v26, %v7084_v43  ;;  %v5028_v12 = vpop.f32.mrb[5].mxu0 }
 0x2d4   :  { %v7479_v29 = vadd.f32 %v5028_v12, %v2277_v45  ;;  %v7415_v59 = vpop.f32.mrb[6].mxu0 }
 0x2d5   :  { %v5854_v8 = vadd.f32 %v5853_v4, %v5852_v51  ;;  %v6364_v41 = vpack.c.bf16 %v7478_v50, %v7478_v50  ;;  %v5031_v9 = vpop.f32.mrb[7].mxu0  ;;  %v5658_v30 = vadd.f32 %v5657_v28, %v5656_v38  ;;  %v7480_v45 = vadd.f32 %v7415_v59, %v9177_v25 }
 0x2d6   :  { %v6362_v21 = vpack.c.bf16 %v7479_v29, %v7479_v29  ;;  %v5659_v16 = vsel %vm21_vm1, %v7479_v29, 0.0  ;;  %v5790_v62 = vmul.f32 %v7479_v29, %v7479_v29  ;;  %v7481_v23 = vadd.f32 %v5031_v9, %v9179_v39 }
 0x2d7   :  { %5594 = vst.msk [vmem:[%s9651_s4 + $0x18] sm:$0xf] %vm5587_vm4, %v6364_v41  ;;  %v5856_v43 = vadd.f32 %v5855_v24, %v5854_v8  ;;  %v5660_v49 = vadd.f32 %v5659_v16, %v5658_v30  ;;  %v5792_v1 = vmul.f32 %v7478_v50, %v7478_v50  ;;  %v6365_v36 = vpack.c.bf16 %v7480_v45, %v7480_v45 }
 0x2d8   :  { %5592 = vst.msk [vmem:[%s9651_s4 + $0x10] sm:$0xf] %vm5587_vm4, %v6362_v21  ;;  %v5857_v22 = vsel %vm21_vm1, %v5790_v62, 0.0  ;;  %v6363_v47 = vpack.c.bf16 %v7481_v23, %v7481_v23  ;;  %v5661_v19 = vsel %vm21_vm1, %v7481_v23, 0.0  ;;  %v5791_v5 = vmul.f32 %v7481_v23, %v7481_v23 }
 0x2d9   :  { %v5858_v18 = vadd.f32 %v5857_v22, %v5856_v43  ;;  %5595 = vst.msk [vmem:[%s9651_s4 + $0x1c] sm:$0xf] %vm5587_vm4, %v6365_v36  ;;  %v5662_v25 = vadd.f32 %v5661_v19, %v5660_v49  ;;  %v5663_v60 = vsel %vm21_vm1, %v7478_v50, 0.0  ;;  %v5793_v14 = vmul.f32 %v7480_v45, %v7480_v45 }
 0x2da   :  { %v7418_v33 = vpop.f32.mrb[8].mxu0  ;;  %5593 = vst.msk [vmem:[%s9651_s4 + $0x14] sm:$0xf] %vm5587_vm4, %v6363_v47  ;;  %v5859_v61 = vsel %vm21_vm1, %v5791_v5, 0.0  ;;  %v5861_v10 = vsel %vm21_vm1, %v5792_v1, 0.0  ;;  %v5665_v38 = vsel %vm21_vm1, %v7480_v45, 0.0 }
 0x2db   :  { %v7482_v39 = vadd.f32 %v7418_v33, %v9181_v54  ;;  %v5044_v31 = vpop.f32.mrb[9].mxu0  ;;  %v5664_v46 = vadd.f32 %v5663_v60, %v5662_v25  ;;  %v5860_v7 = vadd.f32 %v5859_v61, %v5858_v18  ;;  %v5863_v28 = vsel %vm21_vm1, %v5793_v14, 0.0 }
 0x2dc   :  { %v7483_v32 = vadd.f32 %v5044_v31, %v9183_v42  ;;  %v7419_v37 = vpop.f32.mrb[10].mxu0 }
 0x2dd   :  { %v6368_v26 = vpack.c.bf16 %v7482_v39, %v7482_v39  ;;  %v5047_v54 = vpop.f32.mrb[11].mxu0  ;;  %v5862_v4 = vadd.f32 %v5861_v10, %v5860_v7  ;;  %v5666_v42 = vadd.f32 %v5665_v38, %v5664_v46  ;;  %v7484_v29 = vadd.f32 %v7419_v37, %v9185_v27 }
 0x2de   :  { %v6366_v51 = vpack.c.bf16 %v7483_v32, %v7483_v32  ;;  %v5667_v50 = vsel %vm21_vm1, %v7483_v32, 0.0  ;;  %v5794_v12 = vmul.f32 %v7483_v32, %v7483_v32  ;;  %v7485_v59 = vadd.f32 %v5047_v54, %v9187_v57 }
 0x2df   :  { %5598 = vst.msk [vmem:[%s9651_s4 + $0x28] sm:$0xf] %vm5587_vm4, %v6368_v26  ;;  %v5796_v8 = vmul.f32 %v7482_v39, %v7482_v39  ;;  %v5668_v41 = vadd.f32 %v5667_v50, %v5666_v42  ;;  %v5864_v9 = vadd.f32 %v5863_v28, %v5862_v4  ;;  %v6369_v21 = vpack.c.bf16 %v7484_v29, %v7484_v29 }
 0x2e0   :  { %5596 = vst.msk [vmem:[%s9651_s4 + $0x20] sm:$0xf] %vm5587_vm4, %v6366_v51  ;;  %v5865_v24 = vsel %vm21_vm1, %v5794_v12, 0.0  ;;  %v6367_v30 = vpack.c.bf16 %v7485_v59, %v7485_v59  ;;  %v5669_v16 = vsel %vm21_vm1, %v7485_v59, 0.0  ;;  %v5795_v62 = vmul.f32 %v7485_v59, %v7485_v59 }
 0x2e1   :  { %v5866_v43 = vadd.f32 %v5865_v24, %v5864_v9  ;;  %5599 = vst.msk [vmem:[%s9651_s4 + $0x2c] sm:$0xf] %vm5587_vm4, %v6369_v21  ;;  %v5670_v57 = vadd.f32 %v5669_v16, %v5668_v41  ;;  %v5671_v49 = vsel %vm21_vm1, %v7482_v39, 0.0  ;;  %v5797_v22 = vmul.f32 %v7484_v29, %v7484_v29 }
 0x2e2   :  { %v7422_v27 = vpop.f32.mrb[12].mxu0  ;;  %5597 = vst.msk [vmem:[%s9651_s4 + $0x24] sm:$0xf] %vm5587_vm4, %v6367_v30  ;;  %v5867_v1 = vsel %vm21_vm1, %v5795_v62, 0.0  ;;  %v5869_v47 = vsel %vm21_vm1, %v5796_v8, 0.0  ;;  %v5673_v25 = vsel %vm21_vm1, %v7484_v29, 0.0 }
 0x2e3   :  { %v7486_v45 = vadd.f32 %v7422_v27, %v9189_v58  ;;  %v5060_v23 = vpop.f32.mrb[13].mxu0  ;;  %v5672_v19 = vadd.f32 %v5671_v49, %v5670_v57  ;;  %v5868_v5 = vadd.f32 %v5867_v1, %v5866_v43  ;;  %v5871_v37 = vsel %vm21_vm1, %v5797_v22, 0.0 }
 0x2e4   :  { %v7487_v18 = vadd.f32 %v5060_v23, %v9191_v55  ;;  %v7423_v36 = vpop.f32.mrb[14].mxu0 }
 0x2e5   :  { %v6372_v33 = vpack.c.bf16 %v7486_v45, %v7486_v45  ;;  %v5063_v58 = vpop.f32.mrb[15].mxu0  ;;  %v5870_v14 = vadd.f32 %v5869_v47, %v5868_v5  ;;  %v5674_v55 = vadd.f32 %v5673_v25, %v5672_v19  ;;  %v7488_v61 = vadd.f32 %v7423_v36, %v9193_v2 }
 0x2e6   :  { %v6370_v39 = vpack.c.bf16 %v7487_v18, %v7487_v18  ;;  %v5675_v31 = vsel %vm21_vm1, %v7487_v18, 0.0  ;;  %v5798_v60 = vmul.f32 %v7487_v18, %v7487_v18  ;;  %v7489_v32 = vadd.f32 %v5063_v58, %v9195_v56 }
 0x2e7   :  { %5602 = vst.msk [vmem:[%s9651_s4 + $0x38] sm:$0xf] %vm5587_vm4, %v6372_v33  ;;  %v5800_v46 = vmul.f32 %v7486_v45, %v7486_v45  ;;  %v5676_v7 = vadd.f32 %v5675_v31, %v5674_v55  ;;  %v5872_v26 = vadd.f32 %v5871_v37, %v5870_v14  ;;  %v6373_v54 = vpack.c.bf16 %v7488_v61, %v7488_v61 }
 0x2e8   :  { %5600 = vst.msk [vmem:[%s9651_s4 + $0x30] sm:$0xf] %vm5587_vm4, %v6370_v39  ;;  %v5873_v10 = vsel %vm21_vm1, %v5798_v60, 0.0  ;;  %v6371_v38 = vpack.c.bf16 %v7489_v32, %v7489_v32  ;;  %v5677_v51 = vsel %vm21_vm1, %v7489_v32, 0.0  ;;  %v5799_v50 = vmul.f32 %v7489_v32, %v7489_v32 }
 0x2e9   :  { %v5874_v12 = vadd.f32 %v5873_v10, %v5872_v26  ;;  %5603 = vst.msk [vmem:[%s9651_s4 + $0x3c] sm:$0xf] %vm5587_vm4, %v6373_v54  ;;  %v5678_v56 = vadd.f32 %v5677_v51, %v5676_v7  ;;  %v5679_v29 = vsel %vm21_vm1, %v7486_v45, 0.0  ;;  %v5801_v59 = vmul.f32 %v7488_v61, %v7488_v61 }
 0x2ea   :  { %v7426_v2 = vpop.f32.mrb[16].mxu0  ;;  %5601 = vst.msk [vmem:[%s9651_s4 + $0x34] sm:$0xf] %vm5587_vm4, %v6371_v38  ;;  %v5875_v28 = vsel %vm21_vm1, %v5799_v50, 0.0  ;;  %v5877_v41 = vsel %vm21_vm1, %v5800_v46, 0.0  ;;  %v5681_v16 = vsel %vm21_vm1, %v7488_v61, 0.0 }
 0x2eb   :  { %v7490_v4 = vadd.f32 %v7426_v2, %v9197_v53  ;;  %v5076_v42 = vpop.f32.mrb[17].mxu0  ;;  %v5680_v9 = vadd.f32 %v5679_v29, %v5678_v56  ;;  %v5876_v21 = vadd.f32 %v5875_v28, %v5874_v12  ;;  %v5879_v49 = vsel %vm21_vm1, %v5801_v59, 0.0 }
 0x2ec   :  { %v7491_v24 = vadd.f32 %v5076_v42, %v9199_v40  ;;  %v7427_v8 = vpop.f32.mrb[18].mxu0 }
 0x2ed   :  { %v6376_v30 = vpack.c.bf16 %v7490_v4, %v7490_v4  ;;  %v5079_v53 = vpop.f32.mrb[19].mxu0  ;;  %v5878_v57 = vadd.f32 %v5877_v41, %v5876_v21  ;;  %v5682_v40 = vadd.f32 %v5681_v16, %v5680_v9  ;;  %v7492_v45 = vadd.f32 %v7427_v8, %v9201_v35 }
 0x2ee   :  { %v6374_v62 = vpack.c.bf16 %v7491_v24, %v7491_v24  ;;  %v5683_v27 = vsel %vm21_vm1, %v7491_v24, 0.0  ;;  %v5802_v43 = vmul.f32 %v7491_v24, %v7491_v24  ;;  %v7493_v23 = vadd.f32 %v5079_v53, %v9203_v20 }
 0x2ef   :  { %5606 = vst.msk [vmem:[%s9651_s4 + $0x48] sm:$0xf] %vm5587_vm4, %v6376_v30  ;;  %v5804_v1 = vmul.f32 %v7490_v4, %v7490_v4  ;;  %v5684_v18 = vadd.f32 %v5683_v27, %v5682_v40  ;;  %v5880_v36 = vadd.f32 %v5879_v49, %v5878_v57  ;;  %v6377_v47 = vpack.c.bf16 %v7492_v45, %v7492_v45 }
 0x2f0   :  { %5604 = vst.msk [vmem:[%s9651_s4 + $0x40] sm:$0xf] %vm5587_vm4, %v6374_v62  ;;  %v5881_v22 = vsel %vm21_vm1, %v5802_v43, 0.0  ;;  %v6375_v19 = vpack.c.bf16 %v7493_v23, %v7493_v23  ;;  %v5685_v5 = vsel %vm21_vm1, %v7493_v23, 0.0  ;;  %v5803_v33 = vmul.f32 %v7493_v23, %v7493_v23 }
 0x2f1   :  { %v5882_v58 = vadd.f32 %v5881_v22, %v5880_v36  ;;  %5607 = vst.msk [vmem:[%s9651_s4 + $0x4c] sm:$0xf] %vm5587_vm4, %v6377_v47  ;;  %v5686_v20 = vadd.f32 %v5685_v5, %v5684_v18  ;;  %v5687_v31 = vsel %vm21_vm1, %v7490_v4, 0.0  ;;  %v5805_v60 = vmul.f32 %v7492_v45, %v7492_v45 }
 0x2f2   :  { %v7430_v35 = vpop.f32.mrb[20].mxu0  ;;  %5605 = vst.msk [vmem:[%s9651_s4 + $0x44] sm:$0xf] %vm5587_vm4, %v6375_v19  ;;  %v5883_v14 = vsel %vm21_vm1, %v5803_v33, 0.0  ;;  %v5885_v32 = vsel %vm21_vm1, %v5804_v1, 0.0  ;;  %v5689_v7 = vsel %vm21_vm1, %v7492_v45, 0.0 }
 0x2f3   :  { %v7494_v25 = vadd.f32 %v7430_v35, %v9205_v17  ;;  %v5092_v39 = vpop.f32.mrb[21].mxu0  ;;  %v5688_v37 = vadd.f32 %v5687_v31, %v5686_v20  ;;  %v5884_v10 = vadd.f32 %v5883_v14, %v5882_v58  ;;  %v5887_v12 = vsel %vm21_vm1, %v5805_v60, 0.0 }
 0x2f4   :  { %v7495_v55 = vadd.f32 %v5092_v39, %v9207_v11  ;;  %v7431_v61 = vpop.f32.mrb[22].mxu0 }
 0x2f5   :  { %v6380_v46 = vpack.c.bf16 %v7494_v25, %v7494_v25  ;;  %v5095_v17 = vpop.f32.mrb[23].mxu0  ;;  %v5886_v51 = vadd.f32 %v5885_v32, %v5884_v10  ;;  %v5690_v11 = vadd.f32 %v5689_v7, %v5688_v37  ;;  %v7496_v50 = vadd.f32 %v7431_v61, %v9209_v63 }
 0x2f6   :  { %v6378_v26 = vpack.c.bf16 %v7495_v55, %v7495_v55  ;;  %v5691_v54 = vsel %vm21_vm1, %v7495_v55, 0.0  ;;  %v5806_v38 = vmul.f32 %v7495_v55, %v7495_v55  ;;  %v7497_v2 = vadd.f32 %v5095_v17, %v9211_v3 }
 0x2f7   :  { %5610 = vst.msk [vmem:[%s9651_s4 + $0x58] sm:$0xf] %vm5587_vm4, %v6380_v46  ;;  %v5808_v4 = vmul.f32 %v7494_v25, %v7494_v25  ;;  %v5692_v42 = vadd.f32 %v5691_v54, %v5690_v11  ;;  %v5888_v29 = vadd.f32 %v5887_v12, %v5886_v51  ;;  %v6381_v59 = vpack.c.bf16 %v7496_v50, %v7496_v50 }
 0x2f8   :  { %5608 = vst.msk [vmem:[%s9651_s4 + $0x50] sm:$0xf] %vm5587_vm4, %v6378_v26  ;;  %v5889_v56 = vsel %vm21_vm1, %v5806_v38, 0.0  ;;  %v6379_v28 = vpack.c.bf16 %v7497_v2, %v7497_v2  ;;  %v5693_v24 = vsel %vm21_vm1, %v7497_v2, 0.0  ;;  %v5807_v8 = vmul.f32 %v7497_v2, %v7497_v2 }
 0x2f9   :  { %v5890_v41 = vadd.f32 %v5889_v56, %v5888_v29  ;;  %5611 = vst.msk [vmem:[%s9651_s4 + $0x5c] sm:$0xf] %vm5587_vm4, %v6381_v59  ;;  %v5694_v3 = vadd.f32 %v5693_v24, %v5692_v42  ;;  %v5695_v30 = vsel %vm21_vm1, %v7494_v25, 0.0  ;;  %v5809_v53 = vmul.f32 %v7496_v50, %v7496_v50 }
 0x2fa   :  { %v7434_v63 = vpop.f32.mrb[24].mxu0  ;;  %5609 = vst.msk [vmem:[%s9651_s4 + $0x54] sm:$0xf] %vm5587_vm4, %v6379_v28  ;;  %v5891_v16 = vsel %vm21_vm1, %v5807_v8, 0.0  ;;  %v5893_v43 = vsel %vm21_vm1, %v5808_v4, 0.0  ;;  %v5697_v23 = vsel %vm21_vm1, %v7496_v50, 0.0 }
 0x2fb   :  { %v7498_v9 = vadd.f32 %v7434_v63, %v9213_v44  ;;  %v5108_v21 = vpop.f32.mrb[25].mxu0  ;;  %v5696_v57 = vadd.f32 %v5695_v30, %v5694_v3  ;;  %v5892_v40 = vadd.f32 %v5891_v16, %v5890_v41  ;;  %v5895_v19 = vsel %vm21_vm1, %v5809_v53, 0.0 }
 0x2fc   :  { %v7499_v62 = vadd.f32 %v5108_v21, %v9215_v15  ;;  %v7435_v27 = vpop.f32.mrb[26].mxu0 }
 0x2fd   :  { %v6384_v45 = vpack.c.bf16 %v7498_v9, %v7498_v9  ;;  %v5111_v44 = vpop.f32.mrb[27].mxu0  ;;  %v5894_v18 = vadd.f32 %v5893_v43, %v5892_v40  ;;  %v5698_v15 = vadd.f32 %v5697_v23, %v5696_v57  ;;  %v7500_v36 = vadd.f32 %v7435_v27, %v9217_v34 }
 0x2fe   :  { %v6382_v49 = vpack.c.bf16 %v7499_v62, %v7499_v62  ;;  %v5699_v22 = vsel %vm21_vm1, %v7499_v62, 0.0  ;;  %v5810_v1 = vmul.f32 %v7499_v62, %v7499_v62  ;;  %v7501_v47 = vadd.f32 %v5111_v44, %v9219_v13 }
 0x2ff   :  { %5614 = vst.msk [vmem:[%s9651_s4 + $0x68] sm:$0xf] %vm5587_vm4, %v6384_v45  ;;  %v5812_v33 = vmul.f32 %v7498_v9, %v7498_v9  ;;  %v5700_v35 = vadd.f32 %v5699_v22, %v5698_v15  ;;  %v5896_v58 = vadd.f32 %v5895_v19, %v5894_v18  ;;  %v6385_v20 = vpack.c.bf16 %v7500_v36, %v7500_v36 }
 0x300   :  { %5612 = vst.msk [vmem:[%s9651_s4 + $0x60] sm:$0xf] %vm5587_vm4, %v6382_v49  ;;  %v5897_v5 = vsel %vm21_vm1, %v5810_v1, 0.0  ;;  %v6383_v25 = vpack.c.bf16 %v7501_v47, %v7501_v47  ;;  %v5701_v39 = vsel %vm21_vm1, %v7501_v47, 0.0  ;;  %v5811_v31 = vmul.f32 %v7501_v47, %v7501_v47 }
 0x301   :  { %v5898_v60 = vadd.f32 %v5897_v5, %v5896_v58  ;;  %5615 = vst.msk [vmem:[%s9651_s4 + $0x6c] sm:$0xf] %vm5587_vm4, %v6385_v20  ;;  %v5702_v13 = vadd.f32 %v5701_v39, %v5700_v35  ;;  %v5703_v61 = vsel %vm21_vm1, %v7498_v9, 0.0  ;;  %v5813_v32 = vmul.f32 %v7500_v36, %v7500_v36 }
 0x302   :  { %v7438_v34 = vpop.f32.mrb[28].mxu0  ;;  %5613 = vst.msk [vmem:[%s9651_s4 + $0x64] sm:$0xf] %vm5587_vm4, %v6383_v25  ;;  %v5899_v37 = vsel %vm21_vm1, %v5811_v31, 0.0  ;;  %v5901_v17 = vsel %vm21_vm1, %v5812_v33, 0.0  ;;  %v5705_v38 = vsel %vm21_vm1, %v7500_v36, 0.0 }
 0x303   :  { %v7502_v14 = vadd.f32 %v7438_v34, %v9221_v52  ;;  %v5124_v55 = vpop.f32.mrb[29].mxu0  ;;  %v5704_v7 = vadd.f32 %v5703_v61, %v5702_v13  ;;  %v5900_v26 = vadd.f32 %v5899_v37, %v5898_v60  ;;  %v5903_v42 = vsel %vm21_vm1, %v5813_v32, 0.0 }
 0x304   :  { %v7503_v10 = vadd.f32 %v5124_v55, %v9223_v0  ;;  %v7439_v46 = vpop.f32.mrb[30].mxu0 }
 0x305   :  { %v6388_v54 = vpack.c.bf16 %v7502_v14, %v7502_v14  ;;  %v5127_v52 = vpop.f32.mrb[31].mxu0  ;;  %v5902_v2 = vadd.f32 %v5901_v17, %v5900_v26  ;;  %v5706_v0 = vadd.f32 %v5705_v38, %v5704_v7  ;;  %v7504_v12 = vadd.f32 %v7439_v46, %v9225_v48 }
 0x306   :  { %v6386_v51 = vpack.c.bf16 %v7503_v10, %v7503_v10  ;;  %v5707_v11 = vsel %vm21_vm1, %v7503_v10, 0.0  ;;  %v5814_v50 = vmul.f32 %v7503_v10, %v7503_v10  ;;  %v7505_v56 = vadd.f32 %v5127_v52, %v9227_v6 }
 0x307   :  { %5618 = vst.msk [vmem:[%s9651_s4 + $0x78] sm:$0xf] %vm5587_vm4, %v6388_v54  ;;  %v5816_v28 = vmul.f32 %v7502_v14, %v7502_v14  ;;  %v5708_v24 = vadd.f32 %v5707_v11, %v5706_v0  ;;  %v5904_v8 = vadd.f32 %v5903_v42, %v5902_v2  ;;  %v6389_v63 = vpack.c.bf16 %v7504_v12, %v7504_v12 }
 0x308   :  { %v7178_v4 = vpop.f32.mrb[32].mxu1  ;;  %5616 = vst.msk [vmem:[%s9651_s4 + $0x70] sm:$0xf] %vm5587_vm4, %v6386_v51  ;;  %v5905_v29 = vsel %vm21_vm1, %v5814_v50, 0.0  ;;  %v6387_v3 = vpack.c.bf16 %v7505_v56, %v7505_v56  ;;  %v5709_v48 = vsel %vm21_vm1, %v7505_v56, 0.0  ;;  %v5815_v6 = vmul.f32 %v7505_v56, %v7505_v56 }
 0x309   :  { %v2939_v59 = vpop.f32.mrb[33].mxu1  ;;  %v5906_v30 = vadd.f32 %v5905_v29, %v5904_v8  ;;  %5619 = vst.msk [vmem:[%s9651_s4 + $0x7c] sm:$0xf] %vm5587_vm4, %v6389_v63  ;;  %v5710_v53 = vadd.f32 %v5709_v48, %v5708_v24  ;;  %v5711_v27 = vsel %vm21_vm1, %v7502_v14, 0.0  ;;  %v5817_v43 = vmul.f32 %v7504_v12, %v7504_v12 }
 0x30a   :  { %v7179_v41 = vpop.f32.mrb[34].mxu1  ;;  %v7442_v9 = vpop.f32.mrb[32].mxu0  ;;  %5617 = vst.msk [vmem:[%s9651_s4 + $0x74] sm:$0xf] %vm5587_vm4, %v6387_v3  ;;  %v5907_v57 = vsel %vm21_vm1, %v5815_v6, 0.0  ;;  %v5909_v44 = vsel %vm21_vm1, %v5816_v28, 0.0 }
 0x30b   :  { %v2942_v21 = vpop.f32.mrb[35].mxu1  ;;  %v7506_v16 = vadd.f32 %v7442_v9, %v7178_v4  ;;  %v5140_v62 = vpop.f32.mrb[33].mxu0  ;;  %v5712_v23 = vadd.f32 %v5711_v27, %v5710_v53  ;;  %v5908_v49 = vadd.f32 %v5907_v57, %v5906_v30  ;;  %v5713_v18 = vsel %vm21_vm1, %v7504_v12, 0.0 }
 0x30c   :  { %v7507_v40 = vadd.f32 %v5140_v62, %v2939_v59  ;;  %v7443_v45 = vpop.f32.mrb[34].mxu0  ;;  %v5911_v20 = vsel %vm21_vm1, %v5817_v43, 0.0 }
 0x30d   :  { %v6392_v22 = vpack.c.bf16 %v7506_v16, %v7506_v16  ;;  %v5143_v1 = vpop.f32.mrb[35].mxu0  ;;  %v5910_v19 = vadd.f32 %v5909_v44, %v5908_v49  ;;  %v5714_v5 = vadd.f32 %v5713_v18, %v5712_v23  ;;  %v7508_v33 = vadd.f32 %v7443_v45, %v7179_v41 }
 0x30e   :  { %v6390_v15 = vpack.c.bf16 %v7507_v40, %v7507_v40  ;;  %v5715_v36 = vsel %vm21_vm1, %v7507_v40, 0.0  ;;  %v5818_v47 = vmul.f32 %v7507_v40, %v7507_v40  ;;  %v7509_v35 = vadd.f32 %v5143_v1, %v2942_v21 }
 0x30f   :  { %5622 = vst.msk [vmem:[%s9651_s4 + $0x88] sm:$0xf] %vm5587_vm4, %v6392_v22  ;;  %v5820_v31 = vmul.f32 %v7506_v16, %v7506_v16  ;;  %v5716_v34 = vadd.f32 %v5715_v36, %v5714_v5  ;;  %v5912_v60 = vadd.f32 %v5911_v20, %v5910_v19  ;;  %v6393_v13 = vpack.c.bf16 %v7508_v33, %v7508_v33 }
 0x310   :  { %v7182_v58 = vpop.f32.mrb[36].mxu1  ;;  %5620 = vst.msk [vmem:[%s9651_s4 + $0x80] sm:$0xf] %vm5587_vm4, %v6390_v15  ;;  %v5913_v25 = vsel %vm21_vm1, %v5818_v47, 0.0  ;;  %v6391_v55 = vpack.c.bf16 %v7509_v35, %v7509_v35  ;;  %v5717_v61 = vsel %vm21_vm1, %v7509_v35, 0.0  ;;  %v5819_v32 = vmul.f32 %v7509_v35, %v7509_v35 }
 0x311   :  { %v2955_v39 = vpop.f32.mrb[37].mxu1  ;;  %v5914_v46 = vadd.f32 %v5913_v25, %v5912_v60  ;;  %5623 = vst.msk [vmem:[%s9651_s4 + $0x8c] sm:$0xf] %vm5587_vm4, %v6393_v13  ;;  %v5718_v17 = vadd.f32 %v5717_v61, %v5716_v34  ;;  %v5719_v54 = vsel %vm21_vm1, %v7506_v16, 0.0  ;;  %v5821_v52 = vmul.f32 %v7508_v33, %v7508_v33 }
 0x312   :  { %v7183_v14 = vpop.f32.mrb[38].mxu1  ;;  %v7446_v37 = vpop.f32.mrb[36].mxu0  ;;  %5621 = vst.msk [vmem:[%s9651_s4 + $0x84] sm:$0xf] %vm5587_vm4, %v6391_v55  ;;  %v5915_v38 = vsel %vm21_vm1, %v5819_v32, 0.0  ;;  %v5917_v50 = vsel %vm21_vm1, %v5820_v31, 0.0 }
 0x313   :  { %v2958_v10 = vpop.f32.mrb[39].mxu1  ;;  %v7510_v7 = vadd.f32 %v7446_v37, %v7182_v58  ;;  %v5156_v26 = vpop.f32.mrb[37].mxu0  ;;  %v5720_v2 = vadd.f32 %v5719_v54, %v5718_v17  ;;  %v5916_v0 = vadd.f32 %v5915_v38, %v5914_v46  ;;  %v5721_v4 = vsel %vm21_vm1, %v7508_v33, 0.0 }
 0x314   :  { %v7511_v51 = vadd.f32 %v5156_v26, %v2955_v39  ;;  %v7447_v11 = vpop.f32.mrb[38].mxu0  ;;  %v5919_v3 = vsel %vm21_vm1, %v5821_v52, 0.0 }
 0x315   :  { %v6396_v12 = vpack.c.bf16 %v7510_v7, %v7510_v7  ;;  %v5159_v56 = vpop.f32.mrb[39].mxu0  ;;  %v5918_v28 = vadd.f32 %v5917_v50, %v5916_v0  ;;  %v5722_v24 = vadd.f32 %v5721_v4, %v5720_v2  ;;  %v7512_v8 = vadd.f32 %v7447_v11, %v7183_v14 }
 0x316   :  { %v6394_v42 = vpack.c.bf16 %v7511_v51, %v7511_v51  ;;  %v5723_v29 = vsel %vm21_vm1, %v7511_v51, 0.0  ;;  %v5822_v59 = vmul.f32 %v7511_v51, %v7511_v51  ;;  %v7513_v63 = vadd.f32 %v5159_v56, %v2958_v10 }
 0x317   :  { %5626 = vst.msk [vmem:[%s9651_s4 + $0x98] sm:$0xf] %vm5587_vm4, %v6396_v12  ;;  %v5824_v9 = vmul.f32 %v7510_v7, %v7510_v7  ;;  %v5724_v21 = vadd.f32 %v5723_v29, %v5722_v24  ;;  %v5920_v30 = vadd.f32 %v5919_v3, %v5918_v28  ;;  %v6397_v53 = vpack.c.bf16 %v7512_v8, %v7512_v8 }
 0x318   :  { %v7186_v41 = vpop.f32.mrb[40].mxu1  ;;  %5624 = vst.msk [vmem:[%s9651_s4 + $0x90] sm:$0xf] %vm5587_vm4, %v6394_v42  ;;  %v5921_v48 = vsel %vm21_vm1, %v5822_v59, 0.0  ;;  %v6395_v62 = vpack.c.bf16 %v7513_v63, %v7513_v63  ;;  %v5725_v27 = vsel %vm21_vm1, %v7513_v63, 0.0  ;;  %v5823_v43 = vmul.f32 %v7513_v63, %v7513_v63 }
 0x319   :  { %v2971_v6 = vpop.f32.mrb[41].mxu1  ;;  %v5922_v45 = vadd.f32 %v5921_v48, %v5920_v30  ;;  %5627 = vst.msk [vmem:[%s9651_s4 + $0x9c] sm:$0xf] %vm5587_vm4, %v6397_v53  ;;  %v5726_v44 = vadd.f32 %v5725_v27, %v5724_v21  ;;  %v5727_v22 = vsel %vm21_vm1, %v7510_v7, 0.0  ;;  %v5825_v1 = vmul.f32 %v7512_v8, %v7512_v8 }
 0x31a   :  { %v7187_v16 = vpop.f32.mrb[42].mxu1  ;;  %v7450_v57 = vpop.f32.mrb[40].mxu0  ;;  %5625 = vst.msk [vmem:[%s9651_s4 + $0x94] sm:$0xf] %vm5587_vm4, %v6395_v62  ;;  %v5923_v18 = vsel %vm21_vm1, %v5823_v43, 0.0  ;;  %v5925_v47 = vsel %vm21_vm1, %v5824_v9, 0.0 }
 0x31b   :  { %v2974_v40 = vpop.f32.mrb[43].mxu1  ;;  %v7514_v23 = vadd.f32 %v7450_v57, %v7186_v41  ;;  %v5172_v49 = vpop.f32.mrb[41].mxu0  ;;  %v5728_v19 = vadd.f32 %v5727_v22, %v5726_v44  ;;  %v5924_v5 = vadd.f32 %v5923_v18, %v5922_v45  ;;  %v5729_v58 = vsel %vm21_vm1, %v7512_v8, 0.0 }
 0x31c   :  { %v7515_v15 = vadd.f32 %v5172_v49, %v2971_v6  ;;  %v7451_v36 = vpop.f32.mrb[42].mxu0  ;;  %v5927_v55 = vsel %vm21_vm1, %v5825_v1, 0.0 }
 0x31d   :  { %v6400_v33 = vpack.c.bf16 %v7514_v23, %v7514_v23  ;;  %v5175_v35 = vpop.f32.mrb[43].mxu0  ;;  %v5926_v31 = vadd.f32 %v5925_v47, %v5924_v5  ;;  %v5730_v34 = vadd.f32 %v5729_v58, %v5728_v19  ;;  %v7516_v60 = vadd.f32 %v7451_v36, %v7187_v16 }
 0x31e   :  { %v6398_v20 = vpack.c.bf16 %v7515_v15, %v7515_v15  ;;  %v5731_v25 = vsel %vm21_vm1, %v7515_v15, 0.0  ;;  %v5826_v39 = vmul.f32 %v7515_v15, %v7515_v15  ;;  %v7517_v13 = vadd.f32 %v5175_v35, %v2974_v40 }
 0x31f   :  { %5630 = vst.msk [vmem:[%s9651_s4 + $0xa8] sm:$0xf] %vm5587_vm4, %v6400_v33  ;;  %v5828_v37 = vmul.f32 %v7514_v23, %v7514_v23  ;;  %v5732_v10 = vadd.f32 %v5731_v25, %v5730_v34  ;;  %v5928_v46 = vadd.f32 %v5927_v55, %v5926_v31  ;;  %v6401_v17 = vpack.c.bf16 %v7516_v60, %v7516_v60 }
 0x320   :  { %v7190_v14 = vpop.f32.mrb[44].mxu1  ;;  %5628 = vst.msk [vmem:[%s9651_s4 + $0xa0] sm:$0xf] %vm5587_vm4, %v6398_v20  ;;  %v5929_v61 = vsel %vm21_vm1, %v5826_v39, 0.0  ;;  %v6399_v26 = vpack.c.bf16 %v7517_v13, %v7517_v13  ;;  %v5733_v54 = vsel %vm21_vm1, %v7517_v13, 0.0  ;;  %v5827_v52 = vmul.f32 %v7517_v13, %v7517_v13 }
 0x321   :  { %v2987_v32 = vpop.f32.mrb[45].mxu1  ;;  %v5930_v11 = vadd.f32 %v5929_v61, %v5928_v46  ;;  %5631 = vst.msk [vmem:[%s9651_s4 + $0xac] sm:$0xf] %vm5587_vm4, %v6401_v17  ;;  %v5734_v50 = vadd.f32 %v5733_v54, %v5732_v10  ;;  %v5735_v12 = vsel %vm21_vm1, %v7514_v23, 0.0  ;;  %v5829_v56 = vmul.f32 %v7516_v60, %v7516_v60 }
 0x322   :  { %v7191_v7 = vpop.f32.mrb[46].mxu1  ;;  %v7454_v38 = vpop.f32.mrb[44].mxu0  ;;  %5629 = vst.msk [vmem:[%s9651_s4 + $0xa4] sm:$0xf] %vm5587_vm4, %v6399_v26  ;;  %v5931_v4 = vsel %vm21_vm1, %v5827_v52, 0.0  ;;  %v5933_v59 = vsel %vm21_vm1, %v5828_v37, 0.0 }
 0x323   :  { %v2990_v51 = vpop.f32.mrb[47].mxu1  ;;  %v7518_v2 = vadd.f32 %v7454_v38, %v7190_v14  ;;  %v5188_v0 = vpop.f32.mrb[45].mxu0  ;;  %v5736_v28 = vadd.f32 %v5735_v12, %v5734_v50  ;;  %v5932_v24 = vadd.f32 %v5931_v4, %v5930_v11  ;;  %v5737_v41 = vsel %vm21_vm1, %v7516_v60, 0.0 }
 0x324   :  { %v7519_v42 = vadd.f32 %v5188_v0, %v2987_v32  ;;  %v7455_v29 = vpop.f32.mrb[46].mxu0  ;;  %v5935_v62 = vsel %vm21_vm1, %v5829_v56, 0.0 }
 0x325   :  { %v6404_v8 = vpack.c.bf16 %v7518_v2, %v7518_v2  ;;  %v5191_v63 = vpop.f32.mrb[47].mxu0  ;;  %v5934_v9 = vadd.f32 %v5933_v59, %v5932_v24  ;;  %v5738_v21 = vadd.f32 %v5737_v41, %v5736_v28  ;;  %v7520_v30 = vadd.f32 %v7455_v29, %v7191_v7 }
 0x326   :  { %v6402_v3 = vpack.c.bf16 %v7519_v42, %v7519_v42  ;;  %v5739_v48 = vsel %vm21_vm1, %v7519_v42, 0.0  ;;  %v5830_v6 = vmul.f32 %v7519_v42, %v7519_v42  ;;  %v7521_v53 = vadd.f32 %v5191_v63, %v2990_v51 }
 0x327   :  { %5634 = vst.msk [vmem:[%s9651_s4 + $0xb8] sm:$0xf] %vm5587_vm4, %v6404_v8  ;;  %v5832_v57 = vmul.f32 %v7518_v2, %v7518_v2  ;;  %v5740_v40 = vadd.f32 %v5739_v48, %v5738_v21  ;;  %v5936_v45 = vadd.f32 %v5935_v62, %v5934_v9  ;;  %v6405_v44 = vpack.c.bf16 %v7520_v30, %v7520_v30 }
 0x328   :  { %v7194_v16 = vpop.f32.mrb[48].mxu1  ;;  %5632 = vst.msk [vmem:[%s9651_s4 + $0xb0] sm:$0xf] %vm5587_vm4, %v6402_v3  ;;  %v5937_v27 = vsel %vm21_vm1, %v5830_v6, 0.0  ;;  %v6403_v49 = vpack.c.bf16 %v7521_v53, %v7521_v53  ;;  %v5741_v22 = vsel %vm21_vm1, %v7521_v53, 0.0  ;;  %v5831_v1 = vmul.f32 %v7521_v53, %v7521_v53 }
 0x329   :  { %v3003_v43 = vpop.f32.mrb[49].mxu1  ;;  %v5938_v36 = vadd.f32 %v5937_v27, %v5936_v45  ;;  %5635 = vst.msk [vmem:[%s9651_s4 + $0xbc] sm:$0xf] %vm5587_vm4, %v6405_v44  ;;  %v5742_v47 = vadd.f32 %v5741_v22, %v5740_v40  ;;  %v5743_v33 = vsel %vm21_vm1, %v7518_v2, 0.0  ;;  %v5833_v35 = vmul.f32 %v7520_v30, %v7520_v30 }
 0x32a   :  { %v7195_v23 = vpop.f32.mrb[50].mxu1  ;;  %v7458_v18 = vpop.f32.mrb[48].mxu0  ;;  %5633 = vst.msk [vmem:[%s9651_s4 + $0xb4] sm:$0xf] %vm5587_vm4, %v6403_v49  ;;  %v5939_v58 = vsel %vm21_vm1, %v5831_v1, 0.0  ;;  %v5941_v39 = vsel %vm21_vm1, %v5832_v57, 0.0 }
 0x32b   :  { %v3006_v15 = vpop.f32.mrb[51].mxu1  ;;  %v7522_v19 = vadd.f32 %v7458_v18, %v7194_v16  ;;  %v5204_v5 = vpop.f32.mrb[49].mxu0  ;;  %v5744_v31 = vadd.f32 %v5743_v33, %v5742_v47  ;;  %v5940_v34 = vadd.f32 %v5939_v58, %v5938_v36  ;;  %v5745_v14 = vsel %vm21_vm1, %v7520_v30, 0.0 }
 0x32c   :  { %v7523_v20 = vadd.f32 %v5204_v5, %v3003_v43  ;;  %v7459_v25 = vpop.f32.mrb[50].mxu0  ;;  %v5943_v26 = vsel %vm21_vm1, %v5833_v35, 0.0 }
 0x32d   :  { %v6408_v60 = vpack.c.bf16 %v7522_v19, %v7522_v19  ;;  %v5207_v13 = vpop.f32.mrb[51].mxu0  ;;  %v5942_v37 = vadd.f32 %v5941_v39, %v5940_v34  ;;  %v5746_v10 = vadd.f32 %v5745_v14, %v5744_v31  ;;  %v7524_v46 = vadd.f32 %v7459_v25, %v7195_v23 }
 0x32e   :  { %v6406_v55 = vpack.c.bf16 %v7523_v20, %v7523_v20  ;;  %v5747_v61 = vsel %vm21_vm1, %v7523_v20, 0.0  ;;  %v5834_v32 = vmul.f32 %v7523_v20, %v7523_v20  ;;  %v7525_v17 = vadd.f32 %v5207_v13, %v3006_v15 }
 0x32f   :  { %5638 = vst.msk [vmem:[%s9651_s4 + $0xc8] sm:$0xf] %vm5587_vm4, %v6408_v60  ;;  %v5836_v38 = vmul.f32 %v7522_v19, %v7522_v19  ;;  %v5748_v51 = vadd.f32 %v5747_v61, %v5746_v10  ;;  %v5944_v11 = vadd.f32 %v5943_v26, %v5942_v37  ;;  %v6409_v50 = vpack.c.bf16 %v7524_v46, %v7524_v46 }
 0x330   :  { %v7198_v7 = vpop.f32.mrb[52].mxu1  ;;  %5636 = vst.msk [vmem:[%s9651_s4 + $0xc0] sm:$0xf] %vm5587_vm4, %v6406_v55  ;;  %v5945_v54 = vsel %vm21_vm1, %v5834_v32, 0.0  ;;  %v6407_v0 = vpack.c.bf16 %v7525_v17, %v7525_v17  ;;  %v5749_v12 = vsel %vm21_vm1, %v7525_v17, 0.0  ;;  %v5835_v56 = vmul.f32 %v7525_v17, %v7525_v17 }
 0x331   :  { %v3019_v52 = vpop.f32.mrb[53].mxu1  ;;  %v5946_v29 = vadd.f32 %v5945_v54, %v5944_v11  ;;  %5639 = vst.msk [vmem:[%s9651_s4 + $0xcc] sm:$0xf] %vm5587_vm4, %v6409_v50  ;;  %v5750_v59 = vadd.f32 %v5749_v12, %v5748_v51  ;;  %v5751_v8 = vsel %vm21_vm1, %v7522_v19, 0.0  ;;  %v5837_v63 = vmul.f32 %v7524_v46, %v7524_v46 }
 0x332   :  { %v7199_v2 = vpop.f32.mrb[54].mxu1  ;;  %v7462_v4 = vpop.f32.mrb[52].mxu0  ;;  %5637 = vst.msk [vmem:[%s9651_s4 + $0xc4] sm:$0xf] %vm5587_vm4, %v6407_v0  ;;  %v5947_v41 = vsel %vm21_vm1, %v5835_v56, 0.0  ;;  %v5949_v6 = vsel %vm21_vm1, %v5836_v38, 0.0 }
 0x333   :  { %v3022_v42 = vpop.f32.mrb[55].mxu1  ;;  %v7526_v28 = vadd.f32 %v7462_v4, %v7198_v7  ;;  %v5220_v24 = vpop.f32.mrb[53].mxu0  ;;  %v5752_v9 = vadd.f32 %v5751_v8, %v5750_v59  ;;  %v5948_v21 = vadd.f32 %v5947_v41, %v5946_v29  ;;  %v5753_v16 = vsel %vm21_vm1, %v7524_v46, 0.0 }
 0x334   :  { %v7527_v3 = vadd.f32 %v5220_v24, %v3019_v52  ;;  %v7463_v48 = vpop.f32.mrb[54].mxu0  ;;  %v5951_v49 = vsel %vm21_vm1, %v5837_v63, 0.0 }
 0x335   :  { %v6412_v30 = vpack.c.bf16 %v7526_v28, %v7526_v28  ;;  %v5223_v53 = vpop.f32.mrb[55].mxu0  ;;  %v5950_v57 = vadd.f32 %v5949_v6, %v5948_v21  ;;  %v5754_v40 = vadd.f32 %v5753_v16, %v5752_v9  ;;  %v7528_v45 = vadd.f32 %v7463_v48, %v7199_v2 }
 0x336   :  { %v6410_v62 = vpack.c.bf16 %v7527_v3, %v7527_v3  ;;  %v5755_v27 = vsel %vm21_vm1, %v7527_v3, 0.0  ;;  %v5838_v43 = vmul.f32 %v7527_v3, %v7527_v3  ;;  %v7529_v44 = vadd.f32 %v5223_v53, %v3022_v42 }
 0x337   :  { %5642 = vst.msk [vmem:[%s9651_s4 + $0xd8] sm:$0xf] %vm5587_vm4, %v6412_v30  ;;  %v5840_v18 = vmul.f32 %v7526_v28, %v7526_v28  ;;  %v5756_v15 = vadd.f32 %v5755_v27, %v5754_v40  ;;  %v5952_v36 = vadd.f32 %v5951_v49, %v5950_v57  ;;  %v6413_v47 = vpack.c.bf16 %v7528_v45, %v7528_v45 }
 0x338   :  { %v7202_v23 = vpop.f32.mrb[56].mxu1  ;;  %5640 = vst.msk [vmem:[%s9651_s4 + $0xd0] sm:$0xf] %vm5587_vm4, %v6410_v62  ;;  %v5953_v22 = vsel %vm21_vm1, %v5838_v43, 0.0  ;;  %v6411_v5 = vpack.c.bf16 %v7529_v44, %v7529_v44  ;;  %v5757_v33 = vsel %vm21_vm1, %v7529_v44, 0.0  ;;  %v5839_v35 = vmul.f32 %v7529_v44, %v7529_v44 }
 0x339   :  { %v3035_v1 = vpop.f32.mrb[57].mxu1  ;;  %v5954_v25 = vadd.f32 %v5953_v22, %v5952_v36  ;;  %5643 = vst.msk [vmem:[%s9651_s4 + $0xdc] sm:$0xf] %vm5587_vm4, %v6413_v47  ;;  %v5758_v39 = vadd.f32 %v5757_v33, %v5756_v15  ;;  %v5759_v60 = vsel %vm21_vm1, %v7526_v28, 0.0  ;;  %v5841_v13 = vmul.f32 %v7528_v45, %v7528_v45 }
 0x33a   :  { %v7203_v19 = vpop.f32.mrb[58].mxu1  ;;  %v7466_v58 = vpop.f32.mrb[56].mxu0  ;;  %5641 = vst.msk [vmem:[%s9651_s4 + $0xd4] sm:$0xf] %vm5587_vm4, %v6411_v5  ;;  %v5955_v14 = vsel %vm21_vm1, %v5839_v35, 0.0  ;;  %v5957_v32 = vsel %vm21_vm1, %v5840_v18, 0.0 }
 0x33b   :  { %v3038_v20 = vpop.f32.mrb[59].mxu1  ;;  %v7530_v31 = vadd.f32 %v7466_v58, %v7202_v23  ;;  %v5236_v34 = vpop.f32.mrb[57].mxu0  ;;  %v5760_v37 = vadd.f32 %v5759_v60, %v5758_v39  ;;  %v5956_v10 = vadd.f32 %v5955_v14, %v5954_v25  ;;  %v5761_v7 = vsel %vm21_vm1, %v7528_v45, 0.0 }
 0x33c   :  { %v7531_v55 = vadd.f32 %v5236_v34, %v3035_v1  ;;  %v7467_v61 = vpop.f32.mrb[58].mxu0  ;;  %v5959_v0 = vsel %vm21_vm1, %v5841_v13, 0.0 }
 0x33d   :  { %v6416_v46 = vpack.c.bf16 %v7530_v31, %v7530_v31  ;;  %v5239_v17 = vpop.f32.mrb[59].mxu0  ;;  %v5958_v38 = vadd.f32 %v5957_v32, %v5956_v10  ;;  %v5762_v51 = vadd.f32 %v5761_v7, %v5760_v37  ;;  %v7532_v11 = vadd.f32 %v7467_v61, %v7203_v19 }
 0x33e   :  { %v6414_v26 = vpack.c.bf16 %v7531_v55, %v7531_v55  ;;  %v5763_v54 = vsel %vm21_vm1, %v7531_v55, 0.0  ;;  %v5842_v52 = vmul.f32 %v7531_v55, %v7531_v55  ;;  %v7533_v50 = vadd.f32 %v5239_v17, %v3038_v20 }
 0x33f   :  { %5646 = vst.msk [vmem:[%s9651_s4 + $0xe8] sm:$0xf] %vm5587_vm4, %v6416_v46  ;;  %v5844_v4 = vmul.f32 %v7530_v31, %v7530_v31  ;;  %v5764_v42 = vadd.f32 %v5763_v54, %v5762_v51  ;;  %v5960_v29 = vadd.f32 %v5959_v0, %v5958_v38  ;;  %v6417_v59 = vpack.c.bf16 %v7532_v11, %v7532_v11 }
 0x340   :  { %v7206_v2 = vpop.f32.mrb[60].mxu1  ;;  %5644 = vst.msk [vmem:[%s9651_s4 + $0xe0] sm:$0xf] %vm5587_vm4, %v6414_v26  ;;  %v5961_v12 = vsel %vm21_vm1, %v5842_v52, 0.0  ;;  %v6415_v24 = vpack.c.bf16 %v7533_v50, %v7533_v50  ;;  %v5765_v8 = vsel %vm21_vm1, %v7533_v50, 0.0  ;;  %v5843_v63 = vmul.f32 %v7533_v50, %v7533_v50 }
 0x341   :  { %v3051_v56 = vpop.f32.mrb[61].mxu1  ;;  %v5962_v48 = vadd.f32 %v5961_v12, %v5960_v29  ;;  %5647 = vst.msk [vmem:[%s9651_s4 + $0xec] sm:$0xf] %vm5587_vm4, %v6417_v59  ;;  %v5766_v6 = vadd.f32 %v5765_v8, %v5764_v42  ;;  %v5767_v30 = vsel %vm21_vm1, %v7530_v31, 0.0  ;;  %v5845_v53 = vmul.f32 %v7532_v11, %v7532_v11 }
 0x342   :  { %v7207_v28 = vpop.f32.mrb[62].mxu1  ;;  %v7470_v41 = vpop.f32.mrb[60].mxu0  ;;  %5645 = vst.msk [vmem:[%s9651_s4 + $0xe4] sm:$0xf] %vm5587_vm4, %v6415_v24  ;;  %v5963_v16 = vsel %vm21_vm1, %v5843_v63, 0.0  ;;  %v5965_v43 = vsel %vm21_vm1, %v5844_v4, 0.0 }
 0x343   :  { %v3054_v3 = vpop.f32.mrb[63].mxu1  ;;  %v7534_v9 = vadd.f32 %v7470_v41, %v7206_v2  ;;  %v5252_v21 = vpop.f32.mrb[61].mxu0  ;;  %v5768_v57 = vadd.f32 %v5767_v30, %v5766_v6  ;;  %v5964_v40 = vadd.f32 %v5963_v16, %v5962_v48  ;;  %v5769_v23 = vsel %vm21_vm1, %v7532_v11, 0.0 }
 0x344   :  { %v7535_v62 = vadd.f32 %v5252_v21, %v3051_v56  ;;  %v7471_v27 = vpop.f32.mrb[62].mxu0  ;;  %v5967_v19 = vsel %vm21_vm1, %v5845_v53, 0.0 }
 0x345   :  { %v6420_v45 = vpack.c.bf16 %v7534_v9, %v7534_v9  ;;  %v5255_v44 = vpop.f32.mrb[63].mxu0  ;;  %v5966_v18 = vadd.f32 %v5965_v43, %v5964_v40  ;;  %v5770_v15 = vadd.f32 %v5769_v23, %v5768_v57  ;;  %v7536_v36 = vadd.f32 %v7471_v27, %v7207_v28 }
 0x346   :  { %v6418_v49 = vpack.c.bf16 %v7535_v62, %v7535_v62  ;;  %v5771_v22 = vsel %vm21_vm1, %v7535_v62, 0.0  ;;  %v5846_v1 = vmul.f32 %v7535_v62, %v7535_v62  ;;  %v7537_v47 = vadd.f32 %v5255_v44, %v3054_v3 }
 0x347   :  { %5650 = vst.msk [vmem:[%s9651_s4 + $0xf8] sm:$0xf] %vm5587_vm4, %v6420_v45  ;;  %v5772_v33 = vadd.f32 %v5771_v22, %v5770_v15  ;;  %v5968_v35 = vadd.f32 %v5967_v19, %v5966_v18  ;;  %v6421_v58 = vpack.c.bf16 %v7536_v36, %v7536_v36  ;;  %v5848_v20 = vmul.f32 %v7534_v9, %v7534_v9 }
 0x348   :  { %5648 = vst.msk [vmem:[%s9651_s4 + $0xf0] sm:$0xf] %vm5587_vm4, %v6418_v49  ;;  %v5969_v5 = vsel %vm21_vm1, %v5846_v1, 0.0  ;;  %v6419_v25 = vpack.c.bf16 %v7537_v47, %v7537_v47  ;;  %v5773_v39 = vsel %vm21_vm1, %v7537_v47, 0.0  ;;  %v5847_v31 = vmul.f32 %v7537_v47, %v7537_v47 }
 0x349   :  { %v5970_v34 = vadd.f32 %v5969_v5, %v5968_v35  ;;  %5651 = vst.msk [vmem:[%s9651_s4 + $0xfc] sm:$0xf] %vm5587_vm4, %v6421_v58  ;;  %v5774_v60 = vadd.f32 %v5773_v39, %v5772_v33  ;;  %v5775_v13 = vsel %vm21_vm1, %v7534_v9, 0.0  ;;  %v5849_v14 = vmul.f32 %v7536_v36, %v7536_v36 }
 0x34a   :  { %5649 = vst.msk [vmem:[%s9651_s4 + $0xf4] sm:$0xf] %vm5587_vm4, %v6419_v25  ;;  %v5971_v55 = vsel %vm21_vm1, %v5847_v31, 0.0  ;;  %v5973_v37 = vsel %vm21_vm1, %v5848_v20, 0.0  ;;  %v5777_v10 = vsel %vm21_vm1, %v7536_v36, 0.0 }
 0x34b   :  { %v5776_v61 = vadd.f32 %v5775_v13, %v5774_v60  ;;  %v5972_v32 = vadd.f32 %v5971_v55, %v5970_v34  ;;  %v5975_v7 = vsel %vm21_vm1, %v5849_v14, 0.0 }
 0x34d   :  { %v5778_v46 = vadd.f32 %v5777_v10, %v5776_v61  ;;  %v5974_v17 = vadd.f32 %v5973_v37, %v5972_v32 }
 0x34f   :  { %v5779_v26 = vrot.slane %v5778_v46, 4  ;;  %v5976_v54 = vadd.f32 %v5975_v7, %v5974_v17 }
 0x351   :  { %v5780_v52 = vadd.f32 %v5779_v26, %v5778_v46  ;;  %v5977_v38 = vrot.slane %v5976_v54, 4 }
 0x353   :  { %v5781_v51 = vrot.slane %v5780_v52, 2  ;;  %v5978_v11 = vadd.f32 %v5977_v38, %v5976_v54 }
 0x355   :  { %v5782_v50 = vadd.f32 %v5781_v51, %v5780_v52  ;;  %v5979_v2 = vrot.slane %v5978_v11, 2 }
 0x357   :  { %v5783_v0 = vrot.slane %v5782_v50, 1  ;;  %v5980_v12 = vadd.f32 %v5979_v2, %v5978_v11 }
 0x359   :  { %v5784_v56 = vadd.f32 %v5783_v0, %v5782_v50  ;;  %v5981_v4 = vrot.slane %v5980_v12, 1 }
 0x35b   :  { %5785 = vst.msk [vmem:[%s9652_s5] sm:$0x1] %vm36_vm3, %v5784_v56  ;;  %v5982_v42 = vadd.f32 %v5981_v4, %v5980_v12 }
 0x35d   :  { %5983 = vst.msk [vmem:[%s9653_s6] sm:$0x1] %vm36_vm3, %v5982_v42 }

</bundles_post_ra>
